<compile_context>
chip_gen: v7x
topology: tpu7x:2x2x1
jax: 0.10.0
libtpu: 0.0.40
codegen_flags: <defaults>
</compile_context>

<pallas_src>
import numpy as np
import jax
import jax.numpy as jnp
from jax.experimental import pallas as pl
from jax.experimental.pallas import tpu as pltpu

C = 128      # hidden width of the network
K = 3        # conv kernel size
KK = K * K   # taps per 3x3 conv
K1P = 16     # packed conv1-patch width: 9 samples + 1 bias/validity column + pad


def _out_size(s):
    # spatial size after Conv2d(kernel=3, stride=2, padding=1)
    return (s - 1) // 2 + 1


def _pad8(m):
    return max(8, ((m + 7) // 8) * 8)


def _full_spec(shape):
    # whole array as a single VMEM block (grid has one step)
    return pl.BlockSpec(shape, lambda i: (0,) * len(shape))


# ---------------------------------------------------------------------------
# Static (shape-only) tables built with numpy in the wrapper.
# ---------------------------------------------------------------------------
def _conv12_tables(n, h):
    """Index / validity tables for the fused conv1->conv2 im2col.

    Conv2 output pixels are enumerated in PARITY-GROUPED order:
      row = group*[n*hq*hq] + b*[hq*hq] + (oh2//2)*hq + (ow2//2),
      group = 2*(oh2%2) + (ow2%2), hq = s2//2.
    idx[t, r, j] is the flat index (into the input image padded by 3 at top/left)
    of conv1-tap j of the conv1 pixel feeding conv2-tap t at conv2 pixel r;
    invalid (padding-ring) pixels read only zero-pad samples.  valid[t, r] is the
    bias/validity column (1 for real conv1 pixels, 0 on the padding ring)."""
    s1 = _out_size(h)
    s2 = _out_size(s1)
    hq = s2 // 2
    hp = h + 3
    gs, bs, qrs, qcs = np.meshgrid(np.arange(4), np.arange(n), np.arange(hq),
                                   np.arange(hq), indexing="ij")
    eps = np.array([[0, 0], [0, 1], [1, 0], [1, 1]])
    oh2 = (2 * qrs + eps[gs.reshape(-1), 0].reshape(gs.shape)).reshape(-1)
    ow2 = (2 * qcs + eps[gs.reshape(-1), 1].reshape(gs.shape)).reshape(-1)
    b = bs.reshape(-1)
    m2 = oh2.shape[0]
    idx = np.zeros((KK, m2, KK), np.int32)
    valid = np.zeros((KK, m2), np.float32)
    for kh2 in range(K):
        for kw2 in range(K):
            t = kh2 * K + kw2
            oh1 = 2 * oh2 + kh2 - 1
            ow1 = 2 * ow2 + kw2 - 1
            valid[t] = ((oh1 >= 0) & (oh1 < s1) & (ow1 >= 0) & (ow1 < s1))
            for kh1 in range(K):
                for kw1 in range(K):
                    pr = 2 * oh1 + kh1 + 2        # row in the 3-padded input
                    pc = 2 * ow1 + kw1 + 2
                    idx[t, :, kh1 * K + kw1] = (b * hp + pr) * hp + pc
    return idx, valid, s2


def _shift_mats(n, hq):
    """One-hot row maps over (b, i, j) raster rows of an (n*hq*hq, C) block:
    S_h: out(b,i,j) <- in(b,i-1,j); S_w: <- in(b,i,j-1); S_hw: both (zero fill)."""
    m = n * hq * hq
    sh = np.zeros((m, m), np.float32)
    sw = np.zeros((m, m), np.float32)
    shw = np.zeros((m, m), np.float32)
    for b in range(n):
        for i in range(hq):
            for j in range(hq):
                r = (b * hq + i) * hq + j
                if i > 0:
                    sh[r, r - hq] = 1.0
                if j > 0:
                    sw[r, r - 1] = 1.0
                if i > 0 and j > 0:
                    shw[r, r - hq - 1] = 1.0
    return sh, sw, shw


def _tap_gather(n, s_in, rows_in, rows_out):
    """One-hot row-gather matrices (9, rows_out, rows_in) for a stride-2 pad-1
    3x3 conv whose input/output pixels are stored (b, h, w) row-major."""
    s_out = _out_size(s_in)
    g = np.zeros((KK, rows_out, rows_in), np.float32)
    for b in range(n):
        for oh in range(s_out):
            for ow in range(s_out):
                p = (b * s_out + oh) * s_out + ow
                for kh in range(K):
                    for kw in range(K):
                        ih = 2 * oh + kh - 1
                        iw = 2 * ow + kw - 1
                        if 0 <= ih < s_in and 0 <= iw < s_in:
                            g[kh * K + kw, p, (b * s_in + ih) * s_in + iw] = 1.0
    return g


# ---------------------------------------------------------------------------
# The fused kernel: the whole 7-layer network in one invocation.
# ---------------------------------------------------------------------------
def _fused_net_kernel(x1t_ref, w1_ref,
                      w2_ref, b2_ref,
                      sh_ref, sw_ref, shw_ref, w3_ref, b3_ref,
                      g4_ref, w4_ref, b4_ref,
                      g5_ref, w5_ref, b5_ref,
                      g6_ref, w6_ref, b6_ref,
                      g7_ref, w7_ref, b7_ref,
                      o_ref):
    f32, bf16 = jnp.float32, jnp.bfloat16

    # ---- conv1 (bias folded into K=16 patch, padding-ring rows are all-zero so
    # relu gives an exact 0), one small dot per conv2 tap; conv2 as ONE im2col
    # matmul with K = 1152. ----
    w1 = w1_ref[...]
    taps1 = []
    for t in range(KK):
        a1t = jnp.dot(x1t_ref[t], w1, preferred_element_type=f32)
        taps1.append(jnp.maximum(a1t, 0.0).astype(bf16))
    x2 = jnp.concatenate(taps1, axis=1)                        # (512, 1152)
    a2 = jnp.maximum(jnp.dot(x2, w2_ref[...], preferred_element_type=f32)
                     + b2_ref[...], 0.0)
    a = a2.astype(bf16)                                        # parity-grouped rows

    # ---- conv3: parity groups (aligned 128-row slices of a2) + three tiny
    # one-hot shift matmuls for the padding ring -> ONE K=1152 matmul. ----
    q = a.shape[0] // 4
    g_ee, g_eo, g_oe, g_oo = a[0:q], a[q:2 * q], a[2 * q:3 * q], a[3 * q:4 * q]
    sh, sw, shw = sh_ref[...], sw_ref[...], shw_ref[...]

    def shift(s, v):
        return jnp.dot(s, v, preferred_element_type=f32).astype(bf16)

    taps3 = [shift(shw, g_oo), shift(sh, g_oe), shift(sh, g_oo),
             shift(sw, g_eo), g_ee, g_eo,
             shift(sw, g_oo), g_oe, g_oo]
    x3 = jnp.concatenate(taps3, axis=1)                        # (128, 1152)
    a3 = jnp.maximum(jnp.dot(x3, w3_ref[...], preferred_element_type=f32)
                     + b3_ref[...], 0.0)
    a = a3.astype(bf16)                                        # (128,128), raster rows
    a_f32 = a3

    # ---- conv4..conv7: tiny one-hot row gathers per tap, then ONE K=1152
    # matmul per layer.  Padded output rows of conv6/conv7 hold relu(bias)
    # garbage but are never gathered downstream and are sliced off outside. ----
    for g_ref, w_ref, b_ref in ((g4_ref, w4_ref, b4_ref), (g5_ref, w5_ref, b5_ref),
                                (g6_ref, w6_ref, b6_ref), (g7_ref, w7_ref, b7_ref)):
        tapsl = [jnp.dot(g_ref[t], a, preferred_element_type=f32).astype(bf16)
                 for t in range(KK)]
        xl = jnp.concatenate(tapsl, axis=1)                    # (rows_out, 1152)
        a_f32 = jnp.maximum(jnp.dot(xl, w_ref[...], preferred_element_type=f32)
                            + b_ref[...], 0.0)
        a = a_f32.astype(bf16)

    o_ref[...] = a_f32                                         # (8, 128) f32, lane dense


# ---------------------------------------------------------------------------
# Wrapper
# ---------------------------------------------------------------------------
def init_params(key):
    """Synthetic init matching the module: xavier_uniform weights, PyTorch-default
    uniform biases.  Weight layout (KH, KW, Cin, Cout)."""
    chans = [(1, C), (C, C), (C, C), (C, C), (C, C), (C, C), (C, 2)]
    params = []
    for cin, cout in chans:
        key, kw_, kb_ = jax.random.split(key, 3)
        fan_in = cin * K * K
        fan_out = cout * K * K
        limit = (6.0 / (fan_in + fan_out)) ** 0.5
        w = jax.random.uniform(kw_, (K, K, cin, cout), jnp.float32, -limit, limit)
        bb = 1.0 / (fan_in ** 0.5)
        b = jax.random.uniform(kb_, (cout,), jnp.float32, -bb, bb)
        params.append((w, b))
    return params


def forward(params, x_nchw):
    n, cin, h, wd = x_nchw.shape
    assert cin == 1 and h == wd
    s1 = _out_size(h)
    s2 = _out_size(s1)
    assert s1 == 2 * s2 and s2 % 2 == 0, "parity tables assume even conv1/conv2 sizes"
    hq = s2 // 2

    # ---- static tables (shape-only, numpy) ----
    idx12, valid12, _ = _conv12_tables(n, h)
    m2 = idx12.shape[1]                                   # n * s2 * s2
    sh_np, sw_np, shw_np = _shift_mats(n, hq)

    g_np, rows_list = [], []
    s_in = _out_size(s2)                                  # conv3 output spatial
    rows_in = n * s_in * s_in
    for _ in range(4):                                    # conv4 .. conv7
        s_out = _out_size(s_in)
        rows_out = _pad8(n * s_out * s_out)
        g_np.append(_tap_gather(n, s_in, rows_in, rows_out))
        rows_list.append(rows_out)
        s_in, rows_in = s_out, rows_out

    # ---- kernel operands ----
    xpad = jnp.pad(x_nchw[:, 0], ((0, 0), (3, 0), (3, 0))).reshape(-1)
    samples = jnp.take(xpad, jnp.asarray(idx12), axis=0)            # (9, m2, 9) f32
    x1taps = jnp.concatenate(
        [samples, jnp.asarray(valid12)[..., None],
         jnp.zeros((KK, m2, K1P - KK - 1), jnp.float32)], axis=-1
    ).astype(jnp.bfloat16)                                          # (9, m2, 16)

    w1, b1 = params[0]
    w1e = jnp.concatenate(
        [w1.reshape(KK, C), b1.reshape(1, C),
         jnp.zeros((K1P - KK - 1, C), jnp.float32)], axis=0
    ).astype(jnp.bfloat16)                                          # (16, 128)

    wfs, bfs = [], []
    for wl, bl in params[1:]:
        cout = wl.shape[-1]
        wf = wl.reshape(KK * C, cout)                               # (1152, cout)
        bf_ = bl.reshape(1, cout)
        if cout < C:                                                # conv7: pad 2 -> 128
            wf = jnp.pad(wf, ((0, 0), (0, C - cout)))
            bf_ = jnp.pad(bf_, ((0, 0), (0, C - cout)))
        wfs.append(wf.astype(jnp.bfloat16))
        bfs.append(bf_.astype(jnp.float32))

    args = [x1taps, w1e,
            wfs[0], bfs[0],
            jnp.asarray(sh_np, jnp.bfloat16), jnp.asarray(sw_np, jnp.bfloat16),
            jnp.asarray(shw_np, jnp.bfloat16), wfs[1], bfs[1]]
    for i in range(4):
        args += [jnp.asarray(g_np[i], jnp.bfloat16), wfs[i + 2], bfs[i + 2]]

    rows_fin = rows_list[-1]
    out = pl.pallas_call(
        _fused_net_kernel,
        out_shape=jax.ShapeDtypeStruct((rows_fin, C), jnp.float32),
        grid=(1,),
        in_specs=[_full_spec(a.shape) for a in args],
        out_specs=_full_spec((rows_fin, C)),
        compiler_params=pltpu.CompilerParams(
            dimension_semantics=("arbitrary",),
            vmem_limit_bytes=48 * 1024 * 1024),
        cost_estimate=pl.CostEstimate(flops=260_000_000, transcendentals=0,
                                      bytes_accessed=2_200_000),
    )(*args)

    # unpad: real rows are the first n*s_fin*s_fin pixels, real channels = cout
    cout_fin = params[-1][0].shape[-1]
    s_fin = h
    for _ in range(7):
        s_fin = _out_size(s_fin)
    y = out[: n * s_fin * s_fin, :cout_fin].reshape(n, s_fin, s_fin, cout_fin)
    return jnp.transpose(y, (0, 3, 1, 2))                           # NHWC -> NCHW


if __name__ == "__main__":
    key = jax.random.PRNGKey(0)
    pkey, xkey = jax.random.split(key)
    params = init_params(pkey)
    # batch=2, 1 channel, 64x64: seven stride-2 convs: 64->32->16->8->4->2->1->1.
    x = jax.random.normal(xkey, (2, 1, 64, 64), jnp.float32)
    y = jax.jit(forward)(params, x)
    jax.block_until_ready(y)
    assert y.shape == (2, 2, 1, 1), y.shape
    assert bool(jnp.all(jnp.isfinite(y)))
    assert bool(jnp.all(y >= 0.0))      # final ReLU
    print("KERNEL_OK")
</pallas_src>

<mosaic_0001>
module attributes {stable_mosaic.version = 11 : i64} {
  func.func @_fused_net_kernel(%arg0: i32, %arg1: memref<9x512x16xbf16, #tpu.memory_space<vmem>>, %arg2: memref<16x128xbf16, #tpu.memory_space<vmem>>, %arg3: memref<1152x128xbf16, #tpu.memory_space<vmem>>, %arg4: memref<1x128xf32, #tpu.memory_space<vmem>>, %arg5: memref<128x128xbf16, #tpu.memory_space<vmem>>, %arg6: memref<128x128xbf16, #tpu.memory_space<vmem>>, %arg7: memref<128x128xbf16, #tpu.memory_space<vmem>>, %arg8: memref<1152x128xbf16, #tpu.memory_space<vmem>>, %arg9: memref<1x128xf32, #tpu.memory_space<vmem>>, %arg10: memref<9x32x128xbf16, #tpu.memory_space<vmem>>, %arg11: memref<1152x128xbf16, #tpu.memory_space<vmem>>, %arg12: memref<1x128xf32, #tpu.memory_space<vmem>>, %arg13: memref<9x8x32xbf16, #tpu.memory_space<vmem>>, %arg14: memref<1152x128xbf16, #tpu.memory_space<vmem>>, %arg15: memref<1x128xf32, #tpu.memory_space<vmem>>, %arg16: memref<9x8x8xbf16, #tpu.memory_space<vmem>>, %arg17: memref<1152x128xbf16, #tpu.memory_space<vmem>>, %arg18: memref<1x128xf32, #tpu.memory_space<vmem>>, %arg19: memref<9x8x8xbf16, #tpu.memory_space<vmem>>, %arg20: memref<1152x128xbf16, #tpu.memory_space<vmem>>, %arg21: memref<1x128xf32, #tpu.memory_space<vmem>>, %arg22: memref<8x128xf32, #tpu.memory_space<vmem>>) attributes {dimension_semantics = [#tpu.dimension_semantics<arbitrary>], iteration_bounds = array<i64: 1>, scalar_prefetch = 0 : i64, scratch_operands = 0 : i64, tpu.core_type = #tpu.core_type<tc>, window_params = [{pipeline_mode = #tpu.pipeline_mode<synchronous>, transform_indices = @transform_0, window_bounds = array<i64: 9, 512, 16>}, {pipeline_mode = #tpu.pipeline_mode<synchronous>, transform_indices = @transform_1, window_bounds = array<i64: 16, 128>}, {pipeline_mode = #tpu.pipeline_mode<synchronous>, transform_indices = @transform_2, window_bounds = array<i64: 1152, 128>}, {pipeline_mode = #tpu.pipeline_mode<synchronous>, transform_indices = @transform_3, window_bounds = array<i64: 1, 128>}, {pipeline_mode = #tpu.pipeline_mode<synchronous>, transform_indices = @transform_4, window_bounds = array<i64: 128, 128>}, {pipeline_mode = #tpu.pipeline_mode<synchronous>, transform_indices = @transform_5, window_bounds = array<i64: 128, 128>}, {pipeline_mode = #tpu.pipeline_mode<synchronous>, transform_indices = @transform_6, window_bounds = array<i64: 128, 128>}, {pipeline_mode = #tpu.pipeline_mode<synchronous>, transform_indices = @transform_7, window_bounds = array<i64: 1152, 128>}, {pipeline_mode = #tpu.pipeline_mode<synchronous>, transform_indices = @transform_8, window_bounds = array<i64: 1, 128>}, {pipeline_mode = #tpu.pipeline_mode<synchronous>, transform_indices = @transform_9, window_bounds = array<i64: 9, 32, 128>}, {pipeline_mode = #tpu.pipeline_mode<synchronous>, transform_indices = @transform_10, window_bounds = array<i64: 1152, 128>}, {pipeline_mode = #tpu.pipeline_mode<synchronous>, transform_indices = @transform_11, window_bounds = array<i64: 1, 128>}, {pipeline_mode = #tpu.pipeline_mode<synchronous>, transform_indices = @transform_12, window_bounds = array<i64: 9, 8, 32>}, {pipeline_mode = #tpu.pipeline_mode<synchronous>, transform_indices = @transform_13, window_bounds = array<i64: 1152, 128>}, {pipeline_mode = #tpu.pipeline_mode<synchronous>, transform_indices = @transform_14, window_bounds = array<i64: 1, 128>}, {pipeline_mode = #tpu.pipeline_mode<synchronous>, transform_indices = @transform_15, window_bounds = array<i64: 9, 8, 8>}, {pipeline_mode = #tpu.pipeline_mode<synchronous>, transform_indices = @transform_16, window_bounds = array<i64: 1152, 128>}, {pipeline_mode = #tpu.pipeline_mode<synchronous>, transform_indices = @transform_17, window_bounds = array<i64: 1, 128>}, {pipeline_mode = #tpu.pipeline_mode<synchronous>, transform_indices = @transform_18, window_bounds = array<i64: 9, 8, 8>}, {pipeline_mode = #tpu.pipeline_mode<synchronous>, transform_indices = @transform_19, window_bounds = array<i64: 1152, 128>}, {pipeline_mode = #tpu.pipeline_mode<synchronous>, transform_indices = @transform_20, window_bounds = array<i64: 1, 128>}, {pipeline_mode = #tpu.pipeline_mode<synchronous>, transform_indices = @transform_21, window_bounds = array<i64: 8, 128>}]} {
    %c0 = arith.constant 0 : index
    %c0_0 = arith.constant 0 : index
    %0 = vector.load %arg2[%c0, %c0_0] : memref<16x128xbf16, #tpu.memory_space<vmem>>, vector<16x128xbf16>
    %c0_1 = arith.constant 0 : index
    %c0_2 = arith.constant 0 : index
    %c0_3 = arith.constant 0 : index
    %1 = vector.load %arg1[%c0_1, %c0_2, %c0_3] : memref<9x512x16xbf16, #tpu.memory_space<vmem>>, vector<1x512x16xbf16>
    %2 = vector.shape_cast %1 : vector<1x512x16xbf16> to vector<512x16xbf16>
    %cst = arith.constant dense<0.000000e+00> : vector<512x128xf32>
    %3 = tpu.matmul %2, %0, %cst {dimension_numbers = #tpu.dot_dimension_numbers<[1], [0], [0], [1], [0, 0, 1, 1], [], []>} : vector<512x16xbf16>, vector<16x128xbf16>, vector<512x128xf32> -> vector<512x128xf32>
    %cst_4 = arith.constant 0.000000e+00 : f32
    %4 = vector.broadcast %cst_4 : f32 to vector<512x128xf32>
    %5 = arith.maximumf %3, %4 : vector<512x128xf32>
    %6 = arith.truncf %5 : vector<512x128xf32> to vector<512x128xbf16>
    %c1 = arith.constant 1 : index
    %c0_5 = arith.constant 0 : index
    %c0_6 = arith.constant 0 : index
    %7 = vector.load %arg1[%c1, %c0_5, %c0_6] : memref<9x512x16xbf16, #tpu.memory_space<vmem>>, vector<1x512x16xbf16>
    %8 = vector.shape_cast %7 : vector<1x512x16xbf16> to vector<512x16xbf16>
    %cst_7 = arith.constant dense<0.000000e+00> : vector<512x128xf32>
    %9 = tpu.matmul %8, %0, %cst_7 {dimension_numbers = #tpu.dot_dimension_numbers<[1], [0], [0], [1], [0, 0, 1, 1], [], []>} : vector<512x16xbf16>, vector<16x128xbf16>, vector<512x128xf32> -> vector<512x128xf32>
    %cst_8 = arith.constant 0.000000e+00 : f32
    %10 = vector.broadcast %cst_8 : f32 to vector<512x128xf32>
    %11 = arith.maximumf %9, %10 : vector<512x128xf32>
    %12 = arith.truncf %11 : vector<512x128xf32> to vector<512x128xbf16>
    %c2 = arith.constant 2 : index
    %c0_9 = arith.constant 0 : index
    %c0_10 = arith.constant 0 : index
    %13 = vector.load %arg1[%c2, %c0_9, %c0_10] : memref<9x512x16xbf16, #tpu.memory_space<vmem>>, vector<1x512x16xbf16>
    %14 = vector.shape_cast %13 : vector<1x512x16xbf16> to vector<512x16xbf16>
    %cst_11 = arith.constant dense<0.000000e+00> : vector<512x128xf32>
    %15 = tpu.matmul %14, %0, %cst_11 {dimension_numbers = #tpu.dot_dimension_numbers<[1], [0], [0], [1], [0, 0, 1, 1], [], []>} : vector<512x16xbf16>, vector<16x128xbf16>, vector<512x128xf32> -> vector<512x128xf32>
    %cst_12 = arith.constant 0.000000e+00 : f32
    %16 = vector.broadcast %cst_12 : f32 to vector<512x128xf32>
    %17 = arith.maximumf %15, %16 : vector<512x128xf32>
    %18 = arith.truncf %17 : vector<512x128xf32> to vector<512x128xbf16>
    %c3 = arith.constant 3 : index
    %c0_13 = arith.constant 0 : index
    %c0_14 = arith.constant 0 : index
    %19 = vector.load %arg1[%c3, %c0_13, %c0_14] : memref<9x512x16xbf16, #tpu.memory_space<vmem>>, vector<1x512x16xbf16>
    %20 = vector.shape_cast %19 : vector<1x512x16xbf16> to vector<512x16xbf16>
    %cst_15 = arith.constant dense<0.000000e+00> : vector<512x128xf32>
    %21 = tpu.matmul %20, %0, %cst_15 {dimension_numbers = #tpu.dot_dimension_numbers<[1], [0], [0], [1], [0, 0, 1, 1], [], []>} : vector<512x16xbf16>, vector<16x128xbf16>, vector<512x128xf32> -> vector<512x128xf32>
    %cst_16 = arith.constant 0.000000e+00 : f32
    %22 = vector.broadcast %cst_16 : f32 to vector<512x128xf32>
    %23 = arith.maximumf %21, %22 : vector<512x128xf32>
    %24 = arith.truncf %23 : vector<512x128xf32> to vector<512x128xbf16>
    %c4 = arith.constant 4 : index
    %c0_17 = arith.constant 0 : index
    %c0_18 = arith.constant 0 : index
    %25 = vector.load %arg1[%c4, %c0_17, %c0_18] : memref<9x512x16xbf16, #tpu.memory_space<vmem>>, vector<1x512x16xbf16>
    %26 = vector.shape_cast %25 : vector<1x512x16xbf16> to vector<512x16xbf16>
    %cst_19 = arith.constant dense<0.000000e+00> : vector<512x128xf32>
    %27 = tpu.matmul %26, %0, %cst_19 {dimension_numbers = #tpu.dot_dimension_numbers<[1], [0], [0], [1], [0, 0, 1, 1], [], []>} : vector<512x16xbf16>, vector<16x128xbf16>, vector<512x128xf32> -> vector<512x128xf32>
    %cst_20 = arith.constant 0.000000e+00 : f32
    %28 = vector.broadcast %cst_20 : f32 to vector<512x128xf32>
    %29 = arith.maximumf %27, %28 : vector<512x128xf32>
    %30 = arith.truncf %29 : vector<512x128xf32> to vector<512x128xbf16>
    %c5 = arith.constant 5 : index
    %c0_21 = arith.constant 0 : index
    %c0_22 = arith.constant 0 : index
    %31 = vector.load %arg1[%c5, %c0_21, %c0_22] : memref<9x512x16xbf16, #tpu.memory_space<vmem>>, vector<1x512x16xbf16>
    %32 = vector.shape_cast %31 : vector<1x512x16xbf16> to vector<512x16xbf16>
    %cst_23 = arith.constant dense<0.000000e+00> : vector<512x128xf32>
    %33 = tpu.matmul %32, %0, %cst_23 {dimension_numbers = #tpu.dot_dimension_numbers<[1], [0], [0], [1], [0, 0, 1, 1], [], []>} : vector<512x16xbf16>, vector<16x128xbf16>, vector<512x128xf32> -> vector<512x128xf32>
    %cst_24 = arith.constant 0.000000e+00 : f32
    %34 = vector.broadcast %cst_24 : f32 to vector<512x128xf32>
    %35 = arith.maximumf %33, %34 : vector<512x128xf32>
    %36 = arith.truncf %35 : vector<512x128xf32> to vector<512x128xbf16>
    %c6 = arith.constant 6 : index
    %c0_25 = arith.constant 0 : index
    %c0_26 = arith.constant 0 : index
    %37 = vector.load %arg1[%c6, %c0_25, %c0_26] : memref<9x512x16xbf16, #tpu.memory_space<vmem>>, vector<1x512x16xbf16>
    %38 = vector.shape_cast %37 : vector<1x512x16xbf16> to vector<512x16xbf16>
    %cst_27 = arith.constant dense<0.000000e+00> : vector<512x128xf32>
    %39 = tpu.matmul %38, %0, %cst_27 {dimension_numbers = #tpu.dot_dimension_numbers<[1], [0], [0], [1], [0, 0, 1, 1], [], []>} : vector<512x16xbf16>, vector<16x128xbf16>, vector<512x128xf32> -> vector<512x128xf32>
    %cst_28 = arith.constant 0.000000e+00 : f32
    %40 = vector.broadcast %cst_28 : f32 to vector<512x128xf32>
    %41 = arith.maximumf %39, %40 : vector<512x128xf32>
    %42 = arith.truncf %41 : vector<512x128xf32> to vector<512x128xbf16>
    %c7 = arith.constant 7 : index
    %c0_29 = arith.constant 0 : index
    %c0_30 = arith.constant 0 : index
    %43 = vector.load %arg1[%c7, %c0_29, %c0_30] : memref<9x512x16xbf16, #tpu.memory_space<vmem>>, vector<1x512x16xbf16>
    %44 = vector.shape_cast %43 : vector<1x512x16xbf16> to vector<512x16xbf16>
    %cst_31 = arith.constant dense<0.000000e+00> : vector<512x128xf32>
    %45 = tpu.matmul %44, %0, %cst_31 {dimension_numbers = #tpu.dot_dimension_numbers<[1], [0], [0], [1], [0, 0, 1, 1], [], []>} : vector<512x16xbf16>, vector<16x128xbf16>, vector<512x128xf32> -> vector<512x128xf32>
    %cst_32 = arith.constant 0.000000e+00 : f32
    %46 = vector.broadcast %cst_32 : f32 to vector<512x128xf32>
    %47 = arith.maximumf %45, %46 : vector<512x128xf32>
    %48 = arith.truncf %47 : vector<512x128xf32> to vector<512x128xbf16>
    %c8 = arith.constant 8 : index
    %c0_33 = arith.constant 0 : index
    %c0_34 = arith.constant 0 : index
    %49 = vector.load %arg1[%c8, %c0_33, %c0_34] : memref<9x512x16xbf16, #tpu.memory_space<vmem>>, vector<1x512x16xbf16>
    %50 = vector.shape_cast %49 : vector<1x512x16xbf16> to vector<512x16xbf16>
    %cst_35 = arith.constant dense<0.000000e+00> : vector<512x128xf32>
    %51 = tpu.matmul %50, %0, %cst_35 {dimension_numbers = #tpu.dot_dimension_numbers<[1], [0], [0], [1], [0, 0, 1, 1], [], []>} : vector<512x16xbf16>, vector<16x128xbf16>, vector<512x128xf32> -> vector<512x128xf32>
    %cst_36 = arith.constant 0.000000e+00 : f32
    %52 = vector.broadcast %cst_36 : f32 to vector<512x128xf32>
    %53 = arith.maximumf %51, %52 : vector<512x128xf32>
    %54 = arith.truncf %53 : vector<512x128xf32> to vector<512x128xbf16>
    %55 = tpu.concatenate %6, %12, %18, %24, %30, %36, %42, %48, %54 in 1 : vector<512x128xbf16>, vector<512x128xbf16>, vector<512x128xbf16>, vector<512x128xbf16>, vector<512x128xbf16>, vector<512x128xbf16>, vector<512x128xbf16>, vector<512x128xbf16>, vector<512x128xbf16> -> vector<512x1152xbf16>
    %c0_37 = arith.constant 0 : index
    %c0_38 = arith.constant 0 : index
    %56 = vector.load %arg3[%c0_37, %c0_38] : memref<1152x128xbf16, #tpu.memory_space<vmem>>, vector<1152x128xbf16>
    %cst_39 = arith.constant dense<0.000000e+00> : vector<512x128xf32>
    %57 = tpu.matmul %55, %56, %cst_39 {dimension_numbers = #tpu.dot_dimension_numbers<[1], [0], [0], [1], [0, 0, 1, 1], [], []>} : vector<512x1152xbf16>, vector<1152x128xbf16>, vector<512x128xf32> -> vector<512x128xf32>
    %c0_40 = arith.constant 0 : index
    %c0_41 = arith.constant 0 : index
    %58 = vector.load %arg4[%c0_40, %c0_41] : memref<1x128xf32, #tpu.memory_space<vmem>>, vector<1x128xf32>
    %59 = vector.broadcast %58 : vector<1x128xf32> to vector<512x128xf32>
    %60 = arith.addf %57, %59 : vector<512x128xf32>
    %cst_42 = arith.constant 0.000000e+00 : f32
    %61 = vector.broadcast %cst_42 : f32 to vector<512x128xf32>
    %62 = arith.maximumf %60, %61 : vector<512x128xf32>
    %63 = arith.truncf %62 : vector<512x128xf32> to vector<512x128xbf16>
    %64 = vector.extract_strided_slice %63 {offsets = [0, 0], sizes = [128, 128], strides = [1, 1]} : vector<512x128xbf16> to vector<128x128xbf16>
    %65 = vector.extract_strided_slice %63 {offsets = [128, 0], sizes = [128, 128], strides = [1, 1]} : vector<512x128xbf16> to vector<128x128xbf16>
    %66 = vector.extract_strided_slice %63 {offsets = [256, 0], sizes = [128, 128], strides = [1, 1]} : vector<512x128xbf16> to vector<128x128xbf16>
    %67 = vector.extract_strided_slice %63 {offsets = [384, 0], sizes = [128, 128], strides = [1, 1]} : vector<512x128xbf16> to vector<128x128xbf16>
    %c0_43 = arith.constant 0 : index
    %c0_44 = arith.constant 0 : index
    %68 = vector.load %arg5[%c0_43, %c0_44] : memref<128x128xbf16, #tpu.memory_space<vmem>>, vector<128x128xbf16>
    %c0_45 = arith.constant 0 : index
    %c0_46 = arith.constant 0 : index
    %69 = vector.load %arg6[%c0_45, %c0_46] : memref<128x128xbf16, #tpu.memory_space<vmem>>, vector<128x128xbf16>
    %c0_47 = arith.constant 0 : index
    %c0_48 = arith.constant 0 : index
    %70 = vector.load %arg7[%c0_47, %c0_48] : memref<128x128xbf16, #tpu.memory_space<vmem>>, vector<128x128xbf16>
    %cst_49 = arith.constant dense<0.000000e+00> : vector<128x128xf32>
    %71 = tpu.matmul %70, %67, %cst_49 {dimension_numbers = #tpu.dot_dimension_numbers<[1], [0], [0], [1], [0, 0, 1, 1], [], []>} : vector<128x128xbf16>, vector<128x128xbf16>, vector<128x128xf32> -> vector<128x128xf32>
    %72 = arith.truncf %71 : vector<128x128xf32> to vector<128x128xbf16>
    %cst_50 = arith.constant dense<0.000000e+00> : vector<128x128xf32>
    %73 = tpu.matmul %68, %66, %cst_50 {dimension_numbers = #tpu.dot_dimension_numbers<[1], [0], [0], [1], [0, 0, 1, 1], [], []>} : vector<128x128xbf16>, vector<128x128xbf16>, vector<128x128xf32> -> vector<128x128xf32>
    %74 = arith.truncf %73 : vector<128x128xf32> to vector<128x128xbf16>
    %cst_51 = arith.constant dense<0.000000e+00> : vector<128x128xf32>
    %75 = tpu.matmul %68, %67, %cst_51 {dimension_numbers = #tpu.dot_dimension_numbers<[1], [0], [0], [1], [0, 0, 1, 1], [], []>} : vector<128x128xbf16>, vector<128x128xbf16>, vector<128x128xf32> -> vector<128x128xf32>
    %76 = arith.truncf %75 : vector<128x128xf32> to vector<128x128xbf16>
    %cst_52 = arith.constant dense<0.000000e+00> : vector<128x128xf32>
    %77 = tpu.matmul %69, %65, %cst_52 {dimension_numbers = #tpu.dot_dimension_numbers<[1], [0], [0], [1], [0, 0, 1, 1], [], []>} : vector<128x128xbf16>, vector<128x128xbf16>, vector<128x128xf32> -> vector<128x128xf32>
    %78 = arith.truncf %77 : vector<128x128xf32> to vector<128x128xbf16>
    %cst_53 = arith.constant dense<0.000000e+00> : vector<128x128xf32>
    %79 = tpu.matmul %69, %67, %cst_53 {dimension_numbers = #tpu.dot_dimension_numbers<[1], [0], [0], [1], [0, 0, 1, 1], [], []>} : vector<128x128xbf16>, vector<128x128xbf16>, vector<128x128xf32> -> vector<128x128xf32>
    %80 = arith.truncf %79 : vector<128x128xf32> to vector<128x128xbf16>
    %81 = tpu.concatenate %72, %74, %76, %78, %64, %65, %80, %66, %67 in 1 : vector<128x128xbf16>, vector<128x128xbf16>, vector<128x128xbf16>, vector<128x128xbf16>, vector<128x128xbf16>, vector<128x128xbf16>, vector<128x128xbf16>, vector<128x128xbf16>, vector<128x128xbf16> -> vector<128x1152xbf16>
    %c0_54 = arith.constant 0 : index
    %c0_55 = arith.constant 0 : index
    %82 = vector.load %arg8[%c0_54, %c0_55] : memref<1152x128xbf16, #tpu.memory_space<vmem>>, vector<1152x128xbf16>
    %cst_56 = arith.constant dense<0.000000e+00> : vector<128x128xf32>
    %83 = tpu.matmul %81, %82, %cst_56 {dimension_numbers = #tpu.dot_dimension_numbers<[1], [0], [0], [1], [0, 0, 1, 1], [], []>} : vector<128x1152xbf16>, vector<1152x128xbf16>, vector<128x128xf32> -> vector<128x128xf32>
    %c0_57 = arith.constant 0 : index
    %c0_58 = arith.constant 0 : index
    %84 = vector.load %arg9[%c0_57, %c0_58] : memref<1x128xf32, #tpu.memory_space<vmem>>, vector<1x128xf32>
    %85 = vector.broadcast %84 : vector<1x128xf32> to vector<128x128xf32>
    %86 = arith.addf %83, %85 : vector<128x128xf32>
    %cst_59 = arith.constant 0.000000e+00 : f32
    %87 = vector.broadcast %cst_59 : f32 to vector<128x128xf32>
    %88 = arith.maximumf %86, %87 : vector<128x128xf32>
    %89 = arith.truncf %88 : vector<128x128xf32> to vector<128x128xbf16>
    %c0_60 = arith.constant 0 : index
    %c0_61 = arith.constant 0 : index
    %c0_62 = arith.constant 0 : index
    %90 = vector.load %arg10[%c0_60, %c0_61, %c0_62] : memref<9x32x128xbf16, #tpu.memory_space<vmem>>, vector<1x32x128xbf16>
    %91 = vector.shape_cast %90 : vector<1x32x128xbf16> to vector<32x128xbf16>
    %cst_63 = arith.constant dense<0.000000e+00> : vector<32x128xf32>
    %92 = tpu.matmul %91, %89, %cst_63 {dimension_numbers = #tpu.dot_dimension_numbers<[1], [0], [0], [1], [0, 0, 1, 1], [], []>} : vector<32x128xbf16>, vector<128x128xbf16>, vector<32x128xf32> -> vector<32x128xf32>
    %93 = arith.truncf %92 : vector<32x128xf32> to vector<32x128xbf16>
    %c1_64 = arith.constant 1 : index
    %c0_65 = arith.constant 0 : index
    %c0_66 = arith.constant 0 : index
    %94 = vector.load %arg10[%c1_64, %c0_65, %c0_66] : memref<9x32x128xbf16, #tpu.memory_space<vmem>>, vector<1x32x128xbf16>
    %95 = vector.shape_cast %94 : vector<1x32x128xbf16> to vector<32x128xbf16>
    %cst_67 = arith.constant dense<0.000000e+00> : vector<32x128xf32>
    %96 = tpu.matmul %95, %89, %cst_67 {dimension_numbers = #tpu.dot_dimension_numbers<[1], [0], [0], [1], [0, 0, 1, 1], [], []>} : vector<32x128xbf16>, vector<128x128xbf16>, vector<32x128xf32> -> vector<32x128xf32>
    %97 = arith.truncf %96 : vector<32x128xf32> to vector<32x128xbf16>
    %c2_68 = arith.constant 2 : index
    %c0_69 = arith.constant 0 : index
    %c0_70 = arith.constant 0 : index
    %98 = vector.load %arg10[%c2_68, %c0_69, %c0_70] : memref<9x32x128xbf16, #tpu.memory_space<vmem>>, vector<1x32x128xbf16>
    %99 = vector.shape_cast %98 : vector<1x32x128xbf16> to vector<32x128xbf16>
    %cst_71 = arith.constant dense<0.000000e+00> : vector<32x128xf32>
    %100 = tpu.matmul %99, %89, %cst_71 {dimension_numbers = #tpu.dot_dimension_numbers<[1], [0], [0], [1], [0, 0, 1, 1], [], []>} : vector<32x128xbf16>, vector<128x128xbf16>, vector<32x128xf32> -> vector<32x128xf32>
    %101 = arith.truncf %100 : vector<32x128xf32> to vector<32x128xbf16>
    %c3_72 = arith.constant 3 : index
    %c0_73 = arith.constant 0 : index
    %c0_74 = arith.constant 0 : index
    %102 = vector.load %arg10[%c3_72, %c0_73, %c0_74] : memref<9x32x128xbf16, #tpu.memory_space<vmem>>, vector<1x32x128xbf16>
    %103 = vector.shape_cast %102 : vector<1x32x128xbf16> to vector<32x128xbf16>
    %cst_75 = arith.constant dense<0.000000e+00> : vector<32x128xf32>
    %104 = tpu.matmul %103, %89, %cst_75 {dimension_numbers = #tpu.dot_dimension_numbers<[1], [0], [0], [1], [0, 0, 1, 1], [], []>} : vector<32x128xbf16>, vector<128x128xbf16>, vector<32x128xf32> -> vector<32x128xf32>
    %105 = arith.truncf %104 : vector<32x128xf32> to vector<32x128xbf16>
    %c4_76 = arith.constant 4 : index
    %c0_77 = arith.constant 0 : index
    %c0_78 = arith.constant 0 : index
    %106 = vector.load %arg10[%c4_76, %c0_77, %c0_78] : memref<9x32x128xbf16, #tpu.memory_space<vmem>>, vector<1x32x128xbf16>
    %107 = vector.shape_cast %106 : vector<1x32x128xbf16> to vector<32x128xbf16>
    %cst_79 = arith.constant dense<0.000000e+00> : vector<32x128xf32>
    %108 = tpu.matmul %107, %89, %cst_79 {dimension_numbers = #tpu.dot_dimension_numbers<[1], [0], [0], [1], [0, 0, 1, 1], [], []>} : vector<32x128xbf16>, vector<128x128xbf16>, vector<32x128xf32> -> vector<32x128xf32>
    %109 = arith.truncf %108 : vector<32x128xf32> to vector<32x128xbf16>
    %c5_80 = arith.constant 5 : index
    %c0_81 = arith.constant 0 : index
    %c0_82 = arith.constant 0 : index
    %110 = vector.load %arg10[%c5_80, %c0_81, %c0_82] : memref<9x32x128xbf16, #tpu.memory_space<vmem>>, vector<1x32x128xbf16>
    %111 = vector.shape_cast %110 : vector<1x32x128xbf16> to vector<32x128xbf16>
    %cst_83 = arith.constant dense<0.000000e+00> : vector<32x128xf32>
    %112 = tpu.matmul %111, %89, %cst_83 {dimension_numbers = #tpu.dot_dimension_numbers<[1], [0], [0], [1], [0, 0, 1, 1], [], []>} : vector<32x128xbf16>, vector<128x128xbf16>, vector<32x128xf32> -> vector<32x128xf32>
    %113 = arith.truncf %112 : vector<32x128xf32> to vector<32x128xbf16>
    %c6_84 = arith.constant 6 : index
    %c0_85 = arith.constant 0 : index
    %c0_86 = arith.constant 0 : index
    %114 = vector.load %arg10[%c6_84, %c0_85, %c0_86] : memref<9x32x128xbf16, #tpu.memory_space<vmem>>, vector<1x32x128xbf16>
    %115 = vector.shape_cast %114 : vector<1x32x128xbf16> to vector<32x128xbf16>
    %cst_87 = arith.constant dense<0.000000e+00> : vector<32x128xf32>
    %116 = tpu.matmul %115, %89, %cst_87 {dimension_numbers = #tpu.dot_dimension_numbers<[1], [0], [0], [1], [0, 0, 1, 1], [], []>} : vector<32x128xbf16>, vector<128x128xbf16>, vector<32x128xf32> -> vector<32x128xf32>
    %117 = arith.truncf %116 : vector<32x128xf32> to vector<32x128xbf16>
    %c7_88 = arith.constant 7 : index
    %c0_89 = arith.constant 0 : index
    %c0_90 = arith.constant 0 : index
    %118 = vector.load %arg10[%c7_88, %c0_89, %c0_90] : memref<9x32x128xbf16, #tpu.memory_space<vmem>>, vector<1x32x128xbf16>
    %119 = vector.shape_cast %118 : vector<1x32x128xbf16> to vector<32x128xbf16>
    %cst_91 = arith.constant dense<0.000000e+00> : vector<32x128xf32>
    %120 = tpu.matmul %119, %89, %cst_91 {dimension_numbers = #tpu.dot_dimension_numbers<[1], [0], [0], [1], [0, 0, 1, 1], [], []>} : vector<32x128xbf16>, vector<128x128xbf16>, vector<32x128xf32> -> vector<32x128xf32>
    %121 = arith.truncf %120 : vector<32x128xf32> to vector<32x128xbf16>
    %c8_92 = arith.constant 8 : index
    %c0_93 = arith.constant 0 : index
    %c0_94 = arith.constant 0 : index
    %122 = vector.load %arg10[%c8_92, %c0_93, %c0_94] : memref<9x32x128xbf16, #tpu.memory_space<vmem>>, vector<1x32x128xbf16>
    %123 = vector.shape_cast %122 : vector<1x32x128xbf16> to vector<32x128xbf16>
    %cst_95 = arith.constant dense<0.000000e+00> : vector<32x128xf32>
    %124 = tpu.matmul %123, %89, %cst_95 {dimension_numbers = #tpu.dot_dimension_numbers<[1], [0], [0], [1], [0, 0, 1, 1], [], []>} : vector<32x128xbf16>, vector<128x128xbf16>, vector<32x128xf32> -> vector<32x128xf32>
    %125 = arith.truncf %124 : vector<32x128xf32> to vector<32x128xbf16>
    %126 = tpu.concatenate %93, %97, %101, %105, %109, %113, %117, %121, %125 in 1 : vector<32x128xbf16>, vector<32x128xbf16>, vector<32x128xbf16>, vector<32x128xbf16>, vector<32x128xbf16>, vector<32x128xbf16>, vector<32x128xbf16>, vector<32x128xbf16>, vector<32x128xbf16> -> vector<32x1152xbf16>
    %c0_96 = arith.constant 0 : index
    %c0_97 = arith.constant 0 : index
    %127 = vector.load %arg11[%c0_96, %c0_97] : memref<1152x128xbf16, #tpu.memory_space<vmem>>, vector<1152x128xbf16>
    %cst_98 = arith.constant dense<0.000000e+00> : vector<32x128xf32>
    %128 = tpu.matmul %126, %127, %cst_98 {dimension_numbers = #tpu.dot_dimension_numbers<[1], [0], [0], [1], [0, 0, 1, 1], [], []>} : vector<32x1152xbf16>, vector<1152x128xbf16>, vector<32x128xf32> -> vector<32x128xf32>
    %c0_99 = arith.constant 0 : index
    %c0_100 = arith.constant 0 : index
    %129 = vector.load %arg12[%c0_99, %c0_100] : memref<1x128xf32, #tpu.memory_space<vmem>>, vector<1x128xf32>
    %130 = vector.broadcast %129 : vector<1x128xf32> to vector<32x128xf32>
    %131 = arith.addf %128, %130 : vector<32x128xf32>
    %cst_101 = arith.constant 0.000000e+00 : f32
    %132 = vector.broadcast %cst_101 : f32 to vector<32x128xf32>
    %133 = arith.maximumf %131, %132 : vector<32x128xf32>
    %134 = arith.truncf %133 : vector<32x128xf32> to vector<32x128xbf16>
    %c0_102 = arith.constant 0 : index
    %c0_103 = arith.constant 0 : index
    %c0_104 = arith.constant 0 : index
    %135 = vector.load %arg13[%c0_102, %c0_103, %c0_104] : memref<9x8x32xbf16, #tpu.memory_space<vmem>>, vector<1x8x32xbf16>
    %136 = vector.shape_cast %135 : vector<1x8x32xbf16> to vector<8x32xbf16>
    %cst_105 = arith.constant dense<0.000000e+00> : vector<8x128xf32>
    %137 = tpu.matmul %136, %134, %cst_105 {dimension_numbers = #tpu.dot_dimension_numbers<[1], [0], [0], [1], [0, 0, 1, 1], [], []>} : vector<8x32xbf16>, vector<32x128xbf16>, vector<8x128xf32> -> vector<8x128xf32>
    %138 = arith.truncf %137 : vector<8x128xf32> to vector<8x128xbf16>
    %c1_106 = arith.constant 1 : index
    %c0_107 = arith.constant 0 : index
    %c0_108 = arith.constant 0 : index
    %139 = vector.load %arg13[%c1_106, %c0_107, %c0_108] : memref<9x8x32xbf16, #tpu.memory_space<vmem>>, vector<1x8x32xbf16>
    %140 = vector.shape_cast %139 : vector<1x8x32xbf16> to vector<8x32xbf16>
    %cst_109 = arith.constant dense<0.000000e+00> : vector<8x128xf32>
    %141 = tpu.matmul %140, %134, %cst_109 {dimension_numbers = #tpu.dot_dimension_numbers<[1], [0], [0], [1], [0, 0, 1, 1], [], []>} : vector<8x32xbf16>, vector<32x128xbf16>, vector<8x128xf32> -> vector<8x128xf32>
    %142 = arith.truncf %141 : vector<8x128xf32> to vector<8x128xbf16>
    %c2_110 = arith.constant 2 : index
    %c0_111 = arith.constant 0 : index
    %c0_112 = arith.constant 0 : index
    %143 = vector.load %arg13[%c2_110, %c0_111, %c0_112] : memref<9x8x32xbf16, #tpu.memory_space<vmem>>, vector<1x8x32xbf16>
    %144 = vector.shape_cast %143 : vector<1x8x32xbf16> to vector<8x32xbf16>
    %cst_113 = arith.constant dense<0.000000e+00> : vector<8x128xf32>
    %145 = tpu.matmul %144, %134, %cst_113 {dimension_numbers = #tpu.dot_dimension_numbers<[1], [0], [0], [1], [0, 0, 1, 1], [], []>} : vector<8x32xbf16>, vector<32x128xbf16>, vector<8x128xf32> -> vector<8x128xf32>
    %146 = arith.truncf %145 : vector<8x128xf32> to vector<8x128xbf16>
    %c3_114 = arith.constant 3 : index
    %c0_115 = arith.constant 0 : index
    %c0_116 = arith.constant 0 : index
    %147 = vector.load %arg13[%c3_114, %c0_115, %c0_116] : memref<9x8x32xbf16, #tpu.memory_space<vmem>>, vector<1x8x32xbf16>
    %148 = vector.shape_cast %147 : vector<1x8x32xbf16> to vector<8x32xbf16>
    %cst_117 = arith.constant dense<0.000000e+00> : vector<8x128xf32>
    %149 = tpu.matmul %148, %134, %cst_117 {dimension_numbers = #tpu.dot_dimension_numbers<[1], [0], [0], [1], [0, 0, 1, 1], [], []>} : vector<8x32xbf16>, vector<32x128xbf16>, vector<8x128xf32> -> vector<8x128xf32>
    %150 = arith.truncf %149 : vector<8x128xf32> to vector<8x128xbf16>
    %c4_118 = arith.constant 4 : index
    %c0_119 = arith.constant 0 : index
    %c0_120 = arith.constant 0 : index
    %151 = vector.load %arg13[%c4_118, %c0_119, %c0_120] : memref<9x8x32xbf16, #tpu.memory_space<vmem>>, vector<1x8x32xbf16>
    %152 = vector.shape_cast %151 : vector<1x8x32xbf16> to vector<8x32xbf16>
    %cst_121 = arith.constant dense<0.000000e+00> : vector<8x128xf32>
    %153 = tpu.matmul %152, %134, %cst_121 {dimension_numbers = #tpu.dot_dimension_numbers<[1], [0], [0], [1], [0, 0, 1, 1], [], []>} : vector<8x32xbf16>, vector<32x128xbf16>, vector<8x128xf32> -> vector<8x128xf32>
    %154 = arith.truncf %153 : vector<8x128xf32> to vector<8x128xbf16>
    %c5_122 = arith.constant 5 : index
    %c0_123 = arith.constant 0 : index
    %c0_124 = arith.constant 0 : index
    %155 = vector.load %arg13[%c5_122, %c0_123, %c0_124] : memref<9x8x32xbf16, #tpu.memory_space<vmem>>, vector<1x8x32xbf16>
    %156 = vector.shape_cast %155 : vector<1x8x32xbf16> to vector<8x32xbf16>
    %cst_125 = arith.constant dense<0.000000e+00> : vector<8x128xf32>
    %157 = tpu.matmul %156, %134, %cst_125 {dimension_numbers = #tpu.dot_dimension_numbers<[1], [0], [0], [1], [0, 0, 1, 1], [], []>} : vector<8x32xbf16>, vector<32x128xbf16>, vector<8x128xf32> -> vector<8x128xf32>
    %158 = arith.truncf %157 : vector<8x128xf32> to vector<8x128xbf16>
    %c6_126 = arith.constant 6 : index
    %c0_127 = arith.constant 0 : index
    %c0_128 = arith.constant 0 : index
    %159 = vector.load %arg13[%c6_126, %c0_127, %c0_128] : memref<9x8x32xbf16, #tpu.memory_space<vmem>>, vector<1x8x32xbf16>
    %160 = vector.shape_cast %159 : vector<1x8x32xbf16> to vector<8x32xbf16>
    %cst_129 = arith.constant dense<0.000000e+00> : vector<8x128xf32>
    %161 = tpu.matmul %160, %134, %cst_129 {dimension_numbers = #tpu.dot_dimension_numbers<[1], [0], [0], [1], [0, 0, 1, 1], [], []>} : vector<8x32xbf16>, vector<32x128xbf16>, vector<8x128xf32> -> vector<8x128xf32>
    %162 = arith.truncf %161 : vector<8x128xf32> to vector<8x128xbf16>
    %c7_130 = arith.constant 7 : index
    %c0_131 = arith.constant 0 : index
    %c0_132 = arith.constant 0 : index
    %163 = vector.load %arg13[%c7_130, %c0_131, %c0_132] : memref<9x8x32xbf16, #tpu.memory_space<vmem>>, vector<1x8x32xbf16>
    %164 = vector.shape_cast %163 : vector<1x8x32xbf16> to vector<8x32xbf16>
    %cst_133 = arith.constant dense<0.000000e+00> : vector<8x128xf32>
    %165 = tpu.matmul %164, %134, %cst_133 {dimension_numbers = #tpu.dot_dimension_numbers<[1], [0], [0], [1], [0, 0, 1, 1], [], []>} : vector<8x32xbf16>, vector<32x128xbf16>, vector<8x128xf32> -> vector<8x128xf32>
    %166 = arith.truncf %165 : vector<8x128xf32> to vector<8x128xbf16>
    %c8_134 = arith.constant 8 : index
    %c0_135 = arith.constant 0 : index
    %c0_136 = arith.constant 0 : index
    %167 = vector.load %arg13[%c8_134, %c0_135, %c0_136] : memref<9x8x32xbf16, #tpu.memory_space<vmem>>, vector<1x8x32xbf16>
    %168 = vector.shape_cast %167 : vector<1x8x32xbf16> to vector<8x32xbf16>
    %cst_137 = arith.constant dense<0.000000e+00> : vector<8x128xf32>
    %169 = tpu.matmul %168, %134, %cst_137 {dimension_numbers = #tpu.dot_dimension_numbers<[1], [0], [0], [1], [0, 0, 1, 1], [], []>} : vector<8x32xbf16>, vector<32x128xbf16>, vector<8x128xf32> -> vector<8x128xf32>
    %170 = arith.truncf %169 : vector<8x128xf32> to vector<8x128xbf16>
    %171 = tpu.concatenate %138, %142, %146, %150, %154, %158, %162, %166, %170 in 1 : vector<8x128xbf16>, vector<8x128xbf16>, vector<8x128xbf16>, vector<8x128xbf16>, vector<8x128xbf16>, vector<8x128xbf16>, vector<8x128xbf16>, vector<8x128xbf16>, vector<8x128xbf16> -> vector<8x1152xbf16>
    %c0_138 = arith.constant 0 : index
    %c0_139 = arith.constant 0 : index
    %172 = vector.load %arg14[%c0_138, %c0_139] : memref<1152x128xbf16, #tpu.memory_space<vmem>>, vector<1152x128xbf16>
    %cst_140 = arith.constant dense<0.000000e+00> : vector<8x128xf32>
    %173 = tpu.matmul %171, %172, %cst_140 {dimension_numbers = #tpu.dot_dimension_numbers<[1], [0], [0], [1], [0, 0, 1, 1], [], []>} : vector<8x1152xbf16>, vector<1152x128xbf16>, vector<8x128xf32> -> vector<8x128xf32>
    %c0_141 = arith.constant 0 : index
    %c0_142 = arith.constant 0 : index
    %174 = vector.load %arg15[%c0_141, %c0_142] : memref<1x128xf32, #tpu.memory_space<vmem>>, vector<1x128xf32>
    %175 = vector.broadcast %174 : vector<1x128xf32> to vector<8x128xf32>
    %176 = arith.addf %173, %175 : vector<8x128xf32>
    %cst_143 = arith.constant 0.000000e+00 : f32
    %177 = vector.broadcast %cst_143 : f32 to vector<8x128xf32>
    %178 = arith.maximumf %176, %177 : vector<8x128xf32>
    %179 = arith.truncf %178 : vector<8x128xf32> to vector<8x128xbf16>
    %c0_144 = arith.constant 0 : index
    %c0_145 = arith.constant 0 : index
    %c0_146 = arith.constant 0 : index
    %180 = vector.load %arg16[%c0_144, %c0_145, %c0_146] : memref<9x8x8xbf16, #tpu.memory_space<vmem>>, vector<1x8x8xbf16>
    %181 = vector.shape_cast %180 : vector<1x8x8xbf16> to vector<8x8xbf16>
    %cst_147 = arith.constant dense<0.000000e+00> : vector<8x128xf32>
    %182 = tpu.matmul %181, %179, %cst_147 {dimension_numbers = #tpu.dot_dimension_numbers<[1], [0], [0], [1], [0, 0, 1, 1], [], []>} : vector<8x8xbf16>, vector<8x128xbf16>, vector<8x128xf32> -> vector<8x128xf32>
    %183 = arith.truncf %182 : vector<8x128xf32> to vector<8x128xbf16>
    %c1_148 = arith.constant 1 : index
    %c0_149 = arith.constant 0 : index
    %c0_150 = arith.constant 0 : index
    %184 = vector.load %arg16[%c1_148, %c0_149, %c0_150] : memref<9x8x8xbf16, #tpu.memory_space<vmem>>, vector<1x8x8xbf16>
    %185 = vector.shape_cast %184 : vector<1x8x8xbf16> to vector<8x8xbf16>
    %cst_151 = arith.constant dense<0.000000e+00> : vector<8x128xf32>
    %186 = tpu.matmul %185, %179, %cst_151 {dimension_numbers = #tpu.dot_dimension_numbers<[1], [0], [0], [1], [0, 0, 1, 1], [], []>} : vector<8x8xbf16>, vector<8x128xbf16>, vector<8x128xf32> -> vector<8x128xf32>
    %187 = arith.truncf %186 : vector<8x128xf32> to vector<8x128xbf16>
    %c2_152 = arith.constant 2 : index
    %c0_153 = arith.constant 0 : index
    %c0_154 = arith.constant 0 : index
    %188 = vector.load %arg16[%c2_152, %c0_153, %c0_154] : memref<9x8x8xbf16, #tpu.memory_space<vmem>>, vector<1x8x8xbf16>
    %189 = vector.shape_cast %188 : vector<1x8x8xbf16> to vector<8x8xbf16>
    %cst_155 = arith.constant dense<0.000000e+00> : vector<8x128xf32>
    %190 = tpu.matmul %189, %179, %cst_155 {dimension_numbers = #tpu.dot_dimension_numbers<[1], [0], [0], [1], [0, 0, 1, 1], [], []>} : vector<8x8xbf16>, vector<8x128xbf16>, vector<8x128xf32> -> vector<8x128xf32>
    %191 = arith.truncf %190 : vector<8x128xf32> to vector<8x128xbf16>
    %c3_156 = arith.constant 3 : index
    %c0_157 = arith.constant 0 : index
    %c0_158 = arith.constant 0 : index
    %192 = vector.load %arg16[%c3_156, %c0_157, %c0_158] : memref<9x8x8xbf16, #tpu.memory_space<vmem>>, vector<1x8x8xbf16>
    %193 = vector.shape_cast %192 : vector<1x8x8xbf16> to vector<8x8xbf16>
    %cst_159 = arith.constant dense<0.000000e+00> : vector<8x128xf32>
    %194 = tpu.matmul %193, %179, %cst_159 {dimension_numbers = #tpu.dot_dimension_numbers<[1], [0], [0], [1], [0, 0, 1, 1], [], []>} : vector<8x8xbf16>, vector<8x128xbf16>, vector<8x128xf32> -> vector<8x128xf32>
    %195 = arith.truncf %194 : vector<8x128xf32> to vector<8x128xbf16>
    %c4_160 = arith.constant 4 : index
    %c0_161 = arith.constant 0 : index
    %c0_162 = arith.constant 0 : index
    %196 = vector.load %arg16[%c4_160, %c0_161, %c0_162] : memref<9x8x8xbf16, #tpu.memory_space<vmem>>, vector<1x8x8xbf16>
    %197 = vector.shape_cast %196 : vector<1x8x8xbf16> to vector<8x8xbf16>
    %cst_163 = arith.constant dense<0.000000e+00> : vector<8x128xf32>
    %198 = tpu.matmul %197, %179, %cst_163 {dimension_numbers = #tpu.dot_dimension_numbers<[1], [0], [0], [1], [0, 0, 1, 1], [], []>} : vector<8x8xbf16>, vector<8x128xbf16>, vector<8x128xf32> -> vector<8x128xf32>
    %199 = arith.truncf %198 : vector<8x128xf32> to vector<8x128xbf16>
    %c5_164 = arith.constant 5 : index
    %c0_165 = arith.constant 0 : index
    %c0_166 = arith.constant 0 : index
    %200 = vector.load %arg16[%c5_164, %c0_165, %c0_166] : memref<9x8x8xbf16, #tpu.memory_space<vmem>>, vector<1x8x8xbf16>
    %201 = vector.shape_cast %200 : vector<1x8x8xbf16> to vector<8x8xbf16>
    %cst_167 = arith.constant dense<0.000000e+00> : vector<8x128xf32>
    %202 = tpu.matmul %201, %179, %cst_167 {dimension_numbers = #tpu.dot_dimension_numbers<[1], [0], [0], [1], [0, 0, 1, 1], [], []>} : vector<8x8xbf16>, vector<8x128xbf16>, vector<8x128xf32> -> vector<8x128xf32>
    %203 = arith.truncf %202 : vector<8x128xf32> to vector<8x128xbf16>
    %c6_168 = arith.constant 6 : index
    %c0_169 = arith.constant 0 : index
    %c0_170 = arith.constant 0 : index
    %204 = vector.load %arg16[%c6_168, %c0_169, %c0_170] : memref<9x8x8xbf16, #tpu.memory_space<vmem>>, vector<1x8x8xbf16>
    %205 = vector.shape_cast %204 : vector<1x8x8xbf16> to vector<8x8xbf16>
    %cst_171 = arith.constant dense<0.000000e+00> : vector<8x128xf32>
    %206 = tpu.matmul %205, %179, %cst_171 {dimension_numbers = #tpu.dot_dimension_numbers<[1], [0], [0], [1], [0, 0, 1, 1], [], []>} : vector<8x8xbf16>, vector<8x128xbf16>, vector<8x128xf32> -> vector<8x128xf32>
    %207 = arith.truncf %206 : vector<8x128xf32> to vector<8x128xbf16>
    %c7_172 = arith.constant 7 : index
    %c0_173 = arith.constant 0 : index
    %c0_174 = arith.constant 0 : index
    %208 = vector.load %arg16[%c7_172, %c0_173, %c0_174] : memref<9x8x8xbf16, #tpu.memory_space<vmem>>, vector<1x8x8xbf16>
    %209 = vector.shape_cast %208 : vector<1x8x8xbf16> to vector<8x8xbf16>
    %cst_175 = arith.constant dense<0.000000e+00> : vector<8x128xf32>
    %210 = tpu.matmul %209, %179, %cst_175 {dimension_numbers = #tpu.dot_dimension_numbers<[1], [0], [0], [1], [0, 0, 1, 1], [], []>} : vector<8x8xbf16>, vector<8x128xbf16>, vector<8x128xf32> -> vector<8x128xf32>
    %211 = arith.truncf %210 : vector<8x128xf32> to vector<8x128xbf16>
    %c8_176 = arith.constant 8 : index
    %c0_177 = arith.constant 0 : index
    %c0_178 = arith.constant 0 : index
    %212 = vector.load %arg16[%c8_176, %c0_177, %c0_178] : memref<9x8x8xbf16, #tpu.memory_space<vmem>>, vector<1x8x8xbf16>
    %213 = vector.shape_cast %212 : vector<1x8x8xbf16> to vector<8x8xbf16>
    %cst_179 = arith.constant dense<0.000000e+00> : vector<8x128xf32>
    %214 = tpu.matmul %213, %179, %cst_179 {dimension_numbers = #tpu.dot_dimension_numbers<[1], [0], [0], [1], [0, 0, 1, 1], [], []>} : vector<8x8xbf16>, vector<8x128xbf16>, vector<8x128xf32> -> vector<8x128xf32>
    %215 = arith.truncf %214 : vector<8x128xf32> to vector<8x128xbf16>
    %216 = tpu.concatenate %183, %187, %191, %195, %199, %203, %207, %211, %215 in 1 : vector<8x128xbf16>, vector<8x128xbf16>, vector<8x128xbf16>, vector<8x128xbf16>, vector<8x128xbf16>, vector<8x128xbf16>, vector<8x128xbf16>, vector<8x128xbf16>, vector<8x128xbf16> -> vector<8x1152xbf16>
    %c0_180 = arith.constant 0 : index
    %c0_181 = arith.constant 0 : index
    %217 = vector.load %arg17[%c0_180, %c0_181] : memref<1152x128xbf16, #tpu.memory_space<vmem>>, vector<1152x128xbf16>
    %cst_182 = arith.constant dense<0.000000e+00> : vector<8x128xf32>
    %218 = tpu.matmul %216, %217, %cst_182 {dimension_numbers = #tpu.dot_dimension_numbers<[1], [0], [0], [1], [0, 0, 1, 1], [], []>} : vector<8x1152xbf16>, vector<1152x128xbf16>, vector<8x128xf32> -> vector<8x128xf32>
    %c0_183 = arith.constant 0 : index
    %c0_184 = arith.constant 0 : index
    %219 = vector.load %arg18[%c0_183, %c0_184] : memref<1x128xf32, #tpu.memory_space<vmem>>, vector<1x128xf32>
    %220 = vector.broadcast %219 : vector<1x128xf32> to vector<8x128xf32>
    %221 = arith.addf %218, %220 : vector<8x128xf32>
    %cst_185 = arith.constant 0.000000e+00 : f32
    %222 = vector.broadcast %cst_185 : f32 to vector<8x128xf32>
    %223 = arith.maximumf %221, %222 : vector<8x128xf32>
    %224 = arith.truncf %223 : vector<8x128xf32> to vector<8x128xbf16>
    %c0_186 = arith.constant 0 : index
    %c0_187 = arith.constant 0 : index
    %c0_188 = arith.constant 0 : index
    %225 = vector.load %arg19[%c0_186, %c0_187, %c0_188] : memref<9x8x8xbf16, #tpu.memory_space<vmem>>, vector<1x8x8xbf16>
    %226 = vector.shape_cast %225 : vector<1x8x8xbf16> to vector<8x8xbf16>
    %cst_189 = arith.constant dense<0.000000e+00> : vector<8x128xf32>
    %227 = tpu.matmul %226, %224, %cst_189 {dimension_numbers = #tpu.dot_dimension_numbers<[1], [0], [0], [1], [0, 0, 1, 1], [], []>} : vector<8x8xbf16>, vector<8x128xbf16>, vector<8x128xf32> -> vector<8x128xf32>
    %228 = arith.truncf %227 : vector<8x128xf32> to vector<8x128xbf16>
    %c1_190 = arith.constant 1 : index
    %c0_191 = arith.constant 0 : index
    %c0_192 = arith.constant 0 : index
    %229 = vector.load %arg19[%c1_190, %c0_191, %c0_192] : memref<9x8x8xbf16, #tpu.memory_space<vmem>>, vector<1x8x8xbf16>
    %230 = vector.shape_cast %229 : vector<1x8x8xbf16> to vector<8x8xbf16>
    %cst_193 = arith.constant dense<0.000000e+00> : vector<8x128xf32>
    %231 = tpu.matmul %230, %224, %cst_193 {dimension_numbers = #tpu.dot_dimension_numbers<[1], [0], [0], [1], [0, 0, 1, 1], [], []>} : vector<8x8xbf16>, vector<8x128xbf16>, vector<8x128xf32> -> vector<8x128xf32>
    %232 = arith.truncf %231 : vector<8x128xf32> to vector<8x128xbf16>
    %c2_194 = arith.constant 2 : index
    %c0_195 = arith.constant 0 : index
    %c0_196 = arith.constant 0 : index
    %233 = vector.load %arg19[%c2_194, %c0_195, %c0_196] : memref<9x8x8xbf16, #tpu.memory_space<vmem>>, vector<1x8x8xbf16>
    %234 = vector.shape_cast %233 : vector<1x8x8xbf16> to vector<8x8xbf16>
    %cst_197 = arith.constant dense<0.000000e+00> : vector<8x128xf32>
    %235 = tpu.matmul %234, %224, %cst_197 {dimension_numbers = #tpu.dot_dimension_numbers<[1], [0], [0], [1], [0, 0, 1, 1], [], []>} : vector<8x8xbf16>, vector<8x128xbf16>, vector<8x128xf32> -> vector<8x128xf32>
    %236 = arith.truncf %235 : vector<8x128xf32> to vector<8x128xbf16>
    %c3_198 = arith.constant 3 : index
    %c0_199 = arith.constant 0 : index
    %c0_200 = arith.constant 0 : index
    %237 = vector.load %arg19[%c3_198, %c0_199, %c0_200] : memref<9x8x8xbf16, #tpu.memory_space<vmem>>, vector<1x8x8xbf16>
    %238 = vector.shape_cast %237 : vector<1x8x8xbf16> to vector<8x8xbf16>
    %cst_201 = arith.constant dense<0.000000e+00> : vector<8x128xf32>
    %239 = tpu.matmul %238, %224, %cst_201 {dimension_numbers = #tpu.dot_dimension_numbers<[1], [0], [0], [1], [0, 0, 1, 1], [], []>} : vector<8x8xbf16>, vector<8x128xbf16>, vector<8x128xf32> -> vector<8x128xf32>
    %240 = arith.truncf %239 : vector<8x128xf32> to vector<8x128xbf16>
    %c4_202 = arith.constant 4 : index
    %c0_203 = arith.constant 0 : index
    %c0_204 = arith.constant 0 : index
    %241 = vector.load %arg19[%c4_202, %c0_203, %c0_204] : memref<9x8x8xbf16, #tpu.memory_space<vmem>>, vector<1x8x8xbf16>
    %242 = vector.shape_cast %241 : vector<1x8x8xbf16> to vector<8x8xbf16>
    %cst_205 = arith.constant dense<0.000000e+00> : vector<8x128xf32>
    %243 = tpu.matmul %242, %224, %cst_205 {dimension_numbers = #tpu.dot_dimension_numbers<[1], [0], [0], [1], [0, 0, 1, 1], [], []>} : vector<8x8xbf16>, vector<8x128xbf16>, vector<8x128xf32> -> vector<8x128xf32>
    %244 = arith.truncf %243 : vector<8x128xf32> to vector<8x128xbf16>
    %c5_206 = arith.constant 5 : index
    %c0_207 = arith.constant 0 : index
    %c0_208 = arith.constant 0 : index
    %245 = vector.load %arg19[%c5_206, %c0_207, %c0_208] : memref<9x8x8xbf16, #tpu.memory_space<vmem>>, vector<1x8x8xbf16>
    %246 = vector.shape_cast %245 : vector<1x8x8xbf16> to vector<8x8xbf16>
    %cst_209 = arith.constant dense<0.000000e+00> : vector<8x128xf32>
    %247 = tpu.matmul %246, %224, %cst_209 {dimension_numbers = #tpu.dot_dimension_numbers<[1], [0], [0], [1], [0, 0, 1, 1], [], []>} : vector<8x8xbf16>, vector<8x128xbf16>, vector<8x128xf32> -> vector<8x128xf32>
    %248 = arith.truncf %247 : vector<8x128xf32> to vector<8x128xbf16>
    %c6_210 = arith.constant 6 : index
    %c0_211 = arith.constant 0 : index
    %c0_212 = arith.constant 0 : index
    %249 = vector.load %arg19[%c6_210, %c0_211, %c0_212] : memref<9x8x8xbf16, #tpu.memory_space<vmem>>, vector<1x8x8xbf16>
    %250 = vector.shape_cast %249 : vector<1x8x8xbf16> to vector<8x8xbf16>
    %cst_213 = arith.constant dense<0.000000e+00> : vector<8x128xf32>
    %251 = tpu.matmul %250, %224, %cst_213 {dimension_numbers = #tpu.dot_dimension_numbers<[1], [0], [0], [1], [0, 0, 1, 1], [], []>} : vector<8x8xbf16>, vector<8x128xbf16>, vector<8x128xf32> -> vector<8x128xf32>
    %252 = arith.truncf %251 : vector<8x128xf32> to vector<8x128xbf16>
    %c7_214 = arith.constant 7 : index
    %c0_215 = arith.constant 0 : index
    %c0_216 = arith.constant 0 : index
    %253 = vector.load %arg19[%c7_214, %c0_215, %c0_216] : memref<9x8x8xbf16, #tpu.memory_space<vmem>>, vector<1x8x8xbf16>
    %254 = vector.shape_cast %253 : vector<1x8x8xbf16> to vector<8x8xbf16>
    %cst_217 = arith.constant dense<0.000000e+00> : vector<8x128xf32>
    %255 = tpu.matmul %254, %224, %cst_217 {dimension_numbers = #tpu.dot_dimension_numbers<[1], [0], [0], [1], [0, 0, 1, 1], [], []>} : vector<8x8xbf16>, vector<8x128xbf16>, vector<8x128xf32> -> vector<8x128xf32>
    %256 = arith.truncf %255 : vector<8x128xf32> to vector<8x128xbf16>
    %c8_218 = arith.constant 8 : index
    %c0_219 = arith.constant 0 : index
    %c0_220 = arith.constant 0 : index
    %257 = vector.load %arg19[%c8_218, %c0_219, %c0_220] : memref<9x8x8xbf16, #tpu.memory_space<vmem>>, vector<1x8x8xbf16>
    %258 = vector.shape_cast %257 : vector<1x8x8xbf16> to vector<8x8xbf16>
    %cst_221 = arith.constant dense<0.000000e+00> : vector<8x128xf32>
    %259 = tpu.matmul %258, %224, %cst_221 {dimension_numbers = #tpu.dot_dimension_numbers<[1], [0], [0], [1], [0, 0, 1, 1], [], []>} : vector<8x8xbf16>, vector<8x128xbf16>, vector<8x128xf32> -> vector<8x128xf32>
    %260 = arith.truncf %259 : vector<8x128xf32> to vector<8x128xbf16>
    %261 = tpu.concatenate %228, %232, %236, %240, %244, %248, %252, %256, %260 in 1 : vector<8x128xbf16>, vector<8x128xbf16>, vector<8x128xbf16>, vector<8x128xbf16>, vector<8x128xbf16>, vector<8x128xbf16>, vector<8x128xbf16>, vector<8x128xbf16>, vector<8x128xbf16> -> vector<8x1152xbf16>
    %c0_222 = arith.constant 0 : index
    %c0_223 = arith.constant 0 : index
    %262 = vector.load %arg20[%c0_222, %c0_223] : memref<1152x128xbf16, #tpu.memory_space<vmem>>, vector<1152x128xbf16>
    %cst_224 = arith.constant dense<0.000000e+00> : vector<8x128xf32>
    %263 = tpu.matmul %261, %262, %cst_224 {dimension_numbers = #tpu.dot_dimension_numbers<[1], [0], [0], [1], [0, 0, 1, 1], [], []>} : vector<8x1152xbf16>, vector<1152x128xbf16>, vector<8x128xf32> -> vector<8x128xf32>
    %c0_225 = arith.constant 0 : index
    %c0_226 = arith.constant 0 : index
    %264 = vector.load %arg21[%c0_225, %c0_226] : memref<1x128xf32, #tpu.memory_space<vmem>>, vector<1x128xf32>
    %265 = vector.broadcast %264 : vector<1x128xf32> to vector<8x128xf32>
    %266 = arith.addf %263, %265 : vector<8x128xf32>
    %cst_227 = arith.constant 0.000000e+00 : f32
    %267 = vector.broadcast %cst_227 : f32 to vector<8x128xf32>
    %268 = arith.maximumf %266, %267 : vector<8x128xf32>
    %c0_228 = arith.constant 0 : index
    %c0_229 = arith.constant 0 : index
    %269 = vector.load %arg22[%c0_228, %c0_229] : memref<8x128xf32, #tpu.memory_space<vmem>>, vector<8x128xf32>
    tpu.vector_store %arg22[%c0_228, %c0_229], %268 {strides = array<i32>} : memref<8x128xf32, #tpu.memory_space<vmem>>, vector<8x128xf32>,
    return
  }
  func.func @transform_0(%arg0: i32) -> (i32, i32, i32) {
    %c0_i32 = arith.constant 0 : i32
    %c0_i32_0 = arith.constant 0 : i32
    %c0_i32_1 = arith.constant 0 : i32
    %c0_i32_2 = arith.constant 0 : i32
    return %c0_i32, %c0_i32_0, %c0_i32_1 : i32, i32, i32
  }
  func.func @transform_1(%arg0: i32) -> (i32, i32) {
    %c0_i32 = arith.constant 0 : i32
    %c0_i32_0 = arith.constant 0 : i32
    %c0_i32_1 = arith.constant 0 : i32
    return %c0_i32, %c0_i32_0 : i32, i32
  }
  func.func @transform_2(%arg0: i32) -> (i32, i32) {
    %c0_i32 = arith.constant 0 : i32
    %c0_i32_0 = arith.constant 0 : i32
    %c0_i32_1 = arith.constant 0 : i32
    return %c0_i32, %c0_i32_0 : i32, i32
  }
  func.func @transform_3(%arg0: i32) -> (i32, i32) {
    %c0_i32 = arith.constant 0 : i32
    %c0_i32_0 = arith.constant 0 : i32
    %c0_i32_1 = arith.constant 0 : i32
    return %c0_i32, %c0_i32_0 : i32, i32
  }
  func.func @transform_4(%arg0: i32) -> (i32, i32) {
    %c0_i32 = arith.constant 0 : i32
    %c0_i32_0 = arith.constant 0 : i32
    %c0_i32_1 = arith.constant 0 : i32
    return %c0_i32, %c0_i32_0 : i32, i32
  }
  func.func @transform_5(%arg0: i32) -> (i32, i32) {
    %c0_i32 = arith.constant 0 : i32
    %c0_i32_0 = arith.constant 0 : i32
    %c0_i32_1 = arith.constant 0 : i32
    return %c0_i32, %c0_i32_0 : i32, i32
  }
  func.func @transform_6(%arg0: i32) -> (i32, i32) {
    %c0_i32 = arith.constant 0 : i32
    %c0_i32_0 = arith.constant 0 : i32
    %c0_i32_1 = arith.constant 0 : i32
    return %c0_i32, %c0_i32_0 : i32, i32
  }
  func.func @transform_7(%arg0: i32) -> (i32, i32) {
    %c0_i32 = arith.constant 0 : i32
    %c0_i32_0 = arith.constant 0 : i32
    %c0_i32_1 = arith.constant 0 : i32
    return %c0_i32, %c0_i32_0 : i32, i32
  }
  func.func @transform_8(%arg0: i32) -> (i32, i32) {
    %c0_i32 = arith.constant 0 : i32
    %c0_i32_0 = arith.constant 0 : i32
    %c0_i32_1 = arith.constant 0 : i32
    return %c0_i32, %c0_i32_0 : i32, i32
  }
  func.func @transform_9(%arg0: i32) -> (i32, i32, i32) {
    %c0_i32 = arith.constant 0 : i32
    %c0_i32_0 = arith.constant 0 : i32
    %c0_i32_1 = arith.constant 0 : i32
    %c0_i32_2 = arith.constant 0 : i32
    return %c0_i32, %c0_i32_0, %c0_i32_1 : i32, i32, i32
  }
  func.func @transform_10(%arg0: i32) -> (i32, i32) {
    %c0_i32 = arith.constant 0 : i32
    %c0_i32_0 = arith.constant 0 : i32
    %c0_i32_1 = arith.constant 0 : i32
    return %c0_i32, %c0_i32_0 : i32, i32
  }
  func.func @transform_11(%arg0: i32) -> (i32, i32) {
    %c0_i32 = arith.constant 0 : i32
    %c0_i32_0 = arith.constant 0 : i32
    %c0_i32_1 = arith.constant 0 : i32
    return %c0_i32, %c0_i32_0 : i32, i32
  }
  func.func @transform_12(%arg0: i32) -> (i32, i32, i32) {
    %c0_i32 = arith.constant 0 : i32
    %c0_i32_0 = arith.constant 0 : i32
    %c0_i32_1 = arith.constant 0 : i32
    %c0_i32_2 = arith.constant 0 : i32
    return %c0_i32, %c0_i32_0, %c0_i32_1 : i32, i32, i32
  }
  func.func @transform_13(%arg0: i32) -> (i32, i32) {
    %c0_i32 = arith.constant 0 : i32
    %c0_i32_0 = arith.constant 0 : i32
    %c0_i32_1 = arith.constant 0 : i32
    return %c0_i32, %c0_i32_0 : i32, i32
  }
  func.func @transform_14(%arg0: i32) -> (i32, i32) {
    %c0_i32 = arith.constant 0 : i32
    %c0_i32_0 = arith.constant 0 : i32
    %c0_i32_1 = arith.constant 0 : i32
    return %c0_i32, %c0_i32_0 : i32, i32
  }
  func.func @transform_15(%arg0: i32) -> (i32, i32, i32) {
    %c0_i32 = arith.constant 0 : i32
    %c0_i32_0 = arith.constant 0 : i32
    %c0_i32_1 = arith.constant 0 : i32
    %c0_i32_2 = arith.constant 0 : i32
    return %c0_i32, %c0_i32_0, %c0_i32_1 : i32, i32, i32
  }
  func.func @transform_16(%arg0: i32) -> (i32, i32) {
    %c0_i32 = arith.constant 0 : i32
    %c0_i32_0 = arith.constant 0 : i32
    %c0_i32_1 = arith.constant 0 : i32
    return %c0_i32, %c0_i32_0 : i32, i32
  }
  func.func @transform_17(%arg0: i32) -> (i32, i32) {
    %c0_i32 = arith.constant 0 : i32
    %c0_i32_0 = arith.constant 0 : i32
    %c0_i32_1 = arith.constant 0 : i32
    return %c0_i32, %c0_i32_0 : i32, i32
  }
  func.func @transform_18(%arg0: i32) -> (i32, i32, i32) {
    %c0_i32 = arith.constant 0 : i32
    %c0_i32_0 = arith.constant 0 : i32
    %c0_i32_1 = arith.constant 0 : i32
    %c0_i32_2 = arith.constant 0 : i32
    return %c0_i32, %c0_i32_0, %c0_i32_1 : i32, i32, i32
  }
  func.func @transform_19(%arg0: i32) -> (i32, i32) {
    %c0_i32 = arith.constant 0 : i32
    %c0_i32_0 = arith.constant 0 : i32
    %c0_i32_1 = arith.constant 0 : i32
    return %c0_i32, %c0_i32_0 : i32, i32
  }
  func.func @transform_20(%arg0: i32) -> (i32, i32) {
    %c0_i32 = arith.constant 0 : i32
    %c0_i32_0 = arith.constant 0 : i32
    %c0_i32_1 = arith.constant 0 : i32
    return %c0_i32, %c0_i32_0 : i32, i32
  }
  func.func @transform_21(%arg0: i32) -> (i32, i32) {
    %c0_i32 = arith.constant 0 : i32
    %c0_i32_0 = arith.constant 0 : i32
    %c0_i32_1 = arith.constant 0 : i32
    return %c0_i32, %c0_i32_0 : i32, i32
  }
}

</mosaic_0001>

<bundles_post_ra>
// kernel: forward.1
= control target key start
LH: loop header
LB: loop body
LE: loop exit
PB: predicated region body
PF: predicated region fallthrough
CT: control target
= control target key end

     0   :  { %vm301_vm0 = vcmask 130048   ;;  %vm20850_vm1 = vmmov 0   ;;  %vm11810_vm2 = vcmask 261120   ;;  %vm13013_vm3 = vcmask 1043456   ;;  %s25655_s1 = inlined_call_operand.vmem [shape: bf16[16,128], index: 1, kind: input, shape index: {}]   ;;  %s25656_s0 = inlined_call_operand.vmem [shape: bf16[9,512,16], index: 0, kind: input, shape index: {}]   ;;  %s25657_s2 = inlined_call_operand.vmem [shape: bf16[1152,128], index: 2, kind: input, shape index: {}]   ;;  %s25658_s3 = inlined_call_operand.vmem [shape: f32[1,128], index: 3, kind: input, shape index: {}]   ;;  %s25659_s6 = inlined_call_operand.vmem [shape: bf16[128,128], index: 6, kind: input, shape index: {}]   ;;  %s25660_s4 = inlined_call_operand.vmem [shape: bf16[128,128], index: 4, kind: input, shape index: {}]   ;;  %s25661_s5 = inlined_call_operand.vmem [shape: bf16[128,128], index: 5, kind: input, shape index: {}]   ;;  %s25662_s7 = inlined_call_operand.vmem [shape: bf16[1152,128], index: 7, kind: input, shape index: {}]   ;;  %s25663_s8 = inlined_call_operand.vmem [shape: f32[1,128], index: 8, kind: input, shape index: {}]   ;;  %s25664_s9 = inlined_call_operand.vmem [shape: bf16[9,32,128], index: 9, kind: input, shape index: {}]   ;;  %s25665_s10 = inlined_call_operand.vmem [shape: bf16[1152,128], index: 10, kind: input, shape index: {}]   ;;  %s25666_s11 = inlined_call_operand.vmem [shape: f32[1,128], index: 11, kind: input, shape index: {}]   ;;  %s25667_s13 = inlined_call_operand.vmem [shape: bf16[1152,128], index: 13, kind: input, shape index: {}]   ;;  %s25668_s12 = inlined_call_operand.vmem [shape: bf16[9,8,32], index: 12, kind: input, shape index: {}]   ;;  %s25669_s16 = inlined_call_operand.vmem [shape: bf16[1152,128], index: 16, kind: input, shape index: {}]   ;;  %s25670_s14 = inlined_call_operand.vmem [shape: f32[1,128], index: 14, kind: input, shape index: {}]   ;;  %s25671_s15 = inlined_call_operand.vmem [shape: bf16[9,8,8], index: 15, kind: input, shape index: {}]   ;;  %s25672_s19 = inlined_call_operand.vmem [shape: bf16[1152,128], index: 19, kind: input, shape index: {}]   ;;  %s25673_s17 = inlined_call_operand.vmem [shape: f32[1,128], index: 17, kind: input, shape index: {}]   ;;  %s25674_s18 = inlined_call_operand.vmem [shape: bf16[9,8,8], index: 18, kind: input, shape index: {}]   ;;  %s25675_s20 = inlined_call_operand.vmem [shape: f32[1,128], index: 20, kind: input, shape index: {}]   ;;  %s25676_s21 = inlined_call_operand.vmem [shape: f32[8,128], index: 21, kind: output, shape index: {}]  }
   0x1   :  { %25684 = sst [smem:[#allocation89_spill]] %s25655_s1  ;;  %vm13009_vm4 = vcmask 64512  }
   0x2   :  { %25685 = sst [smem:[#allocation90_spill]] %s25656_s0  ;;  %s25690_s26 = sld [smem:[#allocation89_spill]] }
   0x3   :  { %25686 = sst [smem:[#allocation91_spill]] %s25657_s2  ;;  %s25691_s28 = sld [smem:[#allocation90_spill]] }
   0x4   :  { %25687 = sst [smem:[#allocation92_spill]] %s25658_s3 }
   0x5   :  { %25688 = sst [smem:[#allocation93_spill]] %s25659_s6  ;;  %s25893_s3 = sld [smem:[#allocation92_spill]] }
   0x6   :  { %25689 = sst [smem:[#allocation94_spill]] %s25660_s4  ;;  %s25710_s4 = sld [smem:[#allocation91_spill]] }
   0x7   :  { %s25901_s6 = sld [smem:[#allocation93_spill]]  ;;  %s25902_s22 = sld [smem:[#allocation94_spill]] }
   0x8   :  { %v20964_v0 = vld [vmem:[%s25690_s26] sm:$0xff]  }
   0x9   :  { %v20083_v1 = vld [vmem:[%s25691_s28 + $0xe0] sm:$0xff]   ;;  %19629 = vmatprep.subr.bf16.mxu1 %v20964_v0  ;;  %v20084_v2 = vld [vmem:[%s25691_s28 + $0xe8] sm:$0xff]   ;;  %18323 = vmatprep.subr.bf16.mxu0 %v20964_v0  ;;  %v20085_v3 = vld [vmem:[%s25691_s28 + $0xf0] sm:$0xff]  }
   0xa   :  { %19630 = vmatpush3.bf16.msra.mxu1 %v20964_v0  ;;  %18381 = vmatprep.mubr.msk.bf16.mxu1 %vm301_vm0, %v20083_v1  ;;  %v20086_v4 = vld [vmem:[%s25691_s28 + $0xf8] sm:$0xff]   ;;  %v20087_v5 = vld [vmem:[%s25691_s28 + $0x100] sm:$0xff]   ;;  %v20088_v6 = vld [vmem:[%s25691_s28 + $0x108] sm:$0xff]  }
   0xb   :  { %18389 = vmatprep.subr.bf16.mxu1 %v20964_v0  ;;  %18324 = vmatpush3.bf16.msra.mxu0 %v20964_v0  ;;  %v20089_v7 = vld [vmem:[%s25691_s28 + $0x110] sm:$0xff]   ;;  %v20090_v8 = vld [vmem:[%s25691_s28 + $0x118] sm:$0xff]   ;;  %v20091_v9 = vld [vmem:[%s25691_s28 + $0x120] sm:$0xff]  }
   0xc   :  { %18455 = vmatprep.subr.bf16.mxu0 %v20964_v0  ;;  %v20092_v10 = vld [vmem:[%s25691_s28 + $0x128] sm:$0xff]   ;;  %v20093_v11 = vld [vmem:[%s25691_s28 + $0x130] sm:$0xff]   ;;  %v20094_v12 = vld [vmem:[%s25691_s28 + $0x138] sm:$0xff]  }
   0xd   :  { %18382 = vmatmul.mubr.msk.bf16.vlgmr.msra.gmra.mrb[0].mxu1 %vm301_vm0, %v20084_v2  ;;  %v20095_v13 = vld [vmem:[%s25691_s28 + $0x140] sm:$0xff]   ;;  %v20096_v14 = vld [vmem:[%s25691_s28 + $0x148] sm:$0xff]   ;;  %v20097_v15 = vld [vmem:[%s25691_s28 + $0x150] sm:$0xff]  }
   0xe   :  { %18385 = vmatprep.mubr.msk.bf16.mxu1 %vm301_vm0, %v20085_v3  ;;  %18390 = vmatpush3.bf16.msra.mxu1 %v20964_v0  ;;  %v20098_v16 = vld [vmem:[%s25691_s28 + $0x158] sm:$0xff]   ;;  %v20099_v17 = vld [vmem:[%s25691_s28 + $0x160] sm:$0xff]   ;;  %v20100_v18 = vld [vmem:[%s25691_s28 + $0x168] sm:$0xff]  }
   0xf   :  { %18521 = vmatprep.subr.bf16.mxu1 %v20964_v0  ;;  %v20101_v19 = vld [vmem:[%s25691_s28 + $0x170] sm:$0xff]   ;;  %v20102_v20 = vld [vmem:[%s25691_s28 + $0x178] sm:$0xff]   ;;  %v20103_v21 = vld [vmem:[%s25691_s28 + $0x180] sm:$0xff]  }
  0x10   :  { %v20104_v22 = vld [vmem:[%s25691_s28 + $0x188] sm:$0xff]   ;;  %v20105_v23 = vld [vmem:[%s25691_s28 + $0x190] sm:$0xff]   ;;  %v20106_v24 = vld [vmem:[%s25691_s28 + $0x198] sm:$0xff]  }
  0x11   :  { %v20107_v25 = vld [vmem:[%s25691_s28 + $0x1a0] sm:$0xff]   ;;  %v20108_v26 = vld [vmem:[%s25691_s28 + $0x1a8] sm:$0xff]   ;;  %v20109_v27 = vld [vmem:[%s25691_s28 + $0x1b0] sm:$0xff]  }
  0x12   :  { %v20110_v28 = vld [vmem:[%s25691_s28 + $0x1b8] sm:$0xff]   ;;  %v20111_v29 = vld [vmem:[%s25691_s28 + $0x1c0] sm:$0xff]   ;;  %v20112_v30 = vld [vmem:[%s25691_s28 + $0x1c8] sm:$0xff]  }
  0x13   :  { %v20113_v31 = vld [vmem:[%s25691_s28 + $0x1d0] sm:$0xff]   ;;  %v20114_v32 = vld [vmem:[%s25691_s28 + $0x1d8] sm:$0xff]   ;;  %v20115_v33 = vld [vmem:[%s25691_s28 + $0x1e0] sm:$0xff]  }
  0x14   :  { %v20116_v34 = vld [vmem:[%s25691_s28 + $0x1e8] sm:$0xff]   ;;  %v20117_v35 = vld [vmem:[%s25691_s28 + $0x1f0] sm:$0xff]   ;;  %v20118_v36 = vld [vmem:[%s25691_s28 + $0x1f8] sm:$0xff]  }
  0x15   :  { %18386 = vmatmul.mubr.msk.bf16.gmra.mrb[4].mxu1 %vm301_vm0, %v20086_v4  ;;  %v20119_v37 = vld [vmem:[%s25691_s28 + $0x300] sm:$0xff]   ;;  %v20120_v38 = vld [vmem:[%s25691_s28 + $0x308] sm:$0xff]   ;;  %v20121_v39 = vld [vmem:[%s25691_s28 + $0x310] sm:$0xff]  }
  0x16   :  { %18391 = vmatprep.mubr.msk.bf16.mxu1 %vm301_vm0, %v20087_v5  ;;  %v20122_v40 = vld [vmem:[%s25691_s28 + $0x318] sm:$0xff]   ;;  %v20123_v41 = vld [vmem:[%s25691_s28 + $0x320] sm:$0xff]   ;;  %v20124_v42 = vld [vmem:[%s25691_s28 + $0x328] sm:$0xff]  }
  0x17   :  { %v20125_v43 = vld [vmem:[%s25691_s28 + $0x330] sm:$0xff]   ;;  %v20126_v44 = vld [vmem:[%s25691_s28 + $0x338] sm:$0xff]   ;;  %v20127_v45 = vld [vmem:[%s25691_s28 + $0x340] sm:$0xff]  }
  0x18   :  { %v20128_v46 = vld [vmem:[%s25691_s28 + $0x348] sm:$0xff]   ;;  %v20129_v47 = vld [vmem:[%s25691_s28 + $0x350] sm:$0xff]   ;;  %v20161_v48 = vld [vmem:[%s25691_s28] sm:$0xff]  }
  0x19   :  { %v20162_v49 = vld [vmem:[%s25691_s28 + $0x8] sm:$0xff]   ;;  %18325 = vmatprep.mubr.msk.bf16.mxu0 %vm301_vm0, %v20161_v48  ;;  %v20130_v50 = vld [vmem:[%s25691_s28 + $0x358] sm:$0xff]   ;;  %v21180_v51 = vld [vmem:[%s25690_s26] sm:$0xff]  }
  0x1a   :  { %18326 = vmatmul.mubr.msk.bf16.vlgmr.msra.gmra.mrb[0].mxu0 %vm301_vm0, %v20162_v49  ;;  %v20131_v52 = vld [vmem:[%s25691_s28 + $0x360] sm:$0xff]   ;;  %v20132_v53 = vld [vmem:[%s25691_s28 + $0x368] sm:$0xff]   ;;  %v20133_v54 = vld [vmem:[%s25691_s28 + $0x370] sm:$0xff]  }
  0x1b   :  { %18456 = vmatpush3.bf16.msra.mxu0 %v21180_v51  ;;  %v20167_v55 = vld [vmem:[%s25691_s28 + $0x10] sm:$0xff]   ;;  %v20168_v56 = vld [vmem:[%s25691_s28 + $0x18] sm:$0xff]   ;;  %v20135_v58 = vld [vmem:[%s25691_s28 + $0x380] sm:$0xff]  }
  0x1c   :  { %18587 = vmatprep.subr.bf16.mxu0 %v21180_v51  ;;  %18329 = vmatprep.mubr.msk.bf16.mxu0 %vm301_vm0, %v20167_v55  ;;  %v20134_v57 = vld [vmem:[%s25691_s28 + $0x378] sm:$0xff]   ;;  %v20136_v59 = vld [vmem:[%s25691_s28 + $0x388] sm:$0xff]   ;;  %v20137_v60 = vld [vmem:[%s25691_s28 + $0x390] sm:$0xff]  }
  0x1d   :  { %18392 = vmatmul.mubr.msk.bf16.vlgmr.msra.gmra.mrb[8].mxu1 %vm301_vm0, %v20088_v6  ;;  %v20173_v61 = vld [vmem:[%s25691_s28 + $0x20] sm:$0xff]   ;;  %v20174_v62 = vld [vmem:[%s25691_s28 + $0x28] sm:$0xff]   ;;  %v20138_v1 = vld [vmem:[%s25691_s28 + $0x398] sm:$0xff]  }
  0x1e   :  { %18395 = vmatprep.mubr.msk.bf16.mxu1 %vm301_vm0, %v20089_v7  ;;  %18522 = vmatpush3.bf16.msra.mxu1 %v20964_v0  ;;  %v20139_v3 = vld [vmem:[%s25691_s28 + $0x3a0] sm:$0xff]   ;;  %v20186_v48 = vld [vmem:[%s25691_s28 + $0x48] sm:$0xff]  }
  0x1f   :  { %18653 = vmatprep.subr.bf16.mxu1 %v20964_v0 }
  0x22   :  { %18330 = vmatmul.mubr.msk.bf16.gmra.mrb[4].mxu0 %vm301_vm0, %v20168_v56  ;;  %v20147_v56 = vld [vmem:[%s25691_s28 + $0x3e0] sm:$0xff]  }
  0x23   :  { %18333 = vmatprep.mubr.msk.bf16.mxu0 %vm301_vm0, %v20173_v61 }
  0x25   :  { %18396 = vmatmul.mubr.msk.bf16.gmra.mrb[12].mxu1 %vm301_vm0, %v20090_v8 }
  0x26   :  { %18399 = vmatprep.mubr.msk.bf16.mxu1 %vm301_vm0, %v20091_v9 }
  0x2a   :  { %18334 = vmatmul.mubr.msk.bf16.gmra.mrb[8].mxu0 %vm301_vm0, %v20174_v62 }
  0x2d   :  { %18400 = vmatmul.mubr.msk.bf16.gmra.mrb[16].mxu1 %vm301_vm0, %v20092_v10 }
  0x2e   :  { %18403 = vmatprep.mubr.msk.bf16.mxu1 %vm301_vm0, %v20093_v11 }
  0x35   :  { %18404 = vmatmul.mubr.msk.bf16.gmra.mrb[20].mxu1 %vm301_vm0, %v20094_v12 }
  0x36   :  { %18407 = vmatprep.mubr.msk.bf16.mxu1 %vm301_vm0, %v20095_v13  ;;  %v20140_v13 = vld [vmem:[%s25691_s28 + $0x3a8] sm:$0xff]  }
  0x3d   :  { %18408 = vmatmul.mubr.msk.bf16.gmra.mrb[24].mxu1 %vm301_vm0, %v20096_v14 }
  0x3e   :  { %18411 = vmatprep.mubr.msk.bf16.mxu1 %vm301_vm0, %v20097_v15  ;;  %v20141_v15 = vld [vmem:[%s25691_s28 + $0x3b0] sm:$0xff]  }
  0x45   :  { %18412 = vmatmul.mubr.msk.bf16.gmra.mrb[28].mxu1 %vm301_vm0, %v20098_v16 }
  0x46   :  { %18415 = vmatprep.mubr.msk.bf16.mxu1 %vm301_vm0, %v20099_v17 }
  0x4d   :  { %18416 = vmatmul.mubr.msk.bf16.gmra.mrb[32].mxu1 %vm301_vm0, %v20100_v18 }
  0x4e   :  { %18419 = vmatprep.mubr.msk.bf16.mxu1 %vm301_vm0, %v20101_v19 }
  0x55   :  { %18420 = vmatmul.mubr.msk.bf16.gmra.mrb[36].mxu1 %vm301_vm0, %v20102_v20 }
  0x56   :  { %18423 = vmatprep.mubr.msk.bf16.mxu1 %vm301_vm0, %v20103_v21  ;;  %v20179_v21 = vld [vmem:[%s25691_s28 + $0x30] sm:$0xff]  }
  0x57   :  { %18337 = vmatprep.mubr.msk.bf16.mxu0 %vm301_vm0, %v20179_v21 }
  0x5d   :  { %18424 = vmatmul.mubr.msk.bf16.gmra.mrb[40].mxu1 %vm301_vm0, %v20104_v22 }
  0x5e   :  { %18427 = vmatprep.mubr.msk.bf16.mxu1 %vm301_vm0, %v20105_v23  ;;  %v20180_v23 = vld [vmem:[%s25691_s28 + $0x38] sm:$0xff]  }
  0x5f   :  { %18338 = vmatmul.mubr.msk.bf16.gmra.mrb[12].mxu0 %vm301_vm0, %v20180_v23 }
  0x65   :  { %18428 = vmatmul.mubr.msk.bf16.gmra.mrb[44].mxu1 %vm301_vm0, %v20106_v24 }
  0x66   :  { %18431 = vmatprep.mubr.msk.bf16.mxu1 %vm301_vm0, %v20107_v25 }
  0x6d   :  { %18432 = vmatmul.mubr.msk.bf16.gmra.mrb[48].mxu1 %vm301_vm0, %v20108_v26 }
  0x6e   :  { %18435 = vmatprep.mubr.msk.bf16.mxu1 %vm301_vm0, %v20109_v27  ;;  %v20142_v27 = vld [vmem:[%s25691_s28 + $0x3b8] sm:$0xff]  }
  0x75   :  { %18436 = vmatmul.mubr.msk.bf16.gmra.mrb[52].mxu1 %vm301_vm0, %v20110_v28 }
  0x76   :  { %18439 = vmatprep.mubr.msk.bf16.mxu1 %vm301_vm0, %v20111_v29  ;;  %v20143_v29 = vld [vmem:[%s25691_s28 + $0x3c0] sm:$0xff]  }
  0x7d   :  { %18440 = vmatmul.mubr.msk.bf16.gmra.mrb[56].mxu1 %vm301_vm0, %v20112_v30 }
  0x7e   :  { %18443 = vmatprep.mubr.msk.bf16.mxu1 %vm301_vm0, %v20113_v31 }
  0x85   :  { %18444 = vmatmul.mubr.msk.bf16.gmra.mrb[60].mxu1 %vm301_vm0, %v20114_v32 }
  0x86   :  { %18447 = vmatprep.mubr.msk.bf16.mxu1 %vm301_vm0, %v20115_v33 }
  0x8d   :  { %18448 = vmatmul.mubr.msk.bf16.gmra.mrb[64].mxu1 %vm301_vm0, %v20116_v34 }
  0x8e   :  { %18451 = vmatprep.mubr.msk.bf16.mxu1 %vm301_vm0, %v20117_v35 }
  0x95   :  { %18452 = vmatmul.mubr.msk.bf16.gmra.mrb[68].mxu1 %vm301_vm0, %v20118_v36 }
  0x96   :  { %18523 = vmatprep.mubr.msk.bf16.mxu1 %vm301_vm0, %v20119_v37 }
  0x9d   :  { %18524 = vmatmul.mubr.msk.bf16.vlgmr.msra.gmra.mrb[72].mxu1 %vm301_vm0, %v20120_v38 }
  0x9e   :  { %18527 = vmatprep.mubr.msk.bf16.mxu1 %vm301_vm0, %v20121_v39  ;;  %18654 = vmatpush3.bf16.msra.mxu1 %v20964_v0  ;;  %v20144_v39 = vld [vmem:[%s25691_s28 + $0x3c8] sm:$0xff]  }
  0x9f   :  { %18785 = vmatprep.subr.bf16.mxu1 %v20964_v0 }
  0xa5   :  { %18528 = vmatmul.mubr.msk.bf16.gmra.mrb[76].mxu1 %vm301_vm0, %v20122_v40 }
  0xa6   :  { %18531 = vmatprep.mubr.msk.bf16.mxu1 %vm301_vm0, %v20123_v41  ;;  %v20145_v41 = vld [vmem:[%s25691_s28 + $0x3d0] sm:$0xff]  }
  0xad   :  { %18532 = vmatmul.mubr.msk.bf16.gmra.mrb[80].mxu1 %vm301_vm0, %v20124_v42 }
  0xae   :  { %18535 = vmatprep.mubr.msk.bf16.mxu1 %vm301_vm0, %v20125_v43 }
  0xb5   :  { %18536 = vmatmul.mubr.msk.bf16.gmra.mrb[84].mxu1 %vm301_vm0, %v20126_v44 }
  0xb6   :  { %18539 = vmatprep.mubr.msk.bf16.mxu1 %vm301_vm0, %v20127_v45  ;;  %v20185_v45 = vld [vmem:[%s25691_s28 + $0x40] sm:$0xff]  }
  0xb7   :  { %18341 = vmatprep.mubr.msk.bf16.mxu0 %vm301_vm0, %v20185_v45 }
  0xb8   :  { %18342 = vmatmul.mubr.msk.bf16.gmra.mrb[16].mxu0 %vm301_vm0, %v20186_v48  ;;  %v20154_v48 = vld [vmem:[%s25691_s28 + $0x518] sm:$0xff]  }
  0xbd   :  { %18540 = vmatmul.mubr.msk.bf16.gmra.mrb[88].mxu1 %vm301_vm0, %v20128_v46 }
  0xbe   :  { %18543 = vmatprep.mubr.msk.bf16.mxu1 %vm301_vm0, %v20129_v47 }
  0xc5   :  { %18544 = vmatmul.mubr.msk.bf16.gmra.mrb[92].mxu1 %vm301_vm0, %v20130_v50 }
  0xc6   :  { %18547 = vmatprep.mubr.msk.bf16.mxu1 %vm301_vm0, %v20131_v52 }
  0xcd   :  { %18548 = vmatmul.mubr.msk.bf16.gmra.mrb[96].mxu1 %vm301_vm0, %v20132_v53 }
  0xce   :  { %18551 = vmatprep.mubr.msk.bf16.mxu1 %vm301_vm0, %v20133_v54  ;;  %v20146_v54 = vld [vmem:[%s25691_s28 + $0x3d8] sm:$0xff]  }
  0xd5   :  { %18552 = vmatmul.mubr.msk.bf16.gmra.mrb[100].mxu1 %vm301_vm0, %v20134_v57 }
  0xd6   :  { %18555 = vmatprep.mubr.msk.bf16.mxu1 %vm301_vm0, %v20135_v58 }
  0xdd   :  { %18556 = vmatmul.mubr.msk.bf16.gmra.mrb[104].mxu1 %vm301_vm0, %v20136_v59 }
  0xde   :  { %18559 = vmatprep.mubr.msk.bf16.mxu1 %vm301_vm0, %v20137_v60 }
  0xe0   :  { %v18383_v63 = vpop.f32.mrb[0].mxu1 }
  0xe1   :  { %v656_v0 = vpop.f32.mrb[1].mxu1  ;;  %v745_v4 = vmax.f32 %v18383_v63, 0.0 }
  0xe2   :  { %v18384_v2 = vpop.f32.mrb[2].mxu1  ;;  %v743_v7 = vmax.f32 %v656_v0, 0.0 }
  0xe3   :  { %v746_v5 = vmax.f32 %v18384_v2, 0.0  ;;  %v659_v6 = vpop.f32.mrb[3].mxu1  ;;  %v20148_v2 = vld [vmem:[%s25691_s28 + $0x3e8] sm:$0xff]  }
  0xe4   :  { %v744_v8 = vmax.f32 %v659_v6, 0.0 }
  0xe5   :  { %v21235_v9 = vpack.c.bf16 %v746_v5, %v745_v4  ;;  %18560 = vmatmul.mubr.msk.bf16.gmra.mrb[108].mxu1 %vm301_vm0, %v20138_v1  ;;  %v20149_v4 = vld [vmem:[%s25691_s28 + $0x3f0] sm:$0xff]  }
  0xe6   :  { %v21238_v10 = vpack.c.bf16 %v744_v8, %v743_v7  ;;  %18563 = vmatprep.mubr.msk.bf16.mxu1 %vm301_vm0, %v20139_v3  ;;  %v20191_v8 = vld [vmem:[%s25691_s28 + $0x50] sm:$0xff]  }
  0xe7   :  { %25692 = vst [vmem:[#allocation2_spill] sm:$0xff] %v21235_v9  ;;  %18345 = vmatprep.mubr.msk.bf16.mxu0 %vm301_vm0, %v20191_v8 }
  0xe8   :  { %25693 = vst [vmem:[#allocation3_spill] sm:$0xff] %v21238_v10  ;;  %v18387_v11 = vpop.f32.mrb[4].mxu1 }
  0xe9   :  { %v672_v12 = vpop.f32.mrb[5].mxu1  ;;  %v749_v16 = vmax.f32 %v18387_v11, 0.0 }
  0xea   :  { %v18388_v14 = vpop.f32.mrb[6].mxu1  ;;  %v747_v19 = vmax.f32 %v672_v12, 0.0 }
  0xeb   :  { %v750_v17 = vmax.f32 %v18388_v14, 0.0  ;;  %v675_v18 = vpop.f32.mrb[7].mxu1 }
  0xec   :  { %v748_v20 = vmax.f32 %v675_v18, 0.0  ;;  %v20150_v18 = vld [vmem:[%s25691_s28 + $0x3f8] sm:$0xff]  }
  0xed   :  { %v21250_v22 = vpack.c.bf16 %v750_v17, %v749_v16  ;;  %18564 = vmatmul.mubr.msk.bf16.gmra.mrb[112].mxu1 %vm301_vm0, %v20140_v13  ;;  %v20192_v13 = vld [vmem:[%s25691_s28 + $0x58] sm:$0xff]  }
  0xee   :  { %v21256_v24 = vpack.c.bf16 %v748_v20, %v747_v19  ;;  %18567 = vmatprep.mubr.msk.bf16.mxu1 %vm301_vm0, %v20141_v15  ;;  %18346 = vmatmul.mubr.msk.bf16.gmra.mrb[20].mxu0 %vm301_vm0, %v20192_v13  ;;  %v20151_v20 = vld [vmem:[%s25691_s28 + $0x500] sm:$0xff]  }
  0xef   :  { %25694 = vst [vmem:[#allocation4_spill] sm:$0xff] %v21250_v22 }
  0xf0   :  { %25695 = vst [vmem:[#allocation5_spill] sm:$0xff] %v21256_v24  ;;  %v18393_v25 = vpop.f32.mrb[8].mxu1 }
  0xf1   :  { %v1138_v26 = vpop.f32.mrb[9].mxu1  ;;  %v1395_v31 = vmax.f32 %v18393_v25, 0.0 }
  0xf2   :  { %v18394_v28 = vpop.f32.mrb[10].mxu1  ;;  %v1393_v33 = vmax.f32 %v1138_v26, 0.0 }
  0xf3   :  { %v1141_v30 = vpop.f32.mrb[11].mxu1  ;;  %v1396_v32 = vmax.f32 %v18394_v28, 0.0 }
  0xf4   :  { %v1394_v34 = vmax.f32 %v1141_v30, 0.0 }
  0xf5   :  { %18568 = vmatmul.mubr.msk.bf16.gmra.mrb[116].mxu1 %vm301_vm0, %v20142_v27  ;;  %v21268_v35 = vpack.c.bf16 %v1396_v32, %v1395_v31  ;;  %v20152_v32 = vld [vmem:[%s25691_s28 + $0x508] sm:$0xff]  }
  0xf6   :  { %18571 = vmatprep.mubr.msk.bf16.mxu1 %vm301_vm0, %v20143_v29  ;;  %v21271_v36 = vpack.c.bf16 %v1394_v34, %v1393_v33  ;;  %v20153_v34 = vld [vmem:[%s25691_s28 + $0x510] sm:$0xff]  }
  0xf8   :  { %v18397_v37 = vpop.f32.mrb[12].mxu1 }
  0xf9   :  { %v1154_v38 = vpop.f32.mrb[13].mxu1  ;;  %v1399_v43 = vmax.f32 %v18397_v37, 0.0 }
  0xfa   :  { %v18398_v40 = vpop.f32.mrb[14].mxu1  ;;  %v1397_v46 = vmax.f32 %v1154_v38, 0.0 }
  0xfb   :  { %v1157_v42 = vpop.f32.mrb[15].mxu1  ;;  %v1400_v44 = vmax.f32 %v18398_v40, 0.0  ;;  %v20197_v40 = vld [vmem:[%s25691_s28 + $0x60] sm:$0xff]  }
  0xfc   :  { %v1398_v47 = vmax.f32 %v1157_v42, 0.0  ;;  %18349 = vmatprep.mubr.msk.bf16.mxu0 %vm301_vm0, %v20197_v40 }
  0xfd   :  { %18572 = vmatmul.mubr.msk.bf16.gmra.mrb[120].mxu1 %vm301_vm0, %v20144_v39  ;;  %v21286_v49 = vpack.c.bf16 %v1400_v44, %v1399_v43  ;;  %v20198_v43 = vld [vmem:[%s25691_s28 + $0x68] sm:$0xff]  }
  0xfe   :  { %18575 = vmatprep.mubr.msk.bf16.mxu1 %vm301_vm0, %v20145_v41  ;;  %v21290_v50 = vpack.c.bf16 %v1398_v47, %v1397_v46  ;;  %18350 = vmatmul.mubr.msk.bf16.gmra.mrb[24].mxu0 %vm301_vm0, %v20198_v43 }
 0x100   :  { %v18401_v52 = vpop.f32.mrb[16].mxu1 }
 0x101   :  { %v1170_v53 = vpop.f32.mrb[17].mxu1  ;;  %v1403_v58 = vmax.f32 %v18401_v52, 0.0 }
 0x102   :  { %v18402_v55 = vpop.f32.mrb[18].mxu1  ;;  %v1401_v60 = vmax.f32 %v1170_v53, 0.0  ;;  %v20155_v53 = vld [vmem:[%s25691_s28 + $0x520] sm:$0xff]  }
 0x103   :  { %v1173_v57 = vpop.f32.mrb[19].mxu1  ;;  %v1404_v59 = vmax.f32 %v18402_v55, 0.0 }
 0x104   :  { %v1402_v61 = vmax.f32 %v1173_v57, 0.0 }
 0x105   :  { %18576 = vmatmul.mubr.msk.bf16.gmra.mrb[124].mxu1 %vm301_vm0, %v20146_v54  ;;  %v21300_v62 = vpack.c.bf16 %v1404_v59, %v1403_v58 }
 0x106   :  { %18579 = vmatprep.mubr.msk.bf16.mxu1 %vm301_vm0, %v20147_v56  ;;  %v21303_v63 = vpack.c.bf16 %v1402_v61, %v1401_v60 }
 0x108   :  { %v18405_v0 = vpop.f32.mrb[20].mxu1 }
 0x109   :  { %v1186_v1 = vpop.f32.mrb[21].mxu1  ;;  %v1407_v6 = vmax.f32 %v18405_v0, 0.0  ;;  %v20156_v0 = vld [vmem:[%s25691_s28 + $0x528] sm:$0xff]  }
 0x10a   :  { %v18406_v3 = vpop.f32.mrb[22].mxu1  ;;  %v1405_v11 = vmax.f32 %v1186_v1, 0.0 }
 0x10b   :  { %v1189_v5 = vpop.f32.mrb[23].mxu1  ;;  %v1408_v7 = vmax.f32 %v18406_v3, 0.0 }
 0x10c   :  { %v1406_v12 = vmax.f32 %v1189_v5, 0.0 }
 0x10d   :  { %18580 = vmatmul.mubr.msk.bf16.gmra.mrb[128].mxu1 %vm301_vm0, %v20148_v2  ;;  %v21318_v14 = vpack.c.bf16 %v1408_v7, %v1407_v6  ;;  %v20157_v2 = vld [vmem:[%s25691_s28 + $0x530] sm:$0xff]  }
 0x10e   :  { %18583 = vmatprep.mubr.msk.bf16.mxu1 %vm301_vm0, %v20149_v4  ;;  %v21322_v15 = vpack.c.bf16 %v1406_v12, %v1405_v11  ;;  %v20203_v6 = vld [vmem:[%s25691_s28 + $0x70] sm:$0xff]   ;;  %v20204_v11 = vld [vmem:[%s25691_s28 + $0x78] sm:$0xff]  }
 0x10f   :  { %18353 = vmatprep.mubr.msk.bf16.mxu0 %vm301_vm0, %v20203_v6  ;;  %v20166_v6 = vld [vmem:[%s25691_s28 + $0x568] sm:$0xff]  }
 0x110   :  { %v18409_v16 = vpop.f32.mrb[24].mxu1  ;;  %18354 = vmatmul.mubr.msk.bf16.gmra.mrb[28].mxu0 %vm301_vm0, %v20204_v11 }
 0x111   :  { %v1202_v17 = vpop.f32.mrb[25].mxu1  ;;  %v1411_v23 = vmax.f32 %v18409_v16, 0.0 }
 0x112   :  { %v18410_v19 = vpop.f32.mrb[26].mxu1  ;;  %v1409_v26 = vmax.f32 %v1202_v17, 0.0 }
 0x113   :  { %v1205_v21 = vpop.f32.mrb[27].mxu1  ;;  %v1412_v25 = vmax.f32 %v18410_v19, 0.0 }
 0x114   :  { %v1410_v27 = vmax.f32 %v1205_v21, 0.0 }
 0x115   :  { %18584 = vmatmul.mubr.msk.bf16.gmra.mrb[132].mxu1 %vm301_vm0, %v20150_v18  ;;  %v21332_v28 = vpack.c.bf16 %v1412_v25, %v1411_v23  ;;  %v20158_v18 = vld [vmem:[%s25691_s28 + $0x538] sm:$0xff]  }
 0x116   :  { %18655 = vmatprep.mubr.msk.bf16.mxu1 %vm301_vm0, %v20151_v20  ;;  %v21335_v29 = vpack.c.bf16 %v1410_v27, %v1409_v26  ;;  %v20159_v20 = vld [vmem:[%s25691_s28 + $0x540] sm:$0xff]  }
 0x118   :  { %v18413_v30 = vpop.f32.mrb[28].mxu1 }
 0x119   :  { %v1218_v31 = vpop.f32.mrb[29].mxu1  ;;  %v1415_v38 = vmax.f32 %v18413_v30, 0.0 }
 0x11a   :  { %v18414_v33 = vpop.f32.mrb[30].mxu1  ;;  %v1413_v41 = vmax.f32 %v1218_v31, 0.0 }
 0x11b   :  { %v1221_v37 = vpop.f32.mrb[31].mxu1  ;;  %v1416_v39 = vmax.f32 %v18414_v33, 0.0 }
 0x11c   :  { %v1414_v42 = vmax.f32 %v1221_v37, 0.0 }
 0x11d   :  { %18656 = vmatmul.mubr.msk.bf16.vlgmr.msra.gmra.mrb[136].mxu1 %vm301_vm0, %v20152_v32  ;;  %v21350_v44 = vpack.c.bf16 %v1416_v39, %v1415_v38  ;;  %v20163_v38 = vld [vmem:[%s25691_s28 + $0x550] sm:$0xff]  }
 0x11e   :  { %18659 = vmatprep.mubr.msk.bf16.mxu1 %vm301_vm0, %v20153_v34  ;;  %18786 = vmatpush3.bf16.msra.mxu1 %v21180_v51  ;;  %v21354_v45 = vpack.c.bf16 %v1414_v42, %v1413_v41  ;;  %v20160_v34 = vld [vmem:[%s25691_s28 + $0x548] sm:$0xff]   ;;  %v20209_v42 = vld [vmem:[%s25691_s28 + $0x80] sm:$0xff]  }
 0x11f   :  { %18357 = vmatprep.mubr.msk.bf16.mxu0 %vm301_vm0, %v20209_v42 }
 0x120   :  { %v18417_v46 = vpop.f32.mrb[32].mxu1 }
 0x121   :  { %v1234_v47 = vpop.f32.mrb[33].mxu1  ;;  %v1419_v55 = vmax.f32 %v18417_v46, 0.0 }
 0x122   :  { %v18418_v52 = vpop.f32.mrb[34].mxu1  ;;  %v1417_v56 = vmax.f32 %v1234_v47, 0.0  ;;  %v20210_v47 = vld [vmem:[%s25691_s28 + $0x88] sm:$0xff]  }
 0x123   :  { %v1237_v54 = vpop.f32.mrb[35].mxu1  ;;  %v1420_v51 = vmax.f32 %v18418_v52, 0.0  ;;  %18358 = vmatmul.mubr.msk.bf16.gmra.mrb[32].mxu0 %vm301_vm0, %v20210_v47 }
 0x124   :  { %v1418_v57 = vmax.f32 %v1237_v54, 0.0 }
 0x125   :  { %18660 = vmatmul.mubr.msk.bf16.gmra.mrb[140].mxu1 %vm301_vm0, %v20154_v48  ;;  %v21365_v58 = vpack.c.bf16 %v1420_v51, %v1419_v55  ;;  %v20164_v55 = vld [vmem:[%s25691_s28 + $0x558] sm:$0xff]  }
 0x126   :  { %18663 = vmatprep.mubr.msk.bf16.mxu1 %vm301_vm0, %v20155_v53  ;;  %v21368_v59 = vpack.c.bf16 %v1418_v57, %v1417_v56  ;;  %v20165_v56 = vld [vmem:[%s25691_s28 + $0x560] sm:$0xff]  }
 0x128   :  { %v18421_v60 = vpop.f32.mrb[36].mxu1 }
 0x129   :  { %v1250_v61 = vpop.f32.mrb[37].mxu1  ;;  %v1423_v4 = vmax.f32 %v18421_v60, 0.0 }
 0x12a   :  { %v18422_v1 = vpop.f32.mrb[38].mxu1  ;;  %v1421_v7 = vmax.f32 %v1250_v61, 0.0 }
 0x12b   :  { %v1253_v3 = vpop.f32.mrb[39].mxu1  ;;  %v1424_v5 = vmax.f32 %v18422_v1, 0.0 }
 0x12c   :  { %v1422_v8 = vmax.f32 %v1253_v3, 0.0 }
 0x12d   :  { %18664 = vmatmul.mubr.msk.bf16.gmra.mrb[144].mxu1 %vm301_vm0, %v20156_v0  ;;  %v21383_v12 = vpack.c.bf16 %v1424_v5, %v1423_v4 }
 0x12e   :  { %18667 = vmatprep.mubr.msk.bf16.mxu1 %vm301_vm0, %v20157_v2  ;;  %v21387_v13 = vpack.c.bf16 %v1422_v8, %v1421_v7  ;;  %v20169_v8 = vld [vmem:[%s25691_s28 + $0x570] sm:$0xff]  }
 0x130   :  { %v18425_v16 = vpop.f32.mrb[40].mxu1 }
 0x131   :  { %v1266_v17 = vpop.f32.mrb[41].mxu1  ;;  %v1427_v23 = vmax.f32 %v18425_v16, 0.0 }
 0x132   :  { %v18426_v19 = vpop.f32.mrb[42].mxu1  ;;  %v1425_v26 = vmax.f32 %v1266_v17, 0.0 }
 0x133   :  { %v1269_v21 = vpop.f32.mrb[43].mxu1  ;;  %v1428_v25 = vmax.f32 %v18426_v19, 0.0 }
 0x134   :  { %v1426_v27 = vmax.f32 %v1269_v21, 0.0  ;;  %v20216_v21 = vld [vmem:[%s25691_s28 + $0x98] sm:$0xff]  }
 0x135   :  { %18668 = vmatmul.mubr.msk.bf16.gmra.mrb[148].mxu1 %vm301_vm0, %v20158_v18  ;;  %v21397_v30 = vpack.c.bf16 %v1428_v25, %v1427_v23  ;;  %v20215_v18 = vld [vmem:[%s25691_s28 + $0x90] sm:$0xff]  }
 0x136   :  { %18671 = vmatprep.mubr.msk.bf16.mxu1 %vm301_vm0, %v20159_v20  ;;  %v21400_v31 = vpack.c.bf16 %v1426_v27, %v1425_v26  ;;  %18361 = vmatprep.mubr.msk.bf16.mxu0 %vm301_vm0, %v20215_v18 }
 0x137   :  { %18362 = vmatmul.mubr.msk.bf16.gmra.mrb[36].mxu0 %vm301_vm0, %v20216_v21 }
 0x138   :  { %v18429_v32 = vpop.f32.mrb[44].mxu1 }
 0x139   :  { %v1282_v33 = vpop.f32.mrb[45].mxu1  ;;  %v1431_v40 = vmax.f32 %v18429_v32, 0.0  ;;  %v20170_v32 = vld [vmem:[%s25691_s28 + $0x578] sm:$0xff]  }
 0x13a   :  { %v18430_v37 = vpop.f32.mrb[46].mxu1  ;;  %v1429_v43 = vmax.f32 %v1282_v33, 0.0 }
 0x13b   :  { %v1285_v39 = vpop.f32.mrb[47].mxu1  ;;  %v1432_v41 = vmax.f32 %v18430_v37, 0.0 }
 0x13c   :  { %v1430_v46 = vmax.f32 %v1285_v39, 0.0 }
 0x13d   :  { %18672 = vmatmul.mubr.msk.bf16.gmra.mrb[152].mxu1 %vm301_vm0, %v20160_v34  ;;  %v21415_v48 = vpack.c.bf16 %v1432_v41, %v1431_v40  ;;  %v20171_v34 = vld [vmem:[%s25691_s28 + $0x580] sm:$0xff]  }
 0x13e   :  { %18675 = vmatprep.mubr.msk.bf16.mxu1 %vm301_vm0, %v20163_v38  ;;  %v21419_v52 = vpack.c.bf16 %v1430_v46, %v1429_v43 }
 0x140   :  { %v18433_v53 = vpop.f32.mrb[48].mxu1 }
 0x141   :  { %v1298_v54 = vpop.f32.mrb[49].mxu1  ;;  %v1435_v60 = vmax.f32 %v18433_v53, 0.0  ;;  %v20172_v53 = vld [vmem:[%s25691_s28 + $0x588] sm:$0xff]  }
 0x142   :  { %v18434_v51 = vpop.f32.mrb[50].mxu1  ;;  %v1433_v0 = vmax.f32 %v1298_v54, 0.0 }
 0x143   :  { %v1301_v57 = vpop.f32.mrb[51].mxu1  ;;  %v1436_v61 = vmax.f32 %v18434_v51, 0.0 }
 0x144   :  { %v1434_v1 = vmax.f32 %v1301_v57, 0.0 }
 0x145   :  { %18676 = vmatmul.mubr.msk.bf16.gmra.mrb[156].mxu1 %vm301_vm0, %v20164_v55  ;;  %v21429_v2 = vpack.c.bf16 %v1436_v61, %v1435_v60  ;;  %v20175_v55 = vld [vmem:[%s25691_s28 + $0x590] sm:$0xff]   ;;  %v20221_v60 = vld [vmem:[%s25691_s28 + $0xa0] sm:$0xff]   ;;  %v25682_v61 = vmov 0  }
 0x146   :  { %18679 = vmatprep.mubr.msk.bf16.mxu1 %vm301_vm0, %v20165_v56  ;;  %v21432_v3 = vpack.c.bf16 %v1434_v1, %v1433_v0  ;;  %7014 = vmatprep.subr.bf16.mxu1 %v25682_v61  ;;  %v20223_v0 = vld [vmem:[%s25691_s28 + $0xa8] sm:$0xff]  }
 0x147   :  { %18365 = vmatprep.mubr.msk.bf16.mxu0 %vm301_vm0, %v20221_v60  ;;  %v20183_v60 = vld [vmem:[%s25691_s28 + $0x5c0] sm:$0xff]  }
 0x148   :  { %v18437_v4 = vpop.f32.mrb[52].mxu1  ;;  %18366 = vmatmul.mubr.msk.bf16.gmra.mrb[40].mxu0 %vm301_vm0, %v20223_v0 }
 0x149   :  { %v1314_v5 = vpop.f32.mrb[53].mxu1  ;;  %v1439_v16 = vmax.f32 %v18437_v4, 0.0 }
 0x14a   :  { %v18438_v7 = vpop.f32.mrb[54].mxu1  ;;  %v1437_v19 = vmax.f32 %v1314_v5, 0.0 }
 0x14b   :  { %v1317_v11 = vpop.f32.mrb[55].mxu1  ;;  %v1440_v17 = vmax.f32 %v18438_v7, 0.0 }
 0x14c   :  { %v1438_v20 = vmax.f32 %v1317_v11, 0.0  ;;  %v20176_v11 = vld [vmem:[%s25691_s28 + $0x598] sm:$0xff]  }
 0x14d   :  { %18680 = vmatmul.mubr.msk.bf16.gmra.mrb[160].mxu1 %vm301_vm0, %v20166_v6  ;;  %v21447_v23 = vpack.c.bf16 %v1440_v17, %v1439_v16  ;;  %v20177_v17 = vld [vmem:[%s25691_s28 + $0x5a0] sm:$0xff]  }
 0x14e   :  { %18683 = vmatprep.mubr.msk.bf16.mxu1 %vm301_vm0, %v20169_v8  ;;  %v21451_v25 = vpack.c.bf16 %v1438_v20, %v1437_v19  ;;  %v20178_v19 = vld [vmem:[%s25691_s28 + $0x5a8] sm:$0xff]  }
 0x150   :  { %v18441_v26 = vpop.f32.mrb[56].mxu1 }
 0x151   :  { %v1330_v27 = vpop.f32.mrb[57].mxu1  ;;  %v1443_v38 = vmax.f32 %v18441_v26, 0.0 }
 0x152   :  { %v18442_v33 = vpop.f32.mrb[58].mxu1  ;;  %v1441_v40 = vmax.f32 %v1330_v27, 0.0 }
 0x153   :  { %v1333_v37 = vpop.f32.mrb[59].mxu1  ;;  %v1444_v39 = vmax.f32 %v18442_v33, 0.0  ;;  %v20181_v33 = vld [vmem:[%s25691_s28 + $0x5b0] sm:$0xff]  }
 0x154   :  { %v1442_v41 = vmax.f32 %v1333_v37, 0.0 }
 0x155   :  { %18684 = vmatmul.mubr.msk.bf16.gmra.mrb[164].mxu1 %vm301_vm0, %v20170_v32  ;;  %v21461_v42 = vpack.c.bf16 %v1444_v39, %v1443_v38  ;;  %v20231_v38 = vld [vmem:[%s25691_s28 + $0xb0] sm:$0xff]  }
 0x156   :  { %18687 = vmatprep.mubr.msk.bf16.mxu1 %vm301_vm0, %v20171_v34  ;;  %v21464_v43 = vpack.c.bf16 %v1442_v41, %v1441_v40  ;;  %18369 = vmatprep.mubr.msk.bf16.mxu0 %vm301_vm0, %v20231_v38 }
 0x158   :  { %v18445_v46 = vpop.f32.mrb[60].mxu1 }
 0x159   :  { %v1346_v47 = vpop.f32.mrb[61].mxu1  ;;  %v1447_v56 = vmax.f32 %v18445_v46, 0.0  ;;  %v20233_v46 = vld [vmem:[%s25691_s28 + $0xb8] sm:$0xff]  }
 0x15a   :  { %v18446_v54 = vpop.f32.mrb[62].mxu1  ;;  %v1445_v1 = vmax.f32 %v1346_v47, 0.0  ;;  %18370 = vmatmul.mubr.msk.bf16.gmra.mrb[44].mxu0 %vm301_vm0, %v20233_v46  ;;  %v20243_v46 = vld [vmem:[%s25691_s28 + $0xc8] sm:$0xff]  }
 0x15b   :  { %v1349_v51 = vpop.f32.mrb[63].mxu1  ;;  %v1448_v57 = vmax.f32 %v18446_v54, 0.0 }
 0x15c   :  { %v1446_v4 = vmax.f32 %v1349_v51, 0.0 }
 0x15d   :  { %18688 = vmatmul.mubr.msk.bf16.gmra.mrb[168].mxu1 %vm301_vm0, %v20172_v53  ;;  %v21480_v5 = vpack.c.bf16 %v1448_v57, %v1447_v56  ;;  %v20182_v56 = vld [vmem:[%s25691_s28 + $0x5b8] sm:$0xff]  }
 0x15e   :  { %18691 = vmatprep.mubr.msk.bf16.mxu1 %vm301_vm0, %v20175_v55  ;;  %v21485_v6 = vpack.c.bf16 %v1446_v4, %v1445_v1 }
 0x160   :  { %v18449_v7 = vpop.f32.mrb[64].mxu1 }
 0x161   :  { %v1362_v8 = vpop.f32.mrb[65].mxu1  ;;  %v1451_v39 = vmax.f32 %v18449_v7, 0.0 }
 0x162   :  { %v18450_v16 = vpop.f32.mrb[66].mxu1  ;;  %v1449_v21 = vmax.f32 %v1362_v8, 0.0 }
 0x163   :  { %v1365_v18 = vpop.f32.mrb[67].mxu1  ;;  %v1452_v40 = vmax.f32 %v18450_v16, 0.0 }
 0x164   :  { %v1450_v27 = vmax.f32 %v1365_v18, 0.0 }
 0x165   :  { %18692 = vmatmul.mubr.msk.bf16.gmra.mrb[172].mxu1 %vm301_vm0, %v20176_v11  ;;  %v21512_v53 = vpack.c.bf16 %v1452_v40, %v1451_v39  ;;  %v20241_v39 = vld [vmem:[%s25691_s28 + $0xc0] sm:$0xff]  }
 0x166   :  { %18695 = vmatprep.mubr.msk.bf16.mxu1 %vm301_vm0, %v20177_v17  ;;  %v21501_v37 = vpack.c.bf16 %v1450_v27, %v1449_v21  ;;  %v20184_v21 = vld [vmem:[%s25691_s28 + $0x5c8] sm:$0xff]   ;;  %v20187_v27 = vld [vmem:[%s25691_s28 + $0x5d0] sm:$0xff]   ;;  %18373 = vmatprep.mubr.msk.bf16.mxu0 %vm301_vm0, %v20241_v39 }
 0x167   :  { %25697 = vst [vmem:[#allocation7_spill] sm:$0xff] %v21512_v53  ;;  %18374 = vmatmul.mubr.msk.bf16.gmra.mrb[48].mxu0 %vm301_vm0, %v20243_v46 }
 0x168   :  { %v18453_v20 = vpop.f32.mrb[68].mxu1  ;;  %25696 = vst [vmem:[#allocation6_spill] sm:$0xff] %v21501_v37 }
 0x169   :  { %v1378_v26 = vpop.f32.mrb[69].mxu1  ;;  %v1455_v1 = vmax.f32 %v18453_v20, 0.0 }
 0x16a   :  { %v18454_v32 = vpop.f32.mrb[70].mxu1  ;;  %v1453_v41 = vmax.f32 %v1378_v26, 0.0 }
 0x16b   :  { %v1381_v34 = vpop.f32.mrb[71].mxu1  ;;  %v1456_v4 = vmax.f32 %v18454_v32, 0.0 }
 0x16c   :  { %v1454_v47 = vmax.f32 %v1381_v34, 0.0 }
 0x16d   :  { %18696 = vmatmul.mubr.msk.bf16.gmra.mrb[176].mxu1 %vm301_vm0, %v20178_v19  ;;  %v21525_v7 = vpack.c.bf16 %v1456_v4, %v1455_v1 }
 0x16e   :  { %18699 = vmatprep.mubr.msk.bf16.mxu1 %vm301_vm0, %v20181_v33  ;;  %v21515_v54 = vpack.c.bf16 %v1454_v47, %v1453_v41 }
 0x16f   :  { %25699 = vst [vmem:[#allocation9_spill] sm:$0xff] %v21525_v7 }
 0x170   :  { %25698 = vst [vmem:[#allocation8_spill] sm:$0xff] %v21515_v54  ;;  %v18525_v55 = vpop.f32.mrb[72].mxu1 }
 0x171   :  { %v2550_v51 = vpop.f32.mrb[73].mxu1  ;;  %v2807_v17 = vmax.f32 %v18525_v55, 0.0 }
 0x172   :  { %v18526_v57 = vpop.f32.mrb[74].mxu1  ;;  %v2805_v8 = vmax.f32 %v2550_v51, 0.0 }
 0x173   :  { %v2553_v0 = vpop.f32.mrb[75].mxu1  ;;  %v2808_v18 = vmax.f32 %v18526_v57, 0.0  ;;  %v20188_v57 = vld [vmem:[%s25691_s28 + $0x5d8] sm:$0xff]  }
 0x174   :  { %v2806_v11 = vmax.f32 %v2553_v0, 0.0  ;;  %v20189_v0 = vld [vmem:[%s25691_s28 + $0x5e0] sm:$0xff]  }
 0x175   :  { %18700 = vmatmul.mubr.msk.bf16.gmra.mrb[180].mxu1 %vm301_vm0, %v20182_v56  ;;  %v21535_v32 = vpack.c.bf16 %v2808_v18, %v2807_v17 }
 0x176   :  { %18703 = vmatprep.mubr.msk.bf16.mxu1 %vm301_vm0, %v20183_v60  ;;  %v21530_v26 = vpack.c.bf16 %v2806_v11, %v2805_v8 }
 0x177   :  { %25701 = vst [vmem:[#allocation11_spill] sm:$0xff] %v21535_v32 }
 0x178   :  { %v18529_v16 = vpop.f32.mrb[76].mxu1  ;;  %25700 = vst [vmem:[#allocation10_spill] sm:$0xff] %v21530_v26 }
 0x179   :  { %v2566_v19 = vpop.f32.mrb[77].mxu1  ;;  %v2811_v34 = vmax.f32 %v18529_v16, 0.0 }
 0x17a   :  { %v18530_v20 = vpop.f32.mrb[78].mxu1  ;;  %v2809_v40 = vmax.f32 %v2566_v19, 0.0 }
 0x17b   :  { %v2569_v33 = vpop.f32.mrb[79].mxu1  ;;  %v2812_v38 = vmax.f32 %v18530_v20, 0.0  ;;  %v20190_v20 = vld [vmem:[%s25691_s28 + $0x5e8] sm:$0xff]  }
 0x17c   :  { %v2810_v41 = vmax.f32 %v2569_v33, 0.0  ;;  %v20193_v33 = vld [vmem:[%s25691_s28 + $0x5f0] sm:$0xff]  }
 0x17d   :  { %18704 = vmatmul.mubr.msk.bf16.gmra.mrb[184].mxu1 %vm301_vm0, %v20184_v21  ;;  %v21544_v47 = vpack.c.bf16 %v2812_v38, %v2811_v34 }
 0x17e   :  { %18707 = vmatprep.mubr.msk.bf16.mxu1 %vm301_vm0, %v20187_v27  ;;  %v21548_v55 = vpack.c.bf16 %v2810_v41, %v2809_v40  ;;  %v20251_v40 = vld [vmem:[%s25691_s28 + $0xd0] sm:$0xff]  }
 0x17f   :  { %25702 = vst [vmem:[#allocation12_spill] sm:$0xff] %v21544_v47  ;;  %18377 = vmatprep.mubr.msk.bf16.mxu0 %vm301_vm0, %v20251_v40 }
 0x180   :  { %25703 = vst [vmem:[#allocation13_spill] sm:$0xff] %v21548_v55  ;;  %v18533_v51 = vpop.f32.mrb[80].mxu1 }
 0x181   :  { %v2582_v56 = vpop.f32.mrb[81].mxu1  ;;  %v2815_v4 = vmax.f32 %v18533_v51, 0.0  ;;  %v20253_v51 = vld [vmem:[%s25691_s28 + $0xd8] sm:$0xff]  }
 0x182   :  { %v18534_v60 = vpop.f32.mrb[82].mxu1  ;;  %v2813_v11 = vmax.f32 %v2582_v56, 0.0  ;;  %18378 = vmatmul.mubr.msk.bf16.gmra.mrb[52].mxu0 %vm301_vm0, %v20253_v51 }
 0x183   :  { %v2585_v1 = vpop.f32.mrb[83].mxu1  ;;  %v2816_v8 = vmax.f32 %v18534_v60, 0.0 }
 0x184   :  { %v2814_v16 = vmax.f32 %v2585_v1, 0.0  ;;  %v20194_v1 = vld [vmem:[%s25691_s28 + $0x5f8] sm:$0xff]  }
 0x185   :  { %18708 = vmatmul.mubr.msk.bf16.gmra.mrb[188].mxu1 %vm301_vm0, %v20188_v57  ;;  %v21558_v17 = vpack.c.bf16 %v2816_v8, %v2815_v4  ;;  %v20195_v8 = vld [vmem:[%s25691_s28 + $0x700] sm:$0xff]  }
 0x186   :  { %18711 = vmatprep.mubr.msk.bf16.mxu1 %vm301_vm0, %v20189_v0  ;;  %v21561_v18 = vpack.c.bf16 %v2814_v16, %v2813_v11  ;;  %v18327_v11 = vpop.f32.mrb[0].mxu0 }
 0x187   :  { %25704 = vst [vmem:[#allocation14_spill] sm:$0xff] %v21558_v17 }
 0x188   :  { %25705 = vst [vmem:[#allocation15_spill] sm:$0xff] %v21561_v18  ;;  %v18537_v19 = vpop.f32.mrb[84].mxu1 }
 0x189   :  { %v2598_v21 = vpop.f32.mrb[85].mxu1  ;;  %v2819_v38 = vmax.f32 %v18537_v19, 0.0  ;;  %v689_v19 = vmax.f32 %v18327_v11, 0.0 }
 0x18a   :  { %v18538_v27 = vpop.f32.mrb[86].mxu1  ;;  %v2817_v41 = vmax.f32 %v2598_v21, 0.0  ;;  %v432_v21 = vpop.f32.mrb[1].mxu0 }
 0x18b   :  { %v2601_v34 = vpop.f32.mrb[87].mxu1  ;;  %v2820_v39 = vmax.f32 %v18538_v27, 0.0 }
 0x18c   :  { %v2818_v46 = vmax.f32 %v2601_v34, 0.0  ;;  %v18328_v34 = vpop.f32.mrb[2].mxu0 }
 0x18d   :  { %18712 = vmatmul.mubr.msk.bf16.gmra.mrb[192].mxu1 %vm301_vm0, %v20190_v20  ;;  %v21576_v56 = vpack.c.bf16 %v2820_v39, %v2819_v38  ;;  %v690_v40 = vmax.f32 %v18328_v34, 0.0 }
 0x18e   :  { %18715 = vmatprep.mubr.msk.bf16.mxu1 %vm301_vm0, %v20193_v33  ;;  %v21580_v57 = vpack.c.bf16 %v2818_v46, %v2817_v41  ;;  %v687_v33 = vmax.f32 %v432_v21, 0.0  ;;  %v435_v41 = vpop.f32.mrb[3].mxu0 }
 0x18f   :  { %25706 = vst [vmem:[#allocation16_spill] sm:$0xff] %v21576_v56  ;;  %v688_v51 = vmax.f32 %v435_v41, 0.0  ;;  %v25713_v41 = vmov 0  }
 0x190   :  { %25707 = vst [vmem:[#allocation17_spill] sm:$0xff] %v21580_v57  ;;  %v18541_v60 = vpop.f32.mrb[88].mxu1 }
 0x191   :  { %v2614_v0 = vpop.f32.mrb[89].mxu1  ;;  %v2823_v20 = vmax.f32 %v18541_v60, 0.0  ;;  %v20196_v60 = vld [vmem:[%s25691_s28 + $0x708] sm:$0xff]  }
 0x192   :  { %v18542_v4 = vpop.f32.mrb[90].mxu1  ;;  %v2821_v38 = vmax.f32 %v2614_v0, 0.0  ;;  %v20199_v0 = vld [vmem:[%s25691_s28 + $0x710] sm:$0xff]  }
 0x193   :  { %v2617_v16 = vpop.f32.mrb[91].mxu1  ;;  %v2824_v27 = vmax.f32 %v18542_v4, 0.0  ;;  %v21598_v4 = vpack.c.bf16 %v690_v40, %v689_v19  ;;  %v20224_v19 = vld [vmem:[%s25710_s4 + $0x8] sm:$0xff]  }
 0x194   :  { %v2822_v39 = vmax.f32 %v2617_v16, 0.0 }
 0x195   :  { %18716 = vmatmul.mubr.msk.bf16.gmra.mrb[196].mxu1 %vm301_vm0, %v20194_v1  ;;  %v21590_v46 = vpack.c.bf16 %v2824_v27, %v2823_v20  ;;  %v21603_v1 = vpack.c.bf16 %v688_v51, %v687_v33 }
 0x196   :  { %18787 = vmatprep.mubr.msk.bf16.mxu1 %vm301_vm0, %v20195_v8  ;;  %v21593_v61 = vpack.c.bf16 %v2822_v39, %v2821_v38  ;;  %v20222_v8 = vld [vmem:[%s25710_s4] sm:$0xff]  }
 0x197   :  { %25708 = vst [vmem:[#allocation18_spill] sm:$0xff] %v21590_v46 }
 0x198   :  { %25709 = vst [vmem:[#allocation19_spill] sm:$0xff] %v21593_v61  ;;  %v18545_v11 = vpop.f32.mrb[92].mxu1 }
 0x199   :  { %v2630_v16 = vpop.f32.mrb[93].mxu1  ;;  %v2827_v20 = vmax.f32 %v18545_v11, 0.0 }
 0x19a   :  { %v18546_v21 = vpop.f32.mrb[94].mxu1  ;;  %v2825_v38 = vmax.f32 %v2630_v16, 0.0  ;;  %v18331_v16 = vpop.f32.mrb[4].mxu0 }
 0x19b   :  { %v2633_v27 = vpop.f32.mrb[95].mxu1  ;;  %v2828_v34 = vmax.f32 %v18546_v21, 0.0  ;;  %v20200_v21 = vld [vmem:[%s25691_s28 + $0x718] sm:$0xff]  }
 0x19c   :  { %v2826_v39 = vmax.f32 %v2633_v27, 0.0  ;;  %v448_v27 = vpop.f32.mrb[5].mxu0 }
 0x19d   :  { %18788 = vmatmul.mubr.msk.bf16.vlgmr.msra.gmra.mrb[200].mxu1 %vm301_vm0, %v20196_v60  ;;  %v21612_v40 = vpack.c.bf16 %v2828_v34, %v2827_v20  ;;  %v20201_v60 = vld [vmem:[%s25691_s28 + $0x720] sm:$0xff]   ;;  %v693_v20 = vmax.f32 %v18331_v16, 0.0  ;;  %v20228_v16 = vld [vmem:[%s25710_s4 + $0x18] sm:$0xff]  }
 0x19e   :  { %18791 = vmatprep.mubr.msk.bf16.mxu1 %vm301_vm0, %v20199_v0  ;;  %7015 = vmatpush1.bf16.msra.mxu1 %v20222_v8  ;;  %v21615_v33 = vpack.c.bf16 %v2826_v39, %v2825_v38  ;;  %v20227_v0 = vld [vmem:[%s25710_s4 + $0x10] sm:$0xff]   ;;  %v691_v39 = vmax.f32 %v448_v27, 0.0 }
 0x19f   :  { %25711 = vst [vmem:[#allocation20_spill] sm:$0xff] %v21612_v40  ;;  %7016 = vmatprep.subr.bf16.mxu1 %v25713_v41  ;;  %v18332_v40 = vpop.f32.mrb[6].mxu0 }
 0x1a0   :  { %25712 = vst [vmem:[#allocation21_spill] sm:$0xff] %v21615_v33  ;;  %v18549_v51 = vpop.f32.mrb[96].mxu1  ;;  %v694_v56 = vmax.f32 %v18332_v40, 0.0 }
 0x1a1   :  { %v2646_v11 = vpop.f32.mrb[97].mxu1  ;;  %v2831_v34 = vmax.f32 %v18549_v51, 0.0 }
 0x1a2   :  { %v18550_v46 = vpop.f32.mrb[98].mxu1  ;;  %7017 = vmatpush1.bf16.msra.mxu1 %v20224_v19  ;;  %v2829_v33 = vmax.f32 %v2646_v11, 0.0  ;;  %v451_v19 = vpop.f32.mrb[7].mxu0 }
 0x1a3   :  { %v2649_v8 = vpop.f32.mrb[99].mxu1  ;;  %7018 = vmatprep.subr.bf16.mxu1 %v25713_v41  ;;  %v2832_v38 = vmax.f32 %v18550_v46, 0.0  ;;  %v692_v17 = vmax.f32 %v451_v19, 0.0  ;;  %v21638_v46 = vpack.c.bf16 %v694_v56, %v693_v20 }
 0x1a4   :  { %v2830_v61 = vmax.f32 %v2649_v8, 0.0  ;;  %v20205_v8 = vld [vmem:[%s25691_s28 + $0x730] sm:$0xff]  }
 0x1a5   :  { %18792 = vmatmul.mubr.msk.bf16.gmra.mrb[204].mxu1 %vm301_vm0, %v20200_v21  ;;  %v21629_v57 = vpack.c.bf16 %v2832_v38, %v2831_v34  ;;  %v21640_v21 = vpack.c.bf16 %v692_v17, %v691_v39  ;;  %v20234_v38 = vld [vmem:[%s25710_s4 + $0x28] sm:$0xff]  }
 0x1a6   :  { %18795 = vmatprep.mubr.msk.bf16.mxu1 %vm301_vm0, %v20201_v60  ;;  %7019 = vmatpush1.bf16.msra.mxu1 %v20227_v0  ;;  %v21635_v51 = vpack.c.bf16 %v2830_v61, %v2829_v33  ;;  %v20202_v60 = vld [vmem:[%s25691_s28 + $0x728] sm:$0xff]   ;;  %v20232_v61 = vld [vmem:[%s25710_s4 + $0x20] sm:$0xff]  }
 0x1a7   :  { %25714 = vst [vmem:[#allocation22_spill] sm:$0xff] %v21629_v57  ;;  %7020 = vmatprep.subr.bf16.mxu1 %v25713_v41 }
 0x1a8   :  { %25715 = vst [vmem:[#allocation23_spill] sm:$0xff] %v21635_v51  ;;  %v18553_v11 = vpop.f32.mrb[100].mxu1 }
 0x1a9   :  { %v2662_v40 = vpop.f32.mrb[101].mxu1  ;;  %v2835_v17 = vmax.f32 %v18553_v11, 0.0  ;;  %v20206_v11 = vld [vmem:[%s25691_s28 + $0x738] sm:$0xff]  }
 0x1aa   :  { %v18554_v0 = vpop.f32.mrb[102].mxu1  ;;  %7021 = vmatpush1.bf16.msra.mxu1 %v20228_v16  ;;  %v2833_v20 = vmax.f32 %v2662_v40, 0.0 }
 0x1ab   :  { %v2665_v56 = vpop.f32.mrb[103].mxu1  ;;  %7022 = vmatprep.subr.bf16.mxu1 %v25713_v41  ;;  %v2836_v33 = vmax.f32 %v18554_v0, 0.0  ;;  %v20237_v0 = vld [vmem:[%s25710_s4 + $0x30] sm:$0xff]  }
 0x1ac   :  { %v2834_v27 = vmax.f32 %v2665_v56, 0.0 }
 0x1ad   :  { %18796 = vmatmul.mubr.msk.bf16.gmra.mrb[208].mxu1 %vm301_vm0, %v20202_v60  ;;  %v21653_v34 = vpack.c.bf16 %v2836_v33, %v2835_v17  ;;  %v20207_v60 = vld [vmem:[%s25691_s28 + $0x740] sm:$0xff]  }
 0x1ae   :  { %18799 = vmatprep.mubr.msk.bf16.mxu1 %vm301_vm0, %v20205_v8  ;;  %7023 = vmatpush1.bf16.msra.mxu1 %v20232_v61  ;;  %v21659_v39 = vpack.c.bf16 %v2834_v27, %v2833_v20  ;;  %v18335_v8 = vpop.f32.mrb[8].mxu0 }
 0x1af   :  { %25716 = vst [vmem:[#allocation24_spill] sm:$0xff] %v21653_v34  ;;  %7024 = vmatprep.subr.bf16.mxu1 %v25713_v41  ;;  %v697_v56 = vmax.f32 %v18335_v8, 0.0  ;;  %v464_v17 = vpop.f32.mrb[9].mxu0  ;;  %v20238_v8 = vld [vmem:[%s25710_s4 + $0x38] sm:$0xff]  }
 0x1b0   :  { %25717 = vst [vmem:[#allocation25_spill] sm:$0xff] %v21659_v39  ;;  %v18557_v19 = vpop.f32.mrb[104].mxu1  ;;  %v695_v27 = vmax.f32 %v464_v17, 0.0  ;;  %v18336_v34 = vpop.f32.mrb[10].mxu0 }
 0x1b1   :  { %v2678_v16 = vpop.f32.mrb[105].mxu1  ;;  %v2839_v33 = vmax.f32 %v18557_v19, 0.0  ;;  %v698_v51 = vmax.f32 %v18336_v34, 0.0 }
 0x1b2   :  { %v18558_v40 = vpop.f32.mrb[106].mxu1  ;;  %7025 = vmatpush1.bf16.msra.mxu1 %v20234_v38  ;;  %v2837_v39 = vmax.f32 %v2678_v16, 0.0  ;;  %v467_v38 = vpop.f32.mrb[11].mxu0 }
 0x1b3   :  { %v2681_v61 = vpop.f32.mrb[107].mxu1  ;;  %7026 = vmatprep.subr.bf16.mxu1 %v25713_v41  ;;  %v2840_v20 = vmax.f32 %v18558_v40, 0.0  ;;  %v696_v47 = vmax.f32 %v467_v38, 0.0  ;;  %v21682_v16 = vpack.c.bf16 %v698_v51, %v697_v56  ;;  %v20259_v56 = vld [vmem:[%s25691_s28 + $0x200] sm:$0xff]   ;;  %v20244_v38 = vld [vmem:[%s25710_s4 + $0x48] sm:$0xff]  }
 0x1b4   :  { %v2838_v57 = vmax.f32 %v2681_v61, 0.0  ;;  %v20211_v61 = vld [vmem:[%s25691_s28 + $0x750] sm:$0xff]   ;;  %18457 = vmatprep.mubr.msk.bf16.mxu0 %vm301_vm0, %v20259_v56 }
 0x1b5   :  { %18800 = vmatmul.mubr.msk.bf16.gmra.mrb[212].mxu1 %vm301_vm0, %v20206_v11  ;;  %v21673_v18 = vpack.c.bf16 %v2840_v20, %v2839_v33  ;;  %v21684_v11 = vpack.c.bf16 %v696_v47, %v695_v27  ;;  %v20260_v20 = vld [vmem:[%s25691_s28 + $0x208] sm:$0xff]  }
 0x1b6   :  { %18803 = vmatprep.mubr.msk.bf16.mxu1 %vm301_vm0, %v20207_v60  ;;  %7027 = vmatpush1.bf16.msra.mxu1 %v20237_v0  ;;  %v21679_v19 = vpack.c.bf16 %v2838_v57, %v2837_v39  ;;  %v20208_v60 = vld [vmem:[%s25691_s28 + $0x748] sm:$0xff]   ;;  %v20242_v57 = vld [vmem:[%s25710_s4 + $0x40] sm:$0xff]  }
 0x1b7   :  { %25718 = vst [vmem:[#allocation26_spill] sm:$0xff] %v21673_v18  ;;  %7028 = vmatprep.subr.bf16.mxu1 %v25713_v41  ;;  %18458 = vmatmul.mubr.msk.bf16.vlgmr.msra.gmra.mrb[56].mxu0 %vm301_vm0, %v20260_v20 }
 0x1b8   :  { %25719 = vst [vmem:[#allocation27_spill] sm:$0xff] %v21679_v19  ;;  %v18561_v40 = vpop.f32.mrb[108].mxu1 }
 0x1b9   :  { %v2694_v34 = vpop.f32.mrb[109].mxu1  ;;  %v2843_v47 = vmax.f32 %v18561_v40, 0.0 }
 0x1ba   :  { %v18562_v0 = vpop.f32.mrb[110].mxu1  ;;  %7029 = vmatpush1.bf16.msra.mxu1 %v20238_v8  ;;  %v2841_v17 = vmax.f32 %v2694_v34, 0.0 }
 0x1bb   :  { %v2697_v51 = vpop.f32.mrb[111].mxu1  ;;  %7030 = vmatprep.subr.bf16.mxu1 %v25713_v41  ;;  %v2844_v39 = vmax.f32 %v18562_v0, 0.0  ;;  %v20846_v0 = vld [vmem:[%s25690_s26] sm:$0xff]  }
 0x1bc   :  { %v2842_v33 = vmax.f32 %v2697_v51, 0.0  ;;  %18588 = vmatpush3.bf16.msra.mxu0 %v20846_v0  ;;  %v20247_v51 = vld [vmem:[%s25710_s4 + $0x50] sm:$0xff]  }
 0x1bd   :  { %18804 = vmatmul.mubr.msk.bf16.gmra.mrb[216].mxu1 %vm301_vm0, %v20208_v60  ;;  %v21703_v27 = vpack.c.bf16 %v2844_v39, %v2843_v47  ;;  %v20212_v60 = vld [vmem:[%s25691_s28 + $0x758] sm:$0xff]   ;;  %v18339_v47 = vpop.f32.mrb[12].mxu0  ;;  %18719 = vmatprep.subr.bf16.mxu0 %v20846_v0 }
 0x1be   :  { %18807 = vmatprep.mubr.msk.bf16.mxu1 %vm301_vm0, %v20211_v61  ;;  %7031 = vmatpush1.bf16.msra.mxu1 %v20242_v57  ;;  %v21709_v8 = vpack.c.bf16 %v2842_v33, %v2841_v17  ;;  %v20213_v57 = vld [vmem:[%s25691_s28 + $0x760] sm:$0xff]   ;;  %v701_v56 = vmax.f32 %v18339_v47, 0.0  ;;  %v480_v17 = vpop.f32.mrb[13].mxu0  ;;  %v20248_v0 = vld [vmem:[%s25710_s4 + $0x58] sm:$0xff]  }
 0x1bf   :  { %25720 = vst [vmem:[#allocation28_spill] sm:$0xff] %v21703_v27  ;;  %7032 = vmatprep.subr.bf16.mxu1 %v25713_v41  ;;  %v699_v27 = vmax.f32 %v480_v17, 0.0 }
 0x1c0   :  { %25721 = vst [vmem:[#allocation29_spill] sm:$0xff] %v21709_v8  ;;  %v18565_v40 = vpop.f32.mrb[112].mxu1  ;;  %v18340_v8 = vpop.f32.mrb[14].mxu0 }
 0x1c1   :  { %v2710_v34 = vpop.f32.mrb[113].mxu1  ;;  %v2847_v33 = vmax.f32 %v18565_v40, 0.0  ;;  %v483_v55 = vpop.f32.mrb[15].mxu0 }
 0x1c2   :  { %v18566_v61 = vpop.f32.mrb[114].mxu1  ;;  %7033 = vmatpush1.bf16.msra.mxu1 %v20244_v38  ;;  %v2845_v18 = vmax.f32 %v2710_v34, 0.0  ;;  %v702_v38 = vmax.f32 %v18340_v8, 0.0  ;;  %v700_v47 = vmax.f32 %v483_v55, 0.0  ;;  %v20252_v55 = vld [vmem:[%s25710_s4 + $0x60] sm:$0xff]  }
 0x1c3   :  { %v2713_v39 = vpop.f32.mrb[115].mxu1  ;;  %7034 = vmatprep.subr.bf16.mxu1 %v25713_v41  ;;  %v2848_v20 = vmax.f32 %v18566_v61, 0.0 }
 0x1c4   :  { %v2846_v19 = vmax.f32 %v2713_v39, 0.0  ;;  %v21737_v34 = vpack.c.bf16 %v702_v38, %v701_v56  ;;  %v20217_v39 = vld [vmem:[%s25691_s28 + $0x770] sm:$0xff]  }
 0x1c5   :  { %18808 = vmatmul.mubr.msk.bf16.gmra.mrb[220].mxu1 %vm301_vm0, %v20212_v60  ;;  %v21728_v32 = vpack.c.bf16 %v2848_v20, %v2847_v33  ;;  %v21739_v60 = vpack.c.bf16 %v700_v47, %v699_v27  ;;  %v20261_v56 = vld [vmem:[%s25691_s28 + $0x210] sm:$0xff]   ;;  %v20262_v20 = vld [vmem:[%s25691_s28 + $0x218] sm:$0xff]  }
 0x1c6   :  { %18811 = vmatprep.mubr.msk.bf16.mxu1 %vm301_vm0, %v20213_v57  ;;  %7035 = vmatpush1.bf16.msra.mxu1 %v20247_v51  ;;  %v21734_v40 = vpack.c.bf16 %v2846_v19, %v2845_v18  ;;  %v20214_v57 = vld [vmem:[%s25691_s28 + $0x768] sm:$0xff]  }
 0x1c7   :  { %25722 = vst [vmem:[#allocation30_spill] sm:$0xff] %v21728_v32  ;;  %7036 = vmatprep.subr.bf16.mxu1 %v25713_v41  ;;  %18461 = vmatprep.mubr.msk.bf16.mxu0 %vm301_vm0, %v20261_v56 }
 0x1c8   :  { %25723 = vst [vmem:[#allocation31_spill] sm:$0xff] %v21734_v40  ;;  %v18569_v61 = vpop.f32.mrb[116].mxu1  ;;  %18462 = vmatmul.mubr.msk.bf16.gmra.mrb[60].mxu0 %vm301_vm0, %v20262_v20 }
 0x1c9   :  { %v2726_v8 = vpop.f32.mrb[117].mxu1  ;;  %v2851_v19 = vmax.f32 %v18569_v61, 0.0 }
 0x1ca   :  { %v18570_v51 = vpop.f32.mrb[118].mxu1  ;;  %7037 = vmatpush1.bf16.msra.mxu1 %v20248_v0  ;;  %v2849_v17 = vmax.f32 %v2726_v8, 0.0  ;;  %v20254_v0 = vld [vmem:[%s25710_s4 + $0x68] sm:$0xff]  }
 0x1cb   :  { %v2729_v18 = vpop.f32.mrb[119].mxu1  ;;  %7038 = vmatprep.subr.bf16.mxu1 %v25713_v41  ;;  %v2852_v27 = vmax.f32 %v18570_v51, 0.0 }
 0x1cc   :  { %v2850_v33 = vmax.f32 %v2729_v18, 0.0  ;;  %v18343_v18 = vpop.f32.mrb[16].mxu0 }
 0x1cd   :  { %18812 = vmatmul.mubr.msk.bf16.gmra.mrb[224].mxu1 %vm301_vm0, %v20214_v57  ;;  %v21758_v38 = vpack.c.bf16 %v2852_v27, %v2851_v19  ;;  %v20218_v57 = vld [vmem:[%s25691_s28 + $0x778] sm:$0xff]   ;;  %v705_v27 = vmax.f32 %v18343_v18, 0.0  ;;  %v496_v56 = vpop.f32.mrb[17].mxu0 }
 0x1ce   :  { %18815 = vmatprep.mubr.msk.bf16.mxu1 %vm301_vm0, %v20217_v39  ;;  %7039 = vmatpush1.bf16.msra.mxu1 %v20252_v55  ;;  %v21764_v47 = vpack.c.bf16 %v2850_v33, %v2849_v17  ;;  %v20219_v39 = vld [vmem:[%s25691_s28 + $0x780] sm:$0xff]   ;;  %v20257_v55 = vld [vmem:[%s25710_s4 + $0x70] sm:$0xff]   ;;  %v703_v20 = vmax.f32 %v496_v56, 0.0  ;;  %v20258_v18 = vld [vmem:[%s25710_s4 + $0x78] sm:$0xff]  }
 0x1cf   :  { %25724 = vst [vmem:[#allocation32_spill] sm:$0xff] %v21758_v38  ;;  %7040 = vmatprep.subr.bf16.mxu1 %v25713_v41  ;;  %v18344_v38 = vpop.f32.mrb[18].mxu0 }
 0x1d0   :  { %25725 = vst [vmem:[#allocation33_spill] sm:$0xff] %v21764_v47  ;;  %v18573_v61 = vpop.f32.mrb[120].mxu1  ;;  %v706_v40 = vmax.f32 %v18344_v38, 0.0 }
 0x1d1   :  { %v2742_v8 = vpop.f32.mrb[121].mxu1  ;;  %v2855_v17 = vmax.f32 %v18573_v61, 0.0 }
 0x1d2   :  { %v18574_v51 = vpop.f32.mrb[122].mxu1  ;;  %7041 = vmatpush1.bf16.msra.mxu1 %v20254_v0  ;;  %v2853_v47 = vmax.f32 %v2742_v8, 0.0  ;;  %v499_v0 = vpop.f32.mrb[19].mxu0  ;;  %v21789_v8 = vpack.c.bf16 %v706_v40, %v705_v27 }
 0x1d3   :  { %v2745_v19 = vpop.f32.mrb[123].mxu1  ;;  %7042 = vmatprep.subr.bf16.mxu1 %v25713_v41  ;;  %v2856_v33 = vmax.f32 %v18574_v51, 0.0  ;;  %v704_v22 = vmax.f32 %v499_v0, 0.0 }
 0x1d4   :  { %v2854_v32 = vmax.f32 %v2745_v19, 0.0  ;;  %v20225_v19 = vld [vmem:[%s25691_s28 + $0x790] sm:$0xff]  }
 0x1d5   :  { %18816 = vmatmul.mubr.msk.bf16.gmra.mrb[228].mxu1 %vm301_vm0, %v20218_v57  ;;  %v21780_v26 = vpack.c.bf16 %v2856_v33, %v2855_v17  ;;  %v21791_v57 = vpack.c.bf16 %v704_v22, %v703_v20  ;;  %v20263_v22 = vld [vmem:[%s25691_s28 + $0x220] sm:$0xff]   ;;  %v20264_v17 = vld [vmem:[%s25691_s28 + $0x228] sm:$0xff]  }
 0x1d6   :  { %18819 = vmatprep.mubr.msk.bf16.mxu1 %vm301_vm0, %v20219_v39  ;;  %7043 = vmatpush1.bf16.msra.mxu1 %v20257_v55  ;;  %v21786_v61 = vpack.c.bf16 %v2854_v32, %v2853_v47  ;;  %v20220_v39 = vld [vmem:[%s25691_s28 + $0x788] sm:$0xff]  }
 0x1d7   :  { %25726 = vst [vmem:[#allocation34_spill] sm:$0xff] %v21780_v26  ;;  %7044 = vmatprep.subr.bf16.mxu1 %v25713_v41  ;;  %18465 = vmatprep.mubr.msk.bf16.mxu0 %vm301_vm0, %v20263_v22 }
 0x1d8   :  { %25727 = vst [vmem:[#allocation35_spill] sm:$0xff] %v21786_v61  ;;  %v18577_v51 = vpop.f32.mrb[124].mxu1  ;;  %18466 = vmatmul.mubr.msk.bf16.gmra.mrb[64].mxu0 %vm301_vm0, %v20264_v17 }
 0x1d9   :  { %v2758_v38 = vpop.f32.mrb[125].mxu1  ;;  %v2859_v47 = vmax.f32 %v18577_v51, 0.0  ;;  %v20226_v51 = vld [vmem:[%s25691_s28 + $0x798] sm:$0xff]  }
 0x1da   :  { %v18578_v55 = vpop.f32.mrb[126].mxu1  ;;  %7045 = vmatpush1.bf16.msra.mxu1 %v20258_v18  ;;  %v2857_v27 = vmax.f32 %v2758_v38, 0.0 }
 0x1db   :  { %v2761_v32 = vpop.f32.mrb[127].mxu1  ;;  %7303 = vmatprep.subr.bf16.mxu1 %v25713_v41  ;;  %v2860_v40 = vmax.f32 %v18578_v55, 0.0  ;;  %v18347_v55 = vpop.f32.mrb[20].mxu0 }
 0x1dc   :  { %v2858_v56 = vmax.f32 %v2761_v32, 0.0 }
 0x1dd   :  { %18820 = vmatmul.mubr.msk.bf16.gmra.mrb[232].mxu1 %vm301_vm0, %v20220_v39  ;;  %v21807_v33 = vpack.c.bf16 %v2860_v40, %v2859_v47  ;;  %v20229_v39 = vld [vmem:[%s25691_s28 + $0x7a0] sm:$0xff]   ;;  %v512_v47 = vpop.f32.mrb[21].mxu0 }
 0x1de   :  { %18823 = vmatprep.mubr.msk.bf16.mxu1 %vm301_vm0, %v20225_v19  ;;  %v21811_v20 = vpack.c.bf16 %v2858_v56, %v2857_v27  ;;  %v709_v19 = vmax.f32 %v18347_v55, 0.0  ;;  %v707_v27 = vmax.f32 %v512_v47, 0.0  ;;  %v18348_v56 = vpop.f32.mrb[22].mxu0 }
 0x1df   :  { %25728 = vst [vmem:[#allocation36_spill] sm:$0xff] %v21807_v33  ;;  %v515_v26 = vpop.f32.mrb[23].mxu0 }
 0x1e0   :  { %25729 = vst [vmem:[#allocation37_spill] sm:$0xff] %v21811_v20  ;;  %v18581_v0 = vpop.f32.mrb[128].mxu1  ;;  %v710_v20 = vmax.f32 %v18348_v56, 0.0  ;;  %v708_v7 = vmax.f32 %v515_v26, 0.0 }
 0x1e1   :  { %v2774_v18 = vpop.f32.mrb[129].mxu1  ;;  %v2863_v40 = vmax.f32 %v18581_v0, 0.0 }
 0x1e2   :  { %v18582_v38 = vpop.f32.mrb[130].mxu1  ;;  %v2861_v17 = vmax.f32 %v2774_v18, 0.0  ;;  %v21826_v54 = vpack.c.bf16 %v710_v20, %v709_v19  ;;  %v21828_v0 = vpack.c.bf16 %v708_v7, %v707_v27  ;;  %v20230_v18 = vld [vmem:[%s25691_s28 + $0x7a8] sm:$0xff]   ;;  %v20267_v19 = vld [vmem:[%s25691_s28 + $0x238] sm:$0xff]  }
 0x1e3   :  { %v2777_v32 = vpop.f32.mrb[131].mxu1  ;;  %v2864_v22 = vmax.f32 %v18582_v38, 0.0 }
 0x1e4   :  { %v2862_v33 = vmax.f32 %v2777_v32, 0.0  ;;  %v20235_v32 = vld [vmem:[%s25691_s28 + $0x7b0] sm:$0xff]  }
 0x1e5   :  { %18824 = vmatmul.mubr.msk.bf16.gmra.mrb[236].mxu1 %vm301_vm0, %v20226_v51  ;;  %v21821_v61 = vpack.c.bf16 %v2864_v22, %v2863_v40 }
 0x1e6   :  { %18827 = vmatprep.mubr.msk.bf16.mxu1 %vm301_vm0, %v20229_v39  ;;  %v21824_v24 = vpack.c.bf16 %v2862_v33, %v2861_v17  ;;  %v20266_v33 = vld [vmem:[%s25691_s28 + $0x230] sm:$0xff]   ;;  %v20236_v17 = vld [vmem:[%s25691_s28 + $0x7b8] sm:$0xff]  }
 0x1e7   :  { %25730 = vst [vmem:[#allocation38_spill] sm:$0xff] %v21821_v61  ;;  %18469 = vmatprep.mubr.msk.bf16.mxu0 %vm301_vm0, %v20266_v33 }
 0x1e8   :  { %25731 = vst [vmem:[#allocation39_spill] sm:$0xff] %v21824_v24  ;;  %v18585_v55 = vpop.f32.mrb[132].mxu1  ;;  %18470 = vmatmul.mubr.msk.bf16.gmra.mrb[68].mxu0 %vm301_vm0, %v20267_v19 }
 0x1e9   :  { %v2790_v38 = vpop.f32.mrb[133].mxu1  ;;  %v2867_v39 = vmax.f32 %v18585_v55, 0.0 }
 0x1ea   :  { %v18586_v51 = vpop.f32.mrb[134].mxu1  ;;  %v2865_v20 = vmax.f32 %v2790_v38, 0.0  ;;  %v20239_v38 = vld [vmem:[%s25691_s28 + $0x7c0] sm:$0xff]  }
 0x1eb   :  { %v2793_v47 = vpop.f32.mrb[135].mxu1  ;;  %v2868_v26 = vmax.f32 %v18586_v51, 0.0 }
 0x1ec   :  { %v2866_v7 = vmax.f32 %v2793_v47, 0.0  ;;  %v18351_v47 = vpop.f32.mrb[24].mxu0 }
 0x1ed   :  { %18828 = vmatmul.mubr.msk.bf16.gmra.mrb[240].mxu1 %vm301_vm0, %v20230_v18  ;;  %v21843_v40 = vpack.c.bf16 %v2868_v26, %v2867_v39  ;;  %v713_v33 = vmax.f32 %v18351_v47, 0.0 }
 0x1ee   :  { %18831 = vmatprep.mubr.msk.bf16.mxu1 %vm301_vm0, %v20235_v32  ;;  %v21847_v22 = vpack.c.bf16 %v2866_v7, %v2865_v20  ;;  %v528_v20 = vpop.f32.mrb[25].mxu0 }
 0x1ef   :  { %25732 = vst [vmem:[#allocation40_spill] sm:$0xff] %v21843_v40  ;;  %v711_v7 = vmax.f32 %v528_v20, 0.0  ;;  %v18352_v19 = vpop.f32.mrb[26].mxu0 }
 0x1f0   :  { %25733 = vst [vmem:[#allocation41_spill] sm:$0xff] %v21847_v22  ;;  %v18657_v27 = vpop.f32.mrb[136].mxu1  ;;  %v714_v22 = vmax.f32 %v18352_v19, 0.0  ;;  %v531_v61 = vpop.f32.mrb[27].mxu0 }
 0x1f1   :  { %v3962_v56 = vpop.f32.mrb[137].mxu1  ;;  %v4219_v18 = vmax.f32 %v18657_v27, 0.0  ;;  %v712_v27 = vmax.f32 %v531_v61, 0.0 }
 0x1f2   :  { %v18658_v55 = vpop.f32.mrb[138].mxu1  ;;  %v4217_v39 = vmax.f32 %v3962_v56, 0.0  ;;  %v21862_v9 = vpack.c.bf16 %v714_v22, %v713_v33  ;;  %v20269_v22 = vld [vmem:[%s25691_s28 + $0x240] sm:$0xff]   ;;  %v20270_v33 = vld [vmem:[%s25691_s28 + $0x248] sm:$0xff]  }
 0x1f3   :  { %v4220_v51 = vmax.f32 %v18658_v55, 0.0  ;;  %v3965_v32 = vpop.f32.mrb[139].mxu1  ;;  %18473 = vmatprep.mubr.msk.bf16.mxu0 %vm301_vm0, %v20269_v22 }
 0x1f4   :  { %v4218_v26 = vmax.f32 %v3965_v32, 0.0  ;;  %v20240_v32 = vld [vmem:[%s25691_s28 + $0x7c8] sm:$0xff]   ;;  %18474 = vmatmul.mubr.msk.bf16.gmra.mrb[72].mxu0 %vm301_vm0, %v20270_v33 }
 0x1f5   :  { %18832 = vmatmul.mubr.msk.bf16.gmra.mrb[244].mxu1 %vm301_vm0, %v20236_v17  ;;  %v21857_v40 = vpack.c.bf16 %v4220_v51, %v4219_v18  ;;  %v21867_v17 = vpack.c.bf16 %v712_v27, %v711_v7 }
 0x1f6   :  { %18835 = vmatprep.mubr.msk.bf16.mxu1 %vm301_vm0, %v20239_v38  ;;  %v21860_v24 = vpack.c.bf16 %v4218_v26, %v4217_v39  ;;  %v20245_v38 = vld [vmem:[%s25691_s28 + $0x7d0] sm:$0xff]  }
 0x1f7   :  { %25734 = vst [vmem:[#allocation42_spill] sm:$0xff] %v21857_v40 }
 0x1f8   :  { %25735 = vst [vmem:[#allocation43_spill] sm:$0xff] %v21860_v24  ;;  %v18661_v55 = vpop.f32.mrb[140].mxu1 }
 0x1f9   :  { %v3978_v56 = vpop.f32.mrb[141].mxu1  ;;  %v4223_v18 = vmax.f32 %v18661_v55, 0.0  ;;  %v20246_v55 = vld [vmem:[%s25691_s28 + $0x7d8] sm:$0xff]  }
 0x1fa   :  { %v18662_v47 = vpop.f32.mrb[142].mxu1  ;;  %v4221_v26 = vmax.f32 %v3978_v56, 0.0 }
 0x1fb   :  { %v4224_v51 = vmax.f32 %v18662_v47, 0.0  ;;  %v3981_v39 = vpop.f32.mrb[143].mxu1  ;;  %v18355_v47 = vpop.f32.mrb[28].mxu0 }
 0x1fc   :  { %v4222_v61 = vmax.f32 %v3981_v39, 0.0  ;;  %v717_v39 = vmax.f32 %v18355_v47, 0.0 }
 0x1fd   :  { %18836 = vmatmul.mubr.msk.bf16.gmra.mrb[248].mxu1 %vm301_vm0, %v20240_v32  ;;  %v21879_v20 = vpack.c.bf16 %v4224_v51, %v4223_v18  ;;  %v20249_v32 = vld [vmem:[%s25691_s28 + $0x7e0] sm:$0xff]  }
 0x1fe   :  { %18839 = vmatprep.mubr.msk.bf16.mxu1 %vm301_vm0, %v20245_v38  ;;  %v21883_v7 = vpack.c.bf16 %v4222_v61, %v4221_v26  ;;  %v544_v26 = vpop.f32.mrb[29].mxu0 }
 0x1ff   :  { %25736 = vst [vmem:[#allocation44_spill] sm:$0xff] %v21879_v20  ;;  %v715_v33 = vmax.f32 %v544_v26, 0.0  ;;  %v18356_v20 = vpop.f32.mrb[30].mxu0 }
 0x200   :  { %25737 = vst [vmem:[#allocation45_spill] sm:$0xff] %v21883_v7  ;;  %v18665_v19 = vpop.f32.mrb[144].mxu1  ;;  %v718_v7 = vmax.f32 %v18356_v20, 0.0  ;;  %v547_v40 = vpop.f32.mrb[31].mxu0  ;;  %v20255_v20 = vld [vmem:[%s25691_s28 + $0x7f0] sm:$0xff]  }
 0x201   :  { %v3994_v27 = vpop.f32.mrb[145].mxu1  ;;  %v4227_v18 = vmax.f32 %v18665_v19, 0.0  ;;  %v716_v53 = vmax.f32 %v547_v40, 0.0 }
 0x202   :  { %v18666_v56 = vpop.f32.mrb[146].mxu1  ;;  %v4225_v61 = vmax.f32 %v3994_v27, 0.0  ;;  %v21898_v19 = vpack.c.bf16 %v718_v7, %v717_v39  ;;  %v20273_v7 = vld [vmem:[%s25691_s28 + $0x258] sm:$0xff]  }
 0x203   :  { %v4228_v38 = vmax.f32 %v18666_v56, 0.0  ;;  %v3997_v51 = vpop.f32.mrb[147].mxu1  ;;  %v21900_v47 = vpack.c.bf16 %v716_v53, %v715_v33  ;;  %v20272_v53 = vld [vmem:[%s25691_s28 + $0x250] sm:$0xff]  }
 0x204   :  { %v4226_v22 = vmax.f32 %v3997_v51, 0.0  ;;  %v20250_v51 = vld [vmem:[%s25691_s28 + $0x7e8] sm:$0xff]   ;;  %18477 = vmatprep.mubr.msk.bf16.mxu0 %vm301_vm0, %v20272_v53 }
 0x205   :  { %18840 = vmatmul.mubr.msk.bf16.gmra.mrb[252].mxu1 %vm301_vm0, %v20246_v55  ;;  %v21893_v24 = vpack.c.bf16 %v4228_v38, %v4227_v18  ;;  %18478 = vmatmul.mubr.msk.bf16.gmra.mrb[76].mxu0 %vm301_vm0, %v20273_v7 }
 0x206   :  { %18843 = vmatprep.mubr.msk.bf16.mxu1 %vm301_vm0, %v20249_v32  ;;  %v21896_v10 = vpack.c.bf16 %v4226_v22, %v4225_v61 }
 0x207   :  { %25738 = vst [vmem:[#allocation46_spill] sm:$0xff] %v21893_v24 }
 0x208   :  { %25739 = vst [vmem:[#allocation47_spill] sm:$0xff] %v21896_v10  ;;  %v18669_v56 = vpop.f32.mrb[148].mxu1 }
 0x209   :  { %v4010_v27 = vpop.f32.mrb[149].mxu1  ;;  %v4231_v18 = vmax.f32 %v18669_v56, 0.0  ;;  %v20256_v56 = vld [vmem:[%s25691_s28 + $0x7f8] sm:$0xff]  }
 0x20a   :  { %v18670_v55 = vpop.f32.mrb[150].mxu1  ;;  %v4229_v38 = vmax.f32 %v4010_v27, 0.0 }
 0x20b   :  { %v4232_v32 = vmax.f32 %v18670_v55, 0.0  ;;  %v4013_v40 = vpop.f32.mrb[151].mxu1 }
 0x20c   :  { %v4230_v26 = vmax.f32 %v4013_v40, 0.0 }
 0x20d   :  { %18844 = vmatmul.mubr.msk.bf16.gmra.mrb[0].mxu1 %vm301_vm0, %v20250_v51  ;;  %v21915_v39 = vpack.c.bf16 %v4232_v32, %v4231_v18  ;;  %v18359_v51 = vpop.f32.mrb[32].mxu0 }
 0x20e   :  { %18847 = vmatprep.mubr.msk.bf16.mxu1 %vm301_vm0, %v20255_v20  ;;  %v21919_v61 = vpack.c.bf16 %v4230_v26, %v4229_v38  ;;  %v721_v32 = vmax.f32 %v18359_v51, 0.0 }
 0x20f   :  { %25740 = vst [vmem:[#allocation48_spill] sm:$0xff] %v21915_v39  ;;  %v560_v39 = vpop.f32.mrb[33].mxu0 }
 0x210   :  { %25741 = vst [vmem:[#allocation49_spill] sm:$0xff] %v21919_v61  ;;  %v18673_v22 = vpop.f32.mrb[152].mxu1  ;;  %v719_v53 = vmax.f32 %v560_v39, 0.0  ;;  %v18360_v38 = vpop.f32.mrb[34].mxu0  ;;  %v20265_v39 = vld [vmem:[%s25710_s4 + $0x80] sm:$0xff]  }
 0x211   :  { %v4026_v33 = vpop.f32.mrb[153].mxu1  ;;  %v4235_v55 = vmax.f32 %v18673_v22, 0.0  ;;  %v722_v26 = vmax.f32 %v18360_v38, 0.0  ;;  %v563_v7 = vpop.f32.mrb[35].mxu0 }
 0x212   :  { %v18674_v27 = vpop.f32.mrb[154].mxu1  ;;  %v4233_v20 = vmax.f32 %v4026_v33, 0.0  ;;  %v720_v10 = vmax.f32 %v563_v7, 0.0  ;;  %v18363_v7 = vpop.f32.mrb[36].mxu0 }
 0x213   :  { %v4236_v40 = vmax.f32 %v18674_v27, 0.0  ;;  %v4029_v18 = vpop.f32.mrb[155].mxu1  ;;  %v21931_v22 = vpack.c.bf16 %v722_v26, %v721_v32  ;;  %v20268_v32 = vld [vmem:[%s25710_s4 + $0x88] sm:$0xff]  }
 0x214   :  { %v4234_v24 = vmax.f32 %v4029_v18, 0.0  ;;  %v21933_v51 = vpack.c.bf16 %v720_v10, %v719_v53  ;;  %v20276_v10 = vld [vmem:[%s25691_s28 + $0x268] sm:$0xff]  }
 0x215   :  { %18848 = vmatmul.mubr.msk.bf16.gmra.mrb[4].mxu1 %vm301_vm0, %v20256_v56  ;;  %v21926_v61 = vpack.c.bf16 %v4236_v40, %v4235_v55 }
 0x216   :  { %7046 = vmatprep.mubr.bf16.mxu1 %v21271_v36  ;;  %v21929_v37 = vpack.c.bf16 %v4234_v24, %v4233_v20  ;;  %v20275_v24 = vld [vmem:[%s25691_s28 + $0x260] sm:$0xff]  }
 0x217   :  { %25742 = vst [vmem:[#allocation50_spill] sm:$0xff] %v21926_v61  ;;  %18481 = vmatprep.mubr.msk.bf16.mxu0 %vm301_vm0, %v20275_v24 }
 0x218   :  { %v18677_v27 = vpop.f32.mrb[156].mxu1  ;;  %18482 = vmatmul.mubr.msk.bf16.gmra.mrb[80].mxu0 %vm301_vm0, %v20276_v10 }
 0x219   :  { %v4042_v33 = vpop.f32.mrb[157].mxu1  ;;  %v4239_v56 = vmax.f32 %v18677_v27, 0.0 }
 0x21a   :  { %v18678_v18 = vpop.f32.mrb[158].mxu1  ;;  %v4237_v40 = vmax.f32 %v4042_v33, 0.0 }
 0x21b   :  { %v4240_v38 = vmax.f32 %v18678_v18, 0.0  ;;  %v4045_v55 = vpop.f32.mrb[159].mxu1 }
 0x21c   :  { %v4238_v61 = vmax.f32 %v4045_v55, 0.0 }
 0x21d   :  { %7047 = vmatmul.mubr.bf16.vlgmr.msra.gmra.mrb[8].mxu1 %v21603_v1  ;;  %v21945_v36 = vpack.c.bf16 %v4240_v38, %v4239_v56 }
 0x21e   :  { %7054 = vmatprep.mubr.bf16.mxu1 %v21268_v35  ;;  %7304 = vmatpush1.bf16.msra.mxu1 %v20265_v39  ;;  %v21951_v20 = vpack.c.bf16 %v4238_v61, %v4237_v40  ;;  %v20271_v35 = vld [vmem:[%s25710_s4 + $0x90] sm:$0xff]   ;;  %v725_v61 = vmax.f32 %v18363_v7, 0.0  ;;  %v576_v39 = vpop.f32.mrb[37].mxu0 }
 0x21f   :  { %7305 = vmatprep.subr.bf16.mxu1 %v25713_v41  ;;  %v723_v55 = vmax.f32 %v576_v39, 0.0  ;;  %v18364_v40 = vpop.f32.mrb[38].mxu0 }
 0x220   :  { %v18681_v1 = vpop.f32.mrb[160].mxu1  ;;  %v726_v24 = vmax.f32 %v18364_v40, 0.0  ;;  %v579_v10 = vpop.f32.mrb[39].mxu0 }
 0x221   :  { %v4058_v53 = vpop.f32.mrb[161].mxu1  ;;  %v4243_v27 = vmax.f32 %v18681_v1, 0.0  ;;  %v20274_v1 = vld [vmem:[%s25710_s4 + $0x98] sm:$0xff]  }
 0x222   :  { %v18682_v26 = vpop.f32.mrb[162].mxu1  ;;  %7306 = vmatpush1.bf16.msra.mxu1 %v20268_v32  ;;  %v4241_v56 = vmax.f32 %v4058_v53, 0.0  ;;  %v21970_v53 = vpack.c.bf16 %v726_v24, %v725_v61  ;;  %v20278_v61 = vld [vmem:[%s25691_s28 + $0x270] sm:$0xff]  }
 0x223   :  { %v4244_v33 = vmax.f32 %v18682_v26, 0.0  ;;  %v4061_v18 = vpop.f32.mrb[163].mxu1  ;;  %7307 = vmatprep.subr.bf16.mxu1 %v25713_v41  ;;  %v724_v26 = vmax.f32 %v579_v10, 0.0  ;;  %18485 = vmatprep.mubr.msk.bf16.mxu0 %vm301_vm0, %v20278_v61 }
 0x224   :  { %v4242_v38 = vmax.f32 %v4061_v18, 0.0 }
 0x225   :  { %7055 = vmatmul.mubr.bf16.gmra.mrb[12].mxu1 %v21598_v4  ;;  %v21961_v32 = vpack.c.bf16 %v4244_v33, %v4243_v27  ;;  %v21972_v4 = vpack.c.bf16 %v724_v26, %v723_v55  ;;  %v20279_v55 = vld [vmem:[%s25691_s28 + $0x278] sm:$0xff]  }
 0x226   :  { %7062 = vmatprep.mubr.bf16.mxu1 %v21290_v50  ;;  %7308 = vmatpush1.bf16.msra.mxu1 %v20271_v35  ;;  %v21967_v7 = vpack.c.bf16 %v4242_v38, %v4241_v56  ;;  %v20277_v50 = vld [vmem:[%s25710_s4 + $0xa0] sm:$0xff]  }
 0x227   :  { %25743 = vst [vmem:[#allocation51_spill] sm:$0xff] %v21961_v32  ;;  %7309 = vmatprep.subr.bf16.mxu1 %v25713_v41  ;;  %18486 = vmatmul.mubr.msk.bf16.gmra.mrb[84].mxu0 %vm301_vm0, %v20279_v55 }
 0x228   :  { %25744 = vst [vmem:[#allocation52_spill] sm:$0xff] %v21967_v7  ;;  %v18685_v18 = vpop.f32.mrb[164].mxu1 }
 0x229   :  { %v4074_v39 = vpop.f32.mrb[165].mxu1  ;;  %v4247_v35 = vmax.f32 %v18685_v18, 0.0  ;;  %v18367_v18 = vpop.f32.mrb[40].mxu0 }
 0x22a   :  { %v18686_v27 = vpop.f32.mrb[166].mxu1  ;;  %7310 = vmatpush1.bf16.msra.mxu1 %v20274_v1  ;;  %v4245_v56 = vmax.f32 %v4074_v39, 0.0 }
 0x22b   :  { %v4248_v33 = vmax.f32 %v18686_v27, 0.0  ;;  %v4077_v40 = vpop.f32.mrb[167].mxu1  ;;  %7311 = vmatprep.subr.bf16.mxu1 %v25713_v41 }
 0x22c   :  { %v4246_v38 = vmax.f32 %v4077_v40, 0.0 }
 0x22d   :  { %7063 = vmatmul.mubr.bf16.gmra.mrb[16].mxu1 %v21640_v21  ;;  %v21985_v24 = vpack.c.bf16 %v4248_v33, %v4247_v35  ;;  %v592_v35 = vpop.f32.mrb[41].mxu0 }
 0x22e   :  { %7070 = vmatprep.mubr.bf16.mxu1 %v21286_v49  ;;  %7312 = vmatpush1.bf16.msra.mxu1 %v20277_v50  ;;  %v21988_v10 = vpack.c.bf16 %v4246_v38, %v4245_v56  ;;  %v729_v49 = vmax.f32 %v18367_v18, 0.0  ;;  %v18368_v50 = vpop.f32.mrb[42].mxu0  ;;  %v20280_v56 = vld [vmem:[%s25710_s4 + $0xa8] sm:$0xff]   ;;  %v727_v38 = vmax.f32 %v592_v35, 0.0 }
 0x22f   :  { %25745 = vst [vmem:[#allocation53_spill] sm:$0xff] %v21985_v24  ;;  %7313 = vmatprep.subr.bf16.mxu1 %v25713_v41  ;;  %v595_v61 = vpop.f32.mrb[43].mxu0 }
 0x230   :  { %25746 = vst [vmem:[#allocation54_spill] sm:$0xff] %v21988_v10  ;;  %v18689_v1 = vpop.f32.mrb[168].mxu1 }
 0x231   :  { %v4090_v26 = vpop.f32.mrb[169].mxu1  ;;  %v4251_v39 = vmax.f32 %v18689_v1, 0.0  ;;  %v730_v1 = vmax.f32 %v18368_v50, 0.0 }
 0x232   :  { %v18690_v21 = vpop.f32.mrb[170].mxu1  ;;  %v4249_v33 = vmax.f32 %v4090_v26, 0.0  ;;  %7314 = vmatpush1.bf16.msra.mxu1 %v20280_v56 }
 0x233   :  { %v4252_v27 = vmax.f32 %v18690_v21, 0.0  ;;  %v4093_v40 = vpop.f32.mrb[171].mxu1  ;;  %v728_v21 = vmax.f32 %v595_v61, 0.0  ;;  %v22002_v18 = vpack.c.bf16 %v730_v1, %v729_v49  ;;  %7315 = vmatprep.subr.bf16.mxu1 %v25713_v41 }
 0x234   :  { %v4250_v24 = vmax.f32 %v4093_v40, 0.0 }
 0x235   :  { %7071 = vmatmul.mubr.bf16.gmra.mrb[20].mxu1 %v21638_v46  ;;  %v21997_v55 = vpack.c.bf16 %v4252_v27, %v4251_v39  ;;  %v22004_v40 = vpack.c.bf16 %v728_v21, %v727_v38  ;;  %v18371_v38 = vpop.f32.mrb[44].mxu0 }
 0x236   :  { %7078 = vmatprep.mubr.bf16.mxu1 %v21303_v63  ;;  %v22000_v10 = vpack.c.bf16 %v4250_v24, %v4249_v33  ;;  %v20281_v63 = vld [vmem:[%s25691_s28 + $0x280] sm:$0xff]   ;;  %v20282_v24 = vld [vmem:[%s25691_s28 + $0x288] sm:$0xff]   ;;  %v608_v21 = vpop.f32.mrb[45].mxu0 }
 0x237   :  { %25747 = vst [vmem:[#allocation55_spill] sm:$0xff] %v21997_v55  ;;  %18489 = vmatprep.mubr.msk.bf16.mxu0 %vm301_vm0, %v20281_v63 }
 0x238   :  { %v18693_v26 = vpop.f32.mrb[172].mxu1  ;;  %18490 = vmatmul.mubr.msk.bf16.gmra.mrb[88].mxu0 %vm301_vm0, %v20282_v24 }
 0x239   :  { %v4106_v46 = vpop.f32.mrb[173].mxu1  ;;  %v4255_v35 = vmax.f32 %v18693_v26, 0.0 }
 0x23a   :  { %v18694_v32 = vpop.f32.mrb[174].mxu1  ;;  %v4253_v27 = vmax.f32 %v4106_v46, 0.0 }
 0x23b   :  { %v4256_v7 = vmax.f32 %v18694_v32, 0.0  ;;  %v4109_v39 = vpop.f32.mrb[175].mxu1 }
 0x23c   :  { %v4254_v55 = vmax.f32 %v4109_v39, 0.0 }
 0x23d   :  { %7079 = vmatmul.mubr.bf16.gmra.mrb[24].mxu1 %v21684_v11  ;;  %v22014_v33 = vpack.c.bf16 %v4256_v7, %v4255_v35  ;;  %v733_v7 = vmax.f32 %v18371_v38, 0.0  ;;  %v18372_v35 = vpop.f32.mrb[46].mxu0 }
 0x23e   :  { %7086 = vmatprep.mubr.bf16.mxu1 %v21300_v62  ;;  %v22018_v32 = vpack.c.bf16 %v4254_v55, %v4253_v27  ;;  %v20283_v62 = vld [vmem:[%s25710_s4 + $0xb0] sm:$0xff]   ;;  %v731_v55 = vmax.f32 %v608_v21, 0.0  ;;  %v611_v39 = vpop.f32.mrb[47].mxu0  ;;  %v734_v63 = vmax.f32 %v18372_v35, 0.0 }
 0x23f   :  { %25748 = vst [vmem:[#allocation56_spill] sm:$0xff] %v22014_v33  ;;  %v732_v24 = vmax.f32 %v611_v39, 0.0  ;;  %7316 = vmatpush1.bf16.msra.mxu1 %v20283_v62  ;;  %v18375_v39 = vpop.f32.mrb[48].mxu0 }
 0x240   :  { %v18697_v49 = vpop.f32.mrb[176].mxu1  ;;  %7317 = vmatprep.subr.bf16.mxu1 %v25713_v41 }
 0x241   :  { %v4122_v50 = vpop.f32.mrb[177].mxu1  ;;  %v4259_v61 = vmax.f32 %v18697_v49, 0.0  ;;  %v22032_v38 = vpack.c.bf16 %v732_v24, %v731_v55 }
 0x242   :  { %v18698_v56 = vpop.f32.mrb[178].mxu1  ;;  %v4257_v26 = vmax.f32 %v4122_v50, 0.0 }
 0x243   :  { %v4260_v11 = vmax.f32 %v18698_v56, 0.0  ;;  %v4125_v1 = vpop.f32.mrb[179].mxu1  ;;  %v22030_v56 = vpack.c.bf16 %v734_v63, %v733_v7 }
 0x244   :  { %v4258_v46 = vmax.f32 %v4125_v1, 0.0 }
 0x245   :  { %7087 = vmatmul.mubr.bf16.gmra.mrb[28].mxu1 %v21682_v16  ;;  %v22025_v27 = vpack.c.bf16 %v4260_v11, %v4259_v61 }
 0x246   :  { %7094 = vmatprep.mubr.bf16.mxu1 %v21322_v15  ;;  %v22028_v49 = vpack.c.bf16 %v4258_v46, %v4257_v26  ;;  %v20284_v15 = vld [vmem:[%s25691_s28 + $0x290] sm:$0xff]   ;;  %v20285_v26 = vld [vmem:[%s25691_s28 + $0x298] sm:$0xff]  }
 0x247   :  { %25749 = vst [vmem:[#allocation57_spill] sm:$0xff] %v22025_v27  ;;  %18493 = vmatprep.mubr.msk.bf16.mxu0 %vm301_vm0, %v20284_v15 }
 0x248   :  { %v18701_v50 = vpop.f32.mrb[180].mxu1  ;;  %18494 = vmatmul.mubr.msk.bf16.gmra.mrb[92].mxu0 %vm301_vm0, %v20285_v26 }
 0x249   :  { %v4138_v16 = vpop.f32.mrb[181].mxu1  ;;  %v4263_v21 = vmax.f32 %v18701_v50, 0.0  ;;  %v624_v50 = vpop.f32.mrb[49].mxu0 }
 0x24a   :  { %v18702_v1 = vpop.f32.mrb[182].mxu1  ;;  %v4261_v11 = vmax.f32 %v4138_v16, 0.0 }
 0x24b   :  { %v4264_v33 = vmax.f32 %v18702_v1, 0.0  ;;  %v4141_v61 = vpop.f32.mrb[183].mxu1 }
 0x24c   :  { %v4262_v27 = vmax.f32 %v4141_v61, 0.0 }
 0x24d   :  { %7095 = vmatmul.mubr.bf16.gmra.mrb[32].mxu1 %v21739_v60  ;;  %v22042_v46 = vpack.c.bf16 %v4264_v33, %v4263_v21  ;;  %v737_v33 = vmax.f32 %v18375_v39, 0.0  ;;  %v18376_v21 = vpop.f32.mrb[50].mxu0 }
 0x24e   :  { %7102 = vmatprep.mubr.bf16.mxu1 %v21318_v14  ;;  %v22046_v7 = vpack.c.bf16 %v4262_v27, %v4261_v11  ;;  %v20286_v14 = vld [vmem:[%s25710_s4 + $0xb8] sm:$0xff]   ;;  %v735_v27 = vmax.f32 %v624_v50, 0.0  ;;  %v627_v61 = vpop.f32.mrb[51].mxu0  ;;  %v738_v15 = vmax.f32 %v18376_v21, 0.0 }
 0x24f   :  { %25750 = vst [vmem:[#allocation58_spill] sm:$0xff] %v22042_v46  ;;  %v736_v26 = vmax.f32 %v627_v61, 0.0  ;;  %7318 = vmatpush1.bf16.msra.mxu1 %v20286_v14 }
 0x250   :  { %v18705_v35 = vpop.f32.mrb[184].mxu1  ;;  %7319 = vmatprep.subr.bf16.mxu1 %v25713_v41 }
 0x251   :  { %v4154_v62 = vpop.f32.mrb[185].mxu1  ;;  %v4267_v63 = vmax.f32 %v18705_v35, 0.0  ;;  %v22060_v39 = vpack.c.bf16 %v736_v26, %v735_v27 }
 0x252   :  { %v18706_v55 = vpop.f32.mrb[186].mxu1  ;;  %v4265_v16 = vmax.f32 %v4154_v62, 0.0 }
 0x253   :  { %v4268_v60 = vmax.f32 %v18706_v55, 0.0  ;;  %v4157_v24 = vpop.f32.mrb[187].mxu1  ;;  %v22058_v55 = vpack.c.bf16 %v738_v15, %v737_v33 }
 0x254   :  { %v4266_v1 = vmax.f32 %v4157_v24, 0.0 }
 0x255   :  { %7103 = vmatmul.mubr.bf16.gmra.mrb[36].mxu1 %v21737_v34  ;;  %v22053_v11 = vpack.c.bf16 %v4268_v60, %v4267_v63  ;;  %v18379_v61 = vpop.f32.mrb[52].mxu0 }
 0x256   :  { %7110 = vmatprep.mubr.bf16.mxu1 %v21335_v29  ;;  %v22056_v35 = vpack.c.bf16 %v4266_v1, %v4265_v16  ;;  %v20287_v29 = vld [vmem:[%s25691_s28 + $0x2a0] sm:$0xff]   ;;  %v20288_v16 = vld [vmem:[%s25691_s28 + $0x2a8] sm:$0xff]  }
 0x257   :  { %25751 = vst [vmem:[#allocation59_spill] sm:$0xff] %v22053_v11  ;;  %18497 = vmatprep.mubr.msk.bf16.mxu0 %vm301_vm0, %v20287_v29 }
 0x258   :  { %v18709_v62 = vpop.f32.mrb[188].mxu1  ;;  %18498 = vmatmul.mubr.msk.bf16.gmra.mrb[96].mxu0 %vm301_vm0, %v20288_v16 }
 0x259   :  { %v4170_v34 = vpop.f32.mrb[189].mxu1  ;;  %v4271_v50 = vmax.f32 %v18709_v62, 0.0  ;;  %v640_v62 = vpop.f32.mrb[53].mxu0 }
 0x25a   :  { %v18710_v24 = vpop.f32.mrb[190].mxu1  ;;  %v4269_v60 = vmax.f32 %v4170_v34, 0.0 }
 0x25b   :  { %v4272_v46 = vmax.f32 %v18710_v24, 0.0  ;;  %v4173_v63 = vpop.f32.mrb[191].mxu1 }
 0x25c   :  { %v4270_v11 = vmax.f32 %v4173_v63, 0.0 }
 0x25d   :  { %7111 = vmatmul.mubr.bf16.gmra.mrb[40].mxu1 %v21791_v57  ;;  %v22070_v1 = vpack.c.bf16 %v4272_v46, %v4271_v50  ;;  %v741_v46 = vmax.f32 %v18379_v61, 0.0  ;;  %v18380_v50 = vpop.f32.mrb[54].mxu0 }
 0x25e   :  { %7118 = vmatprep.mubr.bf16.mxu1 %v21332_v28  ;;  %v22074_v33 = vpack.c.bf16 %v4270_v11, %v4269_v60  ;;  %v20289_v28 = vld [vmem:[%s25710_s4 + $0xc0] sm:$0xff]   ;;  %v739_v11 = vmax.f32 %v640_v62, 0.0  ;;  %v643_v63 = vpop.f32.mrb[55].mxu0  ;;  %v742_v29 = vmax.f32 %v18380_v50, 0.0 }
 0x25f   :  { %25752 = vst [vmem:[#allocation60_spill] sm:$0xff] %v22070_v1  ;;  %v740_v16 = vmax.f32 %v643_v63, 0.0  ;;  %7320 = vmatpush1.bf16.msra.mxu1 %v20289_v28 }
 0x260   :  { %v18713_v21 = vpop.f32.mrb[192].mxu1  ;;  %7321 = vmatprep.subr.bf16.mxu1 %v25713_v41 }
 0x261   :  { %v4186_v14 = vpop.f32.mrb[193].mxu1  ;;  %v4275_v15 = vmax.f32 %v18713_v21, 0.0  ;;  %v22088_v61 = vpack.c.bf16 %v740_v16, %v739_v11 }
 0x262   :  { %v18714_v27 = vpop.f32.mrb[194].mxu1  ;;  %v4273_v34 = vmax.f32 %v4186_v14, 0.0 }
 0x263   :  { %v4276_v57 = vmax.f32 %v18714_v27, 0.0  ;;  %v4189_v26 = vpop.f32.mrb[195].mxu1  ;;  %v22086_v27 = vpack.c.bf16 %v742_v29, %v741_v46  ;;  %v20292_v46 = vld [vmem:[%s25710_s4 + $0xc8] sm:$0xff]  }
 0x264   :  { %v4274_v24 = vmax.f32 %v4189_v26, 0.0  ;;  %7322 = vmatpush1.bf16.msra.mxu1 %v20292_v46 }
 0x265   :  { %7119 = vmatmul.mubr.bf16.gmra.mrb[44].mxu1 %v21789_v8  ;;  %v22081_v60 = vpack.c.bf16 %v4276_v57, %v4275_v15  ;;  %7323 = vmatprep.subr.bf16.mxu1 %v25713_v41 }
 0x266   :  { %7126 = vmatprep.mubr.bf16.mxu1 %v21354_v45  ;;  %v22084_v21 = vpack.c.bf16 %v4274_v24, %v4273_v34  ;;  %v20290_v45 = vld [vmem:[%s25691_s28 + $0x2b0] sm:$0xff]   ;;  %v20291_v24 = vld [vmem:[%s25691_s28 + $0x2b8] sm:$0xff]  }
 0x267   :  { %25753 = vst [vmem:[#allocation61_spill] sm:$0xff] %v22081_v60  ;;  %18501 = vmatprep.mubr.msk.bf16.mxu0 %vm301_vm0, %v20290_v45 }
 0x268   :  { %v18717_v14 = vpop.f32.mrb[196].mxu1  ;;  %18502 = vmatmul.mubr.msk.bf16.gmra.mrb[100].mxu0 %vm301_vm0, %v20291_v24 }
 0x269   :  { %v4202_v8 = vpop.f32.mrb[197].mxu1  ;;  %v4279_v62 = vmax.f32 %v18717_v14, 0.0 }
 0x26a   :  { %v18718_v26 = vpop.f32.mrb[198].mxu1  ;;  %v4277_v57 = vmax.f32 %v4202_v8, 0.0 }
 0x26b   :  { %v4280_v1 = vmax.f32 %v18718_v26, 0.0  ;;  %v4205_v15 = vpop.f32.mrb[199].mxu1 }
 0x26c   :  { %v4278_v60 = vmax.f32 %v4205_v15, 0.0 }
 0x26d   :  { %7127 = vmatmul.mubr.bf16.gmra.mrb[48].mxu1 %v21828_v0  ;;  %v22095_v34 = vpack.c.bf16 %v4280_v1, %v4279_v62 }
 0x26e   :  { %7134 = vmatprep.mubr.bf16.mxu1 %v21350_v44  ;;  %v22104_v50 = vpack.c.bf16 %v4278_v60, %v4277_v57 }
 0x270   :  { %v18789_v0 = vpop.f32.mrb[200].mxu1 }
 0x271   :  { %v5374_v1 = vpop.f32.mrb[201].mxu1  ;;  %v5631_v28 = vmax.f32 %v18789_v0, 0.0 }
 0x272   :  { %v18790_v44 = vpop.f32.mrb[202].mxu1  ;;  %v5629_v29 = vmax.f32 %v5374_v1, 0.0  ;;  %v20295_v1 = vld [vmem:[%s25710_s4 + $0xd0] sm:$0xff]  }
 0x273   :  { %v5632_v11 = vmax.f32 %v18790_v44, 0.0  ;;  %v5377_v63 = vpop.f32.mrb[203].mxu1  ;;  %7324 = vmatpush1.bf16.msra.mxu1 %v20295_v1 }
 0x274   :  { %v5630_v16 = vmax.f32 %v5377_v63, 0.0  ;;  %7325 = vmatprep.subr.bf16.mxu1 %v25713_v41 }
 0x275   :  { %7135 = vmatmul.mubr.bf16.gmra.mrb[52].mxu1 %v21826_v54  ;;  %v22110_v14 = vpack.c.bf16 %v5632_v11, %v5631_v28  ;;  %v20293_v54 = vld [vmem:[%s25691_s28 + $0x2c0] sm:$0xff]  }
 0x276   :  { %7142 = vmatprep.mubr.bf16.mxu1 %v21368_v59  ;;  %v22113_v60 = vpack.c.bf16 %v5630_v16, %v5629_v29  ;;  %v20294_v59 = vld [vmem:[%s25691_s28 + $0x2c8] sm:$0xff]   ;;  %18505 = vmatprep.mubr.msk.bf16.mxu0 %vm301_vm0, %v20293_v54 }
 0x277   :  { %18506 = vmatmul.mubr.msk.bf16.gmra.mrb[104].mxu0 %vm301_vm0, %v20294_v59 }
 0x278   :  { %v18793_v8 = vpop.f32.mrb[204].mxu1 }
 0x279   :  { %v5390_v26 = vpop.f32.mrb[205].mxu1  ;;  %v5635_v15 = vmax.f32 %v18793_v8, 0.0 }
 0x27a   :  { %v18794_v62 = vpop.f32.mrb[206].mxu1  ;;  %v5633_v24 = vmax.f32 %v5390_v26, 0.0 }
 0x27b   :  { %v5636_v57 = vmax.f32 %v18794_v62, 0.0  ;;  %v5393_v45 = vpop.f32.mrb[207].mxu1  ;;  %v20296_v62 = vld [vmem:[%s25710_s4 + $0xd8] sm:$0xff]  }
 0x27c   :  { %v5634_v46 = vmax.f32 %v5393_v45, 0.0  ;;  %7326 = vmatpush1.bf16.msra.mxu1 %v20296_v62 }
 0x27d   :  { %7143 = vmatmul.mubr.bf16.gmra.mrb[56].mxu1 %v21867_v17  ;;  %v22119_v0 = vpack.c.bf16 %v5636_v57, %v5635_v15  ;;  %7327 = vmatprep.subr.bf16.mxu1 %v25713_v41 }
 0x27e   :  { %7150 = vmatprep.mubr.bf16.mxu1 %v21365_v58  ;;  %v22128_v44 = vpack.c.bf16 %v5634_v46, %v5633_v24 }
 0x280   :  { %v18797_v17 = vpop.f32.mrb[208].mxu1 }
 0x281   :  { %v5406_v28 = vpop.f32.mrb[209].mxu1  ;;  %v5639_v11 = vmax.f32 %v18797_v17, 0.0 }
 0x282   :  { %v18798_v58 = vpop.f32.mrb[210].mxu1  ;;  %v5637_v16 = vmax.f32 %v5406_v28, 0.0  ;;  %v20298_v28 = vld [vmem:[%s25710_s4 + $0xe0] sm:$0xff]  }
 0x283   :  { %v5640_v63 = vmax.f32 %v18798_v58, 0.0  ;;  %v5409_v29 = vpop.f32.mrb[211].mxu1  ;;  %v20299_v58 = vld [vmem:[%s25691_s28 + $0x2d8] sm:$0xff]   ;;  %7328 = vmatpush1.bf16.msra.mxu1 %v20298_v28 }
 0x284   :  { %v5638_v8 = vmax.f32 %v5409_v29, 0.0  ;;  %7329 = vmatprep.subr.bf16.mxu1 %v25713_v41 }
 0x285   :  { %7151 = vmatmul.mubr.bf16.gmra.mrb[60].mxu1 %v21862_v9  ;;  %v22134_v26 = vpack.c.bf16 %v5640_v63, %v5639_v11 }
 0x286   :  { %7158 = vmatprep.mubr.bf16.mxu1 %v21387_v13  ;;  %v22140_v15 = vpack.c.bf16 %v5638_v8, %v5637_v16  ;;  %v20297_v13 = vld [vmem:[%s25691_s28 + $0x2d0] sm:$0xff]  }
 0x287   :  { %25754 = vst [vmem:[#allocation62_spill] sm:$0xff] %v22134_v26  ;;  %18509 = vmatprep.mubr.msk.bf16.mxu0 %vm301_vm0, %v20297_v13 }
 0x288   :  { %v18801_v57 = vpop.f32.mrb[212].mxu1  ;;  %18510 = vmatmul.mubr.msk.bf16.gmra.mrb[108].mxu0 %vm301_vm0, %v20299_v58 }
 0x289   :  { %v5422_v45 = vpop.f32.mrb[213].mxu1  ;;  %v5643_v46 = vmax.f32 %v18801_v57, 0.0 }
 0x28a   :  { %v18802_v24 = vpop.f32.mrb[214].mxu1  ;;  %v5641_v9 = vmax.f32 %v5422_v45, 0.0  ;;  %v18459_v57 = vpop.f32.mrb[56].mxu0 }
 0x28b   :  { %v5644_v54 = vmax.f32 %v18802_v24, 0.0  ;;  %v5425_v59 = vpop.f32.mrb[215].mxu1 }
 0x28c   :  { %v5642_v1 = vmax.f32 %v5425_v59, 0.0 }
 0x28d   :  { %7159 = vmatmul.mubr.bf16.gmra.mrb[64].mxu1 %v21900_v47  ;;  %v22147_v17 = vpack.c.bf16 %v5644_v54, %v5643_v46  ;;  %v2101_v46 = vmax.f32 %v18459_v57, 0.0  ;;  %v1844_v54 = vpop.f32.mrb[57].mxu0 }
 0x28e   :  { %7166 = vmatprep.mubr.bf16.mxu1 %v21383_v12  ;;  %v22156_v11 = vpack.c.bf16 %v5642_v1, %v5641_v9  ;;  %v20300_v12 = vld [vmem:[%s25710_s4 + $0xe8] sm:$0xff]   ;;  %v2099_v59 = vmax.f32 %v1844_v54, 0.0  ;;  %v18460_v9 = vpop.f32.mrb[58].mxu0  ;;  %v20301_v1 = vld [vmem:[%s25710_s4 + $0xf0] sm:$0xff]  }
 0x28f   :  { %25755 = vst [vmem:[#allocation63_spill] sm:$0xff] %v22147_v17  ;;  %7330 = vmatpush1.bf16.msra.mxu1 %v20300_v12  ;;  %v2102_v28 = vmax.f32 %v18460_v9, 0.0  ;;  %v1847_v58 = vpop.f32.mrb[59].mxu0 }
 0x290   :  { %25756 = vst [vmem:[#allocation64_spill] sm:$0xff] %v22156_v11  ;;  %v18805_v47 = vpop.f32.mrb[216].mxu1  ;;  %7331 = vmatprep.subr.bf16.mxu1 %v25713_v41  ;;  %v2100_v12 = vmax.f32 %v1847_v58, 0.0 }
 0x291   :  { %v5438_v63 = vpop.f32.mrb[217].mxu1  ;;  %v5647_v16 = vmax.f32 %v18805_v47, 0.0 }
 0x292   :  { %v18806_v29 = vpop.f32.mrb[218].mxu1  ;;  %v5645_v45 = vmax.f32 %v5438_v63, 0.0  ;;  %v22179_v57 = vpack.c.bf16 %v2100_v12, %v2099_v59  ;;  %v20304_v59 = vld [vmem:[%s25691_s28 + $0x2e8] sm:$0xff]  }
 0x293   :  { %v5648_v8 = vmax.f32 %v18806_v29, 0.0  ;;  %v5441_v62 = vpop.f32.mrb[219].mxu1  ;;  %v22174_v29 = vpack.c.bf16 %v2102_v28, %v2101_v46  ;;  %7332 = vmatpush1.bf16.msra.mxu1 %v20301_v1  ;;  %v20303_v46 = vld [vmem:[%s25691_s28 + $0x2e0] sm:$0xff]  }
 0x294   :  { %v5646_v24 = vmax.f32 %v5441_v62, 0.0  ;;  %7333 = vmatprep.subr.bf16.mxu1 %v25713_v41  ;;  %18513 = vmatprep.mubr.msk.bf16.mxu0 %vm301_vm0, %v20303_v46 }
 0x295   :  { %7167 = vmatmul.mubr.bf16.gmra.mrb[68].mxu1 %v21898_v19  ;;  %v22169_v13 = vpack.c.bf16 %v5648_v8, %v5647_v16  ;;  %v20302_v19 = vld [vmem:[%s25710_s4 + $0xf8] sm:$0xff]   ;;  %18514 = vmatmul.mubr.msk.bf16.gmra.mrb[112].mxu0 %vm301_vm0, %v20304_v59 }
 0x296   :  { %7174 = vmatprep.mubr.bf16.mxu1 %v21400_v31  ;;  %v22172_v47 = vpack.c.bf16 %v5646_v24, %v5645_v45 }
 0x297   :  { %25757 = vst [vmem:[#allocation65_spill] sm:$0xff] %v22169_v13  ;;  %7334 = vmatpush1.bf16.msra.mxu1 %v20302_v19 }
 0x298   :  { %25758 = vst [vmem:[#allocation66_spill] sm:$0xff] %v22172_v47  ;;  %v18809_v63 = vpop.f32.mrb[220].mxu1  ;;  %7592 = vmatprep.subr.bf16.mxu1 %v25713_v41 }
 0x299   :  { %v5454_v62 = vpop.f32.mrb[221].mxu1  ;;  %v5651_v31 = vmax.f32 %v18809_v63, 0.0 }
 0x29a   :  { %v18810_v16 = vpop.f32.mrb[222].mxu1  ;;  %v5649_v45 = vmax.f32 %v5454_v62, 0.0 }
 0x29b   :  { %v5652_v8 = vmax.f32 %v18810_v16, 0.0  ;;  %v5457_v54 = vpop.f32.mrb[223].mxu1  ;;  %v18463_v62 = vpop.f32.mrb[60].mxu0 }
 0x29c   :  { %v5650_v24 = vmax.f32 %v5457_v54, 0.0 }
 0x29d   :  { %7175 = vmatmul.mubr.bf16.gmra.mrb[72].mxu1 %v21933_v51  ;;  %v22187_v9 = vpack.c.bf16 %v5652_v8, %v5651_v31  ;;  %v1860_v8 = vpop.f32.mrb[61].mxu0 }
 0x29e   :  { %7182 = vmatprep.mubr.bf16.mxu1 %v21397_v30  ;;  %v22193_v1 = vpack.c.bf16 %v5650_v24, %v5649_v45  ;;  %v2105_v30 = vmax.f32 %v18463_v62, 0.0  ;;  %v2103_v54 = vmax.f32 %v1860_v8, 0.0  ;;  %v18464_v45 = vpop.f32.mrb[62].mxu0 }
 0x29f   :  { %25759 = vst [vmem:[#allocation67_spill] sm:$0xff] %v22187_v9  ;;  %v2106_v46 = vmax.f32 %v18464_v45, 0.0  ;;  %v1863_v59 = vpop.f32.mrb[63].mxu0 }
 0x2a0   :  { %25760 = vst [vmem:[#allocation68_spill] sm:$0xff] %v22193_v1  ;;  %v18813_v28 = vpop.f32.mrb[224].mxu1 }
 0x2a1   :  { %v5470_v51 = vpop.f32.mrb[225].mxu1  ;;  %v5655_v12 = vmax.f32 %v18813_v28, 0.0  ;;  %v2104_v28 = vmax.f32 %v1863_v59, 0.0  ;;  %v22203_v1 = vpack.c.bf16 %v2106_v46, %v2105_v30 }
 0x2a2   :  { %v18814_v58 = vpop.f32.mrb[226].mxu1  ;;  %v5653_v16 = vmax.f32 %v5470_v51, 0.0 }
 0x2a3   :  { %v5656_v63 = vmax.f32 %v18814_v58, 0.0  ;;  %v5473_v19 = vpop.f32.mrb[227].mxu1 }
 0x2a4   :  { %v5654_v31 = vmax.f32 %v5473_v19, 0.0  ;;  %v22205_v19 = vpack.c.bf16 %v2104_v28, %v2103_v54 }
 0x2a5   :  { %7183 = vmatmul.mubr.bf16.gmra.mrb[76].mxu1 %v21931_v22  ;;  %v22198_v24 = vpack.c.bf16 %v5656_v63, %v5655_v12 }
 0x2a6   :  { %7190 = vmatprep.mubr.bf16.mxu1 %v21419_v52  ;;  %v22201_v9 = vpack.c.bf16 %v5654_v31, %v5653_v16  ;;  %v20305_v52 = vld [vmem:[%s25691_s28 + $0x2f0] sm:$0xff]   ;;  %v20306_v16 = vld [vmem:[%s25691_s28 + $0x2f8] sm:$0xff]  }
 0x2a7   :  { %25761 = vst [vmem:[#allocation69_spill] sm:$0xff] %v22198_v24  ;;  %18517 = vmatprep.mubr.msk.bf16.mxu0 %vm301_vm0, %v20305_v52 }
 0x2a8   :  { %25762 = vst [vmem:[#allocation70_spill] sm:$0xff] %v22201_v9  ;;  %v18817_v58 = vpop.f32.mrb[228].mxu1  ;;  %18518 = vmatmul.mubr.msk.bf16.gmra.mrb[116].mxu0 %vm301_vm0, %v20306_v16 }
 0x2a9   :  { %v5486_v51 = vpop.f32.mrb[229].mxu1  ;;  %v5659_v13 = vmax.f32 %v18817_v58, 0.0 }
 0x2aa   :  { %v18818_v62 = vpop.f32.mrb[230].mxu1  ;;  %v5657_v47 = vmax.f32 %v5486_v51, 0.0 }
 0x2ab   :  { %v5660_v22 = vmax.f32 %v18818_v62, 0.0  ;;  %v5489_v8 = vpop.f32.mrb[231].mxu1  ;;  %v18467_v45 = vpop.f32.mrb[64].mxu0 }
 0x2ac   :  { %v5658_v12 = vmax.f32 %v5489_v8, 0.0  ;;  %v2109_v28 = vmax.f32 %v18467_v45, 0.0  ;;  %v1876_v58 = vpop.f32.mrb[65].mxu0 }
 0x2ad   :  { %7191 = vmatmul.mubr.bf16.gmra.mrb[80].mxu1 %v21972_v4  ;;  %v22211_v63 = vpack.c.bf16 %v5660_v22, %v5659_v13  ;;  %v2107_v62 = vmax.f32 %v1876_v58, 0.0  ;;  %v18468_v22 = vpop.f32.mrb[66].mxu0 }
 0x2ae   :  { %7198 = vmatprep.mubr.bf16.mxu1 %v21415_v48  ;;  %v22217_v31 = vpack.c.bf16 %v5658_v12, %v5657_v47  ;;  %v2110_v47 = vmax.f32 %v18468_v22, 0.0  ;;  %v1879_v12 = vpop.f32.mrb[67].mxu0 }
 0x2af   :  { %25763 = vst [vmem:[#allocation71_spill] sm:$0xff] %v22211_v63  ;;  %v2108_v16 = vmax.f32 %v1879_v12, 0.0 }
 0x2b0   :  { %25764 = vst [vmem:[#allocation72_spill] sm:$0xff] %v22217_v31  ;;  %v18821_v30 = vpop.f32.mrb[232].mxu1 }
 0x2b1   :  { %v5502_v4 = vpop.f32.mrb[233].mxu1  ;;  %v5663_v46 = vmax.f32 %v18821_v30, 0.0  ;;  %v22227_v30 = vpack.c.bf16 %v2110_v47, %v2109_v28  ;;  %v22229_v45 = vpack.c.bf16 %v2108_v16, %v2107_v62 }
 0x2b2   :  { %v18822_v54 = vpop.f32.mrb[234].mxu1  ;;  %v5661_v48 = vmax.f32 %v5502_v4, 0.0 }
 0x2b3   :  { %v5664_v59 = vmax.f32 %v18822_v54, 0.0  ;;  %v5505_v13 = vpop.f32.mrb[235].mxu1 }
 0x2b4   :  { %v5662_v51 = vmax.f32 %v5505_v13, 0.0 }
 0x2b5   :  { %v22221_v8 = vpack.c.bf16 %v5664_v59, %v5663_v46  ;;  %7199 = vmatmul.mubr.bf16.gmra.mrb[84].mxu1 %v21970_v53 }
 0x2b6   :  { %v22224_v52 = vpack.c.bf16 %v5662_v51, %v5661_v48  ;;  %7206 = vmatprep.mubr.bf16.mxu1 %v21432_v3  ;;  %v20307_v3 = vld [vmem:[%s25691_s28 + $0x400] sm:$0xff]   ;;  %v20308_v48 = vld [vmem:[%s25691_s28 + $0x408] sm:$0xff]  }
 0x2b7   :  { %25765 = vst [vmem:[#allocation73_spill] sm:$0xff] %v22221_v8  ;;  %18589 = vmatprep.mubr.msk.bf16.mxu0 %vm301_vm0, %v20307_v3 }
 0x2b8   :  { %25766 = vst [vmem:[#allocation74_spill] sm:$0xff] %v22224_v52  ;;  %v18825_v54 = vpop.f32.mrb[236].mxu1  ;;  %18590 = vmatmul.mubr.msk.bf16.vlgmr.msra.gmra.mrb[120].mxu0 %vm301_vm0, %v20308_v48 }
 0x2b9   :  { %v5518_v4 = vpop.f32.mrb[237].mxu1  ;;  %v5667_v58 = vmax.f32 %v18825_v54, 0.0 }
 0x2ba   :  { %v18826_v13 = vpop.f32.mrb[238].mxu1  ;;  %v5665_v59 = vmax.f32 %v5518_v4, 0.0 }
 0x2bb   :  { %v5668_v63 = vmax.f32 %v18826_v13, 0.0  ;;  %v5521_v46 = vpop.f32.mrb[239].mxu1  ;;  %v18471_v22 = vpop.f32.mrb[68].mxu0 }
 0x2bc   :  { %v5666_v8 = vmax.f32 %v5521_v46, 0.0  ;;  %v2113_v12 = vmax.f32 %v18471_v22, 0.0  ;;  %v1892_v16 = vpop.f32.mrb[69].mxu0 }
 0x2bd   :  { %v22231_v53 = vpack.c.bf16 %v5668_v63, %v5667_v58  ;;  %7207 = vmatmul.mubr.bf16.gmra.mrb[88].mxu1 %v22004_v40  ;;  %v22248_v40 = vld [vmem:[%s25690_s26] sm:$0xff]   ;;  %v2111_v13 = vmax.f32 %v1892_v16, 0.0  ;;  %v18472_v58 = vpop.f32.mrb[70].mxu0 }
 0x2be   :  { %v22237_v28 = vpack.c.bf16 %v5666_v8, %v5665_v59  ;;  %7214 = vmatprep.mubr.bf16.mxu1 %v21429_v2  ;;  %18720 = vmatpush3.bf16.msra.mxu0 %v22248_v40  ;;  %v2114_v59 = vmax.f32 %v18472_v58, 0.0  ;;  %v1895_v3 = vpop.f32.mrb[71].mxu0 }
 0x2bf   :  { %25767 = vst [vmem:[#allocation75_spill] sm:$0xff] %v22231_v53  ;;  %18851 = vmatprep.subr.bf16.mxu0 %v22248_v40  ;;  %v2112_v53 = vmax.f32 %v1895_v3, 0.0 }
 0x2c0   :  { %25768 = vst [vmem:[#allocation76_spill] sm:$0xff] %v22237_v28  ;;  %v18829_v51 = vpop.f32.mrb[240].mxu1 }
 0x2c1   :  { %v5534_v63 = vpop.f32.mrb[241].mxu1  ;;  %v5671_v2 = vmax.f32 %v18829_v51, 0.0  ;;  %v20309_v51 = vld [vmem:[%s25691_s28 + $0x410] sm:$0xff]  }
 0x2c2   :  { %v18830_v62 = vpop.f32.mrb[242].mxu1  ;;  %v5669_v54 = vmax.f32 %v5534_v63, 0.0  ;;  %v20310_v63 = vld [vmem:[%s25691_s28 + $0x418] sm:$0xff]   ;;  %18593 = vmatprep.mubr.msk.bf16.mxu0 %vm301_vm0, %v20309_v51 }
 0x2c3   :  { %v5672_v8 = vmax.f32 %v18830_v62, 0.0  ;;  %v5537_v47 = vpop.f32.mrb[243].mxu1  ;;  %v22264_v62 = vpack.c.bf16 %v2114_v59, %v2113_v12  ;;  %18594 = vmatmul.mubr.msk.bf16.gmra.mrb[124].mxu0 %vm301_vm0, %v20310_v63 }
 0x2c4   :  { %v5670_v4 = vmax.f32 %v5537_v47, 0.0 }
 0x2c5   :  { %v22252_v46 = vpack.c.bf16 %v5672_v8, %v5671_v2  ;;  %7215 = vmatmul.mubr.bf16.gmra.mrb[92].mxu1 %v22002_v18  ;;  %v22266_v2 = vpack.c.bf16 %v2112_v53, %v2111_v13  ;;  %v20311_v53 = vld [vmem:[%s25691_s28 + $0x420] sm:$0xff]   ;;  %v20312_v13 = vld [vmem:[%s25691_s28 + $0x428] sm:$0xff]  }
 0x2c6   :  { %v22255_v48 = vpack.c.bf16 %v5670_v4, %v5669_v54  ;;  %7222 = vmatprep.mubr.bf16.mxu1 %v21451_v25  ;;  %18597 = vmatprep.mubr.msk.bf16.mxu0 %vm301_vm0, %v20311_v53 }
 0x2c7   :  { %25769 = vst [vmem:[#allocation77_spill] sm:$0xff] %v22252_v46 }
 0x2c8   :  { %25770 = vst [vmem:[#allocation78_spill] sm:$0xff] %v22255_v48  ;;  %v18833_v22 = vpop.f32.mrb[244].mxu1 }
 0x2c9   :  { %v5550_v18 = vpop.f32.mrb[245].mxu1  ;;  %v5675_v8 = vmax.f32 %v18833_v22, 0.0 }
 0x2ca   :  { %v18834_v25 = vpop.f32.mrb[246].mxu1  ;;  %v5673_v54 = vmax.f32 %v5550_v18, 0.0 }
 0x2cb   :  { %v5676_v47 = vmax.f32 %v18834_v25, 0.0  ;;  %v5553_v16 = vpop.f32.mrb[247].mxu1  ;;  %18598 = vmatmul.mubr.msk.bf16.gmra.mrb[128].mxu0 %vm301_vm0, %v20312_v13 }
 0x2cc   :  { %v5674_v4 = vmax.f32 %v5553_v16, 0.0 }
 0x2cd   :  { %v22270_v58 = vpack.c.bf16 %v5676_v47, %v5675_v8  ;;  %7223 = vmatmul.mubr.bf16.gmra.mrb[96].mxu1 %v22032_v38  ;;  %v18475_v38 = vpop.f32.mrb[72].mxu0 }
 0x2ce   :  { %v22273_v12 = vpack.c.bf16 %v5674_v4, %v5673_v54  ;;  %7230 = vmatprep.mubr.bf16.mxu1 %v21447_v23  ;;  %v2117_v23 = vmax.f32 %v18475_v38, 0.0  ;;  %v1908_v25 = vpop.f32.mrb[73].mxu0 }
 0x2cf   :  { %25771 = vst [vmem:[#allocation79_spill] sm:$0xff] %v22270_v58  ;;  %v2115_v16 = vmax.f32 %v1908_v25, 0.0  ;;  %v18476_v54 = vpop.f32.mrb[74].mxu0 }
 0x2d0   :  { %25772 = vst [vmem:[#allocation80_spill] sm:$0xff] %v22273_v12  ;;  %v18837_v59 = vpop.f32.mrb[248].mxu1  ;;  %v2118_v58 = vmax.f32 %v18476_v54, 0.0  ;;  %v1911_v53 = vpop.f32.mrb[75].mxu0 }
 0x2d1   :  { %v5566_v3 = vpop.f32.mrb[249].mxu1  ;;  %v5679_v63 = vmax.f32 %v18837_v59, 0.0  ;;  %v2116_v13 = vmax.f32 %v1911_v53, 0.0  ;;  %v20313_v59 = vld [vmem:[%s25691_s28 + $0x430] sm:$0xff]  }
 0x2d2   :  { %v18838_v51 = vpop.f32.mrb[250].mxu1  ;;  %v5677_v8 = vmax.f32 %v5566_v3, 0.0  ;;  %v20314_v3 = vld [vmem:[%s25691_s28 + $0x438] sm:$0xff]   ;;  %18601 = vmatprep.mubr.msk.bf16.mxu0 %vm301_vm0, %v20313_v59 }
 0x2d3   :  { %v5680_v22 = vmax.f32 %v18838_v51, 0.0  ;;  %v5569_v18 = vpop.f32.mrb[251].mxu1  ;;  %v22296_v51 = vpack.c.bf16 %v2118_v58, %v2117_v23  ;;  %18602 = vmatmul.mubr.msk.bf16.gmra.mrb[132].mxu0 %vm301_vm0, %v20314_v3  ;;  %v20315_v23 = vld [vmem:[%s25691_s28 + $0x440] sm:$0xff]  }
 0x2d4   :  { %v5678_v47 = vmax.f32 %v5569_v18, 0.0  ;;  %18605 = vmatprep.mubr.msk.bf16.mxu0 %vm301_vm0, %v20315_v23 }
 0x2d5   :  { %v22284_v4 = vpack.c.bf16 %v5680_v22, %v5679_v63  ;;  %7231 = vmatmul.mubr.bf16.gmra.mrb[100].mxu1 %v22030_v56  ;;  %v22298_v63 = vpack.c.bf16 %v2116_v13, %v2115_v16  ;;  %v20316_v16 = vld [vmem:[%s25691_s28 + $0x448] sm:$0xff]  }
 0x2d6   :  { %v22287_v12 = vpack.c.bf16 %v5678_v47, %v5677_v8  ;;  %7238 = vmatprep.mubr.bf16.mxu1 %v21464_v43 }
 0x2d7   :  { %25773 = vst [vmem:[#allocation81_spill] sm:$0xff] %v22284_v4 }
 0x2d8   :  { %25774 = vst [vmem:[#allocation82_spill] sm:$0xff] %v22287_v12  ;;  %v18841_v38 = vpop.f32.mrb[252].mxu1 }
 0x2d9   :  { %v5582_v56 = vpop.f32.mrb[253].mxu1  ;;  %v5683_v22 = vmax.f32 %v18841_v38, 0.0 }
 0x2da   :  { %v18842_v43 = vpop.f32.mrb[254].mxu1  ;;  %v5681_v8 = vmax.f32 %v5582_v56, 0.0 }
 0x2db   :  { %v5684_v18 = vmax.f32 %v18842_v43, 0.0  ;;  %v5585_v25 = vpop.f32.mrb[255].mxu1  ;;  %18606 = vmatmul.mubr.msk.bf16.gmra.mrb[136].mxu0 %vm301_vm0, %v20316_v16 }
 0x2dc   :  { %v5682_v47 = vmax.f32 %v5585_v25, 0.0 }
 0x2dd   :  { %v22302_v54 = vpack.c.bf16 %v5684_v18, %v5683_v22  ;;  %7239 = vmatmul.mubr.bf16.gmra.mrb[104].mxu1 %v22060_v39  ;;  %v18479_v39 = vpop.f32.mrb[76].mxu0 }
 0x2de   :  { %v22305_v58 = vpack.c.bf16 %v5682_v47, %v5681_v8  ;;  %7246 = vmatprep.mubr.bf16.mxu1 %v21461_v42  ;;  %v2121_v42 = vmax.f32 %v18479_v39, 0.0  ;;  %v1924_v43 = vpop.f32.mrb[77].mxu0 }
 0x2df   :  { %25775 = vst [vmem:[#allocation83_spill] sm:$0xff] %v22302_v54  ;;  %v2119_v25 = vmax.f32 %v1924_v43, 0.0  ;;  %v18480_v8 = vpop.f32.mrb[78].mxu0 }
 0x2e0   :  { %25776 = vst [vmem:[#allocation84_spill] sm:$0xff] %v22305_v58  ;;  %v18845_v53 = vpop.f32.mrb[0].mxu1  ;;  %v2122_v54 = vmax.f32 %v18480_v8, 0.0  ;;  %v1927_v23 = vpop.f32.mrb[79].mxu0 }
 0x2e1   :  { %v5598_v13 = vpop.f32.mrb[1].mxu1  ;;  %v5687_v3 = vmax.f32 %v18845_v53, 0.0  ;;  %v2120_v16 = vmax.f32 %v1927_v23, 0.0  ;;  %v20318_v53 = vld [vmem:[%s25691_s28 + $0x450] sm:$0xff]  }
 0x2e2   :  { %v18846_v59 = vpop.f32.mrb[2].mxu1  ;;  %v5685_v22 = vmax.f32 %v5598_v13, 0.0  ;;  %v20319_v13 = vld [vmem:[%s25691_s28 + $0x458] sm:$0xff]   ;;  %18609 = vmatprep.mubr.msk.bf16.mxu0 %vm301_vm0, %v20318_v53 }
 0x2e3   :  { %v5688_v38 = vmax.f32 %v18846_v59, 0.0  ;;  %v5601_v56 = vpop.f32.mrb[3].mxu1  ;;  %v22328_v59 = vpack.c.bf16 %v2122_v54, %v2121_v42  ;;  %18610 = vmatmul.mubr.msk.bf16.gmra.mrb[140].mxu0 %vm301_vm0, %v20319_v13  ;;  %v20320_v42 = vld [vmem:[%s25691_s28 + $0x460] sm:$0xff]  }
 0x2e4   :  { %v5686_v18 = vmax.f32 %v5601_v56, 0.0  ;;  %18613 = vmatprep.mubr.msk.bf16.mxu0 %vm301_vm0, %v20320_v42  ;;  %v20325_v42 = vld [vmem:[%s25691_s28 + $0x480] sm:$0xff]  }
 0x2e5   :  { %v22316_v47 = vpack.c.bf16 %v5688_v38, %v5687_v3  ;;  %7247 = vmatmul.mubr.bf16.gmra.mrb[108].mxu1 %v22058_v55  ;;  %v22330_v3 = vpack.c.bf16 %v2120_v16, %v2119_v25  ;;  %v20321_v25 = vld [vmem:[%s25691_s28 + $0x468] sm:$0xff]  }
 0x2e6   :  { %v22319_v58 = vpack.c.bf16 %v5686_v18, %v5685_v22  ;;  %7254 = vmatprep.mubr.bf16.mxu1 %v21485_v6 }
 0x2e7   :  { %25777 = vst [vmem:[#allocation85_spill] sm:$0xff] %v22316_v47 }
 0x2e8   :  { %25778 = vst [vmem:[#allocation86_spill] sm:$0xff] %v22319_v58  ;;  %v18849_v39 = vpop.f32.mrb[4].mxu1 }
 0x2e9   :  { %v5614_v55 = vpop.f32.mrb[5].mxu1  ;;  %v5691_v38 = vmax.f32 %v18849_v39, 0.0 }
 0x2ea   :  { %v18850_v6 = vpop.f32.mrb[6].mxu1  ;;  %v5689_v22 = vmax.f32 %v5614_v55, 0.0 }
 0x2eb   :  { %v5692_v56 = vmax.f32 %v18850_v6, 0.0  ;;  %v5617_v43 = vpop.f32.mrb[7].mxu1  ;;  %18614 = vmatmul.mubr.msk.bf16.gmra.mrb[144].mxu0 %vm301_vm0, %v20321_v25  ;;  %v18483_v23 = vpop.f32.mrb[80].mxu0  ;;  %v20323_v6 = vld [vmem:[%s25691_s28 + $0x470] sm:$0xff]   ;;  %v20326_v25 = vld [vmem:[%s25691_s28 + $0x488] sm:$0xff]  }
 0x2ec   :  { %v5690_v18 = vmax.f32 %v5617_v43, 0.0  ;;  %v2125_v16 = vmax.f32 %v18483_v23, 0.0  ;;  %v1940_v53 = vpop.f32.mrb[81].mxu0  ;;  %18617 = vmatprep.mubr.msk.bf16.mxu0 %vm301_vm0, %v20323_v6 }
 0x2ed   :  { %v22334_v8 = vpack.c.bf16 %v5692_v56, %v5691_v38  ;;  %7255 = vmatmul.mubr.bf16.gmra.mrb[112].mxu1 %v22088_v61  ;;  %v2123_v61 = vmax.f32 %v1940_v53, 0.0  ;;  %v18484_v13 = vpop.f32.mrb[82].mxu0  ;;  %v20324_v38 = vld [vmem:[%s25691_s28 + $0x478] sm:$0xff]  }
 0x2ee   :  { %v22337_v54 = vpack.c.bf16 %v5690_v18, %v5689_v22  ;;  %7262 = vmatprep.mubr.bf16.mxu1 %v21480_v5  ;;  %v25781_v5 = vld [vmem:[#allocation6_spill] sm:$0xff]  ;;  %v2126_v39 = vmax.f32 %v18484_v13, 0.0  ;;  %v1943_v55 = vpop.f32.mrb[83].mxu0  ;;  %v25782_v22 = vld [vmem:[#allocation3_spill] sm:$0xff] }
 0x2ef   :  { %25779 = vst [vmem:[#allocation87_spill] sm:$0xff] %v22334_v8  ;;  %v2124_v56 = vmax.f32 %v1943_v55, 0.0  ;;  %v25783_v18 = vld [vmem:[#allocation7_spill] sm:$0xff] }
 0x2f0   :  { %25780 = vst [vmem:[#allocation88_spill] sm:$0xff] %v22337_v54  ;;  %v22356_v43 = vpack.c.bf16 %v2126_v39, %v2125_v16  ;;  %v25785_v39 = vld [vmem:[#allocation8_spill] sm:$0xff] }
 0x2f3   :  { %18618 = vmatmul.mubr.msk.bf16.gmra.mrb[148].mxu0 %vm301_vm0, %v20324_v38  ;;  %v20328_v38 = vld [vmem:[%s25691_s28 + $0x490] sm:$0xff]  }
 0x2f4   :  { %18621 = vmatprep.mubr.msk.bf16.mxu0 %vm301_vm0, %v20325_v42 }
 0x2f5   :  { %7263 = vmatmul.mubr.bf16.gmra.mrb[116].mxu1 %v22086_v27  ;;  %v22359_v27 = vpack.c.bf16 %v2124_v56, %v2123_v61  ;;  %v25784_v61 = vld [vmem:[#allocation2_spill] sm:$0xff]  ;;  %v20329_v56 = vld [vmem:[%s25691_s28 + $0x498] sm:$0xff]  }
 0x2f6   :  { %7270 = vmatprep.mubr.bf16.mxu1 %v25781_v5 }
 0x2fa   :  { %v18487_v23 = vpop.f32.mrb[84].mxu0 }
 0x2fb   :  { %18622 = vmatmul.mubr.msk.bf16.gmra.mrb[152].mxu0 %vm301_vm0, %v20326_v25  ;;  %v2129_v16 = vmax.f32 %v18487_v23, 0.0  ;;  %v1956_v53 = vpop.f32.mrb[85].mxu0  ;;  %v25786_v25 = vld [vmem:[#allocation5_spill] sm:$0xff] }
 0x2fc   :  { %v2127_v13 = vmax.f32 %v1956_v53, 0.0  ;;  %v18488_v5 = vpop.f32.mrb[86].mxu0  ;;  %18625 = vmatprep.mubr.msk.bf16.mxu0 %vm301_vm0, %v20328_v38  ;;  %v25787_v23 = vld [vmem:[#allocation9_spill] sm:$0xff]  ;;  %v20330_v53 = vld [vmem:[%s25691_s28 + $0x4a0] sm:$0xff]  }
 0x2fd   :  { %7271 = vmatmul.mubr.bf16.gmra.mrb[120].mxu1 %v25782_v22  ;;  %v2130_v55 = vmax.f32 %v18488_v5, 0.0  ;;  %v1959_v6 = vpop.f32.mrb[87].mxu0 }
 0x2fe   :  { %7278 = vmatprep.mubr.bf16.mxu1 %v25783_v18  ;;  %v2128_v22 = vmax.f32 %v1959_v6, 0.0  ;;  %v25788_v6 = vld [vmem:[#allocation4_spill] sm:$0xff] }
 0x2ff   :  { %v22380_v18 = vpack.c.bf16 %v2130_v55, %v2129_v16 }
 0x300   :  { %v22383_v42 = vpack.c.bf16 %v2128_v22, %v2127_v13  ;;  %v25789_v22 = vld [vmem:[#allocation10_spill] sm:$0xff] }
 0x303   :  { %18626 = vmatmul.mubr.msk.bf16.gmra.mrb[156].mxu0 %vm301_vm0, %v20329_v56 }
 0x304   :  { %18629 = vmatprep.mubr.msk.bf16.mxu0 %vm301_vm0, %v20330_v53  ;;  %v20334_v53 = vld [vmem:[%s25691_s28 + $0x4b8] sm:$0xff]  }
 0x305   :  { %7279 = vmatmul.mubr.bf16.gmra.mrb[124].mxu1 %v25784_v61  ;;  %v20331_v61 = vld [vmem:[%s25691_s28 + $0x4a8] sm:$0xff]  }
 0x306   :  { %7286 = vmatprep.mubr.bf16.mxu1 %v25785_v39 }
 0x30b   :  { %18630 = vmatmul.mubr.msk.bf16.gmra.mrb[160].mxu0 %vm301_vm0, %v20331_v61  ;;  %v18491_v16 = vpop.f32.mrb[88].mxu0 }
 0x30c   :  { %v2133_v13 = vmax.f32 %v18491_v16, 0.0  ;;  %v1972_v5 = vpop.f32.mrb[89].mxu0 }
 0x30d   :  { %7287 = vmatmul.mubr.bf16.gmra.mrb[128].mxu1 %v25786_v25  ;;  %v2131_v39 = vmax.f32 %v1972_v5, 0.0  ;;  %v18492_v55 = vpop.f32.mrb[90].mxu0  ;;  %v20317_v5 = vld [vmem:[%s25710_s4 + $0x100] sm:$0xff]  }
 0x30e   :  { %7294 = vmatprep.mubr.bf16.mxu1 %v25787_v23  ;;  %v2134_v38 = vmax.f32 %v18492_v55, 0.0  ;;  %v1975_v56 = vpop.f32.mrb[91].mxu0  ;;  %v20333_v23 = vld [vmem:[%s25691_s28 + $0x4b0] sm:$0xff]   ;;  %v25790_v55 = vld [vmem:[#allocation11_spill] sm:$0xff] }
 0x30f   :  { %v2132_v25 = vmax.f32 %v1975_v56, 0.0  ;;  %18633 = vmatprep.mubr.msk.bf16.mxu0 %vm301_vm0, %v20333_v23 }
 0x310   :  { %v22404_v61 = vpack.c.bf16 %v2134_v38, %v2133_v13  ;;  %v20322_v13 = vld [vmem:[%s25710_s4 + $0x108] sm:$0xff]  }
 0x311   :  { %v22406_v16 = vpack.c.bf16 %v2132_v25, %v2131_v39  ;;  %v20335_v39 = vld [vmem:[%s25691_s28 + $0x4c0] sm:$0xff]  }
 0x313   :  { %18634 = vmatmul.mubr.msk.bf16.gmra.mrb[164].mxu0 %vm301_vm0, %v20334_v53 }
 0x314   :  { %18637 = vmatprep.mubr.msk.bf16.mxu0 %vm301_vm0, %v20335_v39 }
 0x315   :  { %7295 = vmatmul.mubr.bf16.gmra.mrb[132].mxu1 %v25788_v6  ;;  %v20336_v6 = vld [vmem:[%s25691_s28 + $0x4c8] sm:$0xff]  }
 0x316   :  { %7335 = vmatprep.mubr.bf16.mxu1 %v25789_v22 }
 0x31b   :  { %18638 = vmatmul.mubr.msk.bf16.gmra.mrb[168].mxu0 %vm301_vm0, %v20336_v6  ;;  %v18495_v38 = vpop.f32.mrb[92].mxu0  ;;  %v20338_v6 = vld [vmem:[%s25691_s28 + $0x4d0] sm:$0xff]  }
 0x31c   :  { %v2137_v56 = vmax.f32 %v18495_v38, 0.0  ;;  %v1988_v22 = vpop.f32.mrb[93].mxu0  ;;  %v20339_v38 = vld [vmem:[%s25691_s28 + $0x4d8] sm:$0xff]   ;;  %18641 = vmatprep.mubr.msk.bf16.mxu0 %vm301_vm0, %v20338_v6 }
 0x31d   :  { %7336 = vmatmul.mubr.bf16.vlgmr.msra.gmra.mrb[8].mxu1 %v22179_v57  ;;  %v20327_v57 = vld [vmem:[%s25710_s4 + $0x110] sm:$0xff]   ;;  %v2135_v25 = vmax.f32 %v1988_v22, 0.0  ;;  %v18496_v23 = vpop.f32.mrb[94].mxu0 }
 0x31e   :  { %7343 = vmatprep.mubr.bf16.mxu1 %v25790_v55  ;;  %7593 = vmatpush1.bf16.msra.mxu1 %v20317_v5  ;;  %v2138_v53 = vmax.f32 %v18496_v23, 0.0  ;;  %v1991_v5 = vpop.f32.mrb[95].mxu0  ;;  %v25791_v55 = vld [vmem:[#allocation13_spill] sm:$0xff]  ;;  %v25792_v23 = vld [vmem:[#allocation12_spill] sm:$0xff] }
 0x31f   :  { %7594 = vmatprep.subr.bf16.mxu1 %v25713_v41  ;;  %v2136_v39 = vmax.f32 %v1991_v5, 0.0 }
 0x321   :  { %v22445_v22 = vpack.c.bf16 %v2136_v39, %v2135_v25  ;;  %v20341_v25 = vld [vmem:[%s25691_s28 + $0x4e8] sm:$0xff]  }
 0x322   :  { %7595 = vmatpush1.bf16.msra.mxu1 %v20322_v13  ;;  %v20332_v13 = vld [vmem:[%s25710_s4 + $0x118] sm:$0xff]  }
 0x323   :  { %7596 = vmatprep.subr.bf16.mxu1 %v25713_v41  ;;  %18642 = vmatmul.mubr.msk.bf16.gmra.mrb[172].mxu0 %vm301_vm0, %v20339_v38 }
 0x325   :  { %7344 = vmatmul.mubr.bf16.gmra.mrb[12].mxu1 %v22174_v29  ;;  %v22443_v29 = vpack.c.bf16 %v2138_v53, %v2137_v56  ;;  %v20340_v56 = vld [vmem:[%s25691_s28 + $0x4e0] sm:$0xff]   ;;  %v20342_v53 = vld [vmem:[%s25710_s4 + $0x128] sm:$0xff]  }
 0x326   :  { %7351 = vmatprep.mubr.bf16.mxu1 %v25791_v55  ;;  %7597 = vmatpush1.bf16.msra.mxu1 %v20327_v57  ;;  %v20337_v57 = vld [vmem:[%s25710_s4 + $0x120] sm:$0xff]  }
 0x327   :  { %7598 = vmatprep.subr.bf16.mxu1 %v25713_v41  ;;  %18645 = vmatprep.mubr.msk.bf16.mxu0 %vm301_vm0, %v20340_v56  ;;  %v20343_v56 = vld [vmem:[%s25691_s28 + $0x4f0] sm:$0xff]  }
 0x32a   :  { %7599 = vmatpush1.bf16.msra.mxu1 %v20332_v13 }
 0x32b   :  { %7600 = vmatprep.subr.bf16.mxu1 %v25713_v41  ;;  %18646 = vmatmul.mubr.msk.bf16.gmra.mrb[176].mxu0 %vm301_vm0, %v20341_v25  ;;  %v20344_v25 = vld [vmem:[%s25691_s28 + $0x4f8] sm:$0xff]  }
 0x32c   :  { %18649 = vmatprep.mubr.msk.bf16.mxu0 %vm301_vm0, %v20343_v56 }
 0x32d   :  { %7352 = vmatmul.mubr.bf16.gmra.mrb[16].mxu1 %v22205_v19  ;;  %v18499_v19 = vpop.f32.mrb[96].mxu0 }
 0x32e   :  { %7359 = vmatprep.mubr.bf16.mxu1 %v25792_v23  ;;  %7601 = vmatpush1.bf16.msra.mxu1 %v20337_v57  ;;  %v2141_v5 = vmax.f32 %v18499_v19, 0.0  ;;  %v2004_v55 = vpop.f32.mrb[97].mxu0  ;;  %v25793_v57 = vld [vmem:[#allocation15_spill] sm:$0xff] }
 0x32f   :  { %7602 = vmatprep.subr.bf16.mxu1 %v25713_v41  ;;  %v2139_v13 = vmax.f32 %v2004_v55, 0.0  ;;  %v18500_v39 = vpop.f32.mrb[98].mxu0  ;;  %v20345_v55 = vld [vmem:[%s25691_s28 + $0x600] sm:$0xff]  }
 0x330   :  { %v2142_v6 = vmax.f32 %v18500_v39, 0.0  ;;  %v2007_v38 = vpop.f32.mrb[99].mxu0  ;;  %v20346_v39 = vld [vmem:[%s25691_s28 + $0x608] sm:$0xff]  }
 0x331   :  { %v2140_v23 = vmax.f32 %v2007_v38, 0.0 }
 0x332   :  { %7603 = vmatpush1.bf16.msra.mxu1 %v20342_v53  ;;  %v22476_v53 = vpack.c.bf16 %v2142_v6, %v2141_v5  ;;  %v20347_v5 = vld [vmem:[%s25710_s4 + $0x130] sm:$0xff]  }
 0x333   :  { %7604 = vmatprep.subr.bf16.mxu1 %v25713_v41  ;;  %v22478_v19 = vpack.c.bf16 %v2140_v23, %v2139_v13  ;;  %18650 = vmatmul.mubr.msk.bf16.gmra.mrb[180].mxu0 %vm301_vm0, %v20344_v25  ;;  %v25795_v23 = vld [vmem:[#allocation17_spill] sm:$0xff] }
 0x334   :  { %18721 = vmatprep.mubr.msk.bf16.mxu0 %vm301_vm0, %v20345_v55  ;;  %v20349_v55 = vld [vmem:[%s25691_s28 + $0x618] sm:$0xff]  }
 0x335   :  { %7360 = vmatmul.mubr.bf16.gmra.mrb[20].mxu1 %v22203_v1  ;;  %v25794_v1 = vld [vmem:[#allocation14_spill] sm:$0xff] }
 0x336   :  { %7367 = vmatprep.mubr.bf16.mxu1 %v25793_v57  ;;  %7605 = vmatpush1.bf16.msra.mxu1 %v20347_v5  ;;  %v25796_v5 = vld [vmem:[#allocation16_spill] sm:$0xff] }
 0x337   :  { %7606 = vmatprep.subr.bf16.mxu1 %v25713_v41 }
 0x33b   :  { %18722 = vmatmul.mubr.msk.bf16.vlgmr.msra.gmra.mrb[184].mxu0 %vm301_vm0, %v20346_v39 }
 0x33c   :  { %18852 = vmatpush3.bf16.msra.mxu0 %v22248_v40 }
 0x33d   :  { %7368 = vmatmul.mubr.bf16.gmra.mrb[24].mxu1 %v22229_v45  ;;  %v18503_v45 = vpop.f32.mrb[100].mxu0 }
 0x33e   :  { %7375 = vmatprep.mubr.bf16.mxu1 %v25794_v1  ;;  %v2145_v13 = vmax.f32 %v18503_v45, 0.0  ;;  %v2020_v6 = vpop.f32.mrb[101].mxu0  ;;  %v20348_v1 = vld [vmem:[%s25691_s28 + $0x610] sm:$0xff]   ;;  %v20350_v45 = vld [vmem:[%s25691_s28 + $0x620] sm:$0xff]  }
 0x33f   :  { %v2143_v38 = vmax.f32 %v2020_v6, 0.0  ;;  %v18504_v57 = vpop.f32.mrb[102].mxu0  ;;  %18725 = vmatprep.mubr.msk.bf16.mxu0 %vm301_vm0, %v20348_v1  ;;  %v20351_v6 = vld [vmem:[%s25691_s28 + $0x628] sm:$0xff]  }
 0x340   :  { %v2146_v56 = vmax.f32 %v18504_v57, 0.0  ;;  %v2023_v25 = vpop.f32.mrb[103].mxu0 }
 0x341   :  { %v2144_v40 = vmax.f32 %v2023_v25, 0.0  ;;  %v25797_v25 = vld [vmem:[#allocation19_spill] sm:$0xff] }
 0x342   :  { %v22505_v39 = vpack.c.bf16 %v2146_v56, %v2145_v13  ;;  %v20352_v13 = vld [vmem:[%s25710_s4 + $0x138] sm:$0xff]  }
 0x343   :  { %18726 = vmatmul.mubr.msk.bf16.gmra.mrb[188].mxu0 %vm301_vm0, %v20349_v55  ;;  %7607 = vmatpush1.bf16.msra.mxu1 %v20352_v13  ;;  %v25798_v13 = vld [vmem:[#allocation18_spill] sm:$0xff] }
 0x344   :  { %18729 = vmatprep.mubr.msk.bf16.mxu0 %vm301_vm0, %v20350_v45  ;;  %7608 = vmatprep.subr.bf16.mxu1 %v25713_v41 }
 0x345   :  { %7376 = vmatmul.mubr.bf16.gmra.mrb[28].mxu1 %v22227_v30  ;;  %v22508_v30 = vpack.c.bf16 %v2144_v40, %v2143_v38  ;;  %v20353_v40 = vld [vmem:[%s25691_s28 + $0x630] sm:$0xff]  }
 0x346   :  { %7383 = vmatprep.mubr.bf16.mxu1 %v25795_v23 }
 0x34b   :  { %18730 = vmatmul.mubr.msk.bf16.gmra.mrb[192].mxu0 %vm301_vm0, %v20351_v6 }
 0x34c   :  { %18733 = vmatprep.mubr.msk.bf16.mxu0 %vm301_vm0, %v20353_v40 }
 0x34d   :  { %7384 = vmatmul.mubr.bf16.gmra.mrb[32].mxu1 %v22266_v2  ;;  %v18507_v2 = vpop.f32.mrb[104].mxu0 }
 0x34e   :  { %7391 = vmatprep.mubr.bf16.mxu1 %v25796_v5  ;;  %v2149_v38 = vmax.f32 %v18507_v2, 0.0  ;;  %v2036_v57 = vpop.f32.mrb[105].mxu0  ;;  %v20354_v5 = vld [vmem:[%s25691_s28 + $0x638] sm:$0xff]   ;;  %v20355_v2 = vld [vmem:[%s25691_s28 + $0x640] sm:$0xff]  }
 0x34f   :  { %v2147_v23 = vmax.f32 %v2036_v57, 0.0  ;;  %v18508_v56 = vpop.f32.mrb[106].mxu0  ;;  %v20356_v57 = vld [vmem:[%s25691_s28 + $0x648] sm:$0xff]  }
 0x350   :  { %v2150_v1 = vmax.f32 %v18508_v56, 0.0  ;;  %v2039_v55 = vpop.f32.mrb[107].mxu0 }
 0x351   :  { %v2148_v45 = vmax.f32 %v2039_v55, 0.0  ;;  %v25799_v55 = vld [vmem:[#allocation21_spill] sm:$0xff] }
 0x352   :  { %v22533_v6 = vpack.c.bf16 %v2150_v1, %v2149_v38  ;;  %v20357_v38 = vld [vmem:[%s25710_s4 + $0x140] sm:$0xff]  }
 0x353   :  { %18734 = vmatmul.mubr.msk.bf16.gmra.mrb[196].mxu0 %vm301_vm0, %v20354_v5  ;;  %7609 = vmatpush1.bf16.msra.mxu1 %v20357_v38  ;;  %v25800_v38 = vld [vmem:[#allocation20_spill] sm:$0xff] }
 0x354   :  { %18737 = vmatprep.mubr.msk.bf16.mxu0 %vm301_vm0, %v20355_v2  ;;  %7610 = vmatprep.subr.bf16.mxu1 %v25713_v41 }
 0x355   :  { %7392 = vmatmul.mubr.bf16.gmra.mrb[36].mxu1 %v22264_v62  ;;  %v22536_v62 = vpack.c.bf16 %v2148_v45, %v2147_v23  ;;  %v20358_v45 = vld [vmem:[%s25691_s28 + $0x650] sm:$0xff]  }
 0x356   :  { %7399 = vmatprep.mubr.bf16.mxu1 %v25797_v25 }
 0x35b   :  { %18738 = vmatmul.mubr.msk.bf16.gmra.mrb[200].mxu0 %vm301_vm0, %v20356_v57 }
 0x35c   :  { %18741 = vmatprep.mubr.msk.bf16.mxu0 %vm301_vm0, %v20358_v45 }
 0x35d   :  { %7400 = vmatmul.mubr.bf16.gmra.mrb[40].mxu1 %v22298_v63  ;;  %v18511_v63 = vpop.f32.mrb[108].mxu0 }
 0x35e   :  { %7407 = vmatprep.mubr.bf16.mxu1 %v25798_v13  ;;  %v2153_v23 = vmax.f32 %v18511_v63, 0.0  ;;  %v2052_v56 = vpop.f32.mrb[109].mxu0  ;;  %v20359_v13 = vld [vmem:[%s25691_s28 + $0x658] sm:$0xff]   ;;  %v20360_v63 = vld [vmem:[%s25691_s28 + $0x660] sm:$0xff]  }
 0x35f   :  { %v2151_v25 = vmax.f32 %v2052_v56, 0.0  ;;  %v18512_v1 = vpop.f32.mrb[110].mxu0  ;;  %v20361_v56 = vld [vmem:[%s25691_s28 + $0x668] sm:$0xff]  }
 0x360   :  { %v2154_v40 = vmax.f32 %v18512_v1, 0.0  ;;  %v2055_v5 = vpop.f32.mrb[111].mxu0 }
 0x361   :  { %v2152_v2 = vmax.f32 %v2055_v5, 0.0  ;;  %v25801_v5 = vld [vmem:[#allocation23_spill] sm:$0xff] }
 0x362   :  { %v22561_v57 = vpack.c.bf16 %v2154_v40, %v2153_v23  ;;  %v20362_v23 = vld [vmem:[%s25710_s4 + $0x148] sm:$0xff]  }
 0x363   :  { %18742 = vmatmul.mubr.msk.bf16.gmra.mrb[204].mxu0 %vm301_vm0, %v20359_v13  ;;  %7611 = vmatpush1.bf16.msra.mxu1 %v20362_v23  ;;  %v25802_v23 = vld [vmem:[#allocation22_spill] sm:$0xff] }
 0x364   :  { %18745 = vmatprep.mubr.msk.bf16.mxu0 %vm301_vm0, %v20360_v63  ;;  %7612 = vmatprep.subr.bf16.mxu1 %v25713_v41 }
 0x365   :  { %7408 = vmatmul.mubr.bf16.gmra.mrb[44].mxu1 %v22296_v51  ;;  %v22564_v51 = vpack.c.bf16 %v2152_v2, %v2151_v25  ;;  %v20363_v2 = vld [vmem:[%s25691_s28 + $0x670] sm:$0xff]  }
 0x366   :  { %7415 = vmatprep.mubr.bf16.mxu1 %v25799_v55 }
 0x36b   :  { %18746 = vmatmul.mubr.msk.bf16.gmra.mrb[208].mxu0 %vm301_vm0, %v20361_v56 }
 0x36c   :  { %18749 = vmatprep.mubr.msk.bf16.mxu0 %vm301_vm0, %v20363_v2 }
 0x36d   :  { %7416 = vmatmul.mubr.bf16.gmra.mrb[48].mxu1 %v22330_v3  ;;  %v18515_v3 = vpop.f32.mrb[112].mxu0 }
 0x36e   :  { %7423 = vmatprep.mubr.bf16.mxu1 %v25800_v38  ;;  %v2157_v25 = vmax.f32 %v18515_v3, 0.0  ;;  %v2068_v1 = vpop.f32.mrb[113].mxu0  ;;  %v20364_v38 = vld [vmem:[%s25691_s28 + $0x678] sm:$0xff]   ;;  %v20365_v3 = vld [vmem:[%s25691_s28 + $0x680] sm:$0xff]  }
 0x36f   :  { %v2155_v55 = vmax.f32 %v2068_v1, 0.0  ;;  %v18516_v40 = vpop.f32.mrb[114].mxu0  ;;  %v20366_v1 = vld [vmem:[%s25691_s28 + $0x688] sm:$0xff]  }
 0x370   :  { %v2158_v45 = vmax.f32 %v18516_v40, 0.0  ;;  %v2071_v13 = vpop.f32.mrb[115].mxu0 }
 0x371   :  { %v2156_v63 = vmax.f32 %v2071_v13, 0.0  ;;  %v25803_v13 = vld [vmem:[#allocation25_spill] sm:$0xff] }
 0x372   :  { %v22589_v56 = vpack.c.bf16 %v2158_v45, %v2157_v25  ;;  %v20367_v25 = vld [vmem:[%s25710_s4 + $0x150] sm:$0xff]  }
 0x373   :  { %18750 = vmatmul.mubr.msk.bf16.gmra.mrb[212].mxu0 %vm301_vm0, %v20364_v38  ;;  %7613 = vmatpush1.bf16.msra.mxu1 %v20367_v25 }
 0x374   :  { %18753 = vmatprep.mubr.msk.bf16.mxu0 %vm301_vm0, %v20365_v3  ;;  %7614 = vmatprep.subr.bf16.mxu1 %v25713_v41  ;;  %v20370_v3 = vld [vmem:[%s25710_s4 + $0x158] sm:$0xff]  }
 0x375   :  { %7424 = vmatmul.mubr.bf16.gmra.mrb[52].mxu1 %v22328_v59  ;;  %v22592_v59 = vpack.c.bf16 %v2156_v63, %v2155_v55  ;;  %v20368_v63 = vld [vmem:[%s25691_s28 + $0x690] sm:$0xff]  }
 0x376   :  { %7431 = vmatprep.mubr.bf16.mxu1 %v25801_v5 }
 0x377   :  { %7615 = vmatpush1.bf16.msra.mxu1 %v20370_v3  ;;  %v25805_v3 = vld [vmem:[#allocation27_spill] sm:$0xff] }
 0x378   :  { %7616 = vmatprep.subr.bf16.mxu1 %v25713_v41 }
 0x37b   :  { %18754 = vmatmul.mubr.msk.bf16.gmra.mrb[216].mxu0 %vm301_vm0, %v20366_v1 }
 0x37c   :  { %18757 = vmatprep.mubr.msk.bf16.mxu0 %vm301_vm0, %v20368_v63 }
 0x37d   :  { %7432 = vmatmul.mubr.bf16.gmra.mrb[56].mxu1 %v22359_v27  ;;  %v18519_v27 = vpop.f32.mrb[116].mxu0 }
 0x37e   :  { %7439 = vmatprep.mubr.bf16.mxu1 %v25802_v23  ;;  %v2161_v55 = vmax.f32 %v18519_v27, 0.0  ;;  %v2084_v40 = vpop.f32.mrb[117].mxu0  ;;  %v20369_v23 = vld [vmem:[%s25691_s28 + $0x698] sm:$0xff]   ;;  %v25804_v27 = vld [vmem:[#allocation24_spill] sm:$0xff] }
 0x37f   :  { %v2159_v5 = vmax.f32 %v2084_v40, 0.0  ;;  %v18520_v45 = vpop.f32.mrb[118].mxu0  ;;  %v20371_v40 = vld [vmem:[%s25710_s4 + $0x160] sm:$0xff]  }
 0x380   :  { %v2162_v2 = vmax.f32 %v18520_v45, 0.0  ;;  %v2087_v38 = vpop.f32.mrb[119].mxu0  ;;  %7617 = vmatpush1.bf16.msra.mxu1 %v20371_v40  ;;  %v20376_v40 = vld [vmem:[%s25691_s28 + $0x6b0] sm:$0xff]  }
 0x381   :  { %v2160_v1 = vmax.f32 %v2087_v38, 0.0  ;;  %7618 = vmatprep.subr.bf16.mxu1 %v25713_v41 }
 0x383   :  { %v22623_v25 = vpack.c.bf16 %v2160_v1, %v2159_v5  ;;  %18758 = vmatmul.mubr.msk.bf16.gmra.mrb[220].mxu0 %vm301_vm0, %v20369_v23  ;;  %v20373_v5 = vld [vmem:[%s25691_s28 + $0x6a8] sm:$0xff]   ;;  %v20375_v23 = vld [vmem:[%s25710_s4 + $0x170] sm:$0xff]  }
 0x385   :  { %7440 = vmatmul.mubr.bf16.gmra.mrb[60].mxu1 %v22356_v43  ;;  %v22620_v43 = vpack.c.bf16 %v2162_v2, %v2161_v55  ;;  %v20372_v55 = vld [vmem:[%s25691_s28 + $0x6a0] sm:$0xff]  }
 0x386   :  { %7447 = vmatprep.mubr.bf16.mxu1 %v25803_v13  ;;  %18761 = vmatprep.mubr.msk.bf16.mxu0 %vm301_vm0, %v20372_v55 }
 0x38b   :  { %18762 = vmatmul.mubr.msk.bf16.gmra.mrb[224].mxu0 %vm301_vm0, %v20373_v5  ;;  %v18591_v45 = vpop.f32.mrb[120].mxu0 }
 0x38c   :  { %v3513_v13 = vmax.f32 %v18591_v45, 0.0  ;;  %v3256_v2 = vpop.f32.mrb[121].mxu0  ;;  %18765 = vmatprep.mubr.msk.bf16.mxu0 %vm301_vm0, %v20376_v40 }
 0x38d   :  { %7448 = vmatmul.mubr.bf16.gmra.mrb[64].mxu1 %v22383_v42  ;;  %v20374_v42 = vld [vmem:[%s25710_s4 + $0x168] sm:$0xff]   ;;  %v3511_v38 = vmax.f32 %v3256_v2, 0.0  ;;  %v18592_v63 = vpop.f32.mrb[122].mxu0  ;;  %v20379_v2 = vld [vmem:[%s25691_s28 + $0x6c0] sm:$0xff]  }
 0x38e   :  { %7455 = vmatprep.mubr.bf16.mxu1 %v25804_v27  ;;  %7619 = vmatpush1.bf16.msra.mxu1 %v20374_v42  ;;  %v3514_v1 = vmax.f32 %v18592_v63, 0.0  ;;  %v3259_v27 = vpop.f32.mrb[123].mxu0  ;;  %v20378_v42 = vld [vmem:[%s25710_s4 + $0x178] sm:$0xff]  }
 0x38f   :  { %7620 = vmatprep.subr.bf16.mxu1 %v25713_v41  ;;  %v3512_v55 = vmax.f32 %v3259_v27, 0.0 }
 0x390   :  { %v22656_v5 = vpack.c.bf16 %v3514_v1, %v3513_v13  ;;  %v25806_v13 = vld [vmem:[#allocation26_spill] sm:$0xff] }
 0x391   :  { %v22662_v45 = vpack.c.bf16 %v3512_v55, %v3511_v38  ;;  %v20380_v38 = vld [vmem:[%s25691_s28 + $0x6c8] sm:$0xff]  }
 0x392   :  { %7621 = vmatpush1.bf16.msra.mxu1 %v20375_v23 }
 0x393   :  { %7622 = vmatprep.subr.bf16.mxu1 %v25713_v41 }
 0x395   :  { %7456 = vmatmul.mubr.bf16.gmra.mrb[68].mxu1 %v22380_v18  ;;  %v20377_v18 = vld [vmem:[%s25691_s28 + $0x6b8] sm:$0xff]  }
 0x396   :  { %7463 = vmatprep.mubr.bf16.mxu1 %v25805_v3  ;;  %18766 = vmatmul.mubr.msk.bf16.gmra.mrb[228].mxu0 %vm301_vm0, %v20377_v18  ;;  %v18595_v63 = vpop.f32.mrb[124].mxu0 }
 0x397   :  { %7623 = vmatpush1.bf16.msra.mxu1 %v20378_v42  ;;  %v3517_v23 = vmax.f32 %v18595_v63, 0.0  ;;  %v3272_v3 = vpop.f32.mrb[125].mxu0  ;;  %18769 = vmatprep.mubr.msk.bf16.mxu0 %vm301_vm0, %v20379_v2  ;;  %v20381_v63 = vld [vmem:[%s25691_s28 + $0x6d0] sm:$0xff]   ;;  %v20382_v2 = vld [vmem:[%s25691_s28 + $0x6d8] sm:$0xff]  }
 0x398   :  { %7881 = vmatprep.subr.bf16.mxu1 %v25713_v41  ;;  %v3515_v1 = vmax.f32 %v3272_v3, 0.0  ;;  %v18596_v27 = vpop.f32.mrb[126].mxu0  ;;  %v20384_v3 = vld [vmem:[%s25691_s28 + $0x6e8] sm:$0xff]  }
 0x399   :  { %v3275_v40 = vpop.f32.mrb[127].mxu0 }
 0x39a   :  { %v3516_v18 = vmax.f32 %v3275_v40, 0.0 }
 0x39c   :  { %v22679_v42 = vpack.c.bf16 %v3516_v18, %v3515_v1 }
 0x39d   :  { %7464 = vmatmul.mubr.bf16.gmra.mrb[72].mxu1 %v22406_v16  ;;  %v3518_v16 = vmax.f32 %v18596_v27, 0.0 }
 0x39e   :  { %7471 = vmatprep.mubr.bf16.mxu1 %v25806_v13  ;;  %18770 = vmatmul.mubr.msk.bf16.gmra.mrb[232].mxu0 %vm301_vm0, %v20380_v38  ;;  %v25807_v13 = vld [vmem:[#allocation29_spill] sm:$0xff]  ;;  %v25808_v38 = vld [vmem:[#allocation28_spill] sm:$0xff] }
 0x39f   :  { %v22677_v55 = vpack.c.bf16 %v3518_v16, %v3517_v23  ;;  %18773 = vmatprep.mubr.msk.bf16.mxu0 %vm301_vm0, %v20381_v63  ;;  %v18599_v23 = vpop.f32.mrb[128].mxu0 }
 0x3a0   :  { %v3521_v1 = vmax.f32 %v18599_v23, 0.0  ;;  %v3288_v27 = vpop.f32.mrb[129].mxu0  ;;  %v20385_v23 = vld [vmem:[%s25691_s28 + $0x6f0] sm:$0xff]  }
 0x3a1   :  { %v3519_v16 = vmax.f32 %v3288_v27, 0.0  ;;  %v18600_v40 = vpop.f32.mrb[130].mxu0  ;;  %v20388_v27 = vld [vmem:[%s25691_s28 + $0x808] sm:$0xff]  }
 0x3a2   :  { %v3291_v18 = vpop.f32.mrb[131].mxu0 }
 0x3a5   :  { %7472 = vmatmul.mubr.bf16.gmra.mrb[76].mxu1 %v22404_v61  ;;  %v20383_v61 = vld [vmem:[%s25691_s28 + $0x6e0] sm:$0xff]  }
 0x3a6   :  { %7479 = vmatprep.mubr.bf16.mxu1 %v25807_v13  ;;  %18774 = vmatmul.mubr.msk.bf16.gmra.mrb[236].mxu0 %vm301_vm0, %v20382_v2  ;;  %v3520_v13 = vmax.f32 %v3291_v18, 0.0 }
 0x3a7   :  { %18777 = vmatprep.mubr.msk.bf16.mxu0 %vm301_vm0, %v20383_v61  ;;  %v20386_v61 = vld [vmem:[%s25691_s28 + $0x6f8] sm:$0xff]  }
 0x3a8   :  { %v22703_v2 = vpack.c.bf16 %v3520_v13, %v3519_v16 }
 0x3ad   :  { %7480 = vmatmul.mubr.bf16.gmra.mrb[80].mxu1 %v22445_v22  ;;  %v3522_v22 = vmax.f32 %v18600_v40, 0.0 }
 0x3ae   :  { %7487 = vmatprep.mubr.bf16.mxu1 %v25808_v38  ;;  %18778 = vmatmul.mubr.msk.bf16.gmra.mrb[240].mxu0 %vm301_vm0, %v20384_v3  ;;  %v25809_v38 = vld [vmem:[#allocation31_spill] sm:$0xff]  ;;  %v25810_v3 = vld [vmem:[#allocation30_spill] sm:$0xff] }
 0x3af   :  { %v22701_v63 = vpack.c.bf16 %v3522_v22, %v3521_v1  ;;  %18781 = vmatprep.mubr.msk.bf16.mxu0 %vm301_vm0, %v20385_v23  ;;  %v18603_v1 = vpop.f32.mrb[132].mxu0 }
 0x3b0   :  { %v3525_v16 = vmax.f32 %v18603_v1, 0.0  ;;  %v3304_v40 = vpop.f32.mrb[133].mxu0  ;;  %v25812_v1 = vld [vmem:[#allocation32_spill] sm:$0xff] }
 0x3b1   :  { %v3523_v22 = vmax.f32 %v3304_v40, 0.0  ;;  %v18604_v18 = vpop.f32.mrb[134].mxu0 }
 0x3b2   :  { %v3307_v13 = vpop.f32.mrb[135].mxu0 }
 0x3b5   :  { %7488 = vmatmul.mubr.bf16.gmra.mrb[84].mxu1 %v22443_v29  ;;  %v20387_v29 = vld [vmem:[%s25691_s28 + $0x800] sm:$0xff]  }
 0x3b6   :  { %7495 = vmatprep.mubr.bf16.mxu1 %v25809_v38  ;;  %18782 = vmatmul.mubr.msk.bf16.gmra.mrb[244].mxu0 %vm301_vm0, %v20386_v61  ;;  %v3524_v38 = vmax.f32 %v3307_v13, 0.0 }
 0x3b7   :  { %18853 = vmatprep.mubr.msk.bf16.mxu0 %vm301_vm0, %v20387_v29  ;;  %v20389_v29 = vld [vmem:[%s25691_s28 + $0x810] sm:$0xff]  }
 0x3b8   :  { %v22727_v61 = vpack.c.bf16 %v3524_v38, %v3523_v22 }
 0x3bd   :  { %7496 = vmatmul.mubr.bf16.gmra.mrb[88].mxu1 %v22478_v19  ;;  %v3526_v19 = vmax.f32 %v18604_v18, 0.0 }
 0x3be   :  { %7503 = vmatprep.mubr.bf16.mxu1 %v25810_v3  ;;  %18854 = vmatmul.mubr.msk.bf16.vlgmr.msra.gmra.mrb[248].mxu0 %vm301_vm0, %v20388_v27  ;;  %v25811_v3 = vld [vmem:[#allocation33_spill] sm:$0xff]  ;;  %v18607_v27 = vpop.f32.mrb[136].mxu0 }
 0x3bf   :  { %v22725_v23 = vpack.c.bf16 %v3526_v19, %v3525_v16  ;;  %v20390_v16 = vld [vmem:[%s25691_s28 + $0x818] sm:$0xff]   ;;  %v3529_v40 = vmax.f32 %v18607_v27, 0.0  ;;  %v3320_v22 = vpop.f32.mrb[137].mxu0  ;;  %18857 = vmatprep.mubr.msk.bf16.mxu0 %vm301_vm0, %v20389_v29  ;;  %v25814_v27 = vld [vmem:[#allocation34_spill] sm:$0xff] }
 0x3c0   :  { %v18608_v18 = vpop.f32.mrb[138].mxu0  ;;  %v20391_v29 = vld [vmem:[%s25691_s28 + $0x820] sm:$0xff]  }
 0x3c1   :  { %v3323_v19 = vpop.f32.mrb[139].mxu0 }
 0x3c2   :  { %v3528_v13 = vmax.f32 %v3323_v19, 0.0 }
 0x3c5   :  { %7504 = vmatmul.mubr.bf16.gmra.mrb[92].mxu1 %v22476_v53  ;;  %v3527_v53 = vmax.f32 %v3320_v22, 0.0 }
 0x3c6   :  { %7511 = vmatprep.mubr.bf16.mxu1 %v25811_v3  ;;  %18858 = vmatmul.mubr.msk.bf16.gmra.mrb[252].mxu0 %vm301_vm0, %v20390_v16  ;;  %v18611_v16 = vpop.f32.mrb[140].mxu0 }
 0x3c7   :  { %v22743_v3 = vpack.c.bf16 %v3528_v13, %v3527_v53  ;;  %v3533_v22 = vmax.f32 %v18611_v16, 0.0  ;;  %v3336_v53 = vpop.f32.mrb[141].mxu0  ;;  %18861 = vmatprep.mubr.msk.bf16.mxu0 %vm301_vm0, %v20391_v29  ;;  %v25816_v16 = vld [vmem:[#allocation36_spill] sm:$0xff] }
 0x3c8   :  { %v20394_v29 = vld [vmem:[%s25691_s28 + $0x830] sm:$0xff]  }
 0x3cd   :  { %7512 = vmatmul.mubr.bf16.gmra.mrb[96].mxu1 %v22508_v30  ;;  %v3530_v30 = vmax.f32 %v18608_v18, 0.0  ;;  %v18612_v18 = vpop.f32.mrb[142].mxu0 }
 0x3ce   :  { %7519 = vmatprep.mubr.bf16.mxu1 %v25812_v1  ;;  %v25813_v1 = vld [vmem:[#allocation35_spill] sm:$0xff] }
 0x3cf   :  { %v22741_v38 = vpack.c.bf16 %v3530_v30, %v3529_v40  ;;  %v20392_v40 = vld [vmem:[%s25691_s28 + $0x828] sm:$0xff]   ;;  %v3339_v30 = vpop.f32.mrb[143].mxu0 }
 0x3d0   :  { %18862 = vmatmul.mubr.msk.bf16.gmra.mrb[0].mxu0 %vm301_vm0, %v20392_v40  ;;  %v3532_v19 = vmax.f32 %v3339_v30, 0.0  ;;  %v18615_v40 = vpop.f32.mrb[144].mxu0 }
 0x3d1   :  { %18865 = vmatprep.mubr.msk.bf16.mxu0 %vm301_vm0, %v20394_v29  ;;  %v20397_v29 = vld [vmem:[%s25691_s28 + $0x840] sm:$0xff]  }
 0x3d5   :  { %7520 = vmatmul.mubr.bf16.gmra.mrb[100].mxu1 %v22505_v39  ;;  %v3531_v39 = vmax.f32 %v3336_v53, 0.0  ;;  %v3537_v53 = vmax.f32 %v18615_v40, 0.0  ;;  %v25818_v40 = vld [vmem:[#allocation38_spill] sm:$0xff] }
 0x3d6   :  { %7527 = vmatprep.mubr.bf16.mxu1 %v25813_v1 }
 0x3d7   :  { %v22759_v1 = vpack.c.bf16 %v3532_v19, %v3531_v39  ;;  %v3352_v39 = vpop.f32.mrb[145].mxu0 }
 0x3dd   :  { %7528 = vmatmul.mubr.bf16.gmra.mrb[104].mxu1 %v22536_v62  ;;  %v3534_v62 = vmax.f32 %v18612_v18, 0.0  ;;  %v18616_v18 = vpop.f32.mrb[146].mxu0 }
 0x3de   :  { %7535 = vmatprep.mubr.bf16.mxu1 %v25814_v27  ;;  %v25815_v27 = vld [vmem:[#allocation37_spill] sm:$0xff] }
 0x3df   :  { %v22757_v13 = vpack.c.bf16 %v3534_v62, %v3533_v22  ;;  %v20395_v22 = vld [vmem:[%s25691_s28 + $0x838] sm:$0xff]   ;;  %v3355_v62 = vpop.f32.mrb[147].mxu0 }
 0x3e0   :  { %18866 = vmatmul.mubr.msk.bf16.gmra.mrb[4].mxu0 %vm301_vm0, %v20395_v22  ;;  %v3536_v30 = vmax.f32 %v3355_v62, 0.0  ;;  %v18619_v22 = vpop.f32.mrb[148].mxu0 }
 0x3e1   :  { %18869 = vmatprep.mubr.msk.bf16.mxu0 %vm301_vm0, %v20397_v29  ;;  %v20400_v29 = vld [vmem:[%s25691_s28 + $0x850] sm:$0xff]  }
 0x3e5   :  { %7536 = vmatmul.mubr.bf16.gmra.mrb[108].mxu1 %v22533_v6  ;;  %v3535_v6 = vmax.f32 %v3352_v39, 0.0  ;;  %v3541_v39 = vmax.f32 %v18619_v22, 0.0  ;;  %v25820_v22 = vld [vmem:[#allocation40_spill] sm:$0xff] }
 0x3e6   :  { %7543 = vmatprep.mubr.bf16.mxu1 %v25815_v27 }
 0x3e7   :  { %v22775_v27 = vpack.c.bf16 %v3536_v30, %v3535_v6  ;;  %v3368_v6 = vpop.f32.mrb[149].mxu0 }
 0x3ed   :  { %7544 = vmatmul.mubr.bf16.gmra.mrb[112].mxu1 %v22564_v51  ;;  %v3538_v51 = vmax.f32 %v18616_v18, 0.0  ;;  %v18620_v18 = vpop.f32.mrb[150].mxu0 }
 0x3ee   :  { %7551 = vmatprep.mubr.bf16.mxu1 %v25816_v16  ;;  %v25817_v16 = vld [vmem:[#allocation39_spill] sm:$0xff] }
 0x3ef   :  { %v22773_v19 = vpack.c.bf16 %v3538_v51, %v3537_v53  ;;  %v20398_v53 = vld [vmem:[%s25691_s28 + $0x848] sm:$0xff]   ;;  %v3371_v51 = vpop.f32.mrb[151].mxu0 }
 0x3f0   :  { %18870 = vmatmul.mubr.msk.bf16.gmra.mrb[8].mxu0 %vm301_vm0, %v20398_v53  ;;  %v3540_v62 = vmax.f32 %v3371_v51, 0.0  ;;  %v18623_v53 = vpop.f32.mrb[152].mxu0 }
 0x3f1   :  { %18873 = vmatprep.mubr.msk.bf16.mxu0 %vm301_vm0, %v20400_v29  ;;  %v25822_v29 = vld [vmem:[#allocation42_spill] sm:$0xff] }
 0x3f5   :  { %7552 = vmatmul.mubr.bf16.gmra.mrb[116].mxu1 %v22561_v57  ;;  %v3539_v57 = vmax.f32 %v3368_v6, 0.0  ;;  %v3545_v6 = vmax.f32 %v18623_v53, 0.0  ;;  %v20393_v53 = vld [vmem:[%s25710_s4 + $0x180] sm:$0xff]  }
 0x3f6   :  { %7559 = vmatprep.mubr.bf16.mxu1 %v25817_v16 }
 0x3f7   :  { %v22791_v16 = vpack.c.bf16 %v3540_v62, %v3539_v57  ;;  %v3384_v57 = vpop.f32.mrb[153].mxu0 }
 0x3fd   :  { %7560 = vmatmul.mubr.bf16.gmra.mrb[120].mxu1 %v22592_v59  ;;  %v3542_v59 = vmax.f32 %v18620_v18, 0.0  ;;  %v18624_v18 = vpop.f32.mrb[154].mxu0 }
 0x3fe   :  { %7567 = vmatprep.mubr.bf16.mxu1 %v25818_v40  ;;  %v25819_v40 = vld [vmem:[#allocation41_spill] sm:$0xff] }
 0x3ff   :  { %v22789_v30 = vpack.c.bf16 %v3542_v59, %v3541_v39  ;;  %v20401_v39 = vld [vmem:[%s25691_s28 + $0x858] sm:$0xff]   ;;  %v3387_v59 = vpop.f32.mrb[155].mxu0 }
 0x400   :  { %18874 = vmatmul.mubr.msk.bf16.gmra.mrb[12].mxu0 %vm301_vm0, %v20401_v39  ;;  %v3544_v51 = vmax.f32 %v3387_v59, 0.0  ;;  %v20396_v39 = vld [vmem:[%s25710_s4 + $0x188] sm:$0xff]  }
 0x405   :  { %7568 = vmatmul.mubr.bf16.gmra.mrb[124].mxu1 %v22589_v56  ;;  %v3543_v56 = vmax.f32 %v3384_v57, 0.0  ;;  %v20404_v57 = vld [vmem:[%s25691_s28 + $0x868] sm:$0xff]  }
 0x406   :  { %7575 = vmatprep.mubr.bf16.mxu1 %v25819_v40 }
 0x407   :  { %v22807_v40 = vpack.c.bf16 %v3544_v51, %v3543_v56 }
 0x40d   :  { %7576 = vmatmul.mubr.bf16.gmra.mrb[128].mxu1 %v22623_v25  ;;  %v3546_v25 = vmax.f32 %v18624_v18, 0.0 }
 0x40e   :  { %7583 = vmatprep.mubr.bf16.mxu1 %v25820_v22  ;;  %v25821_v22 = vld [vmem:[#allocation43_spill] sm:$0xff] }
 0x40f   :  { %v22805_v62 = vpack.c.bf16 %v3546_v25, %v3545_v6  ;;  %v20403_v6 = vld [vmem:[%s25691_s28 + $0x860] sm:$0xff]  }
 0x410   :  { %18877 = vmatprep.mubr.msk.bf16.mxu0 %vm301_vm0, %v20403_v6  ;;  %v25823_v6 = vld [vmem:[#allocation45_spill] sm:$0xff] }
 0x411   :  { %18878 = vmatmul.mubr.msk.bf16.gmra.mrb[16].mxu0 %vm301_vm0, %v20404_v57  ;;  %v20405_v57 = vld [vmem:[%s25710_s4 + $0x1a0] sm:$0xff]  }
 0x415   :  { %7584 = vmatmul.mubr.bf16.gmra.mrb[132].mxu1 %v22620_v43  ;;  %v18627_v43 = vpop.f32.mrb[156].mxu0 }
 0x416   :  { %7624 = vmatprep.mubr.bf16.mxu1 %v25821_v22  ;;  %v3549_v56 = vmax.f32 %v18627_v43, 0.0  ;;  %v20399_v22 = vld [vmem:[%s25710_s4 + $0x190] sm:$0xff]  }
 0x41d   :  { %7625 = vmatmul.mubr.bf16.vlgmr.msra.gmra.mrb[8].mxu1 %v22662_v45  ;;  %v3400_v45 = vpop.f32.mrb[157].mxu0 }
 0x41e   :  { %7632 = vmatprep.mubr.bf16.mxu1 %v25822_v29  ;;  %7882 = vmatpush1.bf16.msra.mxu1 %v20393_v53  ;;  %v3547_v18 = vmax.f32 %v3400_v45, 0.0  ;;  %v18628_v25 = vpop.f32.mrb[158].mxu0 }
 0x41f   :  { %7883 = vmatprep.subr.bf16.mxu1 %v25713_v41  ;;  %v3550_v59 = vmax.f32 %v18628_v25, 0.0  ;;  %v3403_v51 = vpop.f32.mrb[159].mxu0  ;;  %v20408_v25 = vld [vmem:[%s25710_s4 + $0x1a8] sm:$0xff]  }
 0x420   :  { %v3548_v53 = vmax.f32 %v3403_v51, 0.0  ;;  %v18631_v45 = vpop.f32.mrb[160].mxu0 }
 0x421   :  { %v22832_v29 = vpack.c.bf16 %v3550_v59, %v3549_v56  ;;  %v25824_v56 = vld [vmem:[#allocation44_spill] sm:$0xff]  ;;  %v3553_v59 = vmax.f32 %v18631_v45, 0.0  ;;  %v25825_v45 = vld [vmem:[#allocation47_spill] sm:$0xff] }
 0x422   :  { %7884 = vmatpush1.bf16.msra.mxu1 %v20396_v39  ;;  %v22834_v43 = vpack.c.bf16 %v3548_v53, %v3547_v18  ;;  %v20402_v39 = vld [vmem:[%s25710_s4 + $0x198] sm:$0xff]  }
 0x423   :  { %7885 = vmatprep.subr.bf16.mxu1 %v25713_v41  ;;  %v20407_v18 = vld [vmem:[%s25691_s28 + $0x878] sm:$0xff]  }
 0x425   :  { %7633 = vmatmul.mubr.bf16.gmra.mrb[12].mxu1 %v22656_v5  ;;  %v20406_v5 = vld [vmem:[%s25691_s28 + $0x870] sm:$0xff]  }
 0x426   :  { %7640 = vmatprep.mubr.bf16.mxu1 %v25823_v6  ;;  %7886 = vmatpush1.bf16.msra.mxu1 %v20399_v22 }
 0x427   :  { %7887 = vmatprep.subr.bf16.mxu1 %v25713_v41  ;;  %18881 = vmatprep.mubr.msk.bf16.mxu0 %vm301_vm0, %v20406_v5  ;;  %v25826_v5 = vld [vmem:[#allocation46_spill] sm:$0xff] }
 0x428   :  { %18882 = vmatmul.mubr.msk.bf16.gmra.mrb[20].mxu0 %vm301_vm0, %v20407_v18  ;;  %v20409_v18 = vld [vmem:[%s25691_s28 + $0x880] sm:$0xff]  }
 0x429   :  { %18885 = vmatprep.mubr.msk.bf16.mxu0 %vm301_vm0, %v20409_v18  ;;  %v25827_v18 = vld [vmem:[#allocation49_spill] sm:$0xff] }
 0x42a   :  { %7888 = vmatpush1.bf16.msra.mxu1 %v20402_v39 }
 0x42b   :  { %7889 = vmatprep.subr.bf16.mxu1 %v25713_v41 }
 0x42d   :  { %7641 = vmatmul.mubr.bf16.gmra.mrb[16].mxu1 %v22679_v42  ;;  %v3416_v42 = vpop.f32.mrb[161].mxu0 }
 0x42e   :  { %7648 = vmatprep.mubr.bf16.mxu1 %v25824_v56  ;;  %7890 = vmatpush1.bf16.msra.mxu1 %v20405_v57  ;;  %v3551_v51 = vmax.f32 %v3416_v42, 0.0  ;;  %v18632_v22 = vpop.f32.mrb[162].mxu0 }
 0x42f   :  { %7891 = vmatprep.subr.bf16.mxu1 %v25713_v41  ;;  %v3554_v53 = vmax.f32 %v18632_v22, 0.0  ;;  %v3419_v6 = vpop.f32.mrb[163].mxu0 }
 0x430   :  { %v3552_v39 = vmax.f32 %v3419_v6, 0.0  ;;  %v18635_v42 = vpop.f32.mrb[164].mxu0 }
 0x431   :  { %v22860_v57 = vpack.c.bf16 %v3554_v53, %v3553_v59  ;;  %v20411_v59 = vld [vmem:[%s25710_s4 + $0x1b0] sm:$0xff]  }
 0x432   :  { %7892 = vmatpush1.bf16.msra.mxu1 %v20408_v25  ;;  %v22863_v56 = vpack.c.bf16 %v3552_v39, %v3551_v51  ;;  %v20410_v25 = vld [vmem:[%s25691_s28 + $0x888] sm:$0xff]   ;;  %v3432_v51 = vpop.f32.mrb[165].mxu0 }
 0x433   :  { %7893 = vmatprep.subr.bf16.mxu1 %v25713_v41  ;;  %v18636_v22 = vpop.f32.mrb[166].mxu0  ;;  %18886 = vmatmul.mubr.msk.bf16.gmra.mrb[24].mxu0 %vm301_vm0, %v20410_v25 }
 0x434   :  { %v3558_v53 = vmax.f32 %v18636_v22, 0.0  ;;  %v3435_v6 = vpop.f32.mrb[167].mxu0 }
 0x435   :  { %7649 = vmatmul.mubr.bf16.gmra.mrb[20].mxu1 %v22677_v55  ;;  %v3557_v55 = vmax.f32 %v18635_v42, 0.0  ;;  %v3556_v39 = vmax.f32 %v3435_v6, 0.0 }
 0x436   :  { %7656 = vmatprep.mubr.bf16.mxu1 %v25825_v45  ;;  %7894 = vmatpush1.bf16.msra.mxu1 %v20411_v59  ;;  %v18639_v45 = vpop.f32.mrb[168].mxu0 }
 0x437   :  { %7895 = vmatprep.subr.bf16.mxu1 %v25713_v41  ;;  %v3561_v42 = vmax.f32 %v18639_v45, 0.0  ;;  %v3448_v54 = vpop.f32.mrb[169].mxu0 }
 0x438   :  { %v3559_v59 = vmax.f32 %v3448_v54, 0.0 }
 0x43d   :  { %7657 = vmatmul.mubr.bf16.gmra.mrb[24].mxu1 %v22703_v2  ;;  %v3555_v2 = vmax.f32 %v3432_v51, 0.0  ;;  %v18640_v51 = vpop.f32.mrb[170].mxu0 }
 0x43e   :  { %7664 = vmatprep.mubr.bf16.mxu1 %v25826_v5  ;;  %v22881_v5 = vpack.c.bf16 %v3558_v53, %v3557_v55  ;;  %v3562_v47 = vmax.f32 %v18640_v51, 0.0  ;;  %v3451_v25 = vpop.f32.mrb[171].mxu0 }
 0x43f   :  { %v22883_v8 = vpack.c.bf16 %v3556_v39, %v3555_v2  ;;  %v3560_v22 = vmax.f32 %v3451_v25, 0.0  ;;  %v18643_v58 = vpop.f32.mrb[172].mxu0  ;;  %v25828_v25 = vld [vmem:[#allocation48_spill] sm:$0xff] }
 0x440   :  { %v22887_v4 = vpack.c.bf16 %v3562_v47, %v3561_v42  ;;  %v3565_v6 = vmax.f32 %v18643_v58, 0.0  ;;  %v3464_v12 = vpop.f32.mrb[173].mxu0 }
 0x441   :  { %v22889_v55 = vpack.c.bf16 %v3560_v22, %v3559_v59  ;;  %v3563_v2 = vmax.f32 %v3464_v12, 0.0  ;;  %v18644_v53 = vpop.f32.mrb[174].mxu0  ;;  %v20412_v12 = vld [vmem:[%s25691_s28 + $0x890] sm:$0xff]   ;;  %v20413_v59 = vld [vmem:[%s25691_s28 + $0x898] sm:$0xff]  }
 0x442   :  { %v3566_v39 = vmax.f32 %v18644_v53, 0.0  ;;  %18889 = vmatprep.mubr.msk.bf16.mxu0 %vm301_vm0, %v20412_v12 }
 0x443   :  { %18890 = vmatmul.mubr.msk.bf16.gmra.mrb[28].mxu0 %vm301_vm0, %v20413_v59 }
 0x444   :  { %v22892_v54 = vpack.c.bf16 %v3566_v39, %v3565_v6 }
 0x445   :  { %7665 = vmatmul.mubr.bf16.gmra.mrb[28].mxu1 %v22701_v63  ;;  %v3467_v63 = vpop.f32.mrb[175].mxu0 }
 0x446   :  { %7672 = vmatprep.mubr.bf16.mxu1 %v25827_v18  ;;  %v3564_v45 = vmax.f32 %v3467_v63, 0.0  ;;  %v18647_v46 = vpop.f32.mrb[176].mxu0 }
 0x447   :  { %v3569_v18 = vmax.f32 %v18647_v46, 0.0  ;;  %v3480_v51 = vpop.f32.mrb[177].mxu0 }
 0x448   :  { %v22895_v47 = vpack.c.bf16 %v3564_v45, %v3563_v2  ;;  %v3567_v58 = vmax.f32 %v3480_v51, 0.0  ;;  %v18648_v42 = vpop.f32.mrb[178].mxu0 }
 0x449   :  { %v3570_v46 = vmax.f32 %v18648_v42, 0.0  ;;  %v3483_v22 = vpop.f32.mrb[179].mxu0 }
 0x44a   :  { %v3568_v6 = vmax.f32 %v3483_v22, 0.0  ;;  %v18651_v53 = vpop.f32.mrb[180].mxu0 }
 0x44b   :  { %v22907_v2 = vpack.c.bf16 %v3570_v46, %v3569_v18  ;;  %v3573_v39 = vmax.f32 %v18651_v53, 0.0  ;;  %v3496_v63 = vpop.f32.mrb[181].mxu0 }
 0x44c   :  { %v22911_v45 = vpack.c.bf16 %v3568_v6, %v3567_v58  ;;  %v3571_v51 = vmax.f32 %v3496_v63, 0.0 }
 0x44d   :  { %7673 = vmatmul.mubr.bf16.gmra.mrb[32].mxu1 %v22727_v61  ;;  %v20414_v61 = vld [vmem:[%s25710_s4 + $0x1b8] sm:$0xff]  }
 0x44e   :  { %7680 = vmatprep.mubr.bf16.mxu1 %v25828_v25  ;;  %7896 = vmatpush1.bf16.msra.mxu1 %v20414_v61  ;;  %v18652_v25 = vpop.f32.mrb[182].mxu0 }
 0x44f   :  { %7897 = vmatprep.subr.bf16.mxu1 %v25713_v41  ;;  %v3574_v48 = vmax.f32 %v18652_v25, 0.0  ;;  %v3499_v42 = vpop.f32.mrb[183].mxu0 }
 0x450   :  { %v3572_v28 = vmax.f32 %v3499_v42, 0.0  ;;  %v18723_v22 = vpop.f32.mrb[184].mxu0 }
 0x451   :  { %v22914_v12 = vpack.c.bf16 %v3574_v48, %v3573_v39  ;;  %v4925_v18 = vmax.f32 %v18723_v22, 0.0  ;;  %v4668_v61 = vpop.f32.mrb[185].mxu0 }
 0x452   :  { %v22917_v46 = vpack.c.bf16 %v3572_v28, %v3571_v51  ;;  %v4923_v59 = vmax.f32 %v4668_v61, 0.0  ;;  %v18724_v53 = vpop.f32.mrb[186].mxu0 }
 0x453   :  { %v4926_v58 = vmax.f32 %v18724_v53, 0.0  ;;  %v4671_v6 = vpop.f32.mrb[187].mxu0  ;;  %v25829_v53 = vld [vmem:[#allocation50_spill] sm:$0xff] }
 0x454   :  { %v4924_v63 = vmax.f32 %v4671_v6, 0.0  ;;  %v18727_v52 = vpop.f32.mrb[188].mxu0 }
 0x455   :  { %7681 = vmatmul.mubr.bf16.gmra.mrb[36].mxu1 %v22725_v23  ;;  %v22919_v25 = vpack.c.bf16 %v4926_v58, %v4925_v18  ;;  %v4929_v42 = vmax.f32 %v18727_v52, 0.0  ;;  %v4684_v31 = vpop.f32.mrb[189].mxu0 }
 0x456   :  { %7688 = vmatprep.mubr.bf16.mxu1 %v21929_v37  ;;  %v22921_v24 = vpack.c.bf16 %v4924_v63, %v4923_v59  ;;  %v4927_v48 = vmax.f32 %v4684_v31, 0.0  ;;  %v18728_v23 = vpop.f32.mrb[190].mxu0  ;;  %v20415_v31 = vld [vmem:[%s25691_s28 + $0x8a0] sm:$0xff]   ;;  %v20416_v59 = vld [vmem:[%s25691_s28 + $0x8a8] sm:$0xff]  }
 0x457   :  { %v4930_v39 = vmax.f32 %v18728_v23, 0.0  ;;  %v4687_v22 = vpop.f32.mrb[191].mxu0  ;;  %18893 = vmatprep.mubr.msk.bf16.mxu0 %vm301_vm0, %v20415_v31 }
 0x458   :  { %v4928_v9 = vmax.f32 %v4687_v22, 0.0  ;;  %v18731_v37 = vpop.f32.mrb[192].mxu0  ;;  %18894 = vmatmul.mubr.msk.bf16.gmra.mrb[32].mxu0 %vm301_vm0, %v20416_v59 }
 0x459   :  { %v22924_v28 = vpack.c.bf16 %v4930_v39, %v4929_v42  ;;  %v4933_v51 = vmax.f32 %v18731_v37, 0.0  ;;  %v4700_v61 = vpop.f32.mrb[193].mxu0 }
 0x45a   :  { %v22927_v18 = vpack.c.bf16 %v4928_v9, %v4927_v48  ;;  %v4931_v52 = vmax.f32 %v4700_v61, 0.0  ;;  %v18732_v58 = vpop.f32.mrb[194].mxu0 }
 0x45b   :  { %v4934_v6 = vmax.f32 %v18732_v58, 0.0  ;;  %v4703_v63 = vpop.f32.mrb[195].mxu0 }
 0x45c   :  { %v4932_v42 = vmax.f32 %v4703_v63, 0.0  ;;  %v18735_v23 = vpop.f32.mrb[196].mxu0 }
 0x45d   :  { %7689 = vmatmul.mubr.bf16.gmra.mrb[40].mxu1 %v22743_v3  ;;  %v20417_v3 = vld [vmem:[%s25710_s4 + $0x1c0] sm:$0xff]   ;;  %v22939_v9 = vpack.c.bf16 %v4934_v6, %v4933_v51  ;;  %v4937_v48 = vmax.f32 %v18735_v23, 0.0  ;;  %v4716_v39 = vpop.f32.mrb[197].mxu0 }
 0x45e   :  { %7696 = vmatprep.mubr.bf16.mxu1 %v25829_v53  ;;  %7898 = vmatpush1.bf16.msra.mxu1 %v20417_v3  ;;  %v22943_v22 = vpack.c.bf16 %v4932_v42, %v4931_v52  ;;  %v4935_v37 = vmax.f32 %v4716_v39, 0.0  ;;  %v18736_v61 = vpop.f32.mrb[198].mxu0 }
 0x45f   :  { %25830 = vst [vmem:[#allocation6_spill] sm:$0xff] %v22939_v9  ;;  %7899 = vmatprep.subr.bf16.mxu1 %v25713_v41  ;;  %v4938_v53 = vmax.f32 %v18736_v61, 0.0  ;;  %v4719_v58 = vpop.f32.mrb[199].mxu0 }
 0x460   :  { %v4936_v17 = vmax.f32 %v4719_v58, 0.0  ;;  %v18739_v63 = vpop.f32.mrb[200].mxu0 }
 0x461   :  { %v22946_v31 = vpack.c.bf16 %v4938_v53, %v4937_v48  ;;  %v4941_v51 = vmax.f32 %v18739_v63, 0.0  ;;  %v4732_v3 = vpop.f32.mrb[201].mxu0 }
 0x462   :  { %v22949_v6 = vpack.c.bf16 %v4936_v17, %v4935_v37  ;;  %v4939_v59 = vmax.f32 %v4732_v3, 0.0  ;;  %v18740_v23 = vpop.f32.mrb[202].mxu0 }
 0x463   :  { %25831 = vst [vmem:[#allocation3_spill] sm:$0xff] %v22946_v31  ;;  %v4942_v52 = vmax.f32 %v18740_v23, 0.0  ;;  %v4735_v42 = vpop.f32.mrb[203].mxu0 }
 0x464   :  { %v4940_v39 = vmax.f32 %v4735_v42, 0.0  ;;  %v18743_v11 = vpop.f32.mrb[204].mxu0 }
 0x465   :  { %7697 = vmatmul.mubr.bf16.gmra.mrb[44].mxu1 %v22741_v38  ;;  %v22951_v61 = vpack.c.bf16 %v4942_v52, %v4941_v51  ;;  %v4945_v58 = vmax.f32 %v18743_v11, 0.0  ;;  %v4748_v9 = vpop.f32.mrb[205].mxu0 }
 0x466   :  { %7704 = vmatprep.mubr.bf16.mxu1 %v21951_v20  ;;  %v22953_v26 = vpack.c.bf16 %v4940_v39, %v4939_v59  ;;  %v4943_v38 = vmax.f32 %v4748_v9, 0.0  ;;  %v18744_v48 = vpop.f32.mrb[206].mxu0  ;;  %v20418_v9 = vld [vmem:[%s25691_s28 + $0x8b0] sm:$0xff]   ;;  %v20419_v59 = vld [vmem:[%s25691_s28 + $0x8b8] sm:$0xff]  }
 0x467   :  { %v4946_v53 = vmax.f32 %v18744_v48, 0.0  ;;  %v4751_v63 = vpop.f32.mrb[207].mxu0  ;;  %18897 = vmatprep.mubr.msk.bf16.mxu0 %vm301_vm0, %v20418_v9 }
 0x468   :  { %v4944_v31 = vmax.f32 %v4751_v63, 0.0  ;;  %v18747_v20 = vpop.f32.mrb[208].mxu0  ;;  %18898 = vmatmul.mubr.msk.bf16.gmra.mrb[36].mxu0 %vm301_vm0, %v20419_v59 }
 0x469   :  { %v22956_v17 = vpack.c.bf16 %v4946_v53, %v4945_v58  ;;  %v4949_v37 = vmax.f32 %v18747_v20, 0.0  ;;  %v4764_v3 = vpop.f32.mrb[209].mxu0 }
 0x46a   :  { %v22959_v51 = vpack.c.bf16 %v4944_v31, %v4943_v38  ;;  %v4947_v11 = vmax.f32 %v4764_v3, 0.0  ;;  %v18748_v23 = vpop.f32.mrb[210].mxu0 }
 0x46b   :  { %v4950_v52 = vmax.f32 %v18748_v23, 0.0  ;;  %v4767_v42 = vpop.f32.mrb[211].mxu0 }
 0x46c   :  { %v4948_v39 = vmax.f32 %v4767_v42, 0.0 }
 0x46d   :  { %7705 = vmatmul.mubr.bf16.gmra.mrb[48].mxu1 %v22759_v1  ;;  %v20420_v1 = vld [vmem:[%s25710_s4 + $0x1c8] sm:$0xff]   ;;  %v22971_v31 = vpack.c.bf16 %v4950_v52, %v4949_v37  ;;  %v25835_v52 = vld [vmem:[#allocation52_spill] sm:$0xff] }
 0x46e   :  { %7712 = vmatprep.mubr.bf16.mxu1 %v21945_v36  ;;  %v18751_v36 = vpop.f32.mrb[212].mxu0  ;;  %7900 = vmatpush1.bf16.msra.mxu1 %v20420_v1  ;;  %v22975_v48 = vpack.c.bf16 %v4948_v39, %v4947_v11  ;;  %v20421_v11 = vld [vmem:[%s25691_s28 + $0x8c0] sm:$0xff]   ;;  %v20422_v39 = vld [vmem:[%s25691_s28 + $0x8c8] sm:$0xff]  }
 0x46f   :  { %25832 = vst [vmem:[#allocation7_spill] sm:$0xff] %v22971_v31  ;;  %v4953_v58 = vmax.f32 %v18751_v36, 0.0  ;;  %v4780_v38 = vpop.f32.mrb[213].mxu0  ;;  %7901 = vmatprep.subr.bf16.mxu1 %v25713_v41  ;;  %18901 = vmatprep.mubr.msk.bf16.mxu0 %vm301_vm0, %v20421_v11 }
 0x470   :  { %25833 = vst [vmem:[#allocation2_spill] sm:$0xff] %v22975_v48  ;;  %v4951_v53 = vmax.f32 %v4780_v38, 0.0  ;;  %v18752_v63 = vpop.f32.mrb[214].mxu0  ;;  %18902 = vmatmul.mubr.msk.bf16.gmra.mrb[40].mxu0 %vm301_vm0, %v20422_v39 }
 0x471   :  { %v4954_v20 = vmax.f32 %v18752_v63, 0.0  ;;  %v4783_v3 = vpop.f32.mrb[215].mxu0 }
 0x472   :  { %v4952_v23 = vmax.f32 %v4783_v3, 0.0  ;;  %v18755_v42 = vpop.f32.mrb[216].mxu0 }
 0x473   :  { %v22978_v9 = vpack.c.bf16 %v4954_v20, %v4953_v58  ;;  %v4957_v37 = vmax.f32 %v18755_v42, 0.0  ;;  %v4796_v1 = vpop.f32.mrb[217].mxu0 }
 0x474   :  { %v22981_v36 = vpack.c.bf16 %v4952_v23, %v4951_v53  ;;  %v4955_v59 = vmax.f32 %v4796_v1, 0.0  ;;  %v18756_v31 = vpop.f32.mrb[218].mxu0 }
 0x475   :  { %7713 = vmatmul.mubr.bf16.gmra.mrb[52].mxu1 %v22757_v13  ;;  %25834 = vst [vmem:[#allocation8_spill] sm:$0xff] %v22978_v9  ;;  %v4958_v38 = vmax.f32 %v18756_v31, 0.0  ;;  %v4799_v13 = vpop.f32.mrb[219].mxu0 }
 0x476   :  { %7720 = vmatprep.mubr.bf16.mxu1 %v25835_v52  ;;  %25836 = vst [vmem:[#allocation5_spill] sm:$0xff] %v22981_v36  ;;  %v4956_v58 = vmax.f32 %v4799_v13, 0.0  ;;  %v18759_v63 = vpop.f32.mrb[220].mxu0 }
 0x477   :  { %v22990_v20 = vpack.c.bf16 %v4958_v38, %v4957_v37  ;;  %v4961_v53 = vmax.f32 %v18759_v63, 0.0  ;;  %v4812_v3 = vpop.f32.mrb[221].mxu0  ;;  %v25839_v37 = vld [vmem:[#allocation51_spill] sm:$0xff] }
 0x478   :  { %v22993_v23 = vpack.c.bf16 %v4956_v58, %v4955_v59  ;;  %v4959_v42 = vmax.f32 %v4812_v3, 0.0  ;;  %v18760_v1 = vpop.f32.mrb[222].mxu0  ;;  %v20423_v59 = vld [vmem:[%s25710_s4 + $0x200] sm:$0xff]  }
 0x479   :  { %25837 = vst [vmem:[#allocation9_spill] sm:$0xff] %v22990_v20  ;;  %v4962_v52 = vmax.f32 %v18760_v1, 0.0  ;;  %v4815_v9 = vpop.f32.mrb[223].mxu0  ;;  %18917 = vmatprep.subr.bf16.mxu0 %v20423_v59 }
 0x47a   :  { %v4960_v36 = vmax.f32 %v4815_v9, 0.0  ;;  %v18763_v48 = vpop.f32.mrb[224].mxu0  ;;  %v20424_v9 = vld [vmem:[%s25710_s4 + $0x1d0] sm:$0xff]   ;;  %18918 = vmatpush3.bf16.msra.mxu0 %v20423_v59 }
 0x47b   :  { %v22996_v31 = vpack.c.bf16 %v4962_v52, %v4961_v53  ;;  %v4965_v13 = vmax.f32 %v18763_v48, 0.0  ;;  %v4828_v11 = vpop.f32.mrb[225].mxu0  ;;  %7902 = vmatpush1.bf16.msra.mxu1 %v20424_v9 }
 0x47c   :  { %v22999_v38 = vpack.c.bf16 %v4960_v36, %v4959_v42  ;;  %v4963_v63 = vmax.f32 %v4828_v11, 0.0  ;;  %v18764_v39 = vpop.f32.mrb[226].mxu0  ;;  %v20426_v36 = vld [vmem:[%s25691_s28 + $0x8d0] sm:$0xff]   ;;  %7903 = vmatprep.subr.bf16.mxu1 %v25713_v41 }
 0x47d   :  { %7721 = vmatmul.mubr.bf16.gmra.mrb[56].mxu1 %v22775_v27  ;;  %25838 = vst [vmem:[#allocation4_spill] sm:$0xff] %v22996_v31  ;;  %v20425_v27 = vld [vmem:[%s25710_s4 + $0x208] sm:$0xff]   ;;  %v4966_v48 = vmax.f32 %v18764_v39, 0.0  ;;  %v4831_v58 = vpop.f32.mrb[227].mxu0  ;;  %18905 = vmatprep.mubr.msk.bf16.mxu0 %vm301_vm0, %v20426_v36 }
 0x47e   :  { %7728 = vmatprep.mubr.bf16.mxu1 %v25839_v37  ;;  %25840 = vst [vmem:[#allocation10_spill] sm:$0xff] %v22999_v38  ;;  %v4964_v53 = vmax.f32 %v4831_v58, 0.0  ;;  %v18767_v3 = vpop.f32.mrb[228].mxu0  ;;  %18919 = vmatprep.subr.bf16.mxu0 %v20425_v27 }
 0x47f   :  { %v23013_v42 = vpack.c.bf16 %v4966_v48, %v4965_v13  ;;  %v4969_v1 = vmax.f32 %v18767_v3, 0.0  ;;  %v4844_v52 = vpop.f32.mrb[229].mxu0  ;;  %18920 = vmatpush3.bf16.msra.mxu0 %v20425_v27  ;;  %v25843_v48 = vld [vmem:[#allocation54_spill] sm:$0xff] }
 0x480   :  { %v23016_v11 = vpack.c.bf16 %v4964_v53, %v4963_v63  ;;  %v4967_v37 = vmax.f32 %v4844_v52, 0.0  ;;  %v18768_v39 = vpop.f32.mrb[230].mxu0  ;;  %v20427_v63 = vld [vmem:[%s25691_s28 + $0x8d8] sm:$0xff]  }
 0x481   :  { %25841 = vst [vmem:[#allocation11_spill] sm:$0xff] %v23013_v42  ;;  %v4970_v31 = vmax.f32 %v18768_v39, 0.0  ;;  %v4847_v38 = vpop.f32.mrb[231].mxu0  ;;  %18906 = vmatmul.mubr.msk.bf16.gmra.mrb[44].mxu0 %vm301_vm0, %v20427_v63 }
 0x482   :  { %v4968_v20 = vmax.f32 %v4847_v38, 0.0  ;;  %v18771_v58 = vpop.f32.mrb[232].mxu0  ;;  %v20428_v38 = vld [vmem:[%s25710_s4 + $0x210] sm:$0xff]  }
 0x483   :  { %v23020_v13 = vpack.c.bf16 %v4970_v31, %v4969_v1  ;;  %v4973_v59 = vmax.f32 %v18771_v58, 0.0  ;;  %v4860_v9 = vpop.f32.mrb[233].mxu0  ;;  %v20430_v31 = vld [vmem:[%s25710_s4 + $0x218] sm:$0xff]   ;;  %18921 = vmatprep.subr.bf16.mxu0 %v20428_v38 }
 0x484   :  { %v23026_v36 = vpack.c.bf16 %v4968_v20, %v4967_v37  ;;  %v4971_v53 = vmax.f32 %v4860_v9, 0.0  ;;  %v18772_v3 = vpop.f32.mrb[234].mxu0  ;;  %v20431_v20 = vld [vmem:[%s25691_s28 + $0x8e0] sm:$0xff]   ;;  %18922 = vmatpush3.bf16.msra.mxu0 %v20428_v38 }
 0x485   :  { %7729 = vmatmul.mubr.bf16.gmra.mrb[60].mxu1 %v22773_v19  ;;  %25842 = vst [vmem:[#allocation13_spill] sm:$0xff] %v23020_v13  ;;  %v20429_v19 = vld [vmem:[%s25710_s4 + $0x1d8] sm:$0xff]   ;;  %v4974_v27 = vmax.f32 %v18772_v3, 0.0  ;;  %v4863_v1 = vpop.f32.mrb[235].mxu0  ;;  %18909 = vmatprep.mubr.msk.bf16.mxu0 %vm301_vm0, %v20431_v20 }
 0x486   :  { %7736 = vmatprep.mubr.bf16.mxu1 %v25843_v48  ;;  %25844 = vst [vmem:[#allocation12_spill] sm:$0xff] %v23026_v36  ;;  %v4972_v52 = vmax.f32 %v4863_v1, 0.0  ;;  %v18775_v37 = vpop.f32.mrb[236].mxu0  ;;  %7904 = vmatpush1.bf16.msra.mxu1 %v20429_v19 }
 0x487   :  { %v23041_v39 = vpack.c.bf16 %v4974_v27, %v4973_v59  ;;  %v4977_v58 = vmax.f32 %v18775_v37, 0.0  ;;  %v4876_v9 = vpop.f32.mrb[237].mxu0  ;;  %18923 = vmatprep.subr.bf16.mxu0 %v20430_v31  ;;  %7905 = vmatprep.subr.bf16.mxu1 %v25713_v41  ;;  %v25847_v27 = vld [vmem:[#allocation53_spill] sm:$0xff] }
 0x488   :  { %v23044_v48 = vpack.c.bf16 %v4972_v52, %v4971_v53  ;;  %v4975_v63 = vmax.f32 %v4876_v9, 0.0  ;;  %v18776_v3 = vpop.f32.mrb[238].mxu0  ;;  %18924 = vmatpush3.bf16.msra.mxu0 %v20430_v31  ;;  %v20432_v53 = vld [vmem:[%s25691_s28 + $0x8e8] sm:$0xff]  }
 0x489   :  { %25845 = vst [vmem:[#allocation15_spill] sm:$0xff] %v23041_v39  ;;  %v4978_v13 = vmax.f32 %v18776_v3, 0.0  ;;  %v4879_v36 = vpop.f32.mrb[239].mxu0  ;;  %18910 = vmatmul.mubr.msk.bf16.gmra.mrb[48].mxu0 %vm301_vm0, %v20432_v53  ;;  %v20435_v3 = vld [vmem:[%s25710_s4 + $0x1e8] sm:$0xff]  }
 0x48a   :  { %v4976_v42 = vmax.f32 %v4879_v36, 0.0  ;;  %v18779_v1 = vpop.f32.mrb[240].mxu0  ;;  %v20433_v36 = vld [vmem:[%s25710_s4 + $0x1e0] sm:$0xff]  }
 0x48b   :  { %v23048_v59 = vpack.c.bf16 %v4978_v13, %v4977_v58  ;;  %v4981_v38 = vmax.f32 %v18779_v1, 0.0  ;;  %v4892_v19 = vpop.f32.mrb[241].mxu0  ;;  %v20436_v58 = vld [vmem:[%s25710_s4 + $0x228] sm:$0xff]   ;;  %7906 = vmatpush1.bf16.msra.mxu1 %v20433_v36 }
 0x48c   :  { %v23054_v20 = vpack.c.bf16 %v4976_v42, %v4975_v63  ;;  %v4979_v52 = vmax.f32 %v4892_v19, 0.0  ;;  %v18780_v13 = vpop.f32.mrb[242].mxu0  ;;  %v20437_v42 = vld [vmem:[%s25691_s28 + $0x8f0] sm:$0xff]   ;;  %7907 = vmatprep.subr.bf16.mxu1 %v25713_v41 }
 0x48d   :  { %7737 = vmatmul.mubr.bf16.gmra.mrb[64].mxu1 %v22791_v16  ;;  %25846 = vst [vmem:[#allocation14_spill] sm:$0xff] %v23048_v59  ;;  %v20434_v16 = vld [vmem:[%s25710_s4 + $0x220] sm:$0xff]   ;;  %v4982_v31 = vmax.f32 %v18780_v13, 0.0  ;;  %v4895_v37 = vpop.f32.mrb[243].mxu0  ;;  %18913 = vmatprep.mubr.msk.bf16.mxu0 %vm301_vm0, %v20437_v42  ;;  %v20439_v42 = vld [vmem:[%s25710_s4 + $0x1f0] sm:$0xff]  }
 0x48e   :  { %7744 = vmatprep.mubr.bf16.mxu1 %v25847_v27  ;;  %25848 = vst [vmem:[#allocation17_spill] sm:$0xff] %v23054_v20  ;;  %18925 = vmatprep.subr.bf16.mxu0 %v20434_v16  ;;  %v4980_v9 = vmax.f32 %v4895_v37, 0.0  ;;  %v18783_v63 = vpop.f32.mrb[244].mxu0 }
 0x48f   :  { %v23072_v1 = vpack.c.bf16 %v4982_v31, %v4981_v38  ;;  %18926 = vmatpush3.bf16.msra.mxu0 %v20434_v16  ;;  %v4985_v19 = vmax.f32 %v18783_v63, 0.0  ;;  %v4908_v53 = vpop.f32.mrb[245].mxu0  ;;  %7908 = vmatpush1.bf16.msra.mxu1 %v20435_v3 }
 0x490   :  { %v23075_v27 = vpack.c.bf16 %v4980_v9, %v4979_v52  ;;  %v4983_v13 = vmax.f32 %v4908_v53, 0.0  ;;  %18927 = vmatprep.subr.bf16.mxu0 %v20436_v58  ;;  %v18784_v59 = vpop.f32.mrb[246].mxu0  ;;  %v20438_v52 = vld [vmem:[%s25691_s28 + $0x8f8] sm:$0xff]   ;;  %7909 = vmatprep.subr.bf16.mxu1 %v25713_v41 }
 0x491   :  { %v4986_v36 = vmax.f32 %v18784_v59, 0.0  ;;  %v4911_v37 = vpop.f32.mrb[247].mxu0  ;;  %18914 = vmatmul.mubr.msk.bf16.gmra.mrb[52].mxu0 %vm301_vm0, %v20438_v52 }
 0x492   :  { %v4984_v20 = vmax.f32 %v4911_v37, 0.0  ;;  %v18855_v39 = vpop.f32.mrb[248].mxu0 }
 0x493   :  { %v23079_v38 = vpack.c.bf16 %v4986_v36, %v4985_v19  ;;  %18928 = vmatpush3.bf16.msra.mxu0 %v20436_v58  ;;  %v6337_v16 = vmax.f32 %v18855_v39, 0.0  ;;  %v6080_v31 = vpop.f32.mrb[249].mxu0  ;;  %v20442_v58 = vld [vmem:[%s25710_s4 + $0x238] sm:$0xff]   ;;  %7910 = vmatpush1.bf16.msra.mxu1 %v20439_v42 }
 0x494   :  { %v23088_v59 = vpack.c.bf16 %v4984_v20, %v4983_v13  ;;  %v18856_v39 = vpop.f32.mrb[250].mxu0  ;;  %v6335_v20 = vmax.f32 %v6080_v31, 0.0  ;;  %7911 = vmatprep.subr.bf16.mxu1 %v25713_v41  ;;  %v25849_v13 = vld [vmem:[#allocation55_spill] sm:$0xff] }
 0x495   :  { %7745 = vmatmul.mubr.bf16.gmra.mrb[68].mxu1 %v22789_v30  ;;  %v20440_v30 = vld [vmem:[%s25710_s4 + $0x230] sm:$0xff]   ;;  %v6338_v9 = vmax.f32 %v18856_v39, 0.0  ;;  %v6083_v63 = vpop.f32.mrb[251].mxu0 }
 0x496   :  { %7752 = vmatprep.mubr.bf16.mxu1 %v22000_v10  ;;  %18929 = vmatprep.subr.bf16.mxu0 %v20440_v30  ;;  %v20441_v10 = vld [vmem:[%s25710_s4 + $0x1f8] sm:$0xff]   ;;  %v6336_v19 = vmax.f32 %v6083_v63, 0.0 }
 0x497   :  { %v6400_v3 = vpack.c.bf16 %v6338_v9, %v6337_v16  ;;  %18930 = vmatpush3.bf16.msra.mxu0 %v20440_v30  ;;  %7912 = vmatpush1.bf16.msra.mxu1 %v20441_v10 }
 0x498   :  { %18931 = vmatprep.subr.bf16.mxu0 %v20442_v58  ;;  %v6399_v53 = vpack.c.bf16 %v6336_v19, %v6335_v20 }
 0x499   :  { %v18859_v36 = vpop.f32.mrb[252].mxu0 }
 0x49a   :  { %18933 = vmatprep.mubr.bf16.mxu0 %v6399_v53  ;;  %v6341_v37 = vmax.f32 %v18859_v36, 0.0  ;;  %v6096_v31 = vpop.f32.mrb[253].mxu0 }
 0x49b   :  { %18932 = vmatpush3.bf16.msra.mxu0 %v20442_v58  ;;  %v18860_v16 = vpop.f32.mrb[254].mxu0  ;;  %v6339_v42 = vmax.f32 %v6096_v31, 0.0  ;;  %v25850_v58 = vld [vmem:[#allocation56_spill] sm:$0xff] }
 0x49c   :  { %v6342_v52 = vmax.f32 %v18860_v16, 0.0  ;;  %v6099_v41 = vpop.f32.mrb[255].mxu0 }
 0x49d   :  { %7753 = vmatmul.mubr.bf16.gmra.mrb[72].mxu1 %v22807_v40  ;;  %v6340_v39 = vmax.f32 %v6099_v41, 0.0 }
 0x49e   :  { %7760 = vmatprep.mubr.bf16.mxu1 %v25849_v13  ;;  %18934 = vmatmul.mubr.bf16.vlgmr.msra.gmra.mrb[56].mxu0 %v6400_v3  ;;  %v6402_v30 = vpack.c.bf16 %v6342_v52, %v6341_v37  ;;  %v25851_v13 = vld [vmem:[#allocation57_spill] sm:$0xff] }
 0x49f   :  { %v6401_v40 = vpack.c.bf16 %v6340_v39, %v6339_v42 }
 0x4a1   :  { %18937 = vmatprep.mubr.bf16.mxu0 %v6401_v40 }
 0x4a3   :  { %v18863_v9 = vpop.f32.mrb[0].mxu0 }
 0x4a4   :  { %v6112_v63 = vpop.f32.mrb[1].mxu0 }
 0x4a5   :  { %7761 = vmatmul.mubr.bf16.gmra.mrb[76].mxu1 %v22805_v62  ;;  %v6345_v62 = vmax.f32 %v18863_v9, 0.0  ;;  %v6343_v3 = vmax.f32 %v6112_v63, 0.0 }
 0x4a6   :  { %7768 = vmatprep.mubr.bf16.mxu1 %v22018_v32  ;;  %18938 = vmatmul.mubr.bf16.gmra.mrb[60].mxu0 %v6402_v30  ;;  %v18864_v32 = vpop.f32.mrb[2].mxu0  ;;  %v25852_v30 = vld [vmem:[#allocation58_spill] sm:$0xff] }
 0x4a7   :  { %v6346_v10 = vmax.f32 %v18864_v32, 0.0  ;;  %v6115_v20 = vpop.f32.mrb[3].mxu0 }
 0x4a8   :  { %v6344_v53 = vmax.f32 %v6115_v20, 0.0 }
 0x4a9   :  { %v6404_v19 = vpack.c.bf16 %v6346_v10, %v6345_v62  ;;  %v25853_v10 = vld [vmem:[#allocation59_spill] sm:$0xff] }
 0x4ad   :  { %7769 = vmatmul.mubr.bf16.gmra.mrb[80].mxu1 %v22834_v43  ;;  %v6403_v43 = vpack.c.bf16 %v6344_v53, %v6343_v3 }
 0x4ae   :  { %7776 = vmatprep.mubr.bf16.mxu1 %v25850_v58 }
 0x4af   :  { %18941 = vmatprep.mubr.bf16.mxu0 %v6403_v43 }
 0x4b0   :  { %18942 = vmatmul.mubr.bf16.gmra.mrb[64].mxu0 %v6404_v19 }
 0x4b3   :  { %v18867_v36 = vpop.f32.mrb[4].mxu0 }
 0x4b4   :  { %v6128_v37 = vpop.f32.mrb[5].mxu0 }
 0x4b5   :  { %7777 = vmatmul.mubr.bf16.gmra.mrb[84].mxu1 %v22832_v29  ;;  %v6349_v29 = vmax.f32 %v18867_v36, 0.0  ;;  %v6347_v52 = vmax.f32 %v6128_v37, 0.0 }
 0x4b6   :  { %7784 = vmatprep.mubr.bf16.mxu1 %v22028_v49  ;;  %v18868_v49 = vpop.f32.mrb[6].mxu0 }
 0x4b7   :  { %v6350_v31 = vmax.f32 %v18868_v49, 0.0  ;;  %v6131_v16 = vpop.f32.mrb[7].mxu0 }
 0x4b8   :  { %v6348_v42 = vmax.f32 %v6131_v16, 0.0 }
 0x4b9   :  { %v6406_v41 = vpack.c.bf16 %v6350_v31, %v6349_v29  ;;  %v25854_v29 = vld [vmem:[#allocation60_spill] sm:$0xff] }
 0x4bd   :  { %7785 = vmatmul.mubr.bf16.gmra.mrb[88].mxu1 %v22863_v56  ;;  %v6405_v56 = vpack.c.bf16 %v6348_v42, %v6347_v52 }
 0x4be   :  { %7792 = vmatprep.mubr.bf16.mxu1 %v25851_v13 }
 0x4bf   :  { %18945 = vmatprep.mubr.bf16.mxu0 %v6405_v56  ;;  %v25855_v56 = vld [vmem:[#allocation61_spill] sm:$0xff] }
 0x4c0   :  { %18946 = vmatmul.mubr.bf16.gmra.mrb[68].mxu0 %v6406_v41 }
 0x4c3   :  { %v18871_v39 = vpop.f32.mrb[8].mxu0 }
 0x4c4   :  { %v6144_v40 = vpop.f32.mrb[9].mxu0 }
 0x4c5   :  { %7793 = vmatmul.mubr.bf16.gmra.mrb[92].mxu1 %v22860_v57  ;;  %v6353_v57 = vmax.f32 %v18871_v39, 0.0  ;;  %v6351_v62 = vmax.f32 %v6144_v40, 0.0 }
 0x4c6   :  { %7800 = vmatprep.mubr.bf16.mxu1 %v22046_v7  ;;  %v18872_v7 = vpop.f32.mrb[10].mxu0 }
 0x4c7   :  { %v6354_v58 = vmax.f32 %v18872_v7, 0.0  ;;  %v6147_v9 = vpop.f32.mrb[11].mxu0 }
 0x4c8   :  { %v6352_v32 = vmax.f32 %v6147_v9, 0.0 }
 0x4c9   :  { %v6408_v63 = vpack.c.bf16 %v6354_v58, %v6353_v57 }
 0x4cd   :  { %7801 = vmatmul.mubr.bf16.gmra.mrb[96].mxu1 %v22883_v8  ;;  %v6407_v8 = vpack.c.bf16 %v6352_v32, %v6351_v62 }
 0x4ce   :  { %7808 = vmatprep.mubr.bf16.mxu1 %v25852_v30 }
 0x4cf   :  { %18949 = vmatprep.mubr.bf16.mxu0 %v6407_v8 }
 0x4d0   :  { %18950 = vmatmul.mubr.bf16.gmra.mrb[72].mxu0 %v6408_v63 }
 0x4d3   :  { %v18875_v20 = vpop.f32.mrb[12].mxu0 }
 0x4d4   :  { %v6160_v3 = vpop.f32.mrb[13].mxu0 }
 0x4d5   :  { %7809 = vmatmul.mubr.bf16.gmra.mrb[100].mxu1 %v22881_v5  ;;  %v6357_v5 = vmax.f32 %v18875_v20, 0.0  ;;  %v6355_v43 = vmax.f32 %v6160_v3, 0.0 }
 0x4d6   :  { %7816 = vmatprep.mubr.bf16.mxu1 %v22056_v35  ;;  %v18876_v35 = vpop.f32.mrb[14].mxu0 }
 0x4d7   :  { %v6358_v19 = vmax.f32 %v18876_v35, 0.0  ;;  %v6163_v53 = vpop.f32.mrb[15].mxu0 }
 0x4d8   :  { %v6356_v36 = vmax.f32 %v6163_v53, 0.0 }
 0x4d9   :  { %v6410_v13 = vpack.c.bf16 %v6358_v19, %v6357_v5 }
 0x4dd   :  { %7817 = vmatmul.mubr.bf16.gmra.mrb[104].mxu1 %v22889_v55  ;;  %v6409_v55 = vpack.c.bf16 %v6356_v36, %v6355_v43 }
 0x4de   :  { %7824 = vmatprep.mubr.bf16.mxu1 %v25853_v10 }
 0x4df   :  { %18953 = vmatprep.mubr.bf16.mxu0 %v6409_v55 }
 0x4e0   :  { %18954 = vmatmul.mubr.bf16.gmra.mrb[76].mxu0 %v6410_v13 }
 0x4e4   :  { %v18879_v37 = vpop.f32.mrb[16].mxu0 }
 0x4e5   :  { %7825 = vmatmul.mubr.bf16.gmra.mrb[108].mxu1 %v22887_v4  ;;  %v6361_v4 = vmax.f32 %v18879_v37, 0.0  ;;  %v6176_v49 = vpop.f32.mrb[17].mxu0 }
 0x4e6   :  { %7832 = vmatprep.mubr.bf16.mxu1 %v22074_v33  ;;  %v18880_v33 = vpop.f32.mrb[18].mxu0  ;;  %v6359_v52 = vmax.f32 %v6176_v49, 0.0 }
 0x4e7   :  { %v6362_v31 = vmax.f32 %v18880_v33, 0.0  ;;  %v6179_v16 = vpop.f32.mrb[19].mxu0  ;;  %v25856_v33 = vld [vmem:[#allocation62_spill] sm:$0xff] }
 0x4e8   :  { %v6360_v42 = vmax.f32 %v6179_v16, 0.0 }
 0x4e9   :  { %v6412_v41 = vpack.c.bf16 %v6362_v31, %v6361_v4  ;;  %v25857_v31 = vld [vmem:[#allocation6_spill] sm:$0xff] }
 0x4ed   :  { %7833 = vmatmul.mubr.bf16.gmra.mrb[112].mxu1 %v22895_v47  ;;  %v6411_v47 = vpack.c.bf16 %v6360_v42, %v6359_v52  ;;  %v25858_v52 = vld [vmem:[#allocation64_spill] sm:$0xff] }
 0x4ee   :  { %7840 = vmatprep.mubr.bf16.mxu1 %v25854_v29 }
 0x4ef   :  { %18957 = vmatprep.mubr.bf16.mxu0 %v6411_v47 }
 0x4f0   :  { %18958 = vmatmul.mubr.bf16.gmra.mrb[80].mxu0 %v6412_v41 }
 0x4f5   :  { %7841 = vmatmul.mubr.bf16.gmra.mrb[116].mxu1 %v22892_v54 }
 0x4f6   :  { %7848 = vmatprep.mubr.bf16.mxu1 %v22084_v21 }
 0x4fb   :  { %v18883_v30 = vpop.f32.mrb[20].mxu0 }
 0x4fc   :  { %v6365_v54 = vmax.f32 %v18883_v30, 0.0  ;;  %v6192_v39 = vpop.f32.mrb[21].mxu0 }
 0x4fd   :  { %7849 = vmatmul.mubr.bf16.gmra.mrb[120].mxu1 %v22911_v45  ;;  %v18884_v21 = vpop.f32.mrb[22].mxu0  ;;  %v6363_v7 = vmax.f32 %v6192_v39, 0.0  ;;  %v25859_v39 = vld [vmem:[#allocation63_spill] sm:$0xff] }
 0x4fe   :  { %7856 = vmatprep.mubr.bf16.mxu1 %v25855_v56  ;;  %v6366_v57 = vmax.f32 %v18884_v21, 0.0  ;;  %v6195_v40 = vpop.f32.mrb[23].mxu0 }
 0x4ff   :  { %v6364_v9 = vmax.f32 %v6195_v40, 0.0 }
 0x500   :  { %v6414_v58 = vpack.c.bf16 %v6366_v57, %v6365_v54 }
 0x501   :  { %v6413_v45 = vpack.c.bf16 %v6364_v9, %v6363_v7 }
 0x503   :  { %18961 = vmatprep.mubr.bf16.mxu0 %v6413_v45 }
 0x504   :  { %18962 = vmatmul.mubr.bf16.gmra.mrb[84].mxu0 %v6414_v58 }
 0x505   :  { %7857 = vmatmul.mubr.bf16.gmra.mrb[124].mxu1 %v22907_v2 }
 0x506   :  { %7864 = vmatprep.mubr.bf16.mxu1 %v22104_v50  ;;  %v18887_v62 = vpop.f32.mrb[24].mxu0 }
 0x507   :  { %v6369_v2 = vmax.f32 %v18887_v62, 0.0  ;;  %v6208_v63 = vpop.f32.mrb[25].mxu0 }
 0x508   :  { %v18888_v50 = vpop.f32.mrb[26].mxu0  ;;  %v6367_v10 = vmax.f32 %v6208_v63, 0.0  ;;  %v25861_v63 = vld [vmem:[#allocation66_spill] sm:$0xff] }
 0x509   :  { %v6370_v32 = vmax.f32 %v18888_v50, 0.0  ;;  %v6211_v8 = vpop.f32.mrb[27].mxu0 }
 0x50a   :  { %v6368_v5 = vmax.f32 %v6211_v8, 0.0 }
 0x50b   :  { %v6416_v20 = vpack.c.bf16 %v6370_v32, %v6369_v2  ;;  %v25860_v2 = vld [vmem:[#allocation3_spill] sm:$0xff] }
 0x50d   :  { %7865 = vmatmul.mubr.bf16.gmra.mrb[128].mxu1 %v22917_v46  ;;  %v6415_v46 = vpack.c.bf16 %v6368_v5, %v6367_v10 }
 0x50e   :  { %7872 = vmatprep.mubr.bf16.mxu1 %v22095_v34 }
 0x50f   :  { %18965 = vmatprep.mubr.bf16.mxu0 %v6415_v46 }
 0x510   :  { %18966 = vmatmul.mubr.bf16.gmra.mrb[88].mxu0 %v6416_v20  ;;  %v25863_v20 = vld [vmem:[#allocation68_spill] sm:$0xff] }
 0x515   :  { %7873 = vmatmul.mubr.bf16.gmra.mrb[132].mxu1 %v22914_v12 }
 0x516   :  { %7913 = vmatprep.mubr.bf16.mxu1 %v22113_v60  ;;  %v18891_v34 = vpop.f32.mrb[28].mxu0 }
 0x517   :  { %v6373_v12 = vmax.f32 %v18891_v34, 0.0  ;;  %v6224_v3 = vpop.f32.mrb[29].mxu0 }
 0x518   :  { %v18892_v60 = vpop.f32.mrb[30].mxu0  ;;  %v6371_v53 = vmax.f32 %v6224_v3, 0.0 }
 0x519   :  { %v6374_v35 = vmax.f32 %v18892_v60, 0.0  ;;  %v6227_v19 = vpop.f32.mrb[31].mxu0 }
 0x51a   :  { %v6372_v13 = vmax.f32 %v6227_v19, 0.0 }
 0x51b   :  { %v6418_v43 = vpack.c.bf16 %v6374_v35, %v6373_v12 }
 0x51d   :  { %7914 = vmatmul.mubr.bf16.vlgmr.msra.gmra.mrb[8].mxu1 %v22921_v24  ;;  %v6417_v24 = vpack.c.bf16 %v6372_v13, %v6371_v53 }
 0x51e   :  { %7921 = vmatprep.mubr.bf16.mxu1 %v22110_v14 }
 0x51f   :  { %18969 = vmatprep.mubr.bf16.mxu0 %v6417_v24 }
 0x520   :  { %18970 = vmatmul.mubr.bf16.gmra.mrb[92].mxu0 %v6418_v43 }
 0x525   :  { %7922 = vmatmul.mubr.bf16.gmra.mrb[12].mxu1 %v22919_v25 }
 0x526   :  { %7929 = vmatprep.mubr.bf16.mxu1 %v22128_v44 }
 0x52b   :  { %v18895_v14 = vpop.f32.mrb[32].mxu0 }
 0x52c   :  { %v6377_v25 = vmax.f32 %v18895_v14, 0.0  ;;  %v6240_v36 = vpop.f32.mrb[33].mxu0 }
 0x52d   :  { %7930 = vmatmul.mubr.bf16.gmra.mrb[16].mxu1 %v22927_v18  ;;  %v18896_v44 = vpop.f32.mrb[34].mxu0  ;;  %v6375_v37 = vmax.f32 %v6240_v36, 0.0 }
 0x52e   :  { %7937 = vmatprep.mubr.bf16.mxu1 %v22119_v0  ;;  %v6378_v55 = vmax.f32 %v18896_v44, 0.0  ;;  %v6243_v29 = vpop.f32.mrb[35].mxu0  ;;  %v25864_v44 = vld [vmem:[#allocation67_spill] sm:$0xff] }
 0x52f   :  { %v6376_v49 = vmax.f32 %v6243_v29, 0.0 }
 0x530   :  { %v6420_v4 = vpack.c.bf16 %v6378_v55, %v6377_v25 }
 0x531   :  { %v6419_v18 = vpack.c.bf16 %v6376_v49, %v6375_v37 }
 0x533   :  { %18973 = vmatprep.mubr.bf16.mxu0 %v6419_v18 }
 0x534   :  { %18974 = vmatmul.mubr.bf16.gmra.mrb[96].mxu0 %v6420_v4 }
 0x535   :  { %7938 = vmatmul.mubr.bf16.gmra.mrb[20].mxu1 %v22924_v28 }
 0x536   :  { %7945 = vmatprep.mubr.bf16.mxu1 %v22140_v15 }
 0x53b   :  { %v18899_v0 = vpop.f32.mrb[36].mxu0 }
 0x53c   :  { %v6381_v28 = vmax.f32 %v18899_v0, 0.0  ;;  %v6256_v16 = vpop.f32.mrb[37].mxu0 }
 0x53d   :  { %7946 = vmatmul.mubr.bf16.gmra.mrb[24].mxu1 %v22943_v22  ;;  %v18900_v15 = vpop.f32.mrb[38].mxu0  ;;  %v6379_v47 = vmax.f32 %v6256_v16, 0.0 }
 0x53e   :  { %7953 = vmatprep.mubr.bf16.mxu1 %v25856_v33  ;;  %v6382_v41 = vmax.f32 %v18900_v15, 0.0  ;;  %v6259_v42 = vpop.f32.mrb[39].mxu0 }
 0x53f   :  { %v6380_v30 = vmax.f32 %v6259_v42, 0.0 }
 0x540   :  { %v6422_v56 = vpack.c.bf16 %v6382_v41, %v6381_v28 }
 0x541   :  { %v6421_v22 = vpack.c.bf16 %v6380_v30, %v6379_v47 }
 0x543   :  { %v18903_v54 = vpop.f32.mrb[40].mxu0  ;;  %18977 = vmatprep.mubr.bf16.mxu0 %v6421_v22  ;;  %v25870_v22 = vld [vmem:[#allocation5_spill] sm:$0xff] }
 0x544   :  { %v6385_v21 = vmax.f32 %v18903_v54, 0.0  ;;  %v6272_v57 = vpop.f32.mrb[41].mxu0  ;;  %18978 = vmatmul.mubr.bf16.gmra.mrb[100].mxu0 %v6422_v56  ;;  %v25869_v56 = vld [vmem:[#allocation72_spill] sm:$0xff] }
 0x545   :  { %7954 = vmatmul.mubr.bf16.gmra.mrb[28].mxu1 %v25857_v31  ;;  %v18904_v40 = vpop.f32.mrb[42].mxu0  ;;  %v6383_v9 = vmax.f32 %v6272_v57, 0.0  ;;  %v25866_v31 = vld [vmem:[#allocation2_spill] sm:$0xff] }
 0x546   :  { %7961 = vmatprep.mubr.bf16.mxu1 %v25858_v52  ;;  %v6386_v7 = vmax.f32 %v18904_v40, 0.0  ;;  %v6275_v58 = vpop.f32.mrb[43].mxu0  ;;  %v25867_v52 = vld [vmem:[#allocation69_spill] sm:$0xff] }
 0x547   :  { %v6384_v62 = vmax.f32 %v6275_v58, 0.0  ;;  %v25872_v58 = vld [vmem:[#allocation8_spill] sm:$0xff] }
 0x548   :  { %v6424_v45 = vpack.c.bf16 %v6386_v7, %v6385_v21  ;;  %v25871_v21 = vld [vmem:[#allocation71_spill] sm:$0xff] }
 0x549   :  { %v6423_v50 = vpack.c.bf16 %v6384_v62, %v6383_v9 }
 0x54b   :  { %18981 = vmatprep.mubr.bf16.mxu0 %v6423_v50 }
 0x54c   :  { %18982 = vmatmul.mubr.bf16.gmra.mrb[104].mxu0 %v6424_v45  ;;  %v25873_v45 = vld [vmem:[#allocation74_spill] sm:$0xff] }
 0x54d   :  { %7962 = vmatmul.mubr.bf16.gmra.mrb[32].mxu1 %v22949_v6  ;;  %v25862_v6 = vld [vmem:[#allocation65_spill] sm:$0xff] }
 0x54e   :  { %7969 = vmatprep.mubr.bf16.mxu1 %v25859_v39 }
 0x554   :  { %v18907_v32 = vpop.f32.mrb[44].mxu0 }
 0x555   :  { %7970 = vmatmul.mubr.bf16.gmra.mrb[36].mxu1 %v25860_v2  ;;  %v6389_v8 = vmax.f32 %v18907_v32, 0.0  ;;  %v6288_v10 = vpop.f32.mrb[45].mxu0  ;;  %v25874_v2 = vld [vmem:[#allocation73_spill] sm:$0xff] }
 0x556   :  { %7977 = vmatprep.mubr.bf16.mxu1 %v25861_v63  ;;  %v18908_v5 = vpop.f32.mrb[46].mxu0  ;;  %v6387_v3 = vmax.f32 %v6288_v10, 0.0 }
 0x557   :  { %v6390_v46 = vmax.f32 %v18908_v5, 0.0  ;;  %v6291_v34 = vpop.f32.mrb[47].mxu0  ;;  %v25878_v5 = vld [vmem:[#allocation75_spill] sm:$0xff] }
 0x558   :  { %v6388_v35 = vmax.f32 %v6291_v34, 0.0  ;;  %v25879_v34 = vld [vmem:[#allocation4_spill] sm:$0xff] }
 0x559   :  { %v6426_v60 = vpack.c.bf16 %v6390_v46, %v6389_v8  ;;  %v25876_v8 = vld [vmem:[#allocation76_spill] sm:$0xff] }
 0x55a   :  { %v6425_v25 = vpack.c.bf16 %v6388_v35, %v6387_v3  ;;  %v25880_v3 = vld [vmem:[#allocation78_spill] sm:$0xff]  ;;  %v25881_v35 = vld [vmem:[#allocation77_spill] sm:$0xff] }
 0x55c   :  { %v18911_v12 = vpop.f32.mrb[48].mxu0  ;;  %18985 = vmatprep.mubr.bf16.mxu0 %v6425_v25 }
 0x55d   :  { %7978 = vmatmul.mubr.bf16.gmra.mrb[40].mxu1 %v22953_v26  ;;  %v6393_v19 = vmax.f32 %v18911_v12, 0.0  ;;  %v6304_v53 = vpop.f32.mrb[49].mxu0  ;;  %18986 = vmatmul.mubr.bf16.gmra.mrb[108].mxu0 %v6426_v60 }
 0x55e   :  { %7985 = vmatprep.mubr.bf16.mxu1 %v25862_v6  ;;  %v18912_v43 = vpop.f32.mrb[50].mxu0  ;;  %v6391_v28 = vmax.f32 %v6304_v53, 0.0  ;;  %v25875_v6 = vld [vmem:[#allocation9_spill] sm:$0xff] }
 0x55f   :  { %v6394_v26 = vmax.f32 %v18912_v43, 0.0  ;;  %v6307_v13 = vpop.f32.mrb[51].mxu0  ;;  %v25882_v43 = vld [vmem:[#allocation11_spill] sm:$0xff] }
 0x560   :  { %v6392_v16 = vmax.f32 %v6307_v13, 0.0  ;;  %v25883_v13 = vld [vmem:[#allocation80_spill] sm:$0xff] }
 0x562   :  { %v6427_v15 = vpack.c.bf16 %v6392_v16, %v6391_v28  ;;  %v25890_v16 = vld [vmem:[#allocation84_spill] sm:$0xff] }
 0x564   :  { %v18915_v24 = vpop.f32.mrb[52].mxu0  ;;  %18989 = vmatprep.mubr.bf16.mxu0 %v6427_v15  ;;  %v25891_v15 = vld [vmem:[#allocation17_spill] sm:$0xff] }
 0x565   :  { %7986 = vmatmul.mubr.bf16.gmra.mrb[44].mxu1 %v22951_v61  ;;  %v6428_v61 = vpack.c.bf16 %v6394_v26, %v6393_v19  ;;  %v6397_v14 = vmax.f32 %v18915_v24, 0.0  ;;  %v6320_v36 = vpop.f32.mrb[53].mxu0 }
 0x566   :  { %7993 = vmatprep.mubr.bf16.mxu1 %v25863_v20  ;;  %v18916_v55 = vpop.f32.mrb[54].mxu0  ;;  %v6395_v54 = vmax.f32 %v6320_v36, 0.0  ;;  %v25877_v20 = vld [vmem:[#allocation10_spill] sm:$0xff]  ;;  %v25886_v36 = vld [vmem:[#allocation13_spill] sm:$0xff] }
 0x567   :  { %v6398_v29 = vmax.f32 %v18916_v55, 0.0  ;;  %v6323_v37 = vpop.f32.mrb[55].mxu0  ;;  %18990 = vmatmul.mubr.bf16.gmra.mrb[112].mxu0 %v6428_v61  ;;  %v25884_v61 = vld [vmem:[#allocation12_spill] sm:$0xff]  ;;  %v25887_v55 = vld [vmem:[#allocation82_spill] sm:$0xff] }
 0x568   :  { %v6396_v39 = vmax.f32 %v6323_v37, 0.0  ;;  %v25888_v37 = vld [vmem:[#allocation81_spill] sm:$0xff] }
 0x569   :  { %v6430_v4 = vpack.c.bf16 %v6398_v29, %v6397_v14  ;;  %v25885_v14 = vld [vmem:[#allocation79_spill] sm:$0xff] }
 0x56a   :  { %v6429_v57 = vpack.c.bf16 %v6396_v39, %v6395_v54 }
 0x56c   :  { %18993 = vmatprep.mubr.bf16.mxu0 %v6429_v57 }
 0x56d   :  { %7994 = vmatmul.mubr.bf16.gmra.mrb[48].mxu1 %v22959_v51  ;;  %v25865_v51 = vld [vmem:[#allocation70_spill] sm:$0xff] }
 0x56e   :  { %8001 = vmatprep.mubr.bf16.mxu1 %v25864_v44 }
 0x56f   :  { %18994 = vmatmul.mubr.bf16.gmra.mrb[116].mxu0 %v6430_v4 }
 0x571   :  { %v23156_v49 = vpop.f32.mrb[56].mxu0 }
 0x572   :  { %v23158_v18 = vpop.f32.mrb[57].mxu0 }
 0x573   :  { %v23161_v33 = vpop.f32.mrb[58].mxu0 }
 0x574   :  { %v23164_v0 = vpop.f32.mrb[59].mxu0 }
 0x575   :  { %8002 = vmatmul.mubr.bf16.gmra.mrb[52].mxu1 %v22956_v17  ;;  %v25868_v17 = vld [vmem:[#allocation7_spill] sm:$0xff] }
 0x576   :  { %8009 = vmatprep.mubr.bf16.mxu1 %v25865_v51 }
 0x579   :  { %v23168_v41 = vpop.f32.mrb[60].mxu0 }
 0x57a   :  { %v23170_v42 = vpop.f32.mrb[61].mxu0 }
 0x57b   :  { %v23173_v47 = vpop.f32.mrb[62].mxu0 }
 0x57c   :  { %v23176_v30 = vpop.f32.mrb[63].mxu0 }
 0x57d   :  { %8010 = vmatmul.mubr.bf16.gmra.mrb[56].mxu1 %v25866_v31  ;;  %v25889_v31 = vld [vmem:[#allocation15_spill] sm:$0xff] }
 0x57e   :  { %8017 = vmatprep.mubr.bf16.mxu1 %v25867_v52 }
 0x583   :  { %v23180_v40 = vpop.f32.mrb[64].mxu0 }
 0x584   :  { %v23182_v7 = vpop.f32.mrb[65].mxu0 }
 0x585   :  { %8018 = vmatmul.mubr.bf16.gmra.mrb[60].mxu1 %v25868_v17  ;;  %v23185_v9 = vpop.f32.mrb[66].mxu0  ;;  %v25892_v17 = vld [vmem:[#allocation83_spill] sm:$0xff] }
 0x586   :  { %8025 = vmatprep.mubr.bf16.mxu1 %v25869_v56  ;;  %v23188_v62 = vpop.f32.mrb[67].mxu0 }
 0x58d   :  { %8026 = vmatmul.mubr.bf16.gmra.mrb[64].mxu1 %v25870_v22 }
 0x58e   :  { %8033 = vmatprep.mubr.bf16.mxu1 %v25871_v21 }
 0x593   :  { %v23192_v63 = vpop.f32.mrb[68].mxu0 }
 0x594   :  { %v23194_v50 = vpop.f32.mrb[69].mxu0 }
 0x595   :  { %8034 = vmatmul.mubr.bf16.gmra.mrb[68].mxu1 %v25872_v58  ;;  %v23197_v32 = vpop.f32.mrb[70].mxu0 }
 0x596   :  { %8041 = vmatprep.mubr.bf16.mxu1 %v25873_v45  ;;  %v23200_v10 = vpop.f32.mrb[71].mxu0 }
 0x59d   :  { %8042 = vmatmul.mubr.bf16.gmra.mrb[72].mxu1 %v22993_v23 }
 0x59e   :  { %8049 = vmatprep.mubr.bf16.mxu1 %v25874_v2 }
 0x5a3   :  { %v23204_v46 = vpop.f32.mrb[72].mxu0 }
 0x5a4   :  { %v23206_v23 = vpop.f32.mrb[73].mxu0 }
 0x5a5   :  { %8050 = vmatmul.mubr.bf16.gmra.mrb[76].mxu1 %v25875_v6  ;;  %v23209_v12 = vpop.f32.mrb[74].mxu0 }
 0x5a6   :  { %8057 = vmatprep.mubr.bf16.mxu1 %v25876_v8  ;;  %v23212_v60 = vpop.f32.mrb[75].mxu0  ;;  %v25894_v8 = vld [vmem:[#allocation14_spill] sm:$0xff] }
 0x5ad   :  { %8058 = vmatmul.mubr.bf16.gmra.mrb[80].mxu1 %v25877_v20 }
 0x5ae   :  { %8065 = vmatprep.mubr.bf16.mxu1 %v25878_v5  ;;  %v25895_v5 = vld [vmem:[#allocation86_spill] sm:$0xff] }
 0x5b3   :  { %v23216_v19 = vpop.f32.mrb[76].mxu0 }
 0x5b4   :  { %v23218_v53 = vpop.f32.mrb[77].mxu0 }
 0x5b5   :  { %8066 = vmatmul.mubr.bf16.gmra.mrb[84].mxu1 %v25879_v34  ;;  %v23221_v26 = vpop.f32.mrb[78].mxu0 }
 0x5b6   :  { %8073 = vmatprep.mubr.bf16.mxu1 %v25880_v3  ;;  %v23224_v24 = vpop.f32.mrb[79].mxu0 }
 0x5bd   :  { %8074 = vmatmul.mubr.bf16.gmra.mrb[88].mxu1 %v23016_v11 }
 0x5be   :  { %8081 = vmatprep.mubr.bf16.mxu1 %v25881_v35 }
 0x5c3   :  { %v23228_v25 = vpop.f32.mrb[80].mxu0 }
 0x5c4   :  { %v23230_v11 = vpop.f32.mrb[81].mxu0 }
 0x5c5   :  { %8082 = vmatmul.mubr.bf16.gmra.mrb[92].mxu1 %v25882_v43  ;;  %v23233_v44 = vpop.f32.mrb[82].mxu0 }
 0x5c6   :  { %8089 = vmatprep.mubr.bf16.mxu1 %v25883_v13  ;;  %v23236_v29 = vpop.f32.mrb[83].mxu0 }
 0x5cd   :  { %8090 = vmatmul.mubr.bf16.gmra.mrb[96].mxu1 %v25884_v61 }
 0x5ce   :  { %8097 = vmatprep.mubr.bf16.mxu1 %v25885_v14 }
 0x5d5   :  { %8098 = vmatmul.mubr.bf16.gmra.mrb[100].mxu1 %v25886_v36 }
 0x5d6   :  { %8105 = vmatprep.mubr.bf16.mxu1 %v25887_v55 }
 0x5d7   :  { %v23240_v4 = vpop.f32.mrb[84].mxu0 }
 0x5d8   :  { %v23242_v51 = vpop.f32.mrb[85].mxu0 }
 0x5d9   :  { %v23245_v28 = vpop.f32.mrb[86].mxu0 }
 0x5da   :  { %v23248_v52 = vpop.f32.mrb[87].mxu0 }
 0x5dd   :  { %8106 = vmatmul.mubr.bf16.gmra.mrb[104].mxu1 %v23044_v48  ;;  %v23255_v48 = vld [vmem:[%s25893_s3] ss:$0 sm:$0xff] }
 0x5de   :  { %8113 = vmatprep.mubr.bf16.mxu1 %v25888_v37 }
 0x5e3   :  { %v23260_v45 = vpop.f32.mrb[88].mxu0 }
 0x5e4   :  { %v23262_v2 = vpop.f32.mrb[89].mxu0 }
 0x5e5   :  { %8114 = vmatmul.mubr.bf16.gmra.mrb[108].mxu1 %v25889_v31  ;;  %v23266_v20 = vpop.f32.mrb[90].mxu0  ;;  %v25896_v31 = vld [vmem:[#allocation85_spill] sm:$0xff] }
 0x5e6   :  { %8121 = vmatprep.mubr.bf16.mxu1 %v25890_v16  ;;  %v23269_v34 = vpop.f32.mrb[91].mxu0 }
 0x5ed   :  { %8122 = vmatmul.mubr.bf16.gmra.mrb[112].mxu1 %v25891_v15 }
 0x5ee   :  { %8129 = vmatprep.mubr.bf16.mxu1 %v25892_v17 }
 0x5f0   :  { %v7915_v56 = vpop.f32.mrb[8].mxu1 }
 0x5f1   :  { %v19631_v22 = vadd.f32 %v23255_v48, %v7915_v56  ;;  %v7917_v54 = vpop.f32.mrb[9].mxu1 }
 0x5f2   :  { %v7918_v39 = vpop.f32.mrb[10].mxu1 }
 0x5f3   :  { %v19632_v21 = vadd.f32 %v23255_v48, %v7918_v39  ;;  %v8205_v57 = vadd.f32 %v19631_v22, %v23158_v18  ;;  %v7920_v58 = vpop.f32.mrb[11].mxu1 }
 0x5f4   :  { %v23284_v58 = vpop.f32.mrb[92].mxu0 }
 0x5f5   :  { %v8208_v6 = vadd.f32 %v19632_v21, %v23164_v0  ;;  %8130 = vmatmul.mubr.bf16.gmra.mrb[116].mxu1 %v25894_v8  ;;  %v8459_v3 = vmax.f32 %v8205_v57, 0.0  ;;  %v25897_v8 = vld [vmem:[#allocation88_spill] sm:$0xff] }
 0x5f6   :  { %8137 = vmatprep.mubr.bf16.mxu1 %v25895_v5 }
 0x5f7   :  { %v8460_v35 = vmax.f32 %v8208_v6, 0.0 }
 0x5f8   :  { %v7923_v43 = vpop.f32.mrb[12].mxu1 }
 0x5f9   :  { %v23271_v13 = vpack.c.bf16 %v8460_v35, %v8459_v3  ;;  %v19633_v18 = vadd.f32 %v23255_v48, %v7923_v43  ;;  %v7925_v61 = vpop.f32.mrb[13].mxu1 }
 0x5fa   :  { %v7926_v14 = vpop.f32.mrb[14].mxu1 }
 0x5fb   :  { %v8213_v36 = vadd.f32 %v19633_v18, %v23156_v49  ;;  %v19634_v0 = vadd.f32 %v23255_v48, %v7926_v14  ;;  %v7928_v55 = vpop.f32.mrb[15].mxu1 }
 0x5fc   :  { %v25898_v55 = vld [vmem:[#allocation87_spill] sm:$0xff] }
 0x5fd   :  { %v8216_v37 = vadd.f32 %v19634_v0, %v23161_v33  ;;  %8138 = vmatmul.mubr.bf16.gmra.mrb[120].mxu1 %v23075_v27  ;;  %v8461_v16 = vmax.f32 %v8213_v36, 0.0  ;;  %v23286_v33 = vpop.f32.mrb[93].mxu0 }
 0x5fe   :  { %8145 = vmatprep.mubr.bf16.mxu1 %v25896_v31  ;;  %v23290_v6 = vpop.f32.mrb[94].mxu0 }
 0x5ff   :  { %v8462_v15 = vmax.f32 %v8216_v37, 0.0  ;;  %v23293_v5 = vpop.f32.mrb[95].mxu0 }
 0x600   :  { %v7931_v17 = vpop.f32.mrb[16].mxu1 }
 0x601   :  { %v23279_v56 = vpack.c.bf16 %v8462_v15, %v8461_v16  ;;  %v19635_v22 = vadd.f32 %v23255_v48, %v7931_v17  ;;  %v7933_v54 = vpop.f32.mrb[17].mxu1 }
 0x602   :  { %v7934_v39 = vpop.f32.mrb[18].mxu1 }
 0x603   :  { %v19636_v49 = vadd.f32 %v23255_v48, %v7934_v39  ;;  %v8221_v21 = vadd.f32 %v19635_v22, %v23170_v42  ;;  %v7936_v57 = vpop.f32.mrb[19].mxu1 }
 0x605   :  { %v8224_v27 = vadd.f32 %v19636_v49, %v23176_v30  ;;  %8146 = vmatmul.mubr.bf16.gmra.mrb[124].mxu1 %v23072_v1  ;;  %v8463_v3 = vmax.f32 %v8221_v21, 0.0 }
 0x606   :  { %8153 = vmatprep.mubr.bf16.mxu1 %v25897_v8 }
 0x607   :  { %v8464_v35 = vmax.f32 %v8224_v27, 0.0  ;;  %v23308_v21 = vpop.f32.mrb[96].mxu0 }
 0x608   :  { %v7939_v43 = vpop.f32.mrb[20].mxu1 }
 0x609   :  { %v23295_v18 = vpack.c.bf16 %v8464_v35, %v8463_v3  ;;  %v19637_v42 = vadd.f32 %v23255_v48, %v7939_v43  ;;  %v7941_v61 = vpop.f32.mrb[21].mxu1 }
 0x60a   :  { %v7942_v14 = vpop.f32.mrb[22].mxu1 }
 0x60b   :  { %v8229_v36 = vadd.f32 %v19637_v42, %v23168_v41  ;;  %v19638_v30 = vadd.f32 %v23255_v48, %v7942_v14  ;;  %v7944_v1 = vpop.f32.mrb[23].mxu1 }
 0x60d   :  { %v8232_v0 = vadd.f32 %v19638_v30, %v23173_v47  ;;  %8154 = vmatmul.mubr.bf16.gmra.mrb[128].mxu1 %v23088_v59  ;;  %v8465_v37 = vmax.f32 %v8229_v36, 0.0  ;;  %v23310_v47 = vpop.f32.mrb[97].mxu0 }
 0x60e   :  { %8161 = vmatprep.mubr.bf16.mxu1 %v25898_v55  ;;  %v23314_v57 = vpop.f32.mrb[98].mxu0 }
 0x60f   :  { %v8466_v31 = vmax.f32 %v8232_v0, 0.0  ;;  %v23316_v27 = vpop.f32.mrb[99].mxu0 }
 0x610   :  { %v7947_v16 = vpop.f32.mrb[24].mxu1 }
 0x611   :  { %v23303_v15 = vpack.c.bf16 %v8466_v31, %v8465_v37  ;;  %v19639_v17 = vadd.f32 %v23255_v48, %v7947_v16  ;;  %v7949_v22 = vpop.f32.mrb[25].mxu1 }
 0x612   :  { %v7950_v54 = vpop.f32.mrb[26].mxu1 }
 0x613   :  { %v19640_v41 = vadd.f32 %v23255_v48, %v7950_v54  ;;  %v8237_v39 = vadd.f32 %v19639_v17, %v23182_v7  ;;  %v7952_v49 = vpop.f32.mrb[27].mxu1 }
 0x615   :  { %v8240_v59 = vadd.f32 %v19640_v41, %v23188_v62  ;;  %8162 = vmatmul.mubr.bf16.gmra.mrb[132].mxu1 %v23079_v38  ;;  %v8467_v8 = vmax.f32 %v8237_v39, 0.0 }
 0x617   :  { %v8468_v3 = vmax.f32 %v8240_v59, 0.0 }
 0x618   :  { %v7955_v35 = vpop.f32.mrb[28].mxu1 }
 0x619   :  { %v23318_v43 = vpack.c.bf16 %v8468_v3, %v8467_v8  ;;  %v19641_v7 = vadd.f32 %v23255_v48, %v7955_v35  ;;  %v7957_v42 = vpop.f32.mrb[29].mxu1 }
 0x61a   :  { %v7958_v61 = vpop.f32.mrb[30].mxu1 }
 0x61b   :  { %v8245_v14 = vadd.f32 %v19641_v7, %v23180_v40  ;;  %v19642_v36 = vadd.f32 %v23255_v48, %v7958_v61  ;;  %v7960_v62 = vpop.f32.mrb[31].mxu1  ;;  %v23329_v40 = vpop.f32.mrb[100].mxu0 }
 0x61c   :  { %v23331_v41 = vpop.f32.mrb[101].mxu0 }
 0x61d   :  { %v8248_v38 = vadd.f32 %v19642_v36, %v23185_v9  ;;  %v8469_v30 = vmax.f32 %v8245_v14, 0.0  ;;  %v23334_v39 = vpop.f32.mrb[102].mxu0 }
 0x61e   :  { %v23336_v49 = vpop.f32.mrb[103].mxu0 }
 0x61f   :  { %v8470_v1 = vmax.f32 %v8248_v38, 0.0 }
 0x620   :  { %v7963_v0 = vpop.f32.mrb[32].mxu1 }
 0x621   :  { %v23324_v55 = vpack.c.bf16 %v8470_v1, %v8469_v30  ;;  %v19643_v37 = vadd.f32 %v23255_v48, %v7963_v0  ;;  %v7965_v31 = vpop.f32.mrb[33].mxu1  ;;  %v23344_v30 = vpop.f32.mrb[104].mxu0 }
 0x622   :  { %v7966_v16 = vpop.f32.mrb[34].mxu1  ;;  %v23346_v0 = vpop.f32.mrb[105].mxu0 }
 0x623   :  { %v19644_v17 = vadd.f32 %v23255_v48, %v7966_v16  ;;  %v8253_v22 = vadd.f32 %v19643_v37, %v23194_v50  ;;  %v7968_v54 = vpop.f32.mrb[35].mxu1 }
 0x625   :  { %v8256_v9 = vadd.f32 %v19644_v17, %v23200_v10  ;;  %v8471_v59 = vmax.f32 %v8253_v22, 0.0  ;;  %v23351_v17 = vpop.f32.mrb[106].mxu0 }
 0x626   :  { %v23353_v22 = vpop.f32.mrb[107].mxu0 }
 0x627   :  { %v8472_v8 = vmax.f32 %v8256_v9, 0.0 }
 0x628   :  { %v7971_v3 = vpop.f32.mrb[36].mxu1 }
 0x629   :  { %v23338_v35 = vpack.c.bf16 %v8472_v8, %v8471_v59  ;;  %v19645_v7 = vadd.f32 %v23255_v48, %v7971_v3  ;;  %v7973_v42 = vpop.f32.mrb[37].mxu1 }
 0x62a   :  { %v7974_v50 = vpop.f32.mrb[38].mxu1 }
 0x62b   :  { %25899 = vst [vmem:[#allocation16_spill] sm:$0xff] %v23338_v35  ;;  %v8261_v61 = vadd.f32 %v19645_v7, %v23192_v63  ;;  %v19646_v14 = vadd.f32 %v23255_v48, %v7974_v50  ;;  %v7976_v36 = vpop.f32.mrb[39].mxu1 }
 0x62d   :  { %v8264_v10 = vadd.f32 %v19646_v14, %v23197_v32  ;;  %v8473_v62 = vmax.f32 %v8261_v61, 0.0 }
 0x62f   :  { %v8474_v38 = vmax.f32 %v8264_v10, 0.0 }
 0x630   :  { %v7979_v1 = vpop.f32.mrb[40].mxu1 }
 0x631   :  { %v23348_v37 = vpack.c.bf16 %v8474_v38, %v8473_v62  ;;  %v19647_v31 = vadd.f32 %v23255_v48, %v7979_v1  ;;  %v7981_v16 = vpop.f32.mrb[41].mxu1 }
 0x632   :  { %v7982_v63 = vpop.f32.mrb[42].mxu1 }
 0x633   :  { %25900 = vst [vmem:[#allocation19_spill] sm:$0xff] %v23348_v37  ;;  %v19648_v54 = vadd.f32 %v23255_v48, %v7982_v63  ;;  %v8269_v32 = vadd.f32 %v19647_v31, %v23206_v23  ;;  %v7984_v9 = vpop.f32.mrb[43].mxu1 }
 0x635   :  { %v8272_v59 = vadd.f32 %v19648_v54, %v23212_v60  ;;  %v8475_v8 = vmax.f32 %v8269_v32, 0.0 }
 0x637   :  { %v8476_v3 = vmax.f32 %v8272_v59, 0.0 }
 0x638   :  { %v7987_v7 = vpop.f32.mrb[44].mxu1 }
 0x639   :  { %v19649_v42 = vadd.f32 %v23255_v48, %v7987_v7  ;;  %v7989_v50 = vpop.f32.mrb[45].mxu1  ;;  %v23359_v61 = vpack.c.bf16 %v8476_v3, %v8475_v8 }
 0x63a   :  { %v7990_v14 = vpop.f32.mrb[46].mxu1 }
 0x63b   :  { %v8277_v36 = vadd.f32 %v19649_v42, %v23204_v46  ;;  %v19650_v10 = vadd.f32 %v23255_v48, %v7990_v14  ;;  %v7992_v62 = vpop.f32.mrb[47].mxu1  ;;  %v23369_v46 = vpop.f32.mrb[108].mxu0 }
 0x63c   :  { %v23371_v8 = vpop.f32.mrb[109].mxu0 }
 0x63d   :  { %v8280_v38 = vadd.f32 %v19650_v10, %v23209_v12  ;;  %v8477_v23 = vmax.f32 %v8277_v36, 0.0  ;;  %v23374_v3 = vpop.f32.mrb[110].mxu0 }
 0x63e   :  { %v23376_v7 = vpop.f32.mrb[111].mxu0 }
 0x63f   :  { %v8478_v1 = vmax.f32 %v8280_v38, 0.0 }
 0x640   :  { %v7995_v31 = vpop.f32.mrb[48].mxu1 }
 0x641   :  { %v19651_v60 = vadd.f32 %v23255_v48, %v7995_v31  ;;  %v7997_v16 = vpop.f32.mrb[49].mxu1  ;;  %v23365_v63 = vpack.c.bf16 %v8478_v1, %v8477_v23 }
 0x642   :  { %v7998_v54 = vpop.f32.mrb[50].mxu1 }
 0x643   :  { %v19652_v32 = vadd.f32 %v23255_v48, %v7998_v54  ;;  %v8285_v9 = vadd.f32 %v19651_v60, %v23218_v53  ;;  %v8000_v59 = vpop.f32.mrb[51].mxu1 }
 0x645   :  { %v8288_v12 = vadd.f32 %v19652_v32, %v23224_v24  ;;  %v8479_v42 = vmax.f32 %v8285_v9, 0.0 }
 0x647   :  { %v8480_v50 = vmax.f32 %v8288_v12, 0.0 }
 0x648   :  { %v8003_v14 = vpop.f32.mrb[52].mxu1 }
 0x649   :  { %v19653_v36 = vadd.f32 %v23255_v48, %v8003_v14  ;;  %v8005_v10 = vpop.f32.mrb[53].mxu1  ;;  %v23379_v62 = vpack.c.bf16 %v8480_v50, %v8479_v42 }
 0x64a   :  { %v8006_v53 = vpop.f32.mrb[54].mxu1  ;;  %v23390_v10 = vpop.f32.mrb[112].mxu0 }
 0x64b   :  { %v8293_v38 = vadd.f32 %v19653_v36, %v23216_v19  ;;  %v19654_v23 = vadd.f32 %v23255_v48, %v8006_v53  ;;  %v8008_v1 = vpop.f32.mrb[55].mxu1  ;;  %v23392_v53 = vpop.f32.mrb[113].mxu0 }
 0x64c   :  { %v23395_v1 = vpop.f32.mrb[114].mxu0 }
 0x64d   :  { %v8296_v24 = vadd.f32 %v19654_v23, %v23221_v26  ;;  %v8481_v31 = vmax.f32 %v8293_v38, 0.0 }
 0x64f   :  { %v8482_v60 = vmax.f32 %v8296_v24, 0.0 }
 0x650   :  { %v8011_v16 = vpop.f32.mrb[56].mxu1 }
 0x651   :  { %v19655_v54 = vadd.f32 %v23255_v48, %v8011_v16  ;;  %v8013_v32 = vpop.f32.mrb[57].mxu1  ;;  %v23385_v9 = vpack.c.bf16 %v8482_v60, %v8481_v31  ;;  %v23399_v60 = vpop.f32.mrb[115].mxu0 }
 0x652   :  { %v8014_v59 = vpop.f32.mrb[58].mxu1 }
 0x653   :  { %v19656_v12 = vadd.f32 %v23255_v48, %v8014_v59  ;;  %v8301_v42 = vadd.f32 %v19655_v54, %v23230_v11  ;;  %v8016_v50 = vpop.f32.mrb[59].mxu1 }
 0x655   :  { %v8304_v19 = vadd.f32 %v19656_v12, %v23236_v29  ;;  %v8483_v14 = vmax.f32 %v8301_v42, 0.0 }
 0x657   :  { %v8484_v36 = vmax.f32 %v8304_v19, 0.0 }
 0x658   :  { %v8019_v26 = vpop.f32.mrb[60].mxu1 }
 0x659   :  { %v19657_v38 = vadd.f32 %v23255_v48, %v8019_v26  ;;  %v8021_v23 = vpop.f32.mrb[61].mxu1  ;;  %v23397_v24 = vpack.c.bf16 %v8484_v36, %v8483_v14 }
 0x65a   :  { %v8022_v31 = vpop.f32.mrb[62].mxu1 }
 0x65b   :  { %v8309_v11 = vadd.f32 %v19657_v38, %v23228_v25  ;;  %v19658_v29 = vadd.f32 %v23255_v48, %v8022_v31  ;;  %v8024_v16 = vpop.f32.mrb[63].mxu1 }
 0x65c   :  { %v23410_v16 = vpop.f32.mrb[116].mxu0 }
 0x65d   :  { %v8312_v54 = vadd.f32 %v19658_v29, %v23233_v44  ;;  %v8485_v32 = vmax.f32 %v8309_v11, 0.0  ;;  %v23412_v11 = vpop.f32.mrb[117].mxu0 }
 0x65f   :  { %v8486_v59 = vmax.f32 %v8312_v54, 0.0 }
 0x660   :  { %v8027_v12 = vpop.f32.mrb[64].mxu1 }
 0x661   :  { %v19659_v42 = vadd.f32 %v23255_v48, %v8027_v12  ;;  %v8029_v50 = vpop.f32.mrb[65].mxu1  ;;  %v23405_v19 = vpack.c.bf16 %v8486_v59, %v8485_v32  ;;  %v23415_v32 = vpop.f32.mrb[118].mxu0 }
 0x662   :  { %v8030_v14 = vpop.f32.mrb[66].mxu1  ;;  %v23419_v50 = vpop.f32.mrb[119].mxu0 }
 0x663   :  { %v19660_v36 = vadd.f32 %v23255_v48, %v8030_v14  ;;  %v8317_v26 = vadd.f32 %v19659_v42, %v23242_v51  ;;  %v8032_v23 = vpop.f32.mrb[67].mxu1 }
 0x665   :  { %v8320_v25 = vadd.f32 %v19660_v36, %v23248_v52  ;;  %v8487_v38 = vmax.f32 %v8317_v26, 0.0 }
 0x667   :  { %v8488_v31 = vmax.f32 %v8320_v25, 0.0 }
 0x668   :  { %v8035_v44 = vpop.f32.mrb[68].mxu1 }
 0x669   :  { %v19661_v29 = vadd.f32 %v23255_v48, %v8035_v44  ;;  %v8037_v54 = vpop.f32.mrb[69].mxu1  ;;  %v23417_v59 = vpack.c.bf16 %v8488_v31, %v8487_v38 }
 0x66a   :  { %v8038_v12 = vpop.f32.mrb[70].mxu1 }
 0x66b   :  { %v8325_v51 = vadd.f32 %v19661_v29, %v23240_v4  ;;  %v19662_v52 = vadd.f32 %v23255_v48, %v8038_v12  ;;  %v8040_v42 = vpop.f32.mrb[71].mxu1 }
 0x66d   :  { %v8328_v14 = vadd.f32 %v19662_v52, %v23245_v28  ;;  %v8489_v36 = vmax.f32 %v8325_v51, 0.0  ;;  %v20443_v28 = vld [vmem:[%s25901_s6] sm:$0xff]  }
 0x66e   :  { %19013 = vmatprep.mubr.bf16.mxu0 %v20443_v28 }
 0x66f   :  { %v8490_v26 = vmax.f32 %v8328_v14, 0.0 }
 0x670   :  { %v8043_v23 = vpop.f32.mrb[72].mxu1 }
 0x671   :  { %v19663_v25 = vadd.f32 %v23255_v48, %v8043_v23  ;;  %v8045_v44 = vpop.f32.mrb[73].mxu1  ;;  %v23425_v54 = vpack.c.bf16 %v8490_v26, %v8489_v36 }
 0x672   :  { %v8046_v38 = vpop.f32.mrb[74].mxu1 }
 0x673   :  { %v19664_v31 = vadd.f32 %v23255_v48, %v8046_v38  ;;  %v8333_v37 = vadd.f32 %v19663_v25, %v23262_v2  ;;  %v8048_v35 = vpop.f32.mrb[75].mxu1 }
 0x675   :  { %v8336_v4 = vadd.f32 %v19664_v31, %v23269_v34  ;;  %v8491_v29 = vmax.f32 %v8333_v37, 0.0 }
 0x677   :  { %v8492_v12 = vmax.f32 %v8336_v4, 0.0 }
 0x678   :  { %v8051_v51 = vpop.f32.mrb[76].mxu1 }
 0x679   :  { %v19665_v52 = vadd.f32 %v23255_v48, %v8051_v51  ;;  %v8053_v42 = vpop.f32.mrb[77].mxu1  ;;  %v23434_v14 = vpack.c.bf16 %v8492_v12, %v8491_v29 }
 0x67a   :  { %v8054_v36 = vpop.f32.mrb[78].mxu1 }
 0x67b   :  { %v8341_v26 = vadd.f32 %v19665_v52, %v23260_v45  ;;  %v19666_v2 = vadd.f32 %v23255_v48, %v8054_v36  ;;  %v8056_v35 = vpop.f32.mrb[79].mxu1 }
 0x67d   :  { %v8344_v34 = vadd.f32 %v19666_v2, %v23266_v20  ;;  %v8493_v23 = vmax.f32 %v8341_v26, 0.0 }
 0x67f   :  { %v8494_v25 = vmax.f32 %v8344_v34, 0.0 }
 0x680   :  { %v8059_v44 = vpop.f32.mrb[80].mxu1 }
 0x681   :  { %v19667_v37 = vadd.f32 %v23255_v48, %v8059_v44  ;;  %v8061_v38 = vpop.f32.mrb[81].mxu1  ;;  %v23440_v31 = vpack.c.bf16 %v8494_v25, %v8493_v23 }
 0x682   :  { %v8062_v4 = vpop.f32.mrb[82].mxu1 }
 0x683   :  { %v19668_v28 = vadd.f32 %v23255_v48, %v8062_v4  ;;  %v8349_v29 = vadd.f32 %v19667_v37, %v23286_v33  ;;  %v8064_v12 = vpop.f32.mrb[83].mxu1 }
 0x685   :  { %v8352_v45 = vadd.f32 %v19668_v28, %v23293_v5  ;;  %v8495_v51 = vmax.f32 %v8349_v29, 0.0 }
 0x687   :  { %v8496_v52 = vmax.f32 %v8352_v45, 0.0 }
 0x688   :  { %v8067_v42 = vpop.f32.mrb[84].mxu1 }
 0x689   :  { %v19669_v20 = vadd.f32 %v23255_v48, %v8067_v42  ;;  %v8069_v36 = vpop.f32.mrb[85].mxu1  ;;  %v23446_v26 = vpack.c.bf16 %v8496_v52, %v8495_v51 }
 0x68a   :  { %v8070_v2 = vpop.f32.mrb[86].mxu1 }
 0x68b   :  { %v8357_v35 = vadd.f32 %v19669_v20, %v23284_v58  ;;  %v19670_v34 = vadd.f32 %v23255_v48, %v8070_v2  ;;  %v8072_v23 = vpop.f32.mrb[87].mxu1 }
 0x68d   :  { %v8360_v25 = vadd.f32 %v19670_v34, %v23290_v6  ;;  %v8497_v33 = vmax.f32 %v8357_v35, 0.0 }
 0x68f   :  { %v8498_v44 = vmax.f32 %v8360_v25, 0.0 }
 0x690   :  { %v8075_v37 = vpop.f32.mrb[88].mxu1 }
 0x691   :  { %v19671_v5 = vadd.f32 %v23255_v48, %v8075_v37  ;;  %v8077_v38 = vpop.f32.mrb[89].mxu1  ;;  %v23452_v4 = vpack.c.bf16 %v8498_v44, %v8497_v33 }
 0x692   :  { %v8078_v28 = vpop.f32.mrb[90].mxu1 }
 0x693   :  { %v19672_v29 = vadd.f32 %v23255_v48, %v8078_v28  ;;  %v8365_v12 = vadd.f32 %v19671_v5, %v23310_v47  ;;  %v8080_v45 = vpop.f32.mrb[91].mxu1 }
 0x695   :  { %v8368_v58 = vadd.f32 %v19672_v29, %v23316_v27  ;;  %v8499_v51 = vmax.f32 %v8365_v12, 0.0 }
 0x697   :  { %v8500_v52 = vmax.f32 %v8368_v58, 0.0 }
 0x698   :  { %v8083_v42 = vpop.f32.mrb[92].mxu1 }
 0x699   :  { %v19673_v6 = vadd.f32 %v23255_v48, %v8083_v42  ;;  %v8085_v20 = vpop.f32.mrb[93].mxu1  ;;  %v23458_v36 = vpack.c.bf16 %v8500_v52, %v8499_v51 }
 0x69a   :  { %v8086_v2 = vpop.f32.mrb[94].mxu1 }
 0x69b   :  { %v8373_v35 = vadd.f32 %v19673_v6, %v23308_v21  ;;  %v19674_v34 = vadd.f32 %v23255_v48, %v8086_v2  ;;  %v8088_v23 = vpop.f32.mrb[95].mxu1 }
 0x69d   :  { %v8376_v25 = vadd.f32 %v19674_v34, %v23314_v57  ;;  %v8501_v47 = vmax.f32 %v8373_v35, 0.0 }
 0x69f   :  { %v8502_v33 = vmax.f32 %v8376_v25, 0.0 }
 0x6a0   :  { %v8091_v44 = vpop.f32.mrb[96].mxu1 }
 0x6a1   :  { %v19675_v27 = vadd.f32 %v23255_v48, %v8091_v44  ;;  %v8093_v37 = vpop.f32.mrb[97].mxu1  ;;  %v23464_v5 = vpack.c.bf16 %v8502_v33, %v8501_v47 }
 0x6a2   :  { %v8094_v38 = vpop.f32.mrb[98].mxu1 }
 0x6a3   :  { %v19676_v28 = vadd.f32 %v23255_v48, %v8094_v38  ;;  %v8381_v29 = vadd.f32 %v19675_v27, %v23331_v41  ;;  %v8096_v12 = vpop.f32.mrb[99].mxu1 }
 0x6a5   :  { %v8384_v21 = vadd.f32 %v19676_v28, %v23336_v49  ;;  %v8503_v45 = vmax.f32 %v8381_v29, 0.0 }
 0x6a7   :  { %v8504_v58 = vmax.f32 %v8384_v21, 0.0 }
 0x6a8   :  { %v8099_v51 = vpop.f32.mrb[100].mxu1 }
 0x6a9   :  { %v19677_v57 = vadd.f32 %v23255_v48, %v8099_v51  ;;  %v8101_v52 = vpop.f32.mrb[101].mxu1  ;;  %v23470_v42 = vpack.c.bf16 %v8504_v58, %v8503_v45 }
 0x6aa   :  { %v8102_v6 = vpop.f32.mrb[102].mxu1 }
 0x6ab   :  { %v8389_v20 = vadd.f32 %v19677_v57, %v23329_v40  ;;  %v19678_v2 = vadd.f32 %v23255_v48, %v8102_v6  ;;  %v8104_v35 = vpop.f32.mrb[103].mxu1 }
 0x6ad   :  { %v8392_v34 = vadd.f32 %v19678_v2, %v23334_v39  ;;  %v8505_v41 = vmax.f32 %v8389_v20, 0.0 }
 0x6af   :  { %v8506_v23 = vmax.f32 %v8392_v34, 0.0 }
 0x6b0   :  { %v8107_v25 = vpop.f32.mrb[104].mxu1 }
 0x6b1   :  { %v19679_v49 = vadd.f32 %v23255_v48, %v8107_v25  ;;  %v8109_v47 = vpop.f32.mrb[105].mxu1  ;;  %v23476_v33 = vpack.c.bf16 %v8506_v23, %v8505_v41 }
 0x6b2   :  { %v8110_v44 = vpop.f32.mrb[106].mxu1 }
 0x6b3   :  { %v8397_v27 = vadd.f32 %v19679_v49, %v23346_v0  ;;  %v19680_v37 = vadd.f32 %v23255_v48, %v8110_v44  ;;  %v8112_v38 = vpop.f32.mrb[107].mxu1 }
 0x6b5   :  { %v8400_v40 = vadd.f32 %v19680_v37, %v23353_v22  ;;  %v8507_v28 = vmax.f32 %v8397_v27, 0.0 }
 0x6b7   :  { %v8508_v29 = vmax.f32 %v8400_v40, 0.0 }
 0x6b8   :  { %v8115_v12 = vpop.f32.mrb[108].mxu1 }
 0x6b9   :  { %v23481_v39 = vpack.c.bf16 %v8508_v29, %v8507_v28  ;;  %v19681_v21 = vadd.f32 %v23255_v48, %v8115_v12  ;;  %v8117_v45 = vpop.f32.mrb[109].mxu1 }
 0x6ba   :  { %v8118_v58 = vpop.f32.mrb[110].mxu1 }
 0x6bb   :  { %v8405_v51 = vadd.f32 %v19681_v21, %v23344_v30  ;;  %v19682_v57 = vadd.f32 %v23255_v48, %v8118_v58  ;;  %v8120_v52 = vpop.f32.mrb[111].mxu1  ;;  %18997 = vmatprep.subr.bf16.mxu0 %v23481_v39 }
 0x6bc   :  { %18998 = vmatpush3.bf16.msra.mxu0 %v23481_v39 }
 0x6bd   :  { %v8408_v0 = vadd.f32 %v19682_v57, %v23351_v17  ;;  %v8509_v22 = vmax.f32 %v8405_v51, 0.0 }
 0x6bf   :  { %v8510_v6 = vmax.f32 %v8408_v0, 0.0 }
 0x6c0   :  { %v8123_v20 = vpop.f32.mrb[112].mxu1 }
 0x6c1   :  { %v23489_v2 = vpack.c.bf16 %v8510_v6, %v8509_v22  ;;  %v19683_v35 = vadd.f32 %v23255_v48, %v8123_v20  ;;  %v8125_v34 = vpop.f32.mrb[113].mxu1 }
 0x6c2   :  { %v8126_v41 = vpop.f32.mrb[114].mxu1 }
 0x6c3   :  { %v19684_v30 = vadd.f32 %v23255_v48, %v8126_v41  ;;  %v8413_v23 = vadd.f32 %v19683_v35, %v23371_v8  ;;  %v8128_v25 = vpop.f32.mrb[115].mxu1  ;;  %18999 = vmatprep.subr.bf16.mxu0 %v23489_v2 }
 0x6c4   :  { %19000 = vmatpush3.bf16.msra.mxu0 %v23489_v2 }
 0x6c5   :  { %v8416_v17 = vadd.f32 %v19684_v30, %v23376_v7  ;;  %v8511_v49 = vmax.f32 %v8413_v23, 0.0 }
 0x6c7   :  { %v8512_v47 = vmax.f32 %v8416_v17, 0.0 }
 0x6c8   :  { %v8131_v44 = vpop.f32.mrb[116].mxu1 }
 0x6c9   :  { %v23497_v27 = vpack.c.bf16 %v8512_v47, %v8511_v49  ;;  %v19685_v37 = vadd.f32 %v23255_v48, %v8131_v44  ;;  %v8133_v38 = vpop.f32.mrb[117].mxu1 }
 0x6ca   :  { %v8134_v40 = vpop.f32.mrb[118].mxu1 }
 0x6cb   :  { %v8421_v28 = vadd.f32 %v19685_v37, %v23369_v46  ;;  %v19686_v8 = vadd.f32 %v23255_v48, %v8134_v40  ;;  %v8136_v29 = vpop.f32.mrb[119].mxu1  ;;  %19001 = vmatprep.subr.bf16.mxu0 %v23497_v27 }
 0x6cc   :  { %19002 = vmatpush3.bf16.msra.mxu0 %v23497_v27 }
 0x6cd   :  { %v8424_v7 = vadd.f32 %v19686_v8, %v23374_v3  ;;  %v8513_v12 = vmax.f32 %v8421_v28, 0.0 }
 0x6cf   :  { %v8514_v21 = vmax.f32 %v8424_v7, 0.0 }
 0x6d0   :  { %v8139_v45 = vpop.f32.mrb[120].mxu1 }
 0x6d1   :  { %v23505_v58 = vpack.c.bf16 %v8514_v21, %v8513_v12  ;;  %v19687_v51 = vadd.f32 %v23255_v48, %v8139_v45  ;;  %v8141_v57 = vpop.f32.mrb[121].mxu1 }
 0x6d2   :  { %v8142_v52 = vpop.f32.mrb[122].mxu1 }
 0x6d3   :  { %v19688_v46 = vadd.f32 %v23255_v48, %v8142_v52  ;;  %v8429_v0 = vadd.f32 %v19687_v51, %v23392_v53  ;;  %v8144_v22 = vpop.f32.mrb[123].mxu1  ;;  %19003 = vmatprep.subr.bf16.mxu0 %v23505_v58 }
 0x6d4   :  { %19004 = vmatpush3.bf16.msra.mxu0 %v23505_v58 }
 0x6d5   :  { %v8432_v3 = vadd.f32 %v19688_v46, %v23399_v60  ;;  %v8515_v6 = vmax.f32 %v8429_v0, 0.0 }
 0x6d7   :  { %v8516_v20 = vmax.f32 %v8432_v3, 0.0 }
 0x6d8   :  { %v8147_v35 = vpop.f32.mrb[124].mxu1 }
 0x6d9   :  { %v23513_v34 = vpack.c.bf16 %v8516_v20, %v8515_v6  ;;  %v19689_v41 = vadd.f32 %v23255_v48, %v8147_v35  ;;  %v8149_v30 = vpop.f32.mrb[125].mxu1  ;;  %v20444_v20 = vld [vmem:[%s25901_s6 + $0x8] sm:$0xff]  }
 0x6da   :  { %v8150_v23 = vpop.f32.mrb[126].mxu1  ;;  %v20448_v35 = vld [vmem:[%s25901_s6 + $0x28] sm:$0xff]   ;;  %v20450_v30 = vld [vmem:[%s25901_s6 + $0x38] sm:$0xff]  }
 0x6db   :  { %v8437_v25 = vadd.f32 %v19689_v41, %v23390_v10  ;;  %v19690_v53 = vadd.f32 %v23255_v48, %v8150_v23  ;;  %v8152_v17 = vpop.f32.mrb[127].mxu1  ;;  %19005 = vmatprep.subr.bf16.mxu0 %v23513_v34  ;;  %v20449_v41 = vld [vmem:[%s25901_s6 + $0x30] sm:$0xff]   ;;  %v20451_v23 = vld [vmem:[%s25902_s22] sm:$0xff]  }
 0x6dc   :  { %19006 = vmatpush3.bf16.msra.mxu0 %v23513_v34  ;;  %v20454_v17 = vld [vmem:[%s25902_s22 + $0x18] sm:$0xff]  }
 0x6dd   :  { %v8440_v60 = vadd.f32 %v19690_v53, %v23395_v1  ;;  %v8517_v49 = vmax.f32 %v8437_v25, 0.0  ;;  %v20452_v25 = vld [vmem:[%s25902_s22 + $0x8] sm:$0xff]   ;;  %v20453_v53 = vld [vmem:[%s25902_s22 + $0x10] sm:$0xff]  }
 0x6df   :  { %v8518_v47 = vmax.f32 %v8440_v60, 0.0  ;;  %v20455_v60 = vld [vmem:[%s25902_s22 + $0x20] sm:$0xff]  }
 0x6e0   :  { %v8155_v44 = vpop.f32.mrb[128].mxu1 }
 0x6e1   :  { %v23521_v37 = vpack.c.bf16 %v8518_v47, %v8517_v49  ;;  %v19691_v38 = vadd.f32 %v23255_v48, %v8155_v44  ;;  %v8157_v40 = vpop.f32.mrb[129].mxu1  ;;  %v20456_v49 = vld [vmem:[%s25902_s22 + $0x28] sm:$0xff]   ;;  %v20457_v47 = vld [vmem:[%s25902_s22 + $0x30] sm:$0xff]   ;;  %v20458_v44 = vld [vmem:[%s25902_s22 + $0x38] sm:$0xff]  }
 0x6e2   :  { %v8158_v28 = vpop.f32.mrb[130].mxu1  ;;  %v20460_v40 = vld [vmem:[%s25661_s5 + $0x8] sm:$0xff]  }
 0x6e3   :  { %v19692_v10 = vadd.f32 %v23255_v48, %v8158_v28  ;;  %v8445_v8 = vadd.f32 %v19691_v38, %v23412_v11  ;;  %v8160_v29 = vpop.f32.mrb[131].mxu1  ;;  %19007 = vmatprep.subr.bf16.mxu0 %v23521_v37  ;;  %v20459_v38 = vld [vmem:[%s25661_s5] sm:$0xff]   ;;  %v20461_v28 = vld [vmem:[%s25661_s5 + $0x10] sm:$0xff]  }
 0x6e4   :  { %19008 = vmatpush3.bf16.msra.mxu0 %v23521_v37  ;;  %v20464_v29 = vld [vmem:[%s25661_s5 + $0x28] sm:$0xff]  }
 0x6e5   :  { %v8448_v1 = vadd.f32 %v19692_v10, %v23419_v50  ;;  %v8519_v7 = vmax.f32 %v8445_v8, 0.0  ;;  %v20462_v10 = vld [vmem:[%s25661_s5 + $0x18] sm:$0xff]   ;;  %v20463_v8 = vld [vmem:[%s25661_s5 + $0x20] sm:$0xff]  }
 0x6e7   :  { %v8520_v12 = vmax.f32 %v8448_v1, 0.0  ;;  %v20465_v1 = vld [vmem:[%s25661_s5 + $0x30] sm:$0xff]  }
 0x6e8   :  { %v8163_v21 = vpop.f32.mrb[132].mxu1 }
 0x6e9   :  { %v23529_v45 = vpack.c.bf16 %v8520_v12, %v8519_v7  ;;  %v19693_v51 = vadd.f32 %v23255_v48, %v8163_v21  ;;  %v8165_v57 = vpop.f32.mrb[133].mxu1  ;;  %v20466_v7 = vld [vmem:[%s25661_s5 + $0x38] sm:$0xff]   ;;  %v20467_v12 = vld [vmem:[%s25662_s7 + $0x40] sm:$0xff]  }
 0x6ea   :  { %v8166_v52 = vpop.f32.mrb[134].mxu1  ;;  %v20468_v21 = vld [vmem:[%s25662_s7] sm:$0xff]   ;;  %v20470_v57 = vld [vmem:[%s25662_s7 + $0x8] sm:$0xff]  }
 0x6eb   :  { %v8453_v46 = vadd.f32 %v19693_v51, %v23410_v16  ;;  %v19694_v11 = vadd.f32 %v23255_v48, %v8166_v52  ;;  %v8168_v0 = vpop.f32.mrb[135].mxu1  ;;  %19009 = vmatprep.subr.bf16.mxu0 %v23529_v45  ;;  %v20445_v48 = vld [vmem:[%s25901_s6 + $0x10] sm:$0xff]   ;;  %v20446_v16 = vld [vmem:[%s25901_s6 + $0x18] sm:$0xff]   ;;  %v20469_v51 = vld [vmem:[%s25662_s7 + $0x48] sm:$0xff]  }
 0x6ec   :  { %19010 = vmatpush3.bf16.msra.mxu0 %v23529_v45  ;;  %v20471_v52 = vld [vmem:[%s25662_s7 + $0x50] sm:$0xff]   ;;  %v20474_v0 = vld [vmem:[%s25662_s7 + $0x18] sm:$0xff]  }
 0x6ed   :  { %v8456_v50 = vadd.f32 %v19694_v11, %v23415_v32  ;;  %v8521_v22 = vmax.f32 %v8453_v46, 0.0  ;;  %v20447_v32 = vld [vmem:[%s25901_s6 + $0x20] sm:$0xff]   ;;  %v20472_v46 = vld [vmem:[%s25662_s7 + $0x10] sm:$0xff]   ;;  %v20473_v11 = vld [vmem:[%s25662_s7 + $0x58] sm:$0xff]  }
 0x6ef   :  { %v8522_v3 = vmax.f32 %v8456_v50, 0.0  ;;  %v20475_v50 = vld [vmem:[%s25662_s7 + $0x60] sm:$0xff]  }
 0x6f1   :  { %v23537_v6 = vpack.c.bf16 %v8522_v3, %v8521_v22  ;;  %v20476_v22 = vld [vmem:[%s25662_s7 + $0x20] sm:$0xff]   ;;  %v20477_v3 = vld [vmem:[%s25662_s7 + $0x68] sm:$0xff]  }
 0x6f3   :  { %19011 = vmatprep.subr.bf16.mxu0 %v23537_v6 }
 0x6f4   :  { %19012 = vmatpush3.bf16.msra.mxu0 %v23537_v6 }
 0x6f5   :  { %19029 = vmatprep.subr.bf16.mxu0 %v23434_v14 }
 0x6f7   :  { %19014 = vmatmul.mubr.bf16.vlgmr.msra.gmra.mrb[120].mxu0 %v20444_v20  ;;  %v20478_v20 = vld [vmem:[%s25662_s7 + $0x28] sm:$0xff]  }
 0x6f8   :  { %19030 = vmatpush3.bf16.msra.mxu0 %v23434_v14  ;;  %19017 = vmatprep.mubr.bf16.mxu0 %v20445_v48  ;;  %v20479_v48 = vld [vmem:[%s25662_s7 + $0x70] sm:$0xff]  }
 0x6f9   :  { %19031 = vmatprep.subr.bf16.mxu0 %v23440_v31 }
 0x6fc   :  { %19032 = vmatpush3.bf16.msra.mxu0 %v23440_v31 }
 0x6fd   :  { %19033 = vmatprep.subr.bf16.mxu0 %v23446_v26 }
 0x6ff   :  { %19018 = vmatmul.mubr.bf16.gmra.mrb[124].mxu0 %v20446_v16  ;;  %v20480_v16 = vld [vmem:[%s25662_s7 + $0x30] sm:$0xff]  }
 0x700   :  { %19034 = vmatpush3.bf16.msra.mxu0 %v23446_v26  ;;  %19021 = vmatprep.mubr.bf16.mxu0 %v20447_v32  ;;  %v20481_v32 = vld [vmem:[%s25662_s7 + $0x78] sm:$0xff]  }
 0x701   :  { %19035 = vmatprep.subr.bf16.mxu0 %v23452_v4 }
 0x704   :  { %19036 = vmatpush3.bf16.msra.mxu0 %v23452_v4 }
 0x705   :  { %19037 = vmatprep.subr.bf16.mxu0 %v23458_v36 }
 0x707   :  { %19022 = vmatmul.mubr.bf16.gmra.mrb[128].mxu0 %v20448_v35  ;;  %v20482_v35 = vld [vmem:[%s25662_s7 + $0x38] sm:$0xff]  }
 0x708   :  { %19038 = vmatpush3.bf16.msra.mxu0 %v23458_v36  ;;  %19025 = vmatprep.mubr.bf16.mxu0 %v20449_v41  ;;  %v20483_v41 = vld [vmem:[%s25662_s7 + $0xc0] sm:$0xff]  }
 0x709   :  { %19039 = vmatprep.subr.bf16.mxu0 %v23464_v5 }
 0x70c   :  { %19040 = vmatpush3.bf16.msra.mxu0 %v23464_v5 }
 0x70d   :  { %19041 = vmatprep.subr.bf16.mxu0 %v23470_v42 }
 0x70f   :  { %19026 = vmatmul.mubr.bf16.gmra.mrb[132].mxu0 %v20450_v30 }
 0x710   :  { %19042 = vmatpush3.bf16.msra.mxu0 %v23470_v42  ;;  %19045 = vmatprep.mubr.bf16.mxu0 %v20451_v23 }
 0x711   :  { %19043 = vmatprep.subr.bf16.mxu0 %v23476_v33 }
 0x714   :  { %19044 = vmatpush3.bf16.msra.mxu0 %v23476_v33 }
 0x715   :  { %19061 = vmatprep.subr.bf16.mxu0 %v23481_v39 }
 0x717   :  { %19046 = vmatmul.mubr.bf16.vlgmr.msra.gmra.mrb[136].mxu0 %v20452_v25 }
 0x718   :  { %19062 = vmatpush3.bf16.msra.mxu0 %v23481_v39  ;;  %19049 = vmatprep.mubr.bf16.mxu0 %v20453_v53 }
 0x719   :  { %19063 = vmatprep.subr.bf16.mxu0 %v23489_v2 }
 0x71c   :  { %19064 = vmatpush3.bf16.msra.mxu0 %v23489_v2 }
 0x71d   :  { %19065 = vmatprep.subr.bf16.mxu0 %v23497_v27 }
 0x71f   :  { %19050 = vmatmul.mubr.bf16.gmra.mrb[140].mxu0 %v20454_v17 }
 0x720   :  { %19066 = vmatpush3.bf16.msra.mxu0 %v23497_v27  ;;  %19053 = vmatprep.mubr.bf16.mxu0 %v20455_v60 }
 0x721   :  { %19067 = vmatprep.subr.bf16.mxu0 %v23505_v58 }
 0x724   :  { %19068 = vmatpush3.bf16.msra.mxu0 %v23505_v58 }
 0x725   :  { %19069 = vmatprep.subr.bf16.mxu0 %v23513_v34 }
 0x727   :  { %19054 = vmatmul.mubr.bf16.gmra.mrb[144].mxu0 %v20456_v49 }
 0x728   :  { %19070 = vmatpush3.bf16.msra.mxu0 %v23513_v34  ;;  %19057 = vmatprep.mubr.bf16.mxu0 %v20457_v47 }
 0x729   :  { %19071 = vmatprep.subr.bf16.mxu0 %v23521_v37 }
 0x72c   :  { %19072 = vmatpush3.bf16.msra.mxu0 %v23521_v37 }
 0x72d   :  { %19073 = vmatprep.subr.bf16.mxu0 %v23529_v45 }
 0x72f   :  { %19058 = vmatmul.mubr.bf16.gmra.mrb[148].mxu0 %v20458_v44 }
 0x730   :  { %19074 = vmatpush3.bf16.msra.mxu0 %v23529_v45  ;;  %19077 = vmatprep.mubr.bf16.mxu0 %v20451_v23 }
 0x731   :  { %19075 = vmatprep.subr.bf16.mxu0 %v23537_v6 }
 0x734   :  { %19076 = vmatpush3.bf16.msra.mxu0 %v23537_v6 }
 0x735   :  { %19093 = vmatprep.subr.bf16.mxu0 %v23359_v61 }
 0x737   :  { %19078 = vmatmul.mubr.bf16.vlgmr.msra.gmra.mrb[152].mxu0 %v20452_v25 }
 0x738   :  { %19094 = vmatpush3.bf16.msra.mxu0 %v23359_v61  ;;  %19081 = vmatprep.mubr.bf16.mxu0 %v20453_v53 }
 0x739   :  { %19095 = vmatprep.subr.bf16.mxu0 %v23365_v63 }
 0x73c   :  { %19096 = vmatpush3.bf16.msra.mxu0 %v23365_v63 }
 0x73d   :  { %19097 = vmatprep.subr.bf16.mxu0 %v23379_v62 }
 0x73f   :  { %19082 = vmatmul.mubr.bf16.gmra.mrb[156].mxu0 %v20454_v17 }
 0x740   :  { %19098 = vmatpush3.bf16.msra.mxu0 %v23379_v62  ;;  %19085 = vmatprep.mubr.bf16.mxu0 %v20455_v60 }
 0x741   :  { %19099 = vmatprep.subr.bf16.mxu0 %v23385_v9 }
 0x744   :  { %19100 = vmatpush3.bf16.msra.mxu0 %v23385_v9 }
 0x745   :  { %19101 = vmatprep.subr.bf16.mxu0 %v23397_v24 }
 0x747   :  { %19086 = vmatmul.mubr.bf16.gmra.mrb[160].mxu0 %v20456_v49 }
 0x748   :  { %19102 = vmatpush3.bf16.msra.mxu0 %v23397_v24  ;;  %19089 = vmatprep.mubr.bf16.mxu0 %v20457_v47 }
 0x749   :  { %19103 = vmatprep.subr.bf16.mxu0 %v23405_v19 }
 0x74c   :  { %19104 = vmatpush3.bf16.msra.mxu0 %v23405_v19 }
 0x74d   :  { %19105 = vmatprep.subr.bf16.mxu0 %v23417_v59 }
 0x74f   :  { %19090 = vmatmul.mubr.bf16.gmra.mrb[164].mxu0 %v20458_v44 }
 0x750   :  { %19106 = vmatpush3.bf16.msra.mxu0 %v23417_v59  ;;  %19109 = vmatprep.mubr.bf16.mxu0 %v20459_v38 }
 0x751   :  { %19107 = vmatprep.subr.bf16.mxu0 %v23425_v54 }
 0x754   :  { %19108 = vmatpush3.bf16.msra.mxu0 %v23425_v54 }
 0x755   :  { %19125 = vmatprep.subr.bf16.mxu0 %v23481_v39 }
 0x757   :  { %19110 = vmatmul.mubr.bf16.vlgmr.msra.gmra.mrb[168].mxu0 %v20460_v40 }
 0x758   :  { %19126 = vmatpush3.bf16.msra.mxu0 %v23481_v39  ;;  %19113 = vmatprep.mubr.bf16.mxu0 %v20461_v28 }
 0x759   :  { %19127 = vmatprep.subr.bf16.mxu0 %v23489_v2 }
 0x75c   :  { %19128 = vmatpush3.bf16.msra.mxu0 %v23489_v2 }
 0x75d   :  { %19129 = vmatprep.subr.bf16.mxu0 %v23497_v27 }
 0x75f   :  { %19114 = vmatmul.mubr.bf16.gmra.mrb[172].mxu0 %v20462_v10 }
 0x760   :  { %19130 = vmatpush3.bf16.msra.mxu0 %v23497_v27  ;;  %19117 = vmatprep.mubr.bf16.mxu0 %v20463_v8 }
 0x761   :  { %19131 = vmatprep.subr.bf16.mxu0 %v23505_v58 }
 0x764   :  { %19132 = vmatpush3.bf16.msra.mxu0 %v23505_v58 }
 0x765   :  { %19133 = vmatprep.subr.bf16.mxu0 %v23513_v34 }
 0x767   :  { %19118 = vmatmul.mubr.bf16.gmra.mrb[176].mxu0 %v20464_v29 }
 0x768   :  { %19134 = vmatpush3.bf16.msra.mxu0 %v23513_v34  ;;  %19121 = vmatprep.mubr.bf16.mxu0 %v20465_v1 }
 0x769   :  { %19135 = vmatprep.subr.bf16.mxu0 %v23521_v37 }
 0x76c   :  { %19136 = vmatpush3.bf16.msra.mxu0 %v23521_v37 }
 0x76d   :  { %19137 = vmatprep.subr.bf16.mxu0 %v23529_v45 }
 0x76f   :  { %19122 = vmatmul.mubr.bf16.gmra.mrb[180].mxu0 %v20466_v7 }
 0x770   :  { %19138 = vmatpush3.bf16.msra.mxu0 %v23529_v45  ;;  %19141 = vmatprep.mubr.bf16.mxu0 %v20459_v38 }
 0x771   :  { %19139 = vmatprep.subr.bf16.mxu0 %v23537_v6 }
 0x774   :  { %19140 = vmatpush3.bf16.msra.mxu0 %v23537_v6 }
 0x775   :  { %17485 = vmatprep.subr.bf16.mxu0 %v20467_v12 }
 0x777   :  { %19142 = vmatmul.mubr.bf16.vlgmr.msra.gmra.mrb[184].mxu0 %v20460_v40 }
 0x778   :  { %17486 = vmatpush3.bf16.msra.mxu0 %v20468_v21  ;;  %19145 = vmatprep.mubr.bf16.mxu0 %v20461_v28 }
 0x779   :  { %17487 = vmatprep.subr.bf16.mxu0 %v20469_v51 }
 0x77c   :  { %17488 = vmatpush3.bf16.msra.mxu0 %v20470_v57 }
 0x77d   :  { %17489 = vmatprep.subr.bf16.mxu0 %v20471_v52 }
 0x77f   :  { %19146 = vmatmul.mubr.bf16.gmra.mrb[188].mxu0 %v20462_v10 }
 0x780   :  { %17490 = vmatpush3.bf16.msra.mxu0 %v20472_v46  ;;  %19149 = vmatprep.mubr.bf16.mxu0 %v20463_v8 }
 0x781   :  { %17491 = vmatprep.subr.bf16.mxu0 %v20473_v11 }
 0x784   :  { %17492 = vmatpush3.bf16.msra.mxu0 %v20474_v0 }
 0x785   :  { %17493 = vmatprep.subr.bf16.mxu0 %v20475_v50 }
 0x787   :  { %19150 = vmatmul.mubr.bf16.gmra.mrb[192].mxu0 %v20464_v29 }
 0x788   :  { %17494 = vmatpush3.bf16.msra.mxu0 %v20476_v22  ;;  %19153 = vmatprep.mubr.bf16.mxu0 %v20465_v1 }
 0x789   :  { %17495 = vmatprep.subr.bf16.mxu0 %v20477_v3 }
 0x78c   :  { %17496 = vmatpush3.bf16.msra.mxu0 %v20478_v20 }
 0x78d   :  { %17497 = vmatprep.subr.bf16.mxu0 %v20479_v48 }
 0x78f   :  { %19154 = vmatmul.mubr.bf16.gmra.mrb[196].mxu0 %v20466_v7 }
 0x790   :  { %17498 = vmatpush3.bf16.msra.mxu0 %v20480_v16  ;;  %v20484_v16 = vld [vmem:[%s25662_s7 + $0x80] sm:$0xff]  }
 0x791   :  { %17499 = vmatprep.subr.bf16.mxu0 %v20481_v32  ;;  %v20485_v32 = vld [vmem:[%s25662_s7 + $0xc8] sm:$0xff]  }
 0x794   :  { %17500 = vmatpush3.bf16.msra.mxu0 %v20482_v35 }
 0x795   :  { %17549 = vmatprep.subr.bf16.mxu0 %v20483_v41  ;;  %v20486_v41 = vld [vmem:[%s25662_s7 + $0x88] sm:$0xff]  }
 0x7ca   :  { %v19015_v30 = vpop.f32.mrb[120].mxu0 }
 0x7cb   :  { %v8685_v23 = vpop.f32.mrb[121].mxu0 }
 0x7cc   :  { %v19016_v25 = vpop.f32.mrb[122].mxu0 }
 0x7cd   :  { %v8749_v53 = vpack.c.bf16 %v19016_v25, %v19015_v30  ;;  %v8688_v17 = vpop.f32.mrb[123].mxu0 }
 0x7ce   :  { %v8748_v60 = vpack.c.bf16 %v8688_v17, %v8685_v23  ;;  %v20487_v23 = vld [vmem:[%s25662_s7 + $0xd0] sm:$0xff]  }
 0x7d2   :  { %v23725_v49 = vpop.f32.mrb[124].mxu0 }
 0x7d3   :  { %v8701_v47 = vpop.f32.mrb[125].mxu0 }
 0x7d4   :  { %v23727_v44 = vpop.f32.mrb[126].mxu0 }
 0x7d5   :  { %v8751_v38 = vpack.c.bf16 %v23727_v44, %v23725_v49  ;;  %v8704_v40 = vpop.f32.mrb[127].mxu0 }
 0x7d6   :  { %v8750_v28 = vpack.c.bf16 %v8704_v40, %v8701_v47 }
 0x7da   :  { %v23731_v10 = vpop.f32.mrb[128].mxu0 }
 0x7db   :  { %v23733_v8 = vpop.f32.mrb[129].mxu0 }
 0x7dc   :  { %v23735_v29 = vpop.f32.mrb[130].mxu0 }
 0x7dd   :  { %v8753_v1 = vpack.c.bf16 %v23735_v29, %v23731_v10  ;;  %v23739_v7 = vpop.f32.mrb[131].mxu0 }
 0x7de   :  { %v8752_v12 = vpack.c.bf16 %v23739_v7, %v23733_v8 }
 0x7e2   :  { %v23743_v21 = vpop.f32.mrb[132].mxu0 }
 0x7e3   :  { %v23745_v51 = vpop.f32.mrb[133].mxu0 }
 0x7e4   :  { %v23747_v57 = vpop.f32.mrb[134].mxu0 }
 0x7e5   :  { %v8755_v52 = vpack.c.bf16 %v23747_v57, %v23743_v21  ;;  %v23751_v46 = vpop.f32.mrb[135].mxu0  ;;  %v20502_v21 = vld [vmem:[%s25662_s7 + $0x108] sm:$0xff]  }
 0x7e6   :  { %v8754_v11 = vpack.c.bf16 %v23751_v46, %v23745_v51 }
 0x7ea   :  { %v19047_v0 = vpop.f32.mrb[136].mxu0 }
 0x7eb   :  { %v8838_v50 = vpop.f32.mrb[137].mxu0 }
 0x7ec   :  { %v19048_v22 = vpop.f32.mrb[138].mxu0 }
 0x7ed   :  { %v8902_v3 = vpack.c.bf16 %v19048_v22, %v19047_v0  ;;  %v8841_v20 = vpop.f32.mrb[139].mxu0  ;;  %v20489_v0 = vld [vmem:[%s25662_s7 + $0xd8] sm:$0xff]  }
 0x7ee   :  { %v8901_v48 = vpack.c.bf16 %v8841_v20, %v8838_v50  ;;  %v20490_v22 = vld [vmem:[%s25662_s7 + $0x98] sm:$0xff]   ;;  %v20491_v20 = vld [vmem:[%s25662_s7 + $0xe0] sm:$0xff]  }
 0x7f0   :  { %9887 = vmatprep.mubr.bf16.mxu0 %v8901_v48 }
 0x7f1   :  { %9888 = vmatmul.mubr.bf16.vlgmr.msra.gmra.mrb[200].mxu0 %v8748_v60  ;;  %v20488_v60 = vld [vmem:[%s25662_s7 + $0x90] sm:$0xff]  }
 0x7f2   :  { %9895 = vmatprep.mubr.bf16.mxu0 %v8902_v3  ;;  %v19051_v35 = vpop.f32.mrb[140].mxu0  ;;  %17550 = vmatpush3.bf16.msra.mxu0 %v20484_v16 }
 0x7f3   :  { %v8854_v30 = vpop.f32.mrb[141].mxu0  ;;  %17551 = vmatprep.subr.bf16.mxu0 %v20485_v32 }
 0x7f4   :  { %v19052_v25 = vpop.f32.mrb[142].mxu0 }
 0x7f5   :  { %v8904_v17 = vpack.c.bf16 %v19052_v25, %v19051_v35  ;;  %v8857_v47 = vpop.f32.mrb[143].mxu0 }
 0x7f6   :  { %v8903_v40 = vpack.c.bf16 %v8857_v47, %v8854_v30  ;;  %17552 = vmatpush3.bf16.msra.mxu0 %v20486_v41  ;;  %v20493_v41 = vld [vmem:[%s25662_s7 + $0xe8] sm:$0xff]   ;;  %v20495_v47 = vld [vmem:[%s25662_s7 + $0xf0] sm:$0xff]  }
 0x7f7   :  { %17553 = vmatprep.subr.bf16.mxu0 %v20487_v23  ;;  %v20494_v23 = vld [vmem:[%s25662_s7 + $0xa8] sm:$0xff]  }
 0x7f9   :  { %9896 = vmatmul.mubr.bf16.gmra.mrb[204].mxu0 %v8749_v53  ;;  %v20492_v53 = vld [vmem:[%s25662_s7 + $0xa0] sm:$0xff]  }
 0x7fa   :  { %9903 = vmatprep.mubr.bf16.mxu0 %v8903_v40  ;;  %v19055_v50 = vpop.f32.mrb[144].mxu0  ;;  %17554 = vmatpush3.bf16.msra.mxu0 %v20488_v60 }
 0x7fb   :  { %v8870_v3 = vpop.f32.mrb[145].mxu0  ;;  %17555 = vmatprep.subr.bf16.mxu0 %v20489_v0 }
 0x7fc   :  { %v19056_v48 = vpop.f32.mrb[146].mxu0 }
 0x7fd   :  { %v8906_v16 = vpack.c.bf16 %v19056_v48, %v19055_v50  ;;  %v8873_v32 = vpop.f32.mrb[147].mxu0  ;;  %v20499_v48 = vld [vmem:[%s25662_s7 + $0x140] sm:$0xff]  }
 0x7fe   :  { %v8905_v35 = vpack.c.bf16 %v8873_v32, %v8870_v3  ;;  %17556 = vmatpush3.bf16.msra.mxu0 %v20490_v22  ;;  %v20498_v3 = vld [vmem:[%s25662_s7 + $0xb8] sm:$0xff]  }
 0x7ff   :  { %17557 = vmatprep.subr.bf16.mxu0 %v20491_v20 }
 0x801   :  { %9904 = vmatmul.mubr.bf16.gmra.mrb[208].mxu0 %v8750_v28  ;;  %v20496_v28 = vld [vmem:[%s25662_s7 + $0xb0] sm:$0xff]  }
 0x802   :  { %9911 = vmatprep.mubr.bf16.mxu0 %v8904_v17  ;;  %v19059_v30 = vpop.f32.mrb[148].mxu0  ;;  %17558 = vmatpush3.bf16.msra.mxu0 %v20492_v53  ;;  %v20497_v17 = vld [vmem:[%s25662_s7 + $0xf8] sm:$0xff]  }
 0x803   :  { %v8886_v25 = vpop.f32.mrb[149].mxu0  ;;  %17559 = vmatprep.subr.bf16.mxu0 %v20493_v41 }
 0x804   :  { %v19060_v40 = vpop.f32.mrb[150].mxu0 }
 0x805   :  { %v8908_v60 = vpack.c.bf16 %v19060_v40, %v19059_v30  ;;  %v8889_v0 = vpop.f32.mrb[151].mxu0 }
 0x806   :  { %v8907_v50 = vpack.c.bf16 %v8889_v0, %v8886_v25  ;;  %17560 = vmatpush3.bf16.msra.mxu0 %v20494_v23 }
 0x807   :  { %17561 = vmatprep.subr.bf16.mxu0 %v20495_v47 }
 0x809   :  { %9912 = vmatmul.mubr.bf16.gmra.mrb[212].mxu0 %v8751_v38 }
 0x80a   :  { %9919 = vmatprep.mubr.bf16.mxu0 %v8905_v35  ;;  %v19079_v22 = vpop.f32.mrb[152].mxu0  ;;  %17562 = vmatpush3.bf16.msra.mxu0 %v20496_v28 }
 0x80b   :  { %v8943_v20 = vpop.f32.mrb[153].mxu0  ;;  %17563 = vmatprep.subr.bf16.mxu0 %v20497_v17 }
 0x80c   :  { %v19080_v32 = vpop.f32.mrb[154].mxu0 }
 0x80d   :  { %v9007_v53 = vpack.c.bf16 %v19080_v32, %v19079_v22  ;;  %v8946_v41 = vpop.f32.mrb[155].mxu0 }
 0x80e   :  { %v9006_v30 = vpack.c.bf16 %v8946_v41, %v8943_v20  ;;  %17564 = vmatpush3.bf16.msra.mxu0 %v20498_v3  ;;  %v20500_v3 = vld [vmem:[%s25662_s7 + $0x100] sm:$0xff]   ;;  %v20501_v20 = vld [vmem:[%s25662_s7 + $0x148] sm:$0xff]  }
 0x80f   :  { %17613 = vmatprep.subr.bf16.mxu0 %v20499_v48 }
 0x811   :  { %9920 = vmatmul.mubr.bf16.gmra.mrb[216].mxu0 %v8752_v12 }
 0x812   :  { %9927 = vmatprep.mubr.bf16.mxu0 %v8906_v16  ;;  %v23809_v49 = vpop.f32.mrb[156].mxu0 }
 0x813   :  { %v23811_v44 = vpop.f32.mrb[157].mxu0 }
 0x814   :  { %v23813_v38 = vpop.f32.mrb[158].mxu0 }
 0x815   :  { %v9009_v35 = vpack.c.bf16 %v23813_v38, %v23809_v49  ;;  %v8962_v23 = vpop.f32.mrb[159].mxu0 }
 0x816   :  { %v9008_v25 = vpack.c.bf16 %v8962_v23, %v23811_v44 }
 0x819   :  { %9928 = vmatmul.mubr.bf16.gmra.mrb[220].mxu0 %v8753_v1 }
 0x81a   :  { %9935 = vmatprep.mubr.bf16.mxu0 %v8907_v50  ;;  %v23821_v8 = vpop.f32.mrb[160].mxu0 }
 0x81b   :  { %v23823_v7 = vpop.f32.mrb[161].mxu0 }
 0x81c   :  { %v23825_v12 = vpop.f32.mrb[162].mxu0 }
 0x81d   :  { %v9011_v16 = vpack.c.bf16 %v23825_v12, %v23821_v8  ;;  %v23829_v47 = vpop.f32.mrb[163].mxu0 }
 0x81e   :  { %v9010_v40 = vpack.c.bf16 %v23829_v47, %v23823_v7 }
 0x821   :  { %9936 = vmatmul.mubr.bf16.gmra.mrb[224].mxu0 %v8754_v11 }
 0x822   :  { %v23836_v10 = vpop.f32.mrb[164].mxu0  ;;  %9943 = vmatprep.mubr.bf16.mxu0 %v8908_v60 }
 0x823   :  { %v23838_v29 = vpop.f32.mrb[165].mxu0 }
 0x824   :  { %v23840_v1 = vpop.f32.mrb[166].mxu0 }
 0x825   :  { %v9013_v0 = vpack.c.bf16 %v23840_v1, %v23836_v10  ;;  %v23844_v50 = vpop.f32.mrb[167].mxu0  ;;  %v20518_v10 = vld [vmem:[%s25662_s7 + $0x188] sm:$0xff]   ;;  %v20520_v1 = vld [vmem:[%s25662_s7 + $0x190] sm:$0xff]  }
 0x826   :  { %v9012_v28 = vpack.c.bf16 %v23844_v50, %v23838_v29  ;;  %v20516_v29 = vld [vmem:[%s25662_s7 + $0x180] sm:$0xff]   ;;  %v20517_v50 = vld [vmem:[%s25662_s7 + $0x1c8] sm:$0xff]  }
 0x829   :  { %9944 = vmatmul.mubr.bf16.gmra.mrb[228].mxu0 %v8755_v52  ;;  %v20503_v52 = vld [vmem:[%s25662_s7 + $0x150] sm:$0xff]  }
 0x82a   :  { %v19111_v51 = vpop.f32.mrb[168].mxu0 }
 0x82b   :  { %v9096_v46 = vpop.f32.mrb[169].mxu0 }
 0x82c   :  { %v19112_v11 = vpop.f32.mrb[170].mxu0 }
 0x82d   :  { %v9160_v60 = vpack.c.bf16 %v19112_v11, %v19111_v51  ;;  %v9099_v17 = vpop.f32.mrb[171].mxu0  ;;  %v20505_v51 = vld [vmem:[%s25662_s7 + $0x158] sm:$0xff]  }
 0x82e   :  { %v9159_v22 = vpack.c.bf16 %v9099_v17, %v9096_v46  ;;  %v20506_v11 = vld [vmem:[%s25662_s7 + $0x118] sm:$0xff]   ;;  %v20507_v17 = vld [vmem:[%s25662_s7 + $0x160] sm:$0xff]  }
 0x830   :  { %9984 = vmatprep.mubr.bf16.mxu0 %v9159_v22 }
 0x831   :  { %9985 = vmatmul.mubr.bf16.vlgmr.msra.gmra.mrb[232].mxu0 %v9006_v30  ;;  %v20504_v30 = vld [vmem:[%s25662_s7 + $0x110] sm:$0xff]  }
 0x832   :  { %9992 = vmatprep.mubr.bf16.mxu0 %v9160_v60  ;;  %v19115_v48 = vpop.f32.mrb[172].mxu0  ;;  %17614 = vmatpush3.bf16.msra.mxu0 %v20500_v3 }
 0x833   :  { %v9112_v57 = vpop.f32.mrb[173].mxu0  ;;  %17615 = vmatprep.subr.bf16.mxu0 %v20501_v20 }
 0x834   :  { %v19116_v32 = vpop.f32.mrb[174].mxu0 }
 0x835   :  { %v9162_v41 = vpack.c.bf16 %v19116_v32, %v19115_v48  ;;  %v9115_v44 = vpop.f32.mrb[175].mxu0 }
 0x836   :  { %v9161_v23 = vpack.c.bf16 %v9115_v44, %v9112_v57  ;;  %17616 = vmatpush3.bf16.msra.mxu0 %v20502_v21  ;;  %v20509_v21 = vld [vmem:[%s25662_s7 + $0x168] sm:$0xff]   ;;  %v20511_v44 = vld [vmem:[%s25662_s7 + $0x170] sm:$0xff]  }
 0x837   :  { %17617 = vmatprep.subr.bf16.mxu0 %v20503_v52  ;;  %v20510_v52 = vld [vmem:[%s25662_s7 + $0x128] sm:$0xff]  }
 0x839   :  { %9993 = vmatmul.mubr.bf16.gmra.mrb[236].mxu0 %v9007_v53  ;;  %v20508_v53 = vld [vmem:[%s25662_s7 + $0x120] sm:$0xff]  }
 0x83a   :  { %10000 = vmatprep.mubr.bf16.mxu0 %v9161_v23  ;;  %v19119_v46 = vpop.f32.mrb[176].mxu0  ;;  %17618 = vmatpush3.bf16.msra.mxu0 %v20504_v30 }
 0x83b   :  { %v9128_v60 = vpop.f32.mrb[177].mxu0  ;;  %17619 = vmatprep.subr.bf16.mxu0 %v20505_v51 }
 0x83c   :  { %v19120_v22 = vpop.f32.mrb[178].mxu0 }
 0x83d   :  { %v9164_v3 = vpack.c.bf16 %v19120_v22, %v19119_v46  ;;  %v9131_v20 = vpop.f32.mrb[179].mxu0 }
 0x83e   :  { %v9163_v48 = vpack.c.bf16 %v9131_v20, %v9128_v60  ;;  %17620 = vmatpush3.bf16.msra.mxu0 %v20506_v11  ;;  %v20514_v11 = vld [vmem:[%s25662_s7 + $0x138] sm:$0xff]  }
 0x83f   :  { %17621 = vmatprep.subr.bf16.mxu0 %v20507_v17  ;;  %v20515_v17 = vld [vmem:[%s25662_s7 + $0x1c0] sm:$0xff]  }
 0x841   :  { %10001 = vmatmul.mubr.bf16.gmra.mrb[240].mxu0 %v9008_v25  ;;  %v20512_v25 = vld [vmem:[%s25662_s7 + $0x130] sm:$0xff]  }
 0x842   :  { %10008 = vmatprep.mubr.bf16.mxu0 %v9162_v41  ;;  %v19123_v57 = vpop.f32.mrb[180].mxu0  ;;  %17622 = vmatpush3.bf16.msra.mxu0 %v20508_v53  ;;  %v20513_v41 = vld [vmem:[%s25662_s7 + $0x178] sm:$0xff]  }
 0x843   :  { %v9144_v32 = vpop.f32.mrb[181].mxu0  ;;  %17623 = vmatprep.subr.bf16.mxu0 %v20509_v21 }
 0x844   :  { %v19124_v23 = vpop.f32.mrb[182].mxu0 }
 0x845   :  { %v9166_v30 = vpack.c.bf16 %v19124_v23, %v19123_v57  ;;  %v9147_v51 = vpop.f32.mrb[183].mxu0 }
 0x846   :  { %v9165_v46 = vpack.c.bf16 %v9147_v51, %v9144_v32  ;;  %17624 = vmatpush3.bf16.msra.mxu0 %v20510_v52 }
 0x847   :  { %17625 = vmatprep.subr.bf16.mxu0 %v20511_v44 }
 0x849   :  { %10009 = vmatmul.mubr.bf16.gmra.mrb[244].mxu0 %v9009_v35 }
 0x84a   :  { %10016 = vmatprep.mubr.bf16.mxu0 %v9163_v48  ;;  %17626 = vmatpush3.bf16.msra.mxu0 %v20512_v25  ;;  %v23899_v60 = vpop.f32.mrb[184].mxu0 }
 0x84b   :  { %17627 = vmatprep.subr.bf16.mxu0 %v20513_v41  ;;  %v23904_v22 = vpop.f32.mrb[185].mxu0  ;;  %v20528_v41 = vld [vmem:[%s25662_s7 + $0x1b0] sm:$0xff]  }
 0x84c   :  { %v23906_v20 = vpop.f32.mrb[186].mxu0 }
 0x84d   :  { %v9265_v49 = vpack.c.bf16 %v23906_v20, %v23899_v60  ;;  %v23910_v38 = vpop.f32.mrb[187].mxu0  ;;  %v20538_v20 = vld [vmem:[%s25662_s7 + $0x238] sm:$0xff]  }
 0x84e   :  { %17628 = vmatpush3.bf16.msra.mxu0 %v20514_v11  ;;  %v9264_v35 = vpack.c.bf16 %v23910_v38, %v23904_v22  ;;  %v20531_v11 = vld [vmem:[%s25662_s7 + $0x200] sm:$0xff]  }
 0x84f   :  { %17677 = vmatprep.subr.bf16.mxu0 %v20515_v17  ;;  %v20532_v17 = vld [vmem:[%s25662_s7 + $0x208] sm:$0xff]  }
 0x851   :  { %10017 = vmatmul.mubr.bf16.gmra.mrb[248].mxu0 %v9010_v40 }
 0x852   :  { %10024 = vmatprep.mubr.bf16.mxu0 %v9164_v3  ;;  %v23917_v48 = vpop.f32.mrb[188].mxu0 }
 0x853   :  { %v23919_v53 = vpop.f32.mrb[189].mxu0 }
 0x854   :  { %v23921_v21 = vpop.f32.mrb[190].mxu0 }
 0x855   :  { %v9267_v57 = vpack.c.bf16 %v23921_v21, %v23917_v48  ;;  %v23925_v52 = vpop.f32.mrb[191].mxu0 }
 0x856   :  { %v9266_v32 = vpack.c.bf16 %v23925_v52, %v23919_v53 }
 0x859   :  { %10025 = vmatmul.mubr.bf16.gmra.mrb[252].mxu0 %v9011_v16 }
 0x85a   :  { %10032 = vmatprep.mubr.bf16.mxu0 %v9165_v46  ;;  %v23932_v7 = vpop.f32.mrb[192].mxu0 }
 0x85b   :  { %v23934_v47 = vpop.f32.mrb[193].mxu0 }
 0x85c   :  { %v23936_v40 = vpop.f32.mrb[194].mxu0 }
 0x85d   :  { %v9269_v3 = vpack.c.bf16 %v23936_v40, %v23932_v7  ;;  %v23940_v44 = vpop.f32.mrb[195].mxu0 }
 0x85e   :  { %v9268_v23 = vpack.c.bf16 %v23940_v44, %v23934_v47 }
 0x861   :  { %10033 = vmatmul.mubr.bf16.gmra.mrb[0].mxu0 %v9012_v28  ;;  %v20524_v28 = vld [vmem:[%s25662_s7 + $0x1a0] sm:$0xff]  }
 0x862   :  { %10040 = vmatprep.mubr.bf16.mxu0 %v9166_v30  ;;  %v23947_v8 = vpop.f32.mrb[196].mxu0  ;;  %v20527_v30 = vld [vmem:[%s25662_s7 + $0x1f0] sm:$0xff]  }
 0x863   :  { %v23949_v12 = vpop.f32.mrb[197].mxu0 }
 0x864   :  { %v23951_v16 = vpop.f32.mrb[198].mxu0 }
 0x865   :  { %v9271_v51 = vpack.c.bf16 %v23951_v16, %v23947_v8  ;;  %v23955_v46 = vpop.f32.mrb[199].mxu0 }
 0x866   :  { %v9270_v25 = vpack.c.bf16 %v23955_v46, %v23949_v12 }
 0x869   :  { %10041 = vmatmul.mubr.bf16.gmra.mrb[4].mxu0 %v9013_v0  ;;  %v20523_v0 = vld [vmem:[%s25662_s7 + $0x1e0] sm:$0xff]  }
 0x86a   :  { %10081 = vmatprep.mubr.bf16.mxu0 %v23359_v61  ;;  %v20519_v61 = vld [vmem:[%s25662_s7 + $0x1d0] sm:$0xff]  }
 0x871   :  { %10082 = vmatmul.mubr.bf16.vlgmr.msra.gmra.mrb[8].mxu0 %v23271_v13  ;;  %v20521_v13 = vld [vmem:[%s25662_s7 + $0x1d8] sm:$0xff]  }
 0x872   :  { %10089 = vmatprep.mubr.bf16.mxu0 %v23365_v63  ;;  %17678 = vmatpush3.bf16.msra.mxu0 %v20516_v29  ;;  %v20522_v63 = vld [vmem:[%s25662_s7 + $0x198] sm:$0xff]  }
 0x873   :  { %17679 = vmatprep.subr.bf16.mxu0 %v20517_v50 }
 0x876   :  { %17680 = vmatpush3.bf16.msra.mxu0 %v20518_v10 }
 0x877   :  { %17681 = vmatprep.subr.bf16.mxu0 %v20519_v61 }
 0x879   :  { %10090 = vmatmul.mubr.bf16.gmra.mrb[12].mxu0 %v23279_v56  ;;  %v20525_v56 = vld [vmem:[%s25662_s7 + $0x1e8] sm:$0xff]  }
 0x87a   :  { %10097 = vmatprep.mubr.bf16.mxu0 %v23379_v62  ;;  %17682 = vmatpush3.bf16.msra.mxu0 %v20520_v1  ;;  %v20526_v62 = vld [vmem:[%s25662_s7 + $0x1a8] sm:$0xff]  }
 0x87b   :  { %17683 = vmatprep.subr.bf16.mxu0 %v20521_v13 }
 0x87e   :  { %17684 = vmatpush3.bf16.msra.mxu0 %v20522_v63 }
 0x87f   :  { %17685 = vmatprep.subr.bf16.mxu0 %v20523_v0 }
 0x881   :  { %10098 = vmatmul.mubr.bf16.gmra.mrb[16].mxu0 %v23295_v18  ;;  %v20529_v18 = vld [vmem:[%s25662_s7 + $0x1f8] sm:$0xff]  }
 0x882   :  { %10105 = vmatprep.mubr.bf16.mxu0 %v23385_v9  ;;  %17686 = vmatpush3.bf16.msra.mxu0 %v20524_v28  ;;  %v20530_v9 = vld [vmem:[%s25662_s7 + $0x1b8] sm:$0xff]  }
 0x883   :  { %17687 = vmatprep.subr.bf16.mxu0 %v20525_v56 }
 0x886   :  { %17688 = vmatpush3.bf16.msra.mxu0 %v20526_v62 }
 0x887   :  { %17689 = vmatprep.subr.bf16.mxu0 %v20527_v30 }
 0x889   :  { %10106 = vmatmul.mubr.bf16.gmra.mrb[20].mxu0 %v23303_v15  ;;  %v25903_v15 = vld [vmem:[#allocation16_spill] sm:$0xff] }
 0x88a   :  { %10113 = vmatprep.mubr.bf16.mxu0 %v23397_v24  ;;  %17690 = vmatpush3.bf16.msra.mxu0 %v20528_v41  ;;  %v25904_v24 = vld [vmem:[#allocation19_spill] sm:$0xff] }
 0x88b   :  { %17691 = vmatprep.subr.bf16.mxu0 %v20529_v18 }
 0x88e   :  { %17692 = vmatpush3.bf16.msra.mxu0 %v20530_v9 }
 0x88f   :  { %19157 = vmatprep.subr.bf16.mxu0 %v20531_v11 }
 0x891   :  { %10114 = vmatmul.mubr.bf16.gmra.mrb[24].mxu0 %v23318_v43  ;;  %v20533_v43 = vld [vmem:[%s25662_s7 + $0x210] sm:$0xff]  }
 0x892   :  { %10121 = vmatprep.mubr.bf16.mxu0 %v23405_v19  ;;  %v20535_v19 = vld [vmem:[%s25662_s7 + $0x220] sm:$0xff]  }
 0x899   :  { %10122 = vmatmul.mubr.bf16.gmra.mrb[28].mxu0 %v23324_v55  ;;  %v20534_v55 = vld [vmem:[%s25662_s7 + $0x218] sm:$0xff]  }
 0x89a   :  { %10129 = vmatprep.mubr.bf16.mxu0 %v23417_v59  ;;  %v20536_v59 = vld [vmem:[%s25662_s7 + $0x228] sm:$0xff]  }
 0x8a1   :  { %10130 = vmatmul.mubr.bf16.gmra.mrb[32].mxu0 %v25903_v15 }
 0x8a2   :  { %10137 = vmatprep.mubr.bf16.mxu0 %v23425_v54  ;;  %v20537_v54 = vld [vmem:[%s25662_s7 + $0x230] sm:$0xff]  }
 0x8a9   :  { %10138 = vmatmul.mubr.bf16.gmra.mrb[36].mxu0 %v25904_v24 }
 0x8aa   :  { %10178 = vmatprep.mubr.bf16.mxu0 %v23434_v14 }
 0x8b1   :  { %10179 = vmatmul.mubr.bf16.vlgmr.msra.gmra.mrb[40].mxu0 %v9264_v35 }
 0x8b2   :  { %10186 = vmatprep.mubr.bf16.mxu0 %v23440_v31  ;;  %19158 = vmatpush3.bf16.msra.mxu0 %v20531_v11 }
 0x8b3   :  { %19159 = vmatprep.subr.bf16.mxu0 %v20532_v17 }
 0x8b6   :  { %19160 = vmatpush3.bf16.msra.mxu0 %v20532_v17 }
 0x8b7   :  { %19161 = vmatprep.subr.bf16.mxu0 %v20533_v43 }
 0x8b9   :  { %10187 = vmatmul.mubr.bf16.gmra.mrb[44].mxu0 %v9265_v49 }
 0x8ba   :  { %10194 = vmatprep.mubr.bf16.mxu0 %v23446_v26  ;;  %19162 = vmatpush3.bf16.msra.mxu0 %v20533_v43 }
 0x8bb   :  { %19163 = vmatprep.subr.bf16.mxu0 %v20534_v55 }
 0x8be   :  { %19164 = vmatpush3.bf16.msra.mxu0 %v20534_v55 }
 0x8bf   :  { %19165 = vmatprep.subr.bf16.mxu0 %v20535_v19 }
 0x8c1   :  { %10195 = vmatmul.mubr.bf16.gmra.mrb[48].mxu0 %v9266_v32 }
 0x8c2   :  { %10202 = vmatprep.mubr.bf16.mxu0 %v23452_v4  ;;  %19166 = vmatpush3.bf16.msra.mxu0 %v20535_v19 }
 0x8c3   :  { %19167 = vmatprep.subr.bf16.mxu0 %v20536_v59 }
 0x8c4   :  { %v17501_v14 = vpop.f32.mrb[200].mxu0 }
 0x8c5   :  { %v17502_v31 = vpop.f32.mrb[201].mxu0 }
 0x8c6   :  { %v24057_v26 = vadd.f32 %v17502_v31, %v17501_v14  ;;  %v17504_v60 = vpop.f32.mrb[202].mxu0  ;;  %19168 = vmatpush3.bf16.msra.mxu0 %v20536_v59 }
 0x8c7   :  { %v17505_v22 = vpop.f32.mrb[203].mxu0  ;;  %19169 = vmatprep.subr.bf16.mxu0 %v20537_v54 }
 0x8c8   :  { %v24062_v49 = vadd.f32 %v17505_v22, %v17504_v60 }
 0x8c9   :  { %10203 = vmatmul.mubr.bf16.gmra.mrb[52].mxu0 %v9267_v57 }
 0x8ca   :  { %10210 = vmatprep.mubr.bf16.mxu0 %v23458_v36  ;;  %19170 = vmatpush3.bf16.msra.mxu0 %v20537_v54 }
 0x8cb   :  { %19171 = vmatprep.subr.bf16.mxu0 %v20538_v20 }
 0x8cc   :  { %v17507_v4 = vpop.f32.mrb[204].mxu0 }
 0x8cd   :  { %v17508_v38 = vpop.f32.mrb[205].mxu0 }
 0x8ce   :  { %v24068_v35 = vadd.f32 %v17508_v38, %v17507_v4  ;;  %v17510_v53 = vpop.f32.mrb[206].mxu0  ;;  %19172 = vmatpush3.bf16.msra.mxu0 %v20538_v20 }
 0x8cf   :  { %v17511_v52 = vpop.f32.mrb[207].mxu0 }
 0x8d0   :  { %v24070_v32 = vadd.f32 %v17511_v52, %v17510_v53 }
 0x8d1   :  { %10211 = vmatmul.mubr.bf16.gmra.mrb[56].mxu0 %v9268_v23 }
 0x8d2   :  { %10218 = vmatprep.mubr.bf16.mxu0 %v23464_v5 }
 0x8d4   :  { %v17513_v48 = vpop.f32.mrb[208].mxu0 }
 0x8d5   :  { %v17514_v21 = vpop.f32.mrb[209].mxu0 }
 0x8d6   :  { %v24076_v36 = vadd.f32 %v17514_v21, %v17513_v48  ;;  %v17516_v57 = vpop.f32.mrb[210].mxu0 }
 0x8d7   :  { %v17517_v29 = vpop.f32.mrb[211].mxu0 }
 0x8d8   :  { %v24078_v50 = vadd.f32 %v17517_v29, %v17516_v57 }
 0x8d9   :  { %10219 = vmatmul.mubr.bf16.gmra.mrb[60].mxu0 %v9269_v3 }
 0x8da   :  { %10226 = vmatprep.mubr.bf16.mxu0 %v23470_v42 }
 0x8dc   :  { %v17519_v10 = vpop.f32.mrb[212].mxu0 }
 0x8dd   :  { %v17520_v61 = vpop.f32.mrb[213].mxu0 }
 0x8de   :  { %v24084_v47 = vadd.f32 %v17520_v61, %v17519_v10  ;;  %v17522_v44 = vpop.f32.mrb[214].mxu0 }
 0x8df   :  { %v17523_v5 = vpop.f32.mrb[215].mxu0 }
 0x8e0   :  { %v24086_v23 = vadd.f32 %v17523_v5, %v17522_v44 }
 0x8e1   :  { %10227 = vmatmul.mubr.bf16.gmra.mrb[64].mxu0 %v9270_v25 }
 0x8e2   :  { %10234 = vmatprep.mubr.bf16.mxu0 %v23476_v33 }
 0x8e4   :  { %v17525_v1 = vpop.f32.mrb[216].mxu0 }
 0x8e5   :  { %v17526_v13 = vpop.f32.mrb[217].mxu0 }
 0x8e6   :  { %v24092_v7 = vadd.f32 %v17526_v13, %v17525_v1  ;;  %v17528_v40 = vpop.f32.mrb[218].mxu0 }
 0x8e7   :  { %v17529_v42 = vpop.f32.mrb[219].mxu0 }
 0x8e8   :  { %v24094_v3 = vadd.f32 %v17529_v42, %v17528_v40 }
 0x8e9   :  { %10235 = vmatmul.mubr.bf16.gmra.mrb[68].mxu0 %v9271_v51 }
 0x8ea   :  { %19173 = vmatprep.mubr.bf16.mxu0 %v23481_v39 }
 0x8ec   :  { %v17531_v63 = vpop.f32.mrb[220].mxu0 }
 0x8ed   :  { %v17532_v0 = vpop.f32.mrb[221].mxu0 }
 0x8ee   :  { %v24100_v12 = vadd.f32 %v17532_v0, %v17531_v63  ;;  %v17534_v46 = vpop.f32.mrb[222].mxu0 }
 0x8ef   :  { %v17535_v33 = vpop.f32.mrb[223].mxu0 }
 0x8f0   :  { %v24102_v25 = vadd.f32 %v17535_v33, %v17534_v46 }
 0x8f1   :  { %19174 = vmatmul.mubr.bf16.vlgmr.msra.gmra.mrb[72].mxu0 %v23489_v2 }
 0x8f2   :  { %19177 = vmatprep.mubr.bf16.mxu0 %v23497_v27  ;;  %v24121_v27 = vld [vmem:[%s25663_s8] ss:$0 sm:$0xff] }
 0x8f3   :  { %v9898_v54 = vadd.f32 %v24068_v35, %v24121_v27  ;;  %v9901_v22 = vadd.f32 %v24070_v32, %v24121_v27  ;;  %v9906_v38 = vadd.f32 %v24076_v36, %v24121_v27  ;;  %v9909_v21 = vadd.f32 %v24078_v50, %v24121_v27 }
 0x8f4   :  { %v17537_v28 = vpop.f32.mrb[224].mxu0  ;;  %v9914_v61 = vadd.f32 %v24084_v47, %v24121_v27  ;;  %v9917_v13 = vadd.f32 %v24086_v23, %v24121_v27  ;;  %v9922_v0 = vadd.f32 %v24092_v7, %v24121_v27 }
 0x8f5   :  { %v17538_v56 = vpop.f32.mrb[225].mxu0 }
 0x8f6   :  { %v24106_v62 = vadd.f32 %v17538_v56, %v17537_v28  ;;  %v17540_v8 = vpop.f32.mrb[226].mxu0  ;;  %v9925_v56 = vadd.f32 %v24094_v3, %v24121_v27 }
 0x8f7   :  { %v17541_v16 = vpop.f32.mrb[227].mxu0 }
 0x8f8   :  { %v24108_v51 = vadd.f32 %v17541_v16, %v17540_v8 }
 0x8f9   :  { %19178 = vmatmul.mubr.bf16.gmra.mrb[76].mxu0 %v23505_v58 }
 0x8fa   :  { %19181 = vmatprep.mubr.bf16.mxu0 %v23513_v34  ;;  %v9890_v34 = vadd.f32 %v24057_v26, %v24121_v27 }
 0x8fc   :  { %v17543_v39 = vpop.f32.mrb[228].mxu0 }
 0x8fd   :  { %v17544_v30 = vpop.f32.mrb[229].mxu0 }
 0x8fe   :  { %v24112_v41 = vadd.f32 %v17544_v30, %v17543_v39  ;;  %v17546_v18 = vpop.f32.mrb[230].mxu0  ;;  %v9930_v30 = vadd.f32 %v24100_v12, %v24121_v27 }
 0x8ff   :  { %v17547_v2 = vpop.f32.mrb[231].mxu0 }
 0x900   :  { %v24114_v9 = vadd.f32 %v17547_v2, %v17546_v18 }
 0x901   :  { %19182 = vmatmul.mubr.bf16.gmra.mrb[80].mxu0 %v23521_v37  ;;  %v9893_v37 = vadd.f32 %v24062_v49, %v24121_v27 }
 0x902   :  { %19185 = vmatprep.mubr.bf16.mxu0 %v23529_v45 }
 0x904   :  { %v17565_v58 = vpop.f32.mrb[232].mxu0 }
 0x905   :  { %v17566_v11 = vpop.f32.mrb[233].mxu0 }
 0x906   :  { %v17567_v15 = vadd.f32 %v17566_v11, %v17565_v58  ;;  %v17568_v24 = vpop.f32.mrb[234].mxu0  ;;  %v9933_v11 = vadd.f32 %v24102_v25, %v24121_v27 }
 0x907   :  { %v17569_v17 = vpop.f32.mrb[235].mxu0 }
 0x908   :  { %v24125_v43 = vadd.f32 %v17567_v15, %v9890_v34  ;;  %v17570_v55 = vadd.f32 %v17569_v17, %v17568_v24  ;;  %v9938_v17 = vadd.f32 %v24106_v62, %v24121_v27 }
 0x909   :  { %19186 = vmatmul.mubr.bf16.gmra.mrb[84].mxu0 %v23537_v6 }
 0x90a   :  { %v24130_v45 = vadd.f32 %v17570_v55, %v9893_v37 }
 0x90c   :  { %v17571_v19 = vpop.f32.mrb[236].mxu0 }
 0x90d   :  { %v17572_v59 = vpop.f32.mrb[237].mxu0 }
 0x90e   :  { %v17573_v14 = vadd.f32 %v17572_v59, %v17571_v19  ;;  %v17574_v31 = vpop.f32.mrb[238].mxu0  ;;  %v9941_v59 = vadd.f32 %v24108_v51, %v24121_v27 }
 0x90f   :  { %v17575_v26 = vpop.f32.mrb[239].mxu0 }
 0x910   :  { %v24134_v60 = vadd.f32 %v17573_v14, %v9898_v54  ;;  %v17576_v20 = vadd.f32 %v17575_v26, %v17574_v31  ;;  %v9946_v26 = vadd.f32 %v24112_v41, %v24121_v27 }
 0x912   :  { %v24138_v49 = vadd.f32 %v17576_v20, %v9901_v22 }
 0x914   :  { %v17577_v4 = vpop.f32.mrb[240].mxu0 }
 0x915   :  { %v17578_v6 = vpop.f32.mrb[241].mxu0 }
 0x916   :  { %v17579_v53 = vadd.f32 %v17578_v6, %v17577_v4  ;;  %v17580_v52 = vpop.f32.mrb[242].mxu0  ;;  %v9949_v6 = vadd.f32 %v24114_v9, %v24121_v27 }
 0x917   :  { %v17581_v48 = vpop.f32.mrb[243].mxu0 }
 0x918   :  { %v24142_v35 = vadd.f32 %v17579_v53, %v9906_v38  ;;  %v17582_v57 = vadd.f32 %v17581_v48, %v17580_v52 }
 0x91a   :  { %v24146_v29 = vadd.f32 %v17582_v57, %v9909_v21 }
 0x91c   :  { %v17583_v32 = vpop.f32.mrb[244].mxu0 }
 0x91d   :  { %v17584_v10 = vpop.f32.mrb[245].mxu0 }
 0x91e   :  { %v17585_v44 = vadd.f32 %v17584_v10, %v17583_v32  ;;  %v17586_v5 = vpop.f32.mrb[246].mxu0 }
 0x91f   :  { %v17587_v1 = vpop.f32.mrb[247].mxu0 }
 0x920   :  { %v24150_v36 = vadd.f32 %v17585_v44, %v9914_v61  ;;  %v17588_v40 = vadd.f32 %v17587_v1, %v17586_v5 }
 0x922   :  { %v24154_v42 = vadd.f32 %v17588_v40, %v9917_v13 }
 0x924   :  { %v17589_v50 = vpop.f32.mrb[248].mxu0 }
 0x925   :  { %v17590_v63 = vpop.f32.mrb[249].mxu0 }
 0x926   :  { %v17591_v46 = vadd.f32 %v17590_v63, %v17589_v50  ;;  %v17592_v33 = vpop.f32.mrb[250].mxu0 }
 0x927   :  { %v17593_v28 = vpop.f32.mrb[251].mxu0 }
 0x928   :  { %v24158_v47 = vadd.f32 %v17591_v46, %v9922_v0  ;;  %v17594_v8 = vadd.f32 %v17593_v28, %v17592_v33 }
 0x92a   :  { %v24162_v16 = vadd.f32 %v17594_v8, %v9925_v56 }
 0x92c   :  { %v17595_v23 = vpop.f32.mrb[252].mxu0 }
 0x92d   :  { %v17596_v39 = vpop.f32.mrb[253].mxu0 }
 0x92e   :  { %v17597_v18 = vadd.f32 %v17596_v39, %v17595_v23  ;;  %v17598_v2 = vpop.f32.mrb[254].mxu0 }
 0x92f   :  { %v17599_v58 = vpop.f32.mrb[255].mxu0 }
 0x930   :  { %v24166_v7 = vadd.f32 %v17597_v18, %v9930_v30  ;;  %v17600_v34 = vadd.f32 %v17599_v58, %v17598_v2 }
 0x932   :  { %v24170_v15 = vadd.f32 %v17600_v34, %v9933_v11 }
 0x934   :  { %v17601_v3 = vpop.f32.mrb[0].mxu0 }
 0x935   :  { %v17602_v24 = vpop.f32.mrb[1].mxu0 }
 0x936   :  { %v17603_v37 = vadd.f32 %v17602_v24, %v17601_v3  ;;  %v17604_v55 = vpop.f32.mrb[2].mxu0 }
 0x937   :  { %v17605_v19 = vpop.f32.mrb[3].mxu0 }
 0x938   :  { %v24174_v12 = vadd.f32 %v17603_v37, %v9938_v17  ;;  %v17606_v54 = vadd.f32 %v17605_v19, %v17604_v55 }
 0x93a   :  { %v24178_v14 = vadd.f32 %v17606_v54, %v9941_v59 }
 0x93c   :  { %v17607_v25 = vpop.f32.mrb[4].mxu0 }
 0x93d   :  { %v17608_v31 = vpop.f32.mrb[5].mxu0 }
 0x93e   :  { %v17609_v22 = vadd.f32 %v17608_v31, %v17607_v25  ;;  %v17610_v20 = vpop.f32.mrb[6].mxu0 }
 0x93f   :  { %v17611_v4 = vpop.f32.mrb[7].mxu0 }
 0x940   :  { %v24182_v62 = vadd.f32 %v17609_v22, %v9946_v26  ;;  %v17612_v38 = vadd.f32 %v17611_v4, %v17610_v20 }
 0x942   :  { %v24186_v53 = vadd.f32 %v17612_v38, %v9949_v6 }
 0x944   :  { %v17629_v51 = vpop.f32.mrb[8].mxu0 }
 0x945   :  { %v17630_v52 = vpop.f32.mrb[9].mxu0 }
 0x946   :  { %v17631_v48 = vadd.f32 %v17630_v52, %v17629_v51  ;;  %v17632_v21 = vpop.f32.mrb[10].mxu0 }
 0x947   :  { %v17633_v57 = vpop.f32.mrb[11].mxu0 }
 0x948   :  { %v24189_v32 = vadd.f32 %v17631_v48, %v24125_v43  ;;  %v17634_v41 = vadd.f32 %v17633_v57, %v17632_v21 }
 0x94a   :  { %v24192_v10 = vadd.f32 %v17634_v41, %v24130_v45 }
 0x94c   :  { %v17635_v61 = vpop.f32.mrb[12].mxu0 }
 0x94d   :  { %v17636_v44 = vpop.f32.mrb[13].mxu0 }
 0x94e   :  { %v17637_v5 = vadd.f32 %v17636_v44, %v17635_v61  ;;  %v17638_v1 = vpop.f32.mrb[14].mxu0 }
 0x94f   :  { %v17639_v9 = vpop.f32.mrb[15].mxu0 }
 0x950   :  { %v24195_v27 = vadd.f32 %v17637_v5, %v24134_v60  ;;  %v17640_v13 = vadd.f32 %v17639_v9, %v17638_v1 }
 0x952   :  { %v24198_v40 = vadd.f32 %v17640_v13, %v24138_v49 }
 0x954   :  { %v17641_v50 = vpop.f32.mrb[16].mxu0 }
 0x955   :  { %v17642_v63 = vpop.f32.mrb[17].mxu0 }
 0x956   :  { %v17643_v43 = vadd.f32 %v17642_v63, %v17641_v50  ;;  %v17644_v0 = vpop.f32.mrb[18].mxu0 }
 0x957   :  { %v17645_v46 = vpop.f32.mrb[19].mxu0 }
 0x958   :  { %v24201_v45 = vadd.f32 %v17643_v43, %v24142_v35  ;;  %v17646_v33 = vadd.f32 %v17645_v46, %v17644_v0 }
 0x95a   :  { %v24204_v28 = vadd.f32 %v17646_v33, %v24146_v29 }
 0x95c   :  { %v17647_v56 = vpop.f32.mrb[20].mxu0 }
 0x95d   :  { %v17648_v8 = vpop.f32.mrb[21].mxu0 }
 0x95e   :  { %v17649_v60 = vadd.f32 %v17648_v8, %v17647_v56  ;;  %v17650_v23 = vpop.f32.mrb[22].mxu0 }
 0x95f   :  { %v17651_v39 = vpop.f32.mrb[23].mxu0 }
 0x960   :  { %v24207_v49 = vadd.f32 %v17649_v60, %v24150_v36  ;;  %v17652_v30 = vadd.f32 %v17651_v39, %v17650_v23  ;;  %v20539_v36 = vld [vmem:[%s25664_s9] sm:$0xff]  }
 0x961   :  { %19205 = vmatprep.mubr.bf16.mxu0 %v20539_v36 }
 0x962   :  { %v24210_v18 = vadd.f32 %v17652_v30, %v24154_v42 }
 0x964   :  { %v17653_v2 = vpop.f32.mrb[24].mxu0 }
 0x965   :  { %v17654_v58 = vpop.f32.mrb[25].mxu0 }
 0x966   :  { %v17655_v35 = vadd.f32 %v17654_v58, %v17653_v2  ;;  %v17656_v11 = vpop.f32.mrb[26].mxu0 }
 0x967   :  { %v17657_v34 = vpop.f32.mrb[27].mxu0 }
 0x968   :  { %v24213_v29 = vadd.f32 %v17655_v35, %v24158_v47  ;;  %v17658_v3 = vadd.f32 %v17657_v34, %v17656_v11 }
 0x96a   :  { %v24216_v24 = vadd.f32 %v17658_v3, %v24162_v16 }
 0x96c   :  { %v17659_v17 = vpop.f32.mrb[28].mxu0 }
 0x96d   :  { %v17660_v37 = vpop.f32.mrb[29].mxu0 }
 0x96e   :  { %v17661_v42 = vadd.f32 %v17660_v37, %v17659_v17  ;;  %v17662_v55 = vpop.f32.mrb[30].mxu0 }
 0x96f   :  { %v17663_v19 = vpop.f32.mrb[31].mxu0 }
 0x970   :  { %v24222_v59 = vadd.f32 %v17661_v42, %v24166_v7  ;;  %v17664_v54 = vadd.f32 %v17663_v19, %v17662_v55 }
 0x972   :  { %v24225_v47 = vadd.f32 %v17664_v54, %v24170_v15 }
 0x974   :  { %v17665_v25 = vpop.f32.mrb[32].mxu0 }
 0x975   :  { %v17666_v16 = vpop.f32.mrb[33].mxu0 }
 0x976   :  { %v17667_v31 = vadd.f32 %v17666_v16, %v17665_v25  ;;  %v17668_v26 = vpop.f32.mrb[34].mxu0 }
 0x977   :  { %v17669_v22 = vpop.f32.mrb[35].mxu0 }
 0x978   :  { %v24228_v20 = vadd.f32 %v17667_v31, %v24174_v12  ;;  %v17670_v4 = vadd.f32 %v17669_v22, %v17668_v26 }
 0x97a   :  { %v24231_v6 = vadd.f32 %v17670_v4, %v24178_v14 }
 0x97c   :  { %v17671_v38 = vpop.f32.mrb[36].mxu0 }
 0x97d   :  { %v17672_v51 = vpop.f32.mrb[37].mxu0 }
 0x97e   :  { %v17673_v7 = vadd.f32 %v17672_v51, %v17671_v38  ;;  %v17674_v52 = vpop.f32.mrb[38].mxu0 }
 0x97f   :  { %v17675_v48 = vpop.f32.mrb[39].mxu0 }
 0x980   :  { %v24234_v15 = vadd.f32 %v17673_v7, %v24182_v62  ;;  %v17676_v21 = vadd.f32 %v17675_v48, %v17674_v52 }
 0x982   :  { %v24237_v57 = vadd.f32 %v17676_v21, %v24186_v53 }
 0x984   :  { %v17693_v41 = vpop.f32.mrb[40].mxu0 }
 0x985   :  { %v17694_v61 = vpop.f32.mrb[41].mxu0 }
 0x986   :  { %v17695_v12 = vadd.f32 %v17694_v61, %v17693_v41  ;;  %v17696_v44 = vpop.f32.mrb[42].mxu0 }
 0x987   :  { %v17697_v5 = vpop.f32.mrb[43].mxu0 }
 0x988   :  { %v17698_v1 = vadd.f32 %v17697_v5, %v17696_v44  ;;  %v10181_v14 = vadd.f32 %v17695_v12, %v24189_v32 }
 0x98a   :  { %v24241_v9 = vadd.f32 %v17698_v1, %v24192_v10 }
 0x98c   :  { %v17699_v13 = vpop.f32.mrb[44].mxu0 }
 0x98d   :  { %v17700_v50 = vpop.f32.mrb[45].mxu0 }
 0x98e   :  { %v17701_v63 = vadd.f32 %v17700_v50, %v17699_v13  ;;  %v17702_v62 = vpop.f32.mrb[46].mxu0 }
 0x98f   :  { %v17703_v43 = vpop.f32.mrb[47].mxu0 }
 0x990   :  { %v17704_v0 = vadd.f32 %v17703_v43, %v17702_v62  ;;  %v10189_v53 = vadd.f32 %v17701_v63, %v24195_v27 }
 0x992   :  { %v10192_v46 = vadd.f32 %v17704_v0, %v24198_v40 }
 0x994   :  { %v17705_v33 = vpop.f32.mrb[48].mxu0 }
 0x995   :  { %v17706_v56 = vpop.f32.mrb[49].mxu0 }
 0x996   :  { %v17707_v8 = vadd.f32 %v17706_v56, %v17705_v33  ;;  %v17708_v60 = vpop.f32.mrb[50].mxu0 }
 0x997   :  { %v17709_v23 = vpop.f32.mrb[51].mxu0 }
 0x998   :  { %v17710_v39 = vadd.f32 %v17709_v23, %v17708_v60  ;;  %v10197_v32 = vadd.f32 %v17707_v8, %v24201_v45 }
 0x99a   :  { %v24247_v10 = vadd.f32 %v17710_v39, %v24204_v28 }
 0x99c   :  { %v17711_v30 = vpop.f32.mrb[52].mxu0 }
 0x99d   :  { %v17712_v2 = vpop.f32.mrb[53].mxu0 }
 0x99e   :  { %v17713_v58 = vadd.f32 %v17712_v2, %v17711_v30  ;;  %v17714_v35 = vpop.f32.mrb[54].mxu0 }
 0x99f   :  { %v17715_v11 = vpop.f32.mrb[55].mxu0 }
 0x9a0   :  { %v17716_v34 = vadd.f32 %v17715_v11, %v17714_v35  ;;  %v10205_v27 = vadd.f32 %v17713_v58, %v24207_v49 }
 0x9a2   :  { %v10208_v40 = vadd.f32 %v17716_v34, %v24210_v18 }
 0x9a4   :  { %v17717_v3 = vpop.f32.mrb[56].mxu0 }
 0x9a5   :  { %v17718_v17 = vpop.f32.mrb[57].mxu0 }
 0x9a6   :  { %v17719_v37 = vadd.f32 %v17718_v17, %v17717_v3  ;;  %v17720_v36 = vpop.f32.mrb[58].mxu0 }
 0x9a7   :  { %v17721_v42 = vpop.f32.mrb[59].mxu0 }
 0x9a8   :  { %v17722_v55 = vadd.f32 %v17721_v42, %v17720_v36  ;;  %v10213_v45 = vadd.f32 %v17719_v37, %v24213_v29 }
 0x9aa   :  { %v24253_v28 = vadd.f32 %v17722_v55, %v24216_v24 }
 0x9ac   :  { %v17723_v19 = vpop.f32.mrb[60].mxu0 }
 0x9ad   :  { %v17724_v54 = vpop.f32.mrb[61].mxu0 }
 0x9ae   :  { %v17725_v25 = vadd.f32 %v17724_v54, %v17723_v19  ;;  %v17726_v16 = vpop.f32.mrb[62].mxu0 }
 0x9af   :  { %v17727_v31 = vpop.f32.mrb[63].mxu0 }
 0x9b0   :  { %v17728_v26 = vadd.f32 %v17727_v31, %v17726_v16  ;;  %v10221_v49 = vadd.f32 %v17725_v25, %v24222_v59 }
 0x9b2   :  { %v10224_v18 = vadd.f32 %v17728_v26, %v24225_v47 }
 0x9b4   :  { %v17729_v22 = vpop.f32.mrb[64].mxu0 }
 0x9b5   :  { %v17730_v4 = vpop.f32.mrb[65].mxu0 }
 0x9b6   :  { %v17731_v38 = vadd.f32 %v17730_v4, %v17729_v22  ;;  %v17732_v51 = vpop.f32.mrb[66].mxu0 }
 0x9b7   :  { %v17733_v7 = vpop.f32.mrb[67].mxu0 }
 0x9b8   :  { %v17734_v52 = vadd.f32 %v17733_v7, %v17732_v51  ;;  %v24258_v29 = vadd.f32 %v17731_v38, %v24228_v20 }
 0x9ba   :  { %v24261_v24 = vadd.f32 %v17734_v52, %v24231_v6 }
 0x9bc   :  { %v17735_v48 = vpop.f32.mrb[68].mxu0 }
 0x9bd   :  { %v17736_v21 = vpop.f32.mrb[69].mxu0 }
 0x9be   :  { %v17737_v41 = vadd.f32 %v17736_v21, %v17735_v48  ;;  %v17738_v61 = vpop.f32.mrb[70].mxu0  ;;  %v20541_v21 = vld [vmem:[%s25664_s9 + $0x10] sm:$0xff]  }
 0x9bf   :  { %v17739_v12 = vpop.f32.mrb[71].mxu0 }
 0x9c0   :  { %v17740_v59 = vadd.f32 %v17739_v12, %v17738_v61  ;;  %v10237_v47 = vadd.f32 %v17737_v41, %v24234_v15  ;;  %v20542_v41 = vld [vmem:[%s25664_s9 + $0x18] sm:$0xff]   ;;  %v20543_v61 = vld [vmem:[%s25664_s9 + $0x20] sm:$0xff]   ;;  %v20544_v12 = vld [vmem:[%s25664_s9 + $0x28] sm:$0xff]  }
 0x9c2   :  { %v10240_v44 = vadd.f32 %v17740_v59, %v24237_v57  ;;  %v20545_v59 = vld [vmem:[%s25664_s9 + $0x30] sm:$0xff]  }
 0x9c4   :  { %v19175_v5 = vpop.f32.mrb[72].mxu0 }
 0x9c5   :  { %v10286_v1 = vadd.f32 %v19175_v5, %v10189_v53  ;;  %v10277_v13 = vpop.f32.mrb[73].mxu0  ;;  %v20548_v5 = vld [vmem:[%s25664_s9 + $0x48] sm:$0xff]  }
 0x9c6   :  { %v10278_v50 = vadd.f32 %v10277_v13, %v10181_v14  ;;  %v19176_v63 = vpop.f32.mrb[74].mxu0  ;;  %v20556_v13 = vld [vmem:[%s25665_s10 + $0x140] sm:$0xff]  }
 0x9c7   :  { %v10289_v20 = vadd.f32 %v19176_v63, %v10192_v46  ;;  %v10280_v62 = vpop.f32.mrb[75].mxu0  ;;  %v10342_v43 = vmax.f32 %v10286_v1, 0.0  ;;  %v20549_v1 = vld [vmem:[%s25664_s9 + $0x50] sm:$0xff]   ;;  %17903 = vmatprep.subr.bf16.mxu1 %v20556_v13  ;;  %v20550_v63 = vld [vmem:[%s25664_s9 + $0x58] sm:$0xff]  }
 0x9c8   :  { %v10281_v6 = vadd.f32 %v10280_v62, %v24241_v9  ;;  %v10340_v33 = vmax.f32 %v10278_v50, 0.0  ;;  %v20559_v50 = vld [vmem:[%s25665_s10 + $0x100] sm:$0xff]   ;;  %v20575_v62 = vld [vmem:[%s25665_s10 + $0x148] sm:$0xff]   ;;  %v20584_v13 = vld [vmem:[%s25665_s10 + $0x98] sm:$0xff]  }
 0x9c9   :  { %v10343_v0 = vmax.f32 %v10289_v20, 0.0  ;;  %17904 = vmatpush3.bf16.msra.mxu1 %v20559_v50  ;;  %v20551_v20 = vld [vmem:[%s25664_s9 + $0x60] sm:$0xff]  }
 0x9ca   :  { %v10341_v56 = vmax.f32 %v10281_v6, 0.0  ;;  %17905 = vmatprep.subr.bf16.mxu1 %v20575_v62  ;;  %v20577_v6 = vld [vmem:[%s25665_s10 + $0x108] sm:$0xff]   ;;  %v20585_v50 = vld [vmem:[%s25665_s10 + $0xe0] sm:$0xff]  }
 0x9cb   :  { %v24266_v8 = vpack.c.bf16 %v10343_v0, %v10342_v43  ;;  %v20552_v43 = vld [vmem:[%s25664_s9 + $0x68] sm:$0xff]   ;;  %v20553_v0 = vld [vmem:[%s25664_s9 + $0x70] sm:$0xff]  }
 0x9cc   :  { %v24268_v60 = vpack.c.bf16 %v10341_v56, %v10340_v33  ;;  %v19179_v15 = vpop.f32.mrb[76].mxu0  ;;  %v20593_v33 = vld [vmem:[%s25665_s10 + $0x150] sm:$0xff]   ;;  %v20588_v62 = vld [vmem:[%s25665_s10 + $0xa8] sm:$0xff]  }
 0x9cd   :  { %v10302_v23 = vadd.f32 %v19179_v15, %v10205_v27  ;;  %v10293_v57 = vpop.f32.mrb[77].mxu0  ;;  %17906 = vmatpush3.bf16.msra.mxu1 %v20577_v6  ;;  %v20594_v56 = vld [vmem:[%s25665_s10 + $0x110] sm:$0xff]   ;;  %v20595_v15 = vld [vmem:[%s25665_s10 + $0x158] sm:$0xff]  }
 0x9ce   :  { %v10294_v39 = vadd.f32 %v10293_v57, %v10197_v32  ;;  %v19180_v53 = vpop.f32.mrb[78].mxu0  ;;  %19189 = vmatprep.subr.bf16.mxu0 %v24268_v60  ;;  %17907 = vmatprep.subr.bf16.mxu1 %v20593_v33  ;;  %v20597_v57 = vld [vmem:[%s25665_s10 + $0x160] sm:$0xff]   ;;  %v20589_v6 = vld [vmem:[%s25665_s10 + $0xf0] sm:$0xff]  }
 0x9cf   :  { %v10305_v14 = vadd.f32 %v19180_v53, %v10208_v40  ;;  %v10296_v46 = vpop.f32.mrb[79].mxu0  ;;  %19190 = vmatpush3.bf16.msra.mxu0 %v24268_v60  ;;  %v10346_v30 = vmax.f32 %v10302_v23, 0.0  ;;  %v20596_v23 = vld [vmem:[%s25665_s10 + $0x118] sm:$0xff]   ;;  %v20599_v53 = vld [vmem:[%s25665_s10 + $0x168] sm:$0xff]   ;;  %v20590_v33 = vld [vmem:[%s25665_s10 + $0xb0] sm:$0xff]  }
 0x9d0   :  { %v10297_v9 = vadd.f32 %v10296_v46, %v24247_v10  ;;  %19191 = vmatprep.subr.bf16.mxu0 %v24266_v8  ;;  %v10344_v58 = vmax.f32 %v10294_v39, 0.0  ;;  %v20598_v39 = vld [vmem:[%s25665_s10 + $0x120] sm:$0xff]   ;;  %v20600_v46 = vld [vmem:[%s25665_s10 + $0x128] sm:$0xff]  }
 0x9d1   :  { %v10347_v2 = vmax.f32 %v10305_v14, 0.0  ;;  %17908 = vmatpush3.bf16.msra.mxu1 %v20594_v56 }
 0x9d2   :  { %v10345_v35 = vmax.f32 %v10297_v9, 0.0  ;;  %17909 = vmatprep.subr.bf16.mxu1 %v20595_v15 }
 0x9d3   :  { %v24274_v11 = vpack.c.bf16 %v10347_v2, %v10346_v30  ;;  %19192 = vmatpush3.bf16.msra.mxu0 %v24266_v8 }
 0x9d4   :  { %v24277_v32 = vpack.c.bf16 %v10345_v35, %v10344_v58  ;;  %v19183_v34 = vpop.f32.mrb[80].mxu0 }
 0x9d5   :  { %v10318_v27 = vadd.f32 %v19183_v34, %v10221_v49  ;;  %v10309_v40 = vpop.f32.mrb[81].mxu0  ;;  %17910 = vmatpush3.bf16.msra.mxu1 %v20596_v23  ;;  %v20601_v34 = vld [vmem:[%s25665_s10 + $0x170] sm:$0xff]  }
 0x9d6   :  { %v10310_v3 = vadd.f32 %v10309_v40, %v10213_v45  ;;  %v19184_v17 = vpop.f32.mrb[82].mxu0  ;;  %19193 = vmatprep.subr.bf16.mxu0 %v24277_v32  ;;  %17911 = vmatprep.subr.bf16.mxu1 %v20597_v57  ;;  %v20555_v40 = vld [vmem:[%s25664_s9 + $0x80] sm:$0xff]   ;;  %v20591_v57 = vld [vmem:[%s25665_s10 + $0xf8] sm:$0xff]  }
 0x9d7   :  { %v10321_v10 = vadd.f32 %v19184_v17, %v10224_v18  ;;  %v10312_v37 = vpop.f32.mrb[83].mxu0  ;;  %19194 = vmatpush3.bf16.msra.mxu0 %v24277_v32  ;;  %v10350_v42 = vmax.f32 %v10318_v27, 0.0  ;;  %v20554_v27 = vld [vmem:[%s25664_s9 + $0x78] sm:$0xff]  }
 0x9d8   :  { %v10313_v36 = vadd.f32 %v10312_v37, %v24253_v28  ;;  %19195 = vmatprep.subr.bf16.mxu0 %v24274_v11  ;;  %v10348_v19 = vmax.f32 %v10310_v3, 0.0  ;;  %v20603_v37 = vld [vmem:[%s25665_s10 + $0x178] sm:$0xff]  }
 0x9d9   :  { %v10351_v55 = vmax.f32 %v10321_v10, 0.0  ;;  %17912 = vmatpush3.bf16.msra.mxu1 %v20598_v39 }
 0x9da   :  { %v10349_v54 = vmax.f32 %v10313_v36, 0.0  ;;  %17913 = vmatprep.subr.bf16.mxu1 %v20599_v53  ;;  %v20604_v36 = vld [vmem:[%s25665_s10 + $0x138] sm:$0xff]  }
 0x9db   :  { %v24283_v25 = vpack.c.bf16 %v10351_v55, %v10350_v42  ;;  %19196 = vmatpush3.bf16.msra.mxu0 %v24274_v11  ;;  %v20558_v42 = vld [vmem:[%s25665_s10 + $0x40] sm:$0xff]   ;;  %v20557_v55 = vld [vmem:[%s25664_s9 + $0x88] sm:$0xff]   ;;  %v20592_v53 = vld [vmem:[%s25665_s10 + $0xb8] sm:$0xff]  }
 0x9dc   :  { %v24286_v45 = vpack.c.bf16 %v10349_v54, %v10348_v19  ;;  %v19187_v16 = vpop.f32.mrb[84].mxu0  ;;  %v20560_v19 = vld [vmem:[%s25665_s10] sm:$0xff]   ;;  %v20561_v54 = vld [vmem:[%s25665_s10 + $0x48] sm:$0xff]  }
 0x9dd   :  { %v10334_v31 = vadd.f32 %v19187_v16, %v10237_v47  ;;  %v10325_v26 = vpop.f32.mrb[85].mxu0  ;;  %v20546_v47 = vld [vmem:[%s25664_s9 + $0x38] sm:$0xff]   ;;  %17914 = vmatpush3.bf16.msra.mxu1 %v20600_v46  ;;  %v20564_v16 = vld [vmem:[%s25665_s10 + $0x10] sm:$0xff]   ;;  %v20621_v46 = vld [vmem:[%s25665_s10 + $0x200] sm:$0xff]  }
 0x9de   :  { %v10326_v49 = vadd.f32 %v10325_v26, %v24258_v29  ;;  %v19188_v18 = vpop.f32.mrb[86].mxu0  ;;  %19197 = vmatprep.subr.bf16.mxu0 %v24286_v45  ;;  %17915 = vmatprep.subr.bf16.mxu1 %v20601_v34  ;;  %v20566_v26 = vld [vmem:[%s25665_s10 + $0x18] sm:$0xff]  }
 0x9df   :  { %v10337_v28 = vadd.f32 %v19188_v18, %v10240_v44  ;;  %v10328_v22 = vpop.f32.mrb[87].mxu0  ;;  %19198 = vmatpush3.bf16.msra.mxu0 %v24286_v45  ;;  %v10354_v38 = vmax.f32 %v10334_v31, 0.0  ;;  %v20547_v44 = vld [vmem:[%s25664_s9 + $0x40] sm:$0xff]   ;;  %v20565_v31 = vld [vmem:[%s25665_s10 + $0x58] sm:$0xff]  }
 0x9e0   :  { %v10329_v4 = vadd.f32 %v10328_v22, %v24261_v24  ;;  %19199 = vmatprep.subr.bf16.mxu0 %v24283_v25  ;;  %v10352_v7 = vmax.f32 %v10326_v49, 0.0  ;;  %v20540_v24 = vld [vmem:[%s25664_s9 + $0x8] sm:$0xff]   ;;  %v20567_v49 = vld [vmem:[%s25665_s10 + $0x60] sm:$0xff]   ;;  %v20611_v34 = vld [vmem:[%s25665_s10 + $0x1d8] sm:$0xff]  }
 0x9e1   :  { %v10355_v51 = vmax.f32 %v10337_v28, 0.0  ;;  %v20568_v18 = vld [vmem:[%s25665_s10 + $0x20] sm:$0xff]   ;;  %v20569_v28 = vld [vmem:[%s25665_s10 + $0x68] sm:$0xff]  }
 0x9e2   :  { %v10353_v52 = vmax.f32 %v10329_v4, 0.0  ;;  %v20570_v22 = vld [vmem:[%s25665_s10 + $0x28] sm:$0xff]   ;;  %v20571_v4 = vld [vmem:[%s25665_s10 + $0x70] sm:$0xff]  }
 0x9e3   :  { %v24293_v48 = vpack.c.bf16 %v10355_v51, %v10354_v38  ;;  %19200 = vmatpush3.bf16.msra.mxu0 %v24283_v25 }
 0x9e4   :  { %v24296_v29 = vpack.c.bf16 %v10353_v52, %v10352_v7  ;;  %v20572_v7 = vld [vmem:[%s25665_s10 + $0x30] sm:$0xff]  }
 0x9e6   :  { %19201 = vmatprep.subr.bf16.mxu0 %v24296_v29 }
 0x9e7   :  { %19202 = vmatpush3.bf16.msra.mxu0 %v24296_v29 }
 0x9e8   :  { %19203 = vmatprep.subr.bf16.mxu0 %v24293_v48 }
 0x9eb   :  { %19204 = vmatpush3.bf16.msra.mxu0 %v24293_v48 }
 0x9ec   :  { %19209 = vmatprep.subr.bf16.mxu0 %v24268_v60 }
 0x9ee   :  { %19206 = vmatmul.mubr.bf16.vlgmr.msra.gmra.mrb[88].mxu0 %v20540_v24 }
 0x9ef   :  { %19210 = vmatpush3.bf16.msra.mxu0 %v24268_v60  ;;  %19225 = vmatprep.mubr.bf16.mxu0 %v20541_v21 }
 0x9f0   :  { %19211 = vmatprep.subr.bf16.mxu0 %v24266_v8 }
 0x9f3   :  { %19212 = vmatpush3.bf16.msra.mxu0 %v24266_v8 }
 0x9f4   :  { %19213 = vmatprep.subr.bf16.mxu0 %v24277_v32 }
 0x9f7   :  { %19214 = vmatpush3.bf16.msra.mxu0 %v24277_v32 }
 0x9f8   :  { %19215 = vmatprep.subr.bf16.mxu0 %v24274_v11 }
 0x9fb   :  { %19216 = vmatpush3.bf16.msra.mxu0 %v24274_v11 }
 0x9fc   :  { %19217 = vmatprep.subr.bf16.mxu0 %v24286_v45 }
 0x9ff   :  { %19218 = vmatpush3.bf16.msra.mxu0 %v24286_v45 }
 0xa00   :  { %19219 = vmatprep.subr.bf16.mxu0 %v24283_v25 }
 0xa03   :  { %19220 = vmatpush3.bf16.msra.mxu0 %v24283_v25 }
 0xa04   :  { %19221 = vmatprep.subr.bf16.mxu0 %v24296_v29 }
 0xa07   :  { %19222 = vmatpush3.bf16.msra.mxu0 %v24296_v29 }
 0xa08   :  { %19223 = vmatprep.subr.bf16.mxu0 %v24293_v48 }
 0xa0b   :  { %19224 = vmatpush3.bf16.msra.mxu0 %v24293_v48 }
 0xa0c   :  { %19229 = vmatprep.subr.bf16.mxu0 %v24268_v60 }
 0xa0e   :  { %19226 = vmatmul.mubr.bf16.vlgmr.msra.gmra.mrb[92].mxu0 %v20542_v41  ;;  %v20574_v41 = vld [vmem:[%s25665_s10 + $0x38] sm:$0xff]  }
 0xa0f   :  { %19230 = vmatpush3.bf16.msra.mxu0 %v24268_v60  ;;  %19245 = vmatprep.mubr.bf16.mxu0 %v20543_v61  ;;  %v20576_v61 = vld [vmem:[%s25665_s10 + $0xc0] sm:$0xff]  }
 0xa10   :  { %19231 = vmatprep.subr.bf16.mxu0 %v24266_v8 }
 0xa13   :  { %19232 = vmatpush3.bf16.msra.mxu0 %v24266_v8 }
 0xa14   :  { %19233 = vmatprep.subr.bf16.mxu0 %v24277_v32 }
 0xa17   :  { %19234 = vmatpush3.bf16.msra.mxu0 %v24277_v32 }
 0xa18   :  { %19235 = vmatprep.subr.bf16.mxu0 %v24274_v11 }
 0xa1b   :  { %19236 = vmatpush3.bf16.msra.mxu0 %v24274_v11 }
 0xa1c   :  { %19237 = vmatprep.subr.bf16.mxu0 %v24286_v45 }
 0xa1f   :  { %19238 = vmatpush3.bf16.msra.mxu0 %v24286_v45 }
 0xa20   :  { %19239 = vmatprep.subr.bf16.mxu0 %v24283_v25 }
 0xa23   :  { %19240 = vmatpush3.bf16.msra.mxu0 %v24283_v25 }
 0xa24   :  { %19241 = vmatprep.subr.bf16.mxu0 %v24296_v29 }
 0xa27   :  { %19242 = vmatpush3.bf16.msra.mxu0 %v24296_v29 }
 0xa28   :  { %19243 = vmatprep.subr.bf16.mxu0 %v24293_v48 }
 0xa2b   :  { %19244 = vmatpush3.bf16.msra.mxu0 %v24293_v48 }
 0xa2c   :  { %19249 = vmatprep.subr.bf16.mxu0 %v24268_v60 }
 0xa2e   :  { %19246 = vmatmul.mubr.bf16.vlgmr.msra.gmra.mrb[96].mxu0 %v20544_v12  ;;  %v20578_v12 = vld [vmem:[%s25665_s10 + $0x80] sm:$0xff]  }
 0xa2f   :  { %19250 = vmatpush3.bf16.msra.mxu0 %v24268_v60  ;;  %19265 = vmatprep.mubr.bf16.mxu0 %v20545_v59  ;;  %v20579_v59 = vld [vmem:[%s25665_s10 + $0xc8] sm:$0xff]  }
 0xa30   :  { %19251 = vmatprep.subr.bf16.mxu0 %v24266_v8 }
 0xa33   :  { %19252 = vmatpush3.bf16.msra.mxu0 %v24266_v8 }
 0xa34   :  { %19253 = vmatprep.subr.bf16.mxu0 %v24277_v32 }
 0xa37   :  { %19254 = vmatpush3.bf16.msra.mxu0 %v24277_v32 }
 0xa38   :  { %19255 = vmatprep.subr.bf16.mxu0 %v24274_v11 }
 0xa3b   :  { %19256 = vmatpush3.bf16.msra.mxu0 %v24274_v11 }
 0xa3c   :  { %19257 = vmatprep.subr.bf16.mxu0 %v24286_v45 }
 0xa3f   :  { %19258 = vmatpush3.bf16.msra.mxu0 %v24286_v45 }
 0xa40   :  { %19259 = vmatprep.subr.bf16.mxu0 %v24283_v25 }
 0xa43   :  { %19260 = vmatpush3.bf16.msra.mxu0 %v24283_v25 }
 0xa44   :  { %19261 = vmatprep.subr.bf16.mxu0 %v24296_v29 }
 0xa47   :  { %19262 = vmatpush3.bf16.msra.mxu0 %v24296_v29 }
 0xa48   :  { %19263 = vmatprep.subr.bf16.mxu0 %v24293_v48 }
 0xa4b   :  { %19264 = vmatpush3.bf16.msra.mxu0 %v24293_v48 }
 0xa4c   :  { %19269 = vmatprep.subr.bf16.mxu0 %v24268_v60 }
 0xa4e   :  { %19266 = vmatmul.mubr.bf16.vlgmr.msra.gmra.mrb[100].mxu0 %v20546_v47  ;;  %v20580_v47 = vld [vmem:[%s25665_s10 + $0x88] sm:$0xff]  }
 0xa4f   :  { %19270 = vmatpush3.bf16.msra.mxu0 %v24268_v60  ;;  %19285 = vmatprep.mubr.bf16.mxu0 %v20547_v44  ;;  %v20581_v44 = vld [vmem:[%s25665_s10 + $0xd0] sm:$0xff]  }
 0xa50   :  { %19271 = vmatprep.subr.bf16.mxu0 %v24266_v8 }
 0xa53   :  { %19272 = vmatpush3.bf16.msra.mxu0 %v24266_v8 }
 0xa54   :  { %19273 = vmatprep.subr.bf16.mxu0 %v24277_v32 }
 0xa57   :  { %19274 = vmatpush3.bf16.msra.mxu0 %v24277_v32 }
 0xa58   :  { %19275 = vmatprep.subr.bf16.mxu0 %v24274_v11 }
 0xa5b   :  { %19276 = vmatpush3.bf16.msra.mxu0 %v24274_v11 }
 0xa5c   :  { %19277 = vmatprep.subr.bf16.mxu0 %v24286_v45 }
 0xa5f   :  { %19278 = vmatpush3.bf16.msra.mxu0 %v24286_v45 }
 0xa60   :  { %19279 = vmatprep.subr.bf16.mxu0 %v24283_v25 }
 0xa63   :  { %19280 = vmatpush3.bf16.msra.mxu0 %v24283_v25 }
 0xa64   :  { %19281 = vmatprep.subr.bf16.mxu0 %v24296_v29 }
 0xa67   :  { %19282 = vmatpush3.bf16.msra.mxu0 %v24296_v29 }
 0xa68   :  { %19283 = vmatprep.subr.bf16.mxu0 %v24293_v48 }
 0xa6b   :  { %19284 = vmatpush3.bf16.msra.mxu0 %v24293_v48 }
 0xa6c   :  { %19289 = vmatprep.subr.bf16.mxu0 %v24268_v60 }
 0xa6e   :  { %19286 = vmatmul.mubr.bf16.vlgmr.msra.gmra.mrb[104].mxu0 %v20548_v5  ;;  %v20582_v5 = vld [vmem:[%s25665_s10 + $0x90] sm:$0xff]  }
 0xa6f   :  { %19290 = vmatpush3.bf16.msra.mxu0 %v24268_v60  ;;  %19305 = vmatprep.mubr.bf16.mxu0 %v20549_v1  ;;  %v20583_v1 = vld [vmem:[%s25665_s10 + $0xd8] sm:$0xff]  }
 0xa70   :  { %19291 = vmatprep.subr.bf16.mxu0 %v24266_v8 }
 0xa73   :  { %19292 = vmatpush3.bf16.msra.mxu0 %v24266_v8 }
 0xa74   :  { %19293 = vmatprep.subr.bf16.mxu0 %v24277_v32 }
 0xa77   :  { %19294 = vmatpush3.bf16.msra.mxu0 %v24277_v32 }
 0xa78   :  { %19295 = vmatprep.subr.bf16.mxu0 %v24274_v11 }
 0xa7b   :  { %19296 = vmatpush3.bf16.msra.mxu0 %v24274_v11 }
 0xa7c   :  { %19297 = vmatprep.subr.bf16.mxu0 %v24286_v45 }
 0xa7f   :  { %19298 = vmatpush3.bf16.msra.mxu0 %v24286_v45 }
 0xa80   :  { %19299 = vmatprep.subr.bf16.mxu0 %v24283_v25 }
 0xa83   :  { %19300 = vmatpush3.bf16.msra.mxu0 %v24283_v25 }
 0xa84   :  { %19301 = vmatprep.subr.bf16.mxu0 %v24296_v29 }
 0xa87   :  { %19302 = vmatpush3.bf16.msra.mxu0 %v24296_v29 }
 0xa88   :  { %19303 = vmatprep.subr.bf16.mxu0 %v24293_v48 }
 0xa8b   :  { %19304 = vmatpush3.bf16.msra.mxu0 %v24293_v48 }
 0xa8c   :  { %19309 = vmatprep.subr.bf16.mxu0 %v24268_v60 }
 0xa8e   :  { %19306 = vmatmul.mubr.bf16.vlgmr.msra.gmra.mrb[108].mxu0 %v20550_v63  ;;  %v20586_v63 = vld [vmem:[%s25665_s10 + $0xa0] sm:$0xff]  }
 0xa8f   :  { %19310 = vmatpush3.bf16.msra.mxu0 %v24268_v60  ;;  %19325 = vmatprep.mubr.bf16.mxu0 %v20551_v20  ;;  %v20587_v20 = vld [vmem:[%s25665_s10 + $0xe8] sm:$0xff]  }
 0xa90   :  { %19311 = vmatprep.subr.bf16.mxu0 %v24266_v8 }
 0xa93   :  { %19312 = vmatpush3.bf16.msra.mxu0 %v24266_v8 }
 0xa94   :  { %19313 = vmatprep.subr.bf16.mxu0 %v24277_v32 }
 0xa97   :  { %19314 = vmatpush3.bf16.msra.mxu0 %v24277_v32 }
 0xa98   :  { %19315 = vmatprep.subr.bf16.mxu0 %v24274_v11 }
 0xa9b   :  { %19316 = vmatpush3.bf16.msra.mxu0 %v24274_v11 }
 0xa9c   :  { %19317 = vmatprep.subr.bf16.mxu0 %v24286_v45 }
 0xa9f   :  { %19318 = vmatpush3.bf16.msra.mxu0 %v24286_v45 }
 0xaa0   :  { %19319 = vmatprep.subr.bf16.mxu0 %v24283_v25 }
 0xaa3   :  { %19320 = vmatpush3.bf16.msra.mxu0 %v24283_v25 }
 0xaa4   :  { %19321 = vmatprep.subr.bf16.mxu0 %v24296_v29 }
 0xaa7   :  { %19322 = vmatpush3.bf16.msra.mxu0 %v24296_v29 }
 0xaa8   :  { %19323 = vmatprep.subr.bf16.mxu0 %v24293_v48 }
 0xaab   :  { %19324 = vmatpush3.bf16.msra.mxu0 %v24293_v48 }
 0xaac   :  { %19329 = vmatprep.subr.bf16.mxu0 %v24268_v60 }
 0xaae   :  { %19326 = vmatmul.mubr.bf16.vlgmr.msra.gmra.mrb[112].mxu0 %v20552_v43 }
 0xaaf   :  { %19330 = vmatpush3.bf16.msra.mxu0 %v24268_v60  ;;  %19345 = vmatprep.mubr.bf16.mxu0 %v20553_v0 }
 0xab0   :  { %19331 = vmatprep.subr.bf16.mxu0 %v24266_v8 }
 0xab3   :  { %19332 = vmatpush3.bf16.msra.mxu0 %v24266_v8 }
 0xab4   :  { %19333 = vmatprep.subr.bf16.mxu0 %v24277_v32 }
 0xab7   :  { %19334 = vmatpush3.bf16.msra.mxu0 %v24277_v32 }
 0xab8   :  { %19335 = vmatprep.subr.bf16.mxu0 %v24274_v11 }
 0xabb   :  { %19336 = vmatpush3.bf16.msra.mxu0 %v24274_v11 }
 0xabc   :  { %19337 = vmatprep.subr.bf16.mxu0 %v24286_v45 }
 0xabf   :  { %19338 = vmatpush3.bf16.msra.mxu0 %v24286_v45 }
 0xac0   :  { %19339 = vmatprep.subr.bf16.mxu0 %v24283_v25 }
 0xac1   :  { %v24484_v14 = vpop.f32.mrb[88].mxu0 }
 0xac2   :  { %v24489_v9 = vpop.f32.mrb[89].mxu0 }
 0xac3   :  { %19340 = vmatpush3.bf16.msra.mxu0 %v24283_v25  ;;  %v24492_v30 = vpop.f32.mrb[90].mxu0 }
 0xac4   :  { %19341 = vmatprep.subr.bf16.mxu0 %v24296_v29  ;;  %v10430_v2 = vpack.c.bf16 %v24492_v30, %v24484_v14  ;;  %v24497_v58 = vpop.f32.mrb[91].mxu0  ;;  %v20605_v14 = vld [vmem:[%s25665_s10 + $0x1c0] sm:$0xff]   ;;  %v20607_v30 = vld [vmem:[%s25665_s10 + $0x1c8] sm:$0xff]  }
 0xac5   :  { %v10429_v35 = vpack.c.bf16 %v24497_v58, %v24489_v9  ;;  %v20606_v9 = vld [vmem:[%s25665_s10 + $0x180] sm:$0xff]   ;;  %v20609_v58 = vld [vmem:[%s25665_s10 + $0x1d0] sm:$0xff]  }
 0xac7   :  { %19342 = vmatpush3.bf16.msra.mxu0 %v24296_v29 }
 0xac8   :  { %19343 = vmatprep.subr.bf16.mxu0 %v24293_v48 }
 0xacb   :  { %19344 = vmatpush3.bf16.msra.mxu0 %v24293_v48 }
 0xacc   :  { %19349 = vmatprep.subr.bf16.mxu0 %v24268_v60 }
 0xace   :  { %19346 = vmatmul.mubr.bf16.vlgmr.msra.gmra.mrb[116].mxu0 %v20554_v27  ;;  %v20612_v27 = vld [vmem:[%s25665_s10 + $0x198] sm:$0xff]  }
 0xacf   :  { %19350 = vmatpush3.bf16.msra.mxu0 %v24268_v60  ;;  %19365 = vmatprep.mubr.bf16.mxu0 %v20555_v40  ;;  %v20613_v40 = vld [vmem:[%s25665_s10 + $0x1e0] sm:$0xff]  }
 0xad0   :  { %19351 = vmatprep.subr.bf16.mxu0 %v24266_v8 }
 0xad3   :  { %19352 = vmatpush3.bf16.msra.mxu0 %v24266_v8  ;;  %v20602_v8 = vld [vmem:[%s25665_s10 + $0x130] sm:$0xff]  }
 0xad4   :  { %19353 = vmatprep.subr.bf16.mxu0 %v24277_v32  ;;  %17916 = vmatpush3.bf16.msra.mxu1 %v20602_v8  ;;  %v20615_v8 = vld [vmem:[%s25665_s10 + $0x1e8] sm:$0xff]  }
 0xad5   :  { %17917 = vmatprep.subr.bf16.mxu1 %v20603_v37  ;;  %v20618_v37 = vld [vmem:[%s25665_s10 + $0x1b0] sm:$0xff]  }
 0xad7   :  { %19354 = vmatpush3.bf16.msra.mxu0 %v24277_v32 }
 0xad8   :  { %19355 = vmatprep.subr.bf16.mxu0 %v24274_v11  ;;  %17918 = vmatpush3.bf16.msra.mxu1 %v20604_v36 }
 0xad9   :  { %19369 = vmatprep.subr.bf16.mxu1 %v20621_v46 }
 0xadb   :  { %19356 = vmatpush3.bf16.msra.mxu0 %v24274_v11 }
 0xadc   :  { %19357 = vmatprep.subr.bf16.mxu0 %v24286_v45 }
 0xadf   :  { %19358 = vmatpush3.bf16.msra.mxu0 %v24286_v45  ;;  %v20563_v45 = vld [vmem:[%s25665_s10 + $0x50] sm:$0xff]  }
 0xae0   :  { %19359 = vmatprep.subr.bf16.mxu0 %v24283_v25 }
 0xae1   :  { %v24524_v60 = vpop.f32.mrb[92].mxu0 }
 0xae2   :  { %v10482_v3 = vpop.f32.mrb[93].mxu0 }
 0xae3   :  { %19360 = vmatpush3.bf16.msra.mxu0 %v24283_v25  ;;  %v19228_v32 = vpop.f32.mrb[94].mxu0  ;;  %v20562_v25 = vld [vmem:[%s25665_s10 + $0x8] sm:$0xff]  }
 0xae4   :  { %19361 = vmatprep.subr.bf16.mxu0 %v24296_v29  ;;  %v10498_v11 = vpack.c.bf16 %v19228_v32, %v24524_v60  ;;  %v10485_v17 = vpop.f32.mrb[95].mxu0  ;;  %v20614_v60 = vld [vmem:[%s25665_s10 + $0x1a0] sm:$0xff]   ;;  %v20617_v32 = vld [vmem:[%s25665_s10 + $0x1f0] sm:$0xff]  }
 0xae5   :  { %v10497_v10 = vpack.c.bf16 %v10485_v17, %v10482_v3  ;;  %v20616_v3 = vld [vmem:[%s25665_s10 + $0x1a8] sm:$0xff]  }
 0xae7   :  { %19362 = vmatpush3.bf16.msra.mxu0 %v24296_v29 }
 0xae8   :  { %19363 = vmatprep.subr.bf16.mxu0 %v24293_v48 }
 0xaeb   :  { %19364 = vmatpush3.bf16.msra.mxu0 %v24293_v48  ;;  %v20573_v48 = vld [vmem:[%s25665_s10 + $0x78] sm:$0xff]  }
 0xaec   :  { %17847 = vmatprep.subr.bf16.mxu0 %v20558_v42 }
 0xaee   :  { %19366 = vmatmul.mubr.bf16.vlgmr.msra.gmra.mrb[120].mxu0 %v20557_v55  ;;  %v20619_v55 = vld [vmem:[%s25665_s10 + $0x1f8] sm:$0xff]  }
 0xaef   :  { %17848 = vmatpush3.bf16.msra.mxu0 %v20560_v19  ;;  %11590 = vmatprep.mubr.bf16.mxu0 %v10497_v10 }
 0xaf0   :  { %17849 = vmatprep.subr.bf16.mxu0 %v20561_v54  ;;  %v20620_v54 = vld [vmem:[%s25665_s10 + $0x1b8] sm:$0xff]  }
 0xaf3   :  { %17850 = vmatpush3.bf16.msra.mxu0 %v20562_v25 }
 0xaf4   :  { %17851 = vmatprep.subr.bf16.mxu0 %v20563_v45 }
 0xaf7   :  { %17852 = vmatpush3.bf16.msra.mxu0 %v20564_v16 }
 0xaf8   :  { %17853 = vmatprep.subr.bf16.mxu0 %v20565_v31 }
 0xafb   :  { %17854 = vmatpush3.bf16.msra.mxu0 %v20566_v26 }
 0xafc   :  { %17855 = vmatprep.subr.bf16.mxu0 %v20567_v49 }
 0xaff   :  { %17856 = vmatpush3.bf16.msra.mxu0 %v20568_v18  ;;  %v20622_v18 = vld [vmem:[%s25665_s10 + $0x208] sm:$0xff]  }
 0xb00   :  { %17857 = vmatprep.subr.bf16.mxu0 %v20569_v28  ;;  %v20623_v28 = vld [vmem:[%s25665_s10 + $0x210] sm:$0xff]  }
 0xb01   :  { %v24583_v38 = vpop.f32.mrb[96].mxu0 }
 0xb02   :  { %v10550_v51 = vpop.f32.mrb[97].mxu0 }
 0xb03   :  { %17858 = vmatpush3.bf16.msra.mxu0 %v20570_v22  ;;  %v24588_v52 = vpop.f32.mrb[98].mxu0  ;;  %v20624_v22 = vld [vmem:[%s25665_s10 + $0x218] sm:$0xff]  }
 0xb04   :  { %17859 = vmatprep.subr.bf16.mxu0 %v20571_v4  ;;  %v10566_v29 = vpack.c.bf16 %v24588_v52, %v24583_v38  ;;  %v10553_v24 = vpop.f32.mrb[99].mxu0  ;;  %v20625_v4 = vld [vmem:[%s25665_s10 + $0x220] sm:$0xff]   ;;  %v20626_v38 = vld [vmem:[%s25665_s10 + $0x228] sm:$0xff]  }
 0xb05   :  { %v10565_v21 = vpack.c.bf16 %v10553_v24, %v10550_v51  ;;  %v20627_v51 = vld [vmem:[%s25665_s10 + $0x230] sm:$0xff]  }
 0xb07   :  { %17860 = vmatpush3.bf16.msra.mxu0 %v20572_v7  ;;  %v20628_v7 = vld [vmem:[%s25665_s10 + $0x238] sm:$0xff]  }
 0xb08   :  { %17861 = vmatprep.subr.bf16.mxu0 %v20573_v48 }
 0xb0b   :  { %17862 = vmatpush3.bf16.msra.mxu0 %v20574_v41 }
 0xb0c   :  { %17875 = vmatprep.subr.bf16.mxu0 %v20576_v61 }
 0xb0e   :  { %11591 = vmatmul.mubr.bf16.vlgmr.msra.gmra.mrb[124].mxu0 %v10429_v35  ;;  %v20610_v35 = vld [vmem:[%s25665_s10 + $0x190] sm:$0xff]  }
 0xb0f   :  { %17876 = vmatpush3.bf16.msra.mxu0 %v20578_v12  ;;  %11598 = vmatprep.mubr.bf16.mxu0 %v10498_v11 }
 0xb10   :  { %17877 = vmatprep.subr.bf16.mxu0 %v20579_v59 }
 0xb13   :  { %17878 = vmatpush3.bf16.msra.mxu0 %v20580_v47 }
 0xb14   :  { %17879 = vmatprep.subr.bf16.mxu0 %v20581_v44 }
 0xb16   :  { %11599 = vmatmul.mubr.bf16.gmra.mrb[128].mxu0 %v10430_v2  ;;  %v20608_v2 = vld [vmem:[%s25665_s10 + $0x188] sm:$0xff]  }
 0xb17   :  { %17880 = vmatpush3.bf16.msra.mxu0 %v20582_v5 }
 0xb18   :  { %17881 = vmatprep.subr.bf16.mxu0 %v20583_v1 }
 0xb1b   :  { %17882 = vmatpush3.bf16.msra.mxu0 %v20584_v13 }
 0xb1c   :  { %17883 = vmatprep.subr.bf16.mxu0 %v20585_v50 }
 0xb1f   :  { %17884 = vmatpush3.bf16.msra.mxu0 %v20586_v63 }
 0xb20   :  { %17885 = vmatprep.subr.bf16.mxu0 %v20587_v20 }
 0xb21   :  { %v19267_v43 = vpop.f32.mrb[100].mxu0 }
 0xb22   :  { %v10618_v0 = vpop.f32.mrb[101].mxu0 }
 0xb23   :  { %17886 = vmatpush3.bf16.msra.mxu0 %v20588_v62  ;;  %v19268_v56 = vpop.f32.mrb[102].mxu0 }
 0xb24   :  { %17887 = vmatprep.subr.bf16.mxu0 %v20589_v6  ;;  %v10634_v15 = vpack.c.bf16 %v19268_v56, %v19267_v43  ;;  %v10621_v23 = vpop.f32.mrb[103].mxu0 }
 0xb25   :  { %v10633_v39 = vpack.c.bf16 %v10621_v23, %v10618_v0 }
 0xb27   :  { %17888 = vmatpush3.bf16.msra.mxu0 %v20590_v33  ;;  %11639 = vmatprep.mubr.bf16.mxu0 %v10633_v39 }
 0xb28   :  { %17889 = vmatprep.subr.bf16.mxu0 %v20591_v57 }
 0xb2b   :  { %17890 = vmatpush3.bf16.msra.mxu0 %v20592_v53 }
 0xb2c   :  { %17931 = vmatprep.subr.bf16.mxu0 %v20605_v14 }
 0xb2e   :  { %11640 = vmatmul.mubr.bf16.vlgmr.msra.gmra.mrb[132].mxu0 %v10565_v21 }
 0xb2f   :  { %11647 = vmatprep.mubr.bf16.mxu0 %v10634_v15  ;;  %17932 = vmatpush3.bf16.msra.mxu0 %v20606_v9  ;;  %v16725_v9 = vld [vmem:[%s25666_s11] ss:$0 sm:$0xff] }
 0xb30   :  { %17933 = vmatprep.subr.bf16.mxu0 %v20607_v30 }
 0xb33   :  { %17934 = vmatpush3.bf16.msra.mxu0 %v20608_v2 }
 0xb34   :  { %17935 = vmatprep.subr.bf16.mxu0 %v20609_v58 }
 0xb36   :  { %11648 = vmatmul.mubr.bf16.gmra.mrb[136].mxu0 %v10566_v29 }
 0xb37   :  { %17936 = vmatpush3.bf16.msra.mxu0 %v20610_v35 }
 0xb38   :  { %17937 = vmatprep.subr.bf16.mxu0 %v20611_v34 }
 0xb3b   :  { %17938 = vmatpush3.bf16.msra.mxu0 %v20612_v27 }
 0xb3c   :  { %17939 = vmatprep.subr.bf16.mxu0 %v20613_v40 }
 0xb3f   :  { %17940 = vmatpush3.bf16.msra.mxu0 %v20614_v60 }
 0xb40   :  { %17941 = vmatprep.subr.bf16.mxu0 %v20615_v8 }
 0xb41   :  { %v19287_v11 = vpop.f32.mrb[104].mxu0 }
 0xb42   :  { %v10686_v17 = vpop.f32.mrb[105].mxu0 }
 0xb43   :  { %v19288_v10 = vpop.f32.mrb[106].mxu0  ;;  %17942 = vmatpush3.bf16.msra.mxu0 %v20616_v3 }
 0xb44   :  { %v10702_v36 = vpack.c.bf16 %v19288_v10, %v19287_v11  ;;  %v10689_v42 = vpop.f32.mrb[107].mxu0  ;;  %17943 = vmatprep.subr.bf16.mxu0 %v20617_v32 }
 0xb45   :  { %v10701_v19 = vpack.c.bf16 %v10689_v42, %v10686_v17 }
 0xb47   :  { %17944 = vmatpush3.bf16.msra.mxu0 %v20618_v37 }
 0xb48   :  { %17945 = vmatprep.subr.bf16.mxu0 %v20619_v55 }
 0xb4b   :  { %17946 = vmatpush3.bf16.msra.mxu0 %v20620_v54 }
 0xb61   :  { %v19307_v25 = vpop.f32.mrb[108].mxu0 }
 0xb62   :  { %v10754_v45 = vpop.f32.mrb[109].mxu0 }
 0xb63   :  { %v19308_v16 = vpop.f32.mrb[110].mxu0 }
 0xb64   :  { %v10770_v31 = vpack.c.bf16 %v19308_v16, %v19307_v25  ;;  %v10757_v26 = vpop.f32.mrb[111].mxu0  ;;  %v20849_v25 = vmov 0.0  }
 0xb65   :  { %v10769_v49 = vpack.c.bf16 %v10757_v26, %v10754_v45  ;;  %19397 = vmatprep.subr.bf16.mxu0 %v20849_v25 }
 0xb67   :  { %11688 = vmatprep.mubr.bf16.mxu1 %v10769_v49 }
 0xb68   :  { %11689 = vmatmul.mubr.bf16.vlgmr.msra.gmra.mrb[136].mxu1 %v10701_v19 }
 0xb69   :  { %11696 = vmatprep.mubr.bf16.mxu1 %v10770_v31  ;;  %19370 = vmatpush3.bf16.msra.mxu1 %v20621_v46 }
 0xb6a   :  { %19371 = vmatprep.subr.bf16.mxu1 %v20622_v18 }
 0xb6d   :  { %19372 = vmatpush3.bf16.msra.mxu1 %v20622_v18 }
 0xb6e   :  { %19373 = vmatprep.subr.bf16.mxu1 %v20623_v28 }
 0xb70   :  { %11697 = vmatmul.mubr.bf16.gmra.mrb[140].mxu1 %v10702_v36 }
 0xb71   :  { %19374 = vmatpush3.bf16.msra.mxu1 %v20623_v28 }
 0xb72   :  { %19375 = vmatprep.subr.bf16.mxu1 %v20624_v22 }
 0xb75   :  { %19376 = vmatpush3.bf16.msra.mxu1 %v20624_v22 }
 0xb76   :  { %19377 = vmatprep.subr.bf16.mxu1 %v20625_v4 }
 0xb79   :  { %19378 = vmatpush3.bf16.msra.mxu1 %v20625_v4 }
 0xb7a   :  { %19379 = vmatprep.subr.bf16.mxu1 %v20626_v38 }
 0xb7d   :  { %19380 = vmatpush3.bf16.msra.mxu1 %v20626_v38 }
 0xb7e   :  { %19381 = vmatprep.subr.bf16.mxu1 %v20627_v51 }
 0xb81   :  { %v19327_v52 = vpop.f32.mrb[112].mxu0  ;;  %19382 = vmatpush3.bf16.msra.mxu1 %v20627_v51 }
 0xb82   :  { %v10822_v48 = vpop.f32.mrb[113].mxu0  ;;  %19383 = vmatprep.subr.bf16.mxu1 %v20628_v7 }
 0xb83   :  { %v19328_v29 = vpop.f32.mrb[114].mxu0 }
 0xb84   :  { %v10838_v24 = vpack.c.bf16 %v19328_v29, %v19327_v52  ;;  %v10825_v21 = vpop.f32.mrb[115].mxu0 }
 0xb85   :  { %v10837_v41 = vpack.c.bf16 %v10825_v21, %v10822_v48  ;;  %19384 = vmatpush3.bf16.msra.mxu1 %v20628_v7 }
 0xb86   :  { %19389 = vmatprep.subr.bf16.mxu1 %v20849_v25 }
 0xba1   :  { %v19347_v61 = vpop.f32.mrb[116].mxu0 }
 0xba2   :  { %v10890_v12 = vpop.f32.mrb[117].mxu0 }
 0xba3   :  { %v19348_v59 = vpop.f32.mrb[118].mxu0 }
 0xba4   :  { %v10906_v47 = vpack.c.bf16 %v19348_v59, %v19347_v61  ;;  %v10893_v44 = vpop.f32.mrb[119].mxu0 }
 0xba5   :  { %v10905_v5 = vpack.c.bf16 %v10893_v44, %v10890_v12 }
 0xba7   :  { %11737 = vmatprep.mubr.bf16.mxu0 %v10905_v5 }
 0xba8   :  { %11738 = vmatmul.mubr.bf16.vlgmr.msra.gmra.mrb[140].mxu0 %v10837_v41 }
 0xba9   :  { %11745 = vmatprep.mubr.bf16.mxu0 %v10906_v47 }
 0xbb0   :  { %11746 = vmatmul.mubr.bf16.gmra.mrb[144].mxu0 %v10838_v24 }
 0xbb1   :  { %19401 = vmatprep.mubr.msk.bf16.mxu0 %vm20850_vm1, %v20849_v25 }
 0xbc1   :  { %v19367_v1 = vpop.f32.mrb[120].mxu0 }
 0xbc2   :  { %v10958_v13 = vpop.f32.mrb[121].mxu0 }
 0xbc3   :  { %v19368_v50 = vpop.f32.mrb[122].mxu0 }
 0xbc4   :  { %v10974_v63 = vpack.c.bf16 %v19368_v50, %v19367_v1  ;;  %v10961_v20 = vpop.f32.mrb[123].mxu0 }
 0xbc5   :  { %v10973_v62 = vpack.c.bf16 %v10961_v20, %v10958_v13 }
 0xbc7   :  { %19385 = vmatprep.mubr.bf16.mxu1 %v10973_v62 }
 0xbc8   :  { %19386 = vmatmul.mubr.bf16.vlgmr.msra.gmra.mrb[144].mxu1 %v10974_v63 }
 0xbc9   :  { %19393 = vmatprep.mubr.msk.bf16.mxu1 %vm20850_vm1, %v20849_v25 }
 0xbe1   :  { %v17863_v6 = vpop.f32.mrb[124].mxu0 }
 0xbe2   :  { %v17864_v43 = vpop.f32.mrb[125].mxu0 }
 0xbe3   :  { %v17865_v0 = vadd.f32 %v17864_v43, %v17863_v6  ;;  %v17866_v33 = vpop.f32.mrb[126].mxu0 }
 0xbe4   :  { %v17867_v56 = vpop.f32.mrb[127].mxu0 }
 0xbe5   :  { %v17868_v15 = vadd.f32 %v17867_v56, %v17866_v33  ;;  %v11593_v58 = vadd.f32 %v17865_v0, %v16725_v9 }
 0xbe7   :  { %v11596_v40 = vadd.f32 %v17868_v15, %v16725_v9 }
 0xbe9   :  { %v17869_v23 = vpop.f32.mrb[128].mxu0 }
 0xbea   :  { %v17870_v57 = vpop.f32.mrb[129].mxu0 }
 0xbeb   :  { %v17871_v39 = vadd.f32 %v17870_v57, %v17869_v23  ;;  %v17872_v53 = vpop.f32.mrb[130].mxu0 }
 0xbec   :  { %v17873_v14 = vpop.f32.mrb[131].mxu0 }
 0xbed   :  { %v17874_v46 = vadd.f32 %v17873_v14, %v17872_v53  ;;  %v11601_v17 = vadd.f32 %v17871_v39, %v16725_v9 }
 0xbef   :  { %v11604_v42 = vadd.f32 %v17874_v46, %v16725_v9 }
 0xc01   :  { %v17891_v30 = vpop.f32.mrb[132].mxu0 }
 0xc02   :  { %v17892_v2 = vpop.f32.mrb[133].mxu0 }
 0xc03   :  { %v17893_v35 = vadd.f32 %v17892_v2, %v17891_v30  ;;  %v17894_v34 = vpop.f32.mrb[134].mxu0 }
 0xc04   :  { %v17895_v27 = vpop.f32.mrb[135].mxu0 }
 0xc05   :  { %v11642_v60 = vadd.f32 %v17893_v35, %v11593_v58  ;;  %v17896_v8 = vadd.f32 %v17895_v27, %v17894_v34  ;;  %v16799_v35 = vld [vmem:[%s25668_s12 + $0x4] sm:$0xf]  ;;  %v11809_v34 = vld [vmem:[%s25668_s12] sm:$0xf]  ;;  %v16801_v27 = vld [vmem:[%s25668_s12 + $0x8] sm:$0xf] }
 0xc07   :  { %v11645_v3 = vadd.f32 %v17896_v8, %v11596_v40  ;;  %v16803_v40 = vld [vmem:[%s25668_s12 + $0xc] sm:$0xf]  ;;  %v16807_v8 = vld [vmem:[%s25668_s12 + $0x14] sm:$0xf] }
 0xc09   :  { %v17897_v32 = vpop.f32.mrb[136].mxu0 }
 0xc0a   :  { %v17898_v11 = vpop.f32.mrb[137].mxu0 }
 0xc0b   :  { %v17899_v10 = vadd.f32 %v17898_v11, %v17897_v32  ;;  %v17900_v37 = vpop.f32.mrb[138].mxu0  ;;  %v16809_v32 = vld [vmem:[%s25668_s12 + $0x18] sm:$0xf]  ;;  %v16811_v11 = vld [vmem:[%s25668_s12 + $0x1c] sm:$0xf] }
 0xc0c   :  { %v17901_v36 = vpop.f32.mrb[139].mxu0 }
 0xc0d   :  { %v11650_v55 = vadd.f32 %v17899_v10, %v11601_v17  ;;  %v17902_v19 = vadd.f32 %v17901_v36, %v17900_v37  ;;  %v20630_v17 = vld [vmem:[%s25667_s13] sm:$0xff]   ;;  %v20631_v10 = vld [vmem:[%s25667_s13 + $0x48] sm:$0xff]  }
 0xc0e   :  { %v20632_v37 = vld [vmem:[%s25667_s13 + $0x8] sm:$0xff]   ;;  %v20643_v36 = vld [vmem:[%s25667_s13 + $0xc0] sm:$0xff]  }
 0xc0f   :  { %v11653_v54 = vadd.f32 %v17902_v19, %v11604_v42  ;;  %v20633_v42 = vld [vmem:[%s25667_s13 + $0x50] sm:$0xff]   ;;  %v20645_v19 = vld [vmem:[%s25667_s13 + $0x80] sm:$0xff]  }
 0xc3b   :  { %v17919_v45 = vpop.f32.mrb[136].mxu1 }
 0xc3c   :  { %v17920_v16 = vpop.f32.mrb[137].mxu1 }
 0xc3d   :  { %v17921_v31 = vadd.f32 %v17920_v16, %v17919_v45  ;;  %v17922_v26 = vpop.f32.mrb[138].mxu1  ;;  %v20635_v45 = vld [vmem:[%s25667_s13 + $0x58] sm:$0xff]  }
 0xc3e   :  { %v17923_v49 = vpop.f32.mrb[139].mxu1  ;;  %v20636_v16 = vld [vmem:[%s25667_s13 + $0x18] sm:$0xff]  }
 0xc3f   :  { %v11691_v18 = vadd.f32 %v17921_v31, %v11642_v60  ;;  %v17924_v28 = vadd.f32 %v17923_v49, %v17922_v26  ;;  %v16805_v60 = vld [vmem:[%s25668_s12 + $0x10] sm:$0xf]  ;;  %v20637_v31 = vld [vmem:[%s25667_s13 + $0x60] sm:$0xff]   ;;  %v20639_v49 = vld [vmem:[%s25667_s13 + $0x68] sm:$0xff]  }
 0xc40   :  { %v20638_v26 = vld [vmem:[%s25667_s13 + $0x20] sm:$0xff]  }
 0xc41   :  { %v11694_v22 = vadd.f32 %v17924_v28, %v11645_v3  ;;  %v20629_v3 = vld [vmem:[%s25667_s13 + $0x40] sm:$0xff]   ;;  %v20641_v28 = vld [vmem:[%s25667_s13 + $0x70] sm:$0xff]  }
 0xc43   :  { %v17925_v4 = vpop.f32.mrb[140].mxu1 }
 0xc44   :  { %v17926_v38 = vpop.f32.mrb[141].mxu1 }
 0xc45   :  { %v17927_v51 = vadd.f32 %v17926_v38, %v17925_v4  ;;  %v17928_v7 = vpop.f32.mrb[142].mxu1  ;;  %v20644_v4 = vld [vmem:[%s25667_s13 + $0x78] sm:$0xff]   ;;  %v20647_v38 = vld [vmem:[%s25667_s13 + $0xc8] sm:$0xff]  }
 0xc46   :  { %v17929_v52 = vpop.f32.mrb[143].mxu1 }
 0xc47   :  { %v11699_v48 = vadd.f32 %v17927_v51, %v11650_v55  ;;  %v17930_v29 = vadd.f32 %v17929_v52, %v17928_v7  ;;  %v16813_v55 = vld [vmem:[%s25668_s12 + $0x20] sm:$0xf]  ;;  %v20648_v51 = vld [vmem:[%s25667_s13 + $0x88] sm:$0xff]   ;;  %v20651_v7 = vld [vmem:[%s25667_s13 + $0xd0] sm:$0xff]  }
 0xc48   :  { %v20652_v52 = vld [vmem:[%s25667_s13 + $0x90] sm:$0xff]  }
 0xc49   :  { %v11702_v24 = vadd.f32 %v17930_v29, %v11653_v54  ;;  %v20634_v54 = vld [vmem:[%s25667_s13 + $0x10] sm:$0xff]   ;;  %v20656_v29 = vld [vmem:[%s25667_s13 + $0x98] sm:$0xff]  }
 0xc7b   :  { %v17947_v21 = vpop.f32.mrb[140].mxu0 }
 0xc7c   :  { %v17948_v41 = vpop.f32.mrb[141].mxu0 }
 0xc7d   :  { %v17949_v61 = vadd.f32 %v17948_v41, %v17947_v21  ;;  %v17950_v12 = vpop.f32.mrb[142].mxu0  ;;  %v20659_v21 = vld [vmem:[%s25667_s13 + $0xe0] sm:$0xff]  }
 0xc7e   :  { %v17951_v59 = vpop.f32.mrb[143].mxu0  ;;  %v20649_v41 = vld [vmem:[%s25667_s13 + $0x140] sm:$0xff]  }
 0xc7f   :  { %v17952_v47 = vadd.f32 %v17951_v59, %v17950_v12  ;;  %v11740_v44 = vadd.f32 %v17949_v61, %v11691_v18  ;;  %v20640_v18 = vld [vmem:[%s25667_s13 + $0x28] sm:$0xff]   ;;  %v20660_v61 = vld [vmem:[%s25667_s13 + $0xa0] sm:$0xff]  }
 0xc80   :  { %v20663_v12 = vld [vmem:[%s25667_s13 + $0xe8] sm:$0xff]  }
 0xc81   :  { %v11743_v5 = vadd.f32 %v17952_v47, %v11694_v22  ;;  %v20642_v22 = vld [vmem:[%s25667_s13 + $0x30] sm:$0xff]   ;;  %v20664_v59 = vld [vmem:[%s25667_s13 + $0xa8] sm:$0xff]  }
 0xc82   :  { %v20667_v47 = vld [vmem:[%s25667_s13 + $0xf0] sm:$0xff]  }
 0xc83   :  { %v17953_v1 = vpop.f32.mrb[144].mxu0 }
 0xc84   :  { %v17954_v13 = vpop.f32.mrb[145].mxu0 }
 0xc85   :  { %v17955_v50 = vadd.f32 %v17954_v13, %v17953_v1  ;;  %v17956_v63 = vpop.f32.mrb[146].mxu0  ;;  %v20672_v1 = vld [vmem:[%s25667_s13 + $0xb8] sm:$0xff]   ;;  %v20675_v13 = vld [vmem:[%s25667_s13 + $0x1c0] sm:$0xff]  }
 0xc86   :  { %v17957_v20 = vpop.f32.mrb[147].mxu0 }
 0xc87   :  { %v17958_v62 = vadd.f32 %v17957_v20, %v17956_v63  ;;  %v11748_v6 = vadd.f32 %v17955_v50, %v11699_v48  ;;  %v20655_v48 = vld [vmem:[%s25667_s13 + $0xd8] sm:$0xff]  }
 0xc89   :  { %v11751_v43 = vadd.f32 %v17958_v62, %v11702_v24  ;;  %v20646_v24 = vld [vmem:[%s25667_s13 + $0x38] sm:$0xff]  }
 0xc9b   :  { %v19387_v0 = vpop.f32.mrb[144].mxu1 }
 0xc9c   :  { %v11797_v33 = vadd.f32 %v19387_v0, %v11748_v6  ;;  %v11788_v56 = vpop.f32.mrb[145].mxu1  ;;  %v20650_v6 = vld [vmem:[%s25667_s13 + $0x100] sm:$0xff]  }
 0xc9d   :  { %v11789_v15 = vadd.f32 %v11788_v56, %v11740_v44  ;;  %v19388_v23 = vpop.f32.mrb[146].mxu1  ;;  %v20668_v44 = vld [vmem:[%s25667_s13 + $0xb0] sm:$0xff]  }
 0xc9e   :  { %v11800_v57 = vadd.f32 %v19388_v23, %v11751_v43  ;;  %v11791_v39 = vpop.f32.mrb[147].mxu1  ;;  %v11805_v14 = vmax.f32 %v11797_v33, 0.0  ;;  %v20653_v33 = vld [vmem:[%s25667_s13 + $0x148] sm:$0xff]  }
 0xc9f   :  { %v11792_v53 = vadd.f32 %v11791_v39, %v11743_v5  ;;  %v11803_v9 = vmax.f32 %v11789_v15, 0.0  ;;  %v20671_v5 = vld [vmem:[%s25667_s13 + $0xf8] sm:$0xff]   ;;  %v20654_v39 = vld [vmem:[%s25667_s13 + $0x108] sm:$0xff]  }
 0xca0   :  { %v11806_v46 = vmax.f32 %v11800_v57, 0.0 }
 0xca1   :  { %v11804_v30 = vmax.f32 %v11792_v53, 0.0  ;;  %v20657_v53 = vld [vmem:[%s25667_s13 + $0x150] sm:$0xff]  }
 0xca2   :  { %v24736_v2 = vpack.c.bf16 %v11806_v46, %v11805_v14 }
 0xca3   :  { %v11807_v58 = vpack.c.bf16 %v11804_v30, %v11803_v9  ;;  %v20658_v9 = vld [vmem:[%s25667_s13 + $0x110] sm:$0xff]  }
 0xca5   :  { %19390 = vmatpush3.bf16.msra.mxu1 %v11807_v58  ;;  %19398 = vmatpush3.bf16.msra.mxu0 %v11807_v58 }
 0xca6   :  { %19391 = vmatprep.subr.bf16.mxu1 %v20849_v25  ;;  %19399 = vmatprep.subr.bf16.mxu0 %v20849_v25 }
 0xca9   :  { %19392 = vmatpush3.bf16.msra.mxu1 %v24736_v2  ;;  %19400 = vmatpush3.bf16.msra.mxu0 %v24736_v2 }
 0xcaa   :  { %19405 = vmatprep.subr.bf16.mxu1 %v20849_v25  ;;  %19413 = vmatprep.subr.bf16.mxu0 %v20849_v25 }
 0xcac   :  { %19402 = vmatmul.mubr.msk.bf16.vlgmr.msra.gmra.mrb[148].mxu0 %vm11810_vm2, %v16799_v35  ;;  %19394 = vmatmul.mubr.msk.bf16.vlgmr.msra.gmra.mrb[148].mxu1 %vm11810_vm2, %v11809_v34  ;;  %v20677_v34 = vld [vmem:[%s25667_s13 + $0x180] sm:$0xff]  }
 0xcad   :  { %19406 = vmatpush3.bf16.msra.mxu1 %v11807_v58  ;;  %19414 = vmatpush3.bf16.msra.mxu0 %v11807_v58 }
 0xcae   :  { %19407 = vmatprep.subr.bf16.mxu1 %v20849_v25  ;;  %19415 = vmatprep.subr.bf16.mxu0 %v20849_v25 }
 0xcaf   :  { %19409 = vmatprep.mubr.msk.bf16.mxu1 %vm20850_vm1, %v20849_v25  ;;  %19417 = vmatprep.mubr.msk.bf16.mxu0 %vm20850_vm1, %v20849_v25 }
 0xcb1   :  { %19408 = vmatpush3.bf16.msra.mxu1 %v24736_v2  ;;  %19416 = vmatpush3.bf16.msra.mxu0 %v24736_v2 }
 0xcb2   :  { %19421 = vmatprep.subr.bf16.mxu1 %v20849_v25  ;;  %19429 = vmatprep.subr.bf16.mxu0 %v20849_v25 }
 0xcb4   :  { %19410 = vmatmul.mubr.msk.bf16.vlgmr.msra.gmra.mrb[152].mxu1 %vm11810_vm2, %v16801_v27  ;;  %19418 = vmatmul.mubr.msk.bf16.vlgmr.msra.gmra.mrb[152].mxu0 %vm11810_vm2, %v16803_v40  ;;  %v20661_v27 = vld [vmem:[%s25667_s13 + $0x158] sm:$0xff]  }
 0xcb5   :  { %19422 = vmatpush3.bf16.msra.mxu1 %v11807_v58  ;;  %19430 = vmatpush3.bf16.msra.mxu0 %v11807_v58 }
 0xcb6   :  { %19423 = vmatprep.subr.bf16.mxu1 %v20849_v25  ;;  %19431 = vmatprep.subr.bf16.mxu0 %v20849_v25 }
 0xcb7   :  { %19425 = vmatprep.mubr.msk.bf16.mxu1 %vm20850_vm1, %v20849_v25  ;;  %19433 = vmatprep.mubr.msk.bf16.mxu0 %vm20850_vm1, %v20849_v25 }
 0xcb9   :  { %19424 = vmatpush3.bf16.msra.mxu1 %v24736_v2  ;;  %19432 = vmatpush3.bf16.msra.mxu0 %v24736_v2 }
 0xcba   :  { %19437 = vmatprep.subr.bf16.mxu1 %v20849_v25  ;;  %19445 = vmatprep.subr.bf16.mxu0 %v20849_v25 }
 0xcbc   :  { %19426 = vmatmul.mubr.msk.bf16.vlgmr.msra.gmra.mrb[156].mxu1 %vm11810_vm2, %v16805_v60  ;;  %19434 = vmatmul.mubr.msk.bf16.vlgmr.msra.gmra.mrb[156].mxu0 %vm11810_vm2, %v16807_v8  ;;  %v20679_v8 = vld [vmem:[%s25667_s13 + $0x1c8] sm:$0xff]  }
 0xcbd   :  { %19438 = vmatpush3.bf16.msra.mxu1 %v11807_v58  ;;  %19446 = vmatpush3.bf16.msra.mxu0 %v11807_v58 }
 0xcbe   :  { %19439 = vmatprep.subr.bf16.mxu1 %v20849_v25  ;;  %19447 = vmatprep.subr.bf16.mxu0 %v20849_v25 }
 0xcbf   :  { %19441 = vmatprep.mubr.msk.bf16.mxu1 %vm20850_vm1, %v20849_v25  ;;  %19449 = vmatprep.mubr.msk.bf16.mxu0 %vm20850_vm1, %v20849_v25 }
 0xcc1   :  { %19440 = vmatpush3.bf16.msra.mxu1 %v24736_v2  ;;  %19448 = vmatpush3.bf16.msra.mxu0 %v24736_v2 }
 0xcc2   :  { %19453 = vmatprep.subr.bf16.mxu1 %v20849_v25  ;;  %17996 = vmatprep.subr.bf16.mxu0 %v20629_v3 }
 0xcc4   :  { %19442 = vmatmul.mubr.msk.bf16.vlgmr.msra.gmra.mrb[160].mxu1 %vm11810_vm2, %v16809_v32  ;;  %19450 = vmatmul.mubr.msk.bf16.vlgmr.msra.gmra.mrb[160].mxu0 %vm11810_vm2, %v16811_v11  ;;  %v20662_v11 = vld [vmem:[%s25667_s13 + $0x118] sm:$0xff]  }
 0xcc5   :  { %19454 = vmatpush3.bf16.msra.mxu1 %v11807_v58  ;;  %19457 = vmatprep.mubr.msk.bf16.mxu1 %vm20850_vm1, %v20849_v25 }
 0xcc6   :  { %19455 = vmatprep.subr.bf16.mxu1 %v20849_v25  ;;  %17997 = vmatpush3.bf16.msra.mxu0 %v20630_v17  ;;  %v20680_v17 = vld [vmem:[%s25667_s13 + $0x188] sm:$0xff]  }
 0xcc7   :  { %17998 = vmatprep.subr.bf16.mxu0 %v20631_v10  ;;  %v20665_v10 = vld [vmem:[%s25667_s13 + $0x160] sm:$0xff]  }
 0xcc9   :  { %19456 = vmatpush3.bf16.msra.mxu1 %v24736_v2 }
 0xcca   :  { %17999 = vmatpush3.bf16.msra.mxu0 %v20632_v37  ;;  %18018 = vmatprep.subr.bf16.mxu1 %v20643_v36  ;;  %v20682_v37 = vld [vmem:[%s25667_s13 + $0x1d0] sm:$0xff]  }
 0xccb   :  { %18000 = vmatprep.subr.bf16.mxu0 %v20633_v42 }
 0xccc   :  { %19458 = vmatmul.mubr.msk.bf16.vlgmr.msra.gmra.mrb[164].mxu1 %vm11810_vm2, %v16813_v55  ;;  %v20666_v55 = vld [vmem:[%s25667_s13 + $0x120] sm:$0xff]  }
 0xccd   :  { %18019 = vmatpush3.bf16.msra.mxu1 %v20645_v19 }
 0xcce   :  { %18001 = vmatpush3.bf16.msra.mxu0 %v20634_v54  ;;  %18020 = vmatprep.subr.bf16.mxu1 %v20647_v38  ;;  %v20683_v54 = vld [vmem:[%s25667_s13 + $0x190] sm:$0xff]   ;;  %v20686_v38 = vld [vmem:[%s25667_s13 + $0x198] sm:$0xff]  }
 0xccf   :  { %18002 = vmatprep.subr.bf16.mxu0 %v20635_v45 }
 0xcd1   :  { %18021 = vmatpush3.bf16.msra.mxu1 %v20648_v51  ;;  %v20673_v51 = vld [vmem:[%s25667_s13 + $0x170] sm:$0xff]  }
 0xcd2   :  { %18003 = vmatpush3.bf16.msra.mxu0 %v20636_v16  ;;  %18022 = vmatprep.subr.bf16.mxu1 %v20651_v7  ;;  %v20688_v7 = vld [vmem:[%s25667_s13 + $0x1e0] sm:$0xff]  }
 0xcd3   :  { %18004 = vmatprep.subr.bf16.mxu0 %v20637_v31  ;;  %v20669_v31 = vld [vmem:[%s25667_s13 + $0x168] sm:$0xff]  }
 0xcd5   :  { %18023 = vmatpush3.bf16.msra.mxu1 %v20652_v52 }
 0xcd6   :  { %18005 = vmatpush3.bf16.msra.mxu0 %v20638_v26  ;;  %18024 = vmatprep.subr.bf16.mxu1 %v20655_v48  ;;  %v20685_v26 = vld [vmem:[%s25667_s13 + $0x1d8] sm:$0xff]  }
 0xcd7   :  { %18006 = vmatprep.subr.bf16.mxu0 %v20639_v49 }
 0xcd9   :  { %18025 = vmatpush3.bf16.msra.mxu1 %v20656_v29  ;;  %v20674_v29 = vld [vmem:[%s25667_s13 + $0x130] sm:$0xff]  }
 0xcda   :  { %18007 = vmatpush3.bf16.msra.mxu0 %v20640_v18  ;;  %18026 = vmatprep.subr.bf16.mxu1 %v20659_v21 }
 0xcdb   :  { %18008 = vmatprep.subr.bf16.mxu0 %v20641_v28 }
 0xcdd   :  { %18027 = vmatpush3.bf16.msra.mxu1 %v20660_v61 }
 0xcde   :  { %18009 = vmatpush3.bf16.msra.mxu0 %v20642_v22  ;;  %18028 = vmatprep.subr.bf16.mxu1 %v20663_v12  ;;  %v20676_v12 = vld [vmem:[%s25667_s13 + $0x178] sm:$0xff]  }
 0xcdf   :  { %18010 = vmatprep.subr.bf16.mxu0 %v20644_v4  ;;  %v20670_v4 = vld [vmem:[%s25667_s13 + $0x128] sm:$0xff]  }
 0xce1   :  { %18029 = vmatpush3.bf16.msra.mxu1 %v20664_v59  ;;  %v20691_v59 = vld [vmem:[%s25667_s13 + $0x1e8] sm:$0xff]  }
 0xce2   :  { %18011 = vmatpush3.bf16.msra.mxu0 %v20646_v24  ;;  %18030 = vmatprep.subr.bf16.mxu1 %v20667_v47  ;;  %v20689_v24 = vld [vmem:[%s25667_s13 + $0x1a0] sm:$0xff]  }
 0xce3   :  { %18040 = vmatprep.subr.bf16.mxu0 %v20649_v41 }
 0xce5   :  { %18031 = vmatpush3.bf16.msra.mxu1 %v20668_v44 }
 0xce6   :  { %18032 = vmatprep.subr.bf16.mxu1 %v20671_v5 }
 0xce9   :  { %18033 = vmatpush3.bf16.msra.mxu1 %v20672_v1 }
 0xcea   :  { %18062 = vmatprep.subr.bf16.mxu1 %v20675_v13  ;;  %v20678_v13 = vld [vmem:[%s25667_s13 + $0x138] sm:$0xff]  }
 0xd7f   :  { %v11894_v50 = vpop.f32.mrb[148].mxu0  ;;  %v11848_v63 = vpop.f32.mrb[148].mxu1 }
 0xd80   :  { %v11900_v20 = vpack.c.bf16 %v11894_v50, %v11894_v50  ;;  %v11854_v62 = vpack.c.bf16 %v11848_v63, %v11848_v63  ;;  %v19403_v43 = vpop.f32.mrb[149].mxu0  ;;  %v19395_v0 = vpop.f32.mrb[149].mxu1  ;;  %v20692_v50 = vld [vmem:[%s25667_s13 + $0x1a8] sm:$0xff]   ;;  %v20694_v63 = vld [vmem:[%s25667_s13 + $0x1f0] sm:$0xff]  }
 0xd81   :  { %v11897_v56 = vpop.f32.mrb[150].mxu0  ;;  %v11851_v15 = vpop.f32.mrb[150].mxu1  ;;  %v20695_v43 = vld [vmem:[%s25667_s13 + $0x1b0] sm:$0xff]  }
 0xd82   :  { %12838 = vmatprep.mubr.bf16.mxu0 %v11900_v20  ;;  %v19404_v23 = vpop.f32.mrb[151].mxu0  ;;  %v19396_v57 = vpop.f32.mrb[151].mxu1 }
 0xd83   :  { %12839 = vmatmul.mubr.bf16.vlgmr.msra.gmra.mrb[164].mxu0 %v11854_v62  ;;  %v20684_v23 = vld [vmem:[%s25667_s13 + $0x208] sm:$0xff]   ;;  %v20698_v57 = vld [vmem:[%s25667_s13 + $0x1b8] sm:$0xff]  }
 0xd84   :  { %18041 = vmatpush3.bf16.msra.mxu0 %v20650_v6  ;;  %v20681_v6 = vld [vmem:[%s25667_s13 + $0x200] sm:$0xff]  }
 0xd85   :  { %18042 = vmatprep.subr.bf16.mxu0 %v20653_v33  ;;  %v20697_v33 = vld [vmem:[%s25667_s13 + $0x1f8] sm:$0xff]  }
 0xd87   :  { %v11986_v14 = vpop.f32.mrb[152].mxu0  ;;  %v11940_v46 = vpop.f32.mrb[152].mxu1 }
 0xd88   :  { %18043 = vmatpush3.bf16.msra.mxu0 %v20654_v39  ;;  %v11992_v30 = vpack.c.bf16 %v11986_v14, %v11986_v14  ;;  %v11946_v2 = vpack.c.bf16 %v11940_v46, %v11940_v46  ;;  %v19419_v58 = vpop.f32.mrb[153].mxu0  ;;  %v19411_v35 = vpop.f32.mrb[153].mxu1  ;;  %v20690_v14 = vld [vmem:[%s25667_s13 + $0x218] sm:$0xff]   ;;  %v20693_v46 = vld [vmem:[%s25667_s13 + $0x220] sm:$0xff]  }
 0xd89   :  { %18044 = vmatprep.subr.bf16.mxu0 %v20657_v53  ;;  %v11989_v40 = vpop.f32.mrb[154].mxu0  ;;  %v11943_v60 = vpop.f32.mrb[154].mxu1  ;;  %v20687_v53 = vld [vmem:[%s25667_s13 + $0x210] sm:$0xff]  }
 0xd8a   :  { %12878 = vmatprep.mubr.bf16.mxu1 %v11992_v30  ;;  %v19420_v3 = vpop.f32.mrb[155].mxu0  ;;  %v19412_v32 = vpop.f32.mrb[155].mxu1  ;;  %v20699_v30 = vld [vmem:[%s25667_s13 + $0x230] sm:$0xff]  }
 0xd8b   :  { %12879 = vmatmul.mubr.bf16.vlgmr.msra.gmra.mrb[168].mxu1 %v11946_v2  ;;  %v20700_v2 = vld [vmem:[%s25667_s13 + $0x238] sm:$0xff]  }
 0xd8c   :  { %18045 = vmatpush3.bf16.msra.mxu0 %v20658_v9  ;;  %18063 = vmatpush3.bf16.msra.mxu1 %v20677_v34  ;;  %v20696_v9 = vld [vmem:[%s25667_s13 + $0x228] sm:$0xff]  }
 0xd8d   :  { %18046 = vmatprep.subr.bf16.mxu0 %v20661_v27  ;;  %18064 = vmatprep.subr.bf16.mxu1 %v20679_v8  ;;  %v16815_v8 = vld [vmem:[%s25670_s14] ss:$0 sm:$0xff] }
 0xd8f   :  { %v12078_v36 = vpop.f32.mrb[156].mxu0  ;;  %v12032_v42 = vpop.f32.mrb[156].mxu1 }
 0xd90   :  { %18047 = vmatpush3.bf16.msra.mxu0 %v20662_v11  ;;  %v12084_v19 = vpack.c.bf16 %v12078_v36, %v12078_v36  ;;  %18065 = vmatpush3.bf16.msra.mxu1 %v20680_v17  ;;  %v19435_v45 = vpop.f32.mrb[157].mxu0  ;;  %v19427_v16 = vpop.f32.mrb[157].mxu1  ;;  %v12038_v20 = vpack.c.bf16 %v12032_v42, %v12032_v42 }
 0xd91   :  { %18048 = vmatprep.subr.bf16.mxu0 %v20665_v10  ;;  %18066 = vmatprep.subr.bf16.mxu1 %v20682_v37  ;;  %v12081_v49 = vpop.f32.mrb[158].mxu0  ;;  %v12035_v18 = vpop.f32.mrb[158].mxu1 }
 0xd92   :  { %12918 = vmatprep.mubr.bf16.mxu0 %v12084_v19  ;;  %v19436_v28 = vpop.f32.mrb[159].mxu0  ;;  %v19428_v22 = vpop.f32.mrb[159].mxu1 }
 0xd94   :  { %18049 = vmatpush3.bf16.msra.mxu0 %v20666_v55  ;;  %18067 = vmatpush3.bf16.msra.mxu1 %v20683_v54 }
 0xd95   :  { %18050 = vmatprep.subr.bf16.mxu0 %v20669_v31  ;;  %18068 = vmatprep.subr.bf16.mxu1 %v20685_v26 }
 0xd97   :  { %v12170_v52 = vpop.f32.mrb[160].mxu0  ;;  %v12124_v48 = vpop.f32.mrb[160].mxu1 }
 0xd98   :  { %18051 = vmatpush3.bf16.msra.mxu0 %v20670_v4  ;;  %18069 = vmatpush3.bf16.msra.mxu1 %v20686_v38  ;;  %v12176_v21 = vpack.c.bf16 %v12170_v52, %v12170_v52  ;;  %v19443_v41 = vpop.f32.mrb[161].mxu1  ;;  %v19451_v61 = vpop.f32.mrb[161].mxu0  ;;  %v12130_v39 = vpack.c.bf16 %v12124_v48, %v12124_v48 }
 0xd99   :  { %18052 = vmatprep.subr.bf16.mxu0 %v20673_v51  ;;  %18070 = vmatprep.subr.bf16.mxu1 %v20688_v7  ;;  %v12127_v47 = vpop.f32.mrb[162].mxu1  ;;  %v12173_v44 = vpop.f32.mrb[162].mxu0  ;;  %v16895_v41 = vld [vmem:[%s25671_s15 + $0x10] sm:$0xf]  ;;  %v16889_v61 = vld [vmem:[%s25671_s15 + $0x4] sm:$0xf] }
 0xd9a   :  { %12958 = vmatprep.mubr.bf16.mxu1 %v12176_v21  ;;  %v19444_v5 = vpop.f32.mrb[163].mxu1  ;;  %v19452_v1 = vpop.f32.mrb[163].mxu0  ;;  %v13008_v21 = vld [vmem:[%s25671_s15] sm:$0xf]  ;;  %v16893_v44 = vld [vmem:[%s25671_s15 + $0xc] sm:$0xf] }
 0xd9b   :  { %v16903_v47 = vld [vmem:[%s25671_s15 + $0x20] sm:$0xf]  ;;  %v16897_v5 = vld [vmem:[%s25671_s15 + $0x14] sm:$0xf] }
 0xd9c   :  { %18053 = vmatpush3.bf16.msra.mxu0 %v20674_v29  ;;  %18071 = vmatpush3.bf16.msra.mxu1 %v20689_v24  ;;  %v20701_v1 = vld [vmem:[%s25669_s16 + $0x40] sm:$0xff]  }
 0xd9d   :  { %18054 = vmatprep.subr.bf16.mxu0 %v20676_v12  ;;  %18072 = vmatprep.subr.bf16.mxu1 %v20691_v59  ;;  %v16899_v12 = vld [vmem:[%s25671_s15 + $0x18] sm:$0xf]  ;;  %v16891_v59 = vld [vmem:[%s25671_s15 + $0x8] sm:$0xf] }
 0xd9f   :  { %v12216_v62 = vpop.f32.mrb[164].mxu1 }
 0xda0   :  { %18055 = vmatpush3.bf16.msra.mxu0 %v20678_v13  ;;  %18073 = vmatpush3.bf16.msra.mxu1 %v20692_v50  ;;  %v19459_v0 = vpop.f32.mrb[165].mxu1  ;;  %v12222_v58 = vpack.c.bf16 %v12216_v62, %v12216_v62  ;;  %v16901_v13 = vld [vmem:[%s25671_s15 + $0x1c] sm:$0xf]  ;;  %v20702_v50 = vld [vmem:[%s25669_s16] sm:$0xff]   ;;  %v20705_v62 = vld [vmem:[%s25669_s16 + $0x50] sm:$0xff]  }
 0xda1   :  { %19461 = vmatprep.subr.bf16.mxu0 %v20849_v25  ;;  %18074 = vmatprep.subr.bf16.mxu1 %v20694_v63  ;;  %v12219_v56 = vpop.f32.mrb[166].mxu1  ;;  %v20703_v63 = vld [vmem:[%s25669_s16 + $0x48] sm:$0xff]   ;;  %v20708_v0 = vld [vmem:[%s25669_s16 + $0x18] sm:$0xff]  }
 0xda2   :  { %v19460_v15 = vpop.f32.mrb[167].mxu1  ;;  %v20710_v56 = vld [vmem:[%s25669_s16 + $0x20] sm:$0xff]  }
 0xda3   :  { %12919 = vmatmul.mubr.bf16.vlgmr.msra.gmra.mrb[168].mxu0 %v12038_v20  ;;  %v20704_v20 = vld [vmem:[%s25669_s16 + $0x8] sm:$0xff]  }
 0xda4   :  { %19462 = vmatpush3.bf16.msra.mxu0 %v20681_v6  ;;  %18075 = vmatpush3.bf16.msra.mxu1 %v20695_v43  ;;  %v20706_v6 = vld [vmem:[%s25669_s16 + $0x10] sm:$0xff]   ;;  %v20707_v43 = vld [vmem:[%s25669_s16 + $0x58] sm:$0xff]   ;;  %v20711_v15 = vld [vmem:[%s25669_s16 + $0x68] sm:$0xff]  }
 0xda5   :  { %19463 = vmatprep.subr.bf16.mxu0 %v20849_v25  ;;  %18076 = vmatprep.subr.bf16.mxu1 %v20697_v33  ;;  %v20709_v33 = vld [vmem:[%s25669_s16 + $0x60] sm:$0xff]  }
 0xda6   :  { %19477 = vmatprep.mubr.msk.bf16.mxu0 %vm20850_vm1, %v20849_v25 }
 0xda8   :  { %19464 = vmatpush3.bf16.msra.mxu0 %v20684_v23  ;;  %18077 = vmatpush3.bf16.msra.mxu1 %v20698_v57  ;;  %v20712_v23 = vld [vmem:[%s25669_s16 + $0x28] sm:$0xff]   ;;  %v20713_v57 = vld [vmem:[%s25669_s16 + $0x70] sm:$0xff]  }
 0xda9   :  { %19465 = vmatprep.subr.bf16.mxu0 %v20849_v25  ;;  %19481 = vmatprep.subr.bf16.mxu1 %v20849_v25 }
 0xdab   :  { %12959 = vmatmul.mubr.bf16.vlgmr.msra.gmra.mrb[172].mxu1 %v12130_v39  ;;  %v20714_v39 = vld [vmem:[%s25669_s16 + $0x30] sm:$0xff]  }
 0xdac   :  { %19466 = vmatpush3.bf16.msra.mxu0 %v20687_v53  ;;  %19483 = vmatprep.mubr.msk.bf16.mxu1 %vm20850_vm1, %v20849_v25  ;;  %v20715_v53 = vld [vmem:[%s25669_s16 + $0xc0] sm:$0xff]  }
 0xdad   :  { %19467 = vmatprep.subr.bf16.mxu0 %v20849_v25 }
 0xdb0   :  { %19468 = vmatpush3.bf16.msra.mxu0 %v20690_v14  ;;  %v20717_v14 = vld [vmem:[%s25669_s16 + $0x80] sm:$0xff]  }
 0xdb1   :  { %19469 = vmatprep.subr.bf16.mxu0 %v20849_v25 }
 0xdb4   :  { %19470 = vmatpush3.bf16.msra.mxu0 %v20693_v46  ;;  %v20716_v46 = vld [vmem:[%s25669_s16 + $0x78] sm:$0xff]  }
 0xdb5   :  { %19471 = vmatprep.subr.bf16.mxu0 %v20849_v25 }
 0xdb8   :  { %19472 = vmatpush3.bf16.msra.mxu0 %v20696_v9  ;;  %v20719_v9 = vld [vmem:[%s25669_s16 + $0xc8] sm:$0xff]  }
 0xdb9   :  { %19473 = vmatprep.subr.bf16.mxu0 %v20849_v25 }
 0xdbc   :  { %19474 = vmatpush3.bf16.msra.mxu0 %v20699_v30  ;;  %v20720_v30 = vld [vmem:[%s25669_s16 + $0x88] sm:$0xff]  }
 0xdbd   :  { %19475 = vmatprep.subr.bf16.mxu0 %v20849_v25 }
 0xdc0   :  { %19476 = vmatpush3.bf16.msra.mxu0 %v20700_v2  ;;  %v20718_v2 = vld [vmem:[%s25669_s16 + $0x38] sm:$0xff]  }
 0xdc1   :  { %19505 = vmatprep.subr.bf16.mxu0 %v20849_v25 }
 0xdc3   :  { %19478 = vmatmul.mubr.bf16.vlgmr.msra.gmra.mrb[172].mxu0 %v12222_v58  ;;  %v20723_v58 = vld [vmem:[%s25669_s16 + $0xd0] sm:$0xff]  }
 0xdc4   :  { %19507 = vmatprep.mubr.msk.bf16.mxu0 %vm20850_vm1, %v20849_v25 }
 0xe56   :  { %v18012_v35 = vpop.f32.mrb[164].mxu0 }
 0xe57   :  { %v18013_v34 = vpop.f32.mrb[165].mxu0 }
 0xe58   :  { %v18014_v27 = vadd.f32 %v18013_v34, %v18012_v35  ;;  %v18015_v40 = vpop.f32.mrb[166].mxu0  ;;  %v20724_v35 = vld [vmem:[%s25669_s16 + $0x90] sm:$0xff]   ;;  %v20721_v34 = vld [vmem:[%s25669_s16 + $0x140] sm:$0xff]  }
 0xe59   :  { %v18016_v60 = vpop.f32.mrb[167].mxu0  ;;  %v20728_v40 = vld [vmem:[%s25669_s16 + $0x98] sm:$0xff]  }
 0xe5a   :  { %v12841_v11 = vadd.f32 %v18014_v27, %v16815_v8  ;;  %v20727_v27 = vld [vmem:[%s25669_s16 + $0xd8] sm:$0xff]   ;;  %v20731_v60 = vld [vmem:[%s25669_s16 + $0xe0] sm:$0xff]  }
 0xe5b   :  { %v20732_v8 = vld [vmem:[%s25669_s16 + $0xa0] sm:$0xff]  }
 0xe5e   :  { %v18034_v3 = vpop.f32.mrb[168].mxu1 }
 0xe5f   :  { %v18035_v32 = vpop.f32.mrb[169].mxu1 }
 0xe60   :  { %v18036_v17 = vadd.f32 %v18035_v32, %v18034_v3  ;;  %v18037_v10 = vpop.f32.mrb[170].mxu1  ;;  %v20735_v3 = vld [vmem:[%s25669_s16 + $0xe8] sm:$0xff]  }
 0xe61   :  { %v18038_v37 = vpop.f32.mrb[171].mxu1  ;;  %v20736_v32 = vld [vmem:[%s25669_s16 + $0xa8] sm:$0xff]   ;;  %v20743_v10 = vld [vmem:[%s25669_s16 + $0xf8] sm:$0xff]  }
 0xe62   :  { %v12881_v36 = vadd.f32 %v18036_v17, %v12841_v11  ;;  %v20739_v11 = vld [vmem:[%s25669_s16 + $0xf0] sm:$0xff]   ;;  %v20744_v37 = vld [vmem:[%s25669_s16 + $0xb8] sm:$0xff]  }
 0xe63   :  { %v20740_v17 = vld [vmem:[%s25669_s16 + $0xb0] sm:$0xff]  }
 0xe76   :  { %v18056_v42 = vpop.f32.mrb[168].mxu0 }
 0xe77   :  { %v18057_v55 = vpop.f32.mrb[169].mxu0 }
 0xe78   :  { %v18058_v19 = vadd.f32 %v18057_v55, %v18056_v42  ;;  %v18059_v54 = vpop.f32.mrb[170].mxu0 }
 0xe79   :  { %v18060_v45 = vpop.f32.mrb[171].mxu0 }
 0xe7a   :  { %v12921_v16 = vadd.f32 %v18058_v19, %v12881_v36  ;;  %v20747_v36 = vld [vmem:[%s25669_s16 + $0x1c0] sm:$0xff]  }
 0xe7e   :  { %v18078_v31 = vpop.f32.mrb[172].mxu1 }
 0xe7f   :  { %v18079_v26 = vpop.f32.mrb[173].mxu1 }
 0xe80   :  { %v18080_v49 = vadd.f32 %v18079_v26, %v18078_v31  ;;  %v18081_v18 = vpop.f32.mrb[174].mxu1 }
 0xe81   :  { %v18082_v28 = vpop.f32.mrb[175].mxu1 }
 0xe82   :  { %v12961_v22 = vadd.f32 %v18080_v49, %v12921_v16 }
 0xe96   :  { %v13000_v4 = vpop.f32.mrb[172].mxu0 }
 0xe97   :  { %v13001_v38 = vadd.f32 %v13000_v4, %v12961_v22  ;;  %v19479_v51 = vpop.f32.mrb[173].mxu0  ;;  %v20722_v22 = vld [vmem:[%s25669_s16 + $0x100] sm:$0xff]  }
 0xe98   :  { %v13003_v7 = vpop.f32.mrb[174].mxu0 }
 0xe99   :  { %v13006_v52 = vmax.f32 %v13001_v38, 0.0  ;;  %v19480_v48 = vpop.f32.mrb[175].mxu0  ;;  %v20725_v7 = vld [vmem:[%s25669_s16 + $0x148] sm:$0xff]  }
 0xe9b   :  { %v13007_v29 = vpack.c.bf16 %v13006_v52, %v13006_v52 }
 0xe9d   :  { %v13015_v24 = vsel %vm13013_vm3, %v13007_v29, 0 }
 0xe9e   :  { %19482 = vmatpush3.bf16.msra.mxu1 %v13015_v24  ;;  %19506 = vmatpush3.bf16.msra.mxu0 %v13015_v24 }
 0xe9f   :  { %19487 = vmatprep.subr.bf16.mxu1 %v20849_v25  ;;  %19517 = vmatprep.subr.bf16.mxu0 %v20849_v25 }
 0xea1   :  { %19484 = vmatmul.mubr.msk.bf16.vlgmr.msra.gmra.mrb[176].mxu1 %vm13009_vm4, %v13008_v21  ;;  %19508 = vmatmul.mubr.msk.bf16.vlgmr.msra.gmra.mrb[176].mxu0 %vm13009_vm4, %v16895_v41  ;;  %v20726_v21 = vld [vmem:[%s25669_s16 + $0x108] sm:$0xff]   ;;  %v20729_v41 = vld [vmem:[%s25669_s16 + $0x150] sm:$0xff]  }
 0xea2   :  { %19488 = vmatpush3.bf16.msra.mxu1 %v13015_v24  ;;  %19518 = vmatpush3.bf16.msra.mxu0 %v13015_v24 }
 0xea3   :  { %19489 = vmatprep.mubr.msk.bf16.mxu1 %vm20850_vm1, %v20849_v25  ;;  %19493 = vmatprep.subr.bf16.mxu1 %v20849_v25 }
 0xea4   :  { %19519 = vmatprep.mubr.msk.bf16.mxu0 %vm20850_vm1, %v20849_v25  ;;  %19529 = vmatprep.subr.bf16.mxu0 %v20849_v25 }
 0xea9   :  { %19490 = vmatmul.mubr.msk.bf16.vlgmr.msra.gmra.mrb[180].mxu1 %vm13009_vm4, %v16889_v61  ;;  %19520 = vmatmul.mubr.msk.bf16.vlgmr.msra.gmra.mrb[180].mxu0 %vm13009_vm4, %v16899_v12 }
 0xeaa   :  { %19494 = vmatpush3.bf16.msra.mxu1 %v13015_v24  ;;  %19530 = vmatpush3.bf16.msra.mxu0 %v13015_v24 }
 0xeab   :  { %19495 = vmatprep.mubr.msk.bf16.mxu1 %vm20850_vm1, %v20849_v25  ;;  %19499 = vmatprep.subr.bf16.mxu1 %v20849_v25 }
 0xeac   :  { %19531 = vmatprep.mubr.msk.bf16.mxu0 %vm20850_vm1, %v20849_v25  ;;  %18133 = vmatprep.subr.bf16.mxu0 %v20715_v53 }
 0xeb1   :  { %19496 = vmatmul.mubr.msk.bf16.vlgmr.msra.gmra.mrb[184].mxu1 %vm13009_vm4, %v16891_v59  ;;  %19532 = vmatmul.mubr.msk.bf16.vlgmr.msra.gmra.mrb[184].mxu0 %vm13009_vm4, %v16903_v47  ;;  %v20730_v59 = vld [vmem:[%s25669_s16 + $0x110] sm:$0xff]  }
 0xeb2   :  { %19500 = vmatpush3.bf16.msra.mxu1 %v13015_v24  ;;  %19501 = vmatprep.mubr.msk.bf16.mxu1 %vm20850_vm1, %v20849_v25 }
 0xeb3   :  { %19511 = vmatprep.subr.bf16.mxu1 %v20849_v25  ;;  %18134 = vmatpush3.bf16.msra.mxu0 %v20717_v14  ;;  %v20742_v14 = vld [vmem:[%s25669_s16 + $0x128] sm:$0xff]  }
 0xeb4   :  { %18135 = vmatprep.subr.bf16.mxu0 %v20719_v9  ;;  %v20745_v9 = vld [vmem:[%s25669_s16 + $0x170] sm:$0xff]  }
 0xeb7   :  { %18136 = vmatpush3.bf16.msra.mxu0 %v20720_v30  ;;  %v20754_v30 = vld [vmem:[%s25669_s16 + $0x1d0] sm:$0xff]  }
 0xeb8   :  { %18137 = vmatprep.subr.bf16.mxu0 %v20723_v58  ;;  %v20746_v58 = vld [vmem:[%s25669_s16 + $0x130] sm:$0xff]  }
 0xeb9   :  { %19502 = vmatmul.mubr.msk.bf16.vlgmr.msra.gmra.mrb[188].mxu1 %vm13009_vm4, %v16893_v44 }
 0xeba   :  { %19512 = vmatpush3.bf16.msra.mxu1 %v13015_v24  ;;  %19513 = vmatprep.mubr.msk.bf16.mxu1 %vm20850_vm1, %v20849_v25 }
 0xebb   :  { %19523 = vmatprep.subr.bf16.mxu1 %v20849_v25  ;;  %18138 = vmatpush3.bf16.msra.mxu0 %v20724_v35 }
 0xebc   :  { %18139 = vmatprep.subr.bf16.mxu0 %v20727_v27 }
 0xebf   :  { %18140 = vmatpush3.bf16.msra.mxu0 %v20728_v40  ;;  %v20748_v40 = vld [vmem:[%s25669_s16 + $0x178] sm:$0xff]  }
 0xec0   :  { %18141 = vmatprep.subr.bf16.mxu0 %v20731_v60  ;;  %v20757_v60 = vld [vmem:[%s25669_s16 + $0x1d8] sm:$0xff]  }
 0xec1   :  { %19514 = vmatmul.mubr.msk.bf16.vlgmr.msra.gmra.mrb[192].mxu1 %vm13009_vm4, %v16897_v5  ;;  %v20733_v5 = vld [vmem:[%s25669_s16 + $0x158] sm:$0xff]  }
 0xec2   :  { %19524 = vmatpush3.bf16.msra.mxu1 %v13015_v24  ;;  %19525 = vmatprep.mubr.msk.bf16.mxu1 %vm20850_vm1, %v20849_v25 }
 0xec3   :  { %18111 = vmatprep.subr.bf16.mxu1 %v20701_v1  ;;  %18142 = vmatpush3.bf16.msra.mxu0 %v20732_v8 }
 0xec4   :  { %18143 = vmatprep.subr.bf16.mxu0 %v20735_v3 }
 0xec7   :  { %18144 = vmatpush3.bf16.msra.mxu0 %v20736_v32  ;;  %v20750_v32 = vld [vmem:[%s25669_s16 + $0x138] sm:$0xff]  }
 0xec8   :  { %18145 = vmatprep.subr.bf16.mxu0 %v20739_v11  ;;  %v20758_v11 = vld [vmem:[%s25669_s16 + $0x198] sm:$0xff]  }
 0xec9   :  { %19526 = vmatmul.mubr.msk.bf16.vlgmr.msra.gmra.mrb[196].mxu1 %vm13009_vm4, %v16901_v13 }
 0xeca   :  { %18112 = vmatpush3.bf16.msra.mxu1 %v20702_v50 }
 0xecb   :  { %18113 = vmatprep.subr.bf16.mxu1 %v20703_v63  ;;  %18146 = vmatpush3.bf16.msra.mxu0 %v20740_v17  ;;  %v20760_v17 = vld [vmem:[%s25669_s16 + $0x1e0] sm:$0xff]  }
 0xecc   :  { %18147 = vmatprep.subr.bf16.mxu0 %v20743_v10 }
 0xece   :  { %18114 = vmatpush3.bf16.msra.mxu1 %v20704_v20  ;;  %v20734_v20 = vld [vmem:[%s25669_s16 + $0x118] sm:$0xff]  }
 0xecf   :  { %18115 = vmatprep.subr.bf16.mxu1 %v20705_v62  ;;  %18148 = vmatpush3.bf16.msra.mxu0 %v20744_v37  ;;  %v20737_v62 = vld [vmem:[%s25669_s16 + $0x160] sm:$0xff]  }
 0xed0   :  { %18177 = vmatprep.subr.bf16.mxu0 %v20747_v36  ;;  %v20753_v36 = vld [vmem:[%s25669_s16 + $0x200] sm:$0xff]  }
 0xed2   :  { %18116 = vmatpush3.bf16.msra.mxu1 %v20706_v6 }
 0xed3   :  { %18117 = vmatprep.subr.bf16.mxu1 %v20707_v43 }
 0xed6   :  { %18118 = vmatpush3.bf16.msra.mxu1 %v20708_v0  ;;  %v20738_v0 = vld [vmem:[%s25669_s16 + $0x120] sm:$0xff]  }
 0xed7   :  { %18119 = vmatprep.subr.bf16.mxu1 %v20709_v33 }
 0xeda   :  { %18120 = vmatpush3.bf16.msra.mxu1 %v20710_v56 }
 0xedb   :  { %18121 = vmatprep.subr.bf16.mxu1 %v20711_v15  ;;  %v20749_v15 = vld [vmem:[%s25669_s16 + $0x180] sm:$0xff]  }
 0xede   :  { %18122 = vmatpush3.bf16.msra.mxu1 %v20712_v23  ;;  %v20741_v23 = vld [vmem:[%s25669_s16 + $0x168] sm:$0xff]  }
 0xedf   :  { %18123 = vmatprep.subr.bf16.mxu1 %v20713_v57 }
 0xee2   :  { %18124 = vmatpush3.bf16.msra.mxu1 %v20714_v39  ;;  %v20751_v39 = vld [vmem:[%s25669_s16 + $0x1c8] sm:$0xff]  }
 0xee3   :  { %18125 = vmatprep.subr.bf16.mxu1 %v20716_v46  ;;  %v20752_v46 = vld [vmem:[%s25669_s16 + $0x188] sm:$0xff]  }
 0xee6   :  { %18126 = vmatpush3.bf16.msra.mxu1 %v20718_v2 }
 0xee7   :  { %18155 = vmatprep.subr.bf16.mxu1 %v20721_v34  ;;  %v20755_v34 = vld [vmem:[%s25669_s16 + $0x190] sm:$0xff]  }
 0xf74   :  { %v13051_v42 = vpop.f32.mrb[176].mxu1  ;;  %v25208_v55 = vpop.f32.mrb[176].mxu0 }
 0xf75   :  { %v19485_v19 = vpop.f32.mrb[177].mxu1  ;;  %v19509_v54 = vpop.f32.mrb[177].mxu0  ;;  %v13057_v51 = vpack.c.bf16 %v13051_v42, %v13051_v42  ;;  %v13241_v10 = vpack.c.bf16 %v25208_v55, %v25208_v55  ;;  %v20761_v42 = vld [vmem:[%s25669_s16 + $0x1a0] sm:$0xff]   ;;  %v20763_v55 = vld [vmem:[%s25669_s16 + $0x1e8] sm:$0xff]  }
 0xf76   :  { %v13054_v45 = vpop.f32.mrb[178].mxu1  ;;  %v13238_v16 = vpop.f32.mrb[178].mxu0 }
 0xf77   :  { %v19486_v31 = vpop.f32.mrb[179].mxu1  ;;  %v19510_v26 = vpop.f32.mrb[179].mxu0 }
 0xf78   :  { %v20756_v31 = vld [vmem:[%s25669_s16 + $0x208] sm:$0xff]  }
 0xf79   :  { %v20764_v26 = vld [vmem:[%s25669_s16 + $0x1a8] sm:$0xff]  }
 0xf7c   :  { %v13097_v49 = vpop.f32.mrb[180].mxu1  ;;  %v25210_v18 = vpop.f32.mrb[180].mxu0 }
 0xf7d   :  { %v13103_v28 = vpack.c.bf16 %v13097_v49, %v13097_v49  ;;  %v19491_v4 = vpop.f32.mrb[181].mxu1  ;;  %v19521_v38 = vpop.f32.mrb[181].mxu0  ;;  %v20766_v49 = vld [vmem:[%s25669_s16 + $0x1f0] sm:$0xff]  }
 0xf7e   :  { %v13100_v52 = vpop.f32.mrb[182].mxu1  ;;  %v13330_v48 = vpop.f32.mrb[182].mxu0  ;;  %v20769_v4 = vld [vmem:[%s25669_s16 + $0x1f8] sm:$0xff]  }
 0xf7f   :  { %14041 = vmatprep.mubr.bf16.mxu1 %v13103_v28  ;;  %v19492_v29 = vpop.f32.mrb[183].mxu1  ;;  %v19522_v24 = vpop.f32.mrb[183].mxu0  ;;  %v20759_v28 = vld [vmem:[%s25669_s16 + $0x210] sm:$0xff]   ;;  %v20762_v38 = vld [vmem:[%s25669_s16 + $0x218] sm:$0xff]   ;;  %v20765_v52 = vld [vmem:[%s25669_s16 + $0x220] sm:$0xff]  }
 0xf80   :  { %14042 = vmatmul.mubr.bf16.vlgmr.msra.gmra.mrb[200].mxu1 %v13057_v51  ;;  %v20770_v51 = vld [vmem:[%s25669_s16 + $0x1b8] sm:$0xff]   ;;  %v20768_v48 = vld [vmem:[%s25669_s16 + $0x228] sm:$0xff]  }
 0xf81   :  { %18156 = vmatpush3.bf16.msra.mxu1 %v20722_v22  ;;  %v20767_v22 = vld [vmem:[%s25669_s16 + $0x1b0] sm:$0xff]   ;;  %v20772_v29 = vld [vmem:[%s25669_s16 + $0x238] sm:$0xff]  }
 0xf82   :  { %18157 = vmatprep.subr.bf16.mxu1 %v20725_v7  ;;  %v13333_v7 = vpack.c.bf16 %v25210_v18, %v25210_v18  ;;  %v20771_v18 = vld [vmem:[%s25669_s16 + $0x230] sm:$0xff]  }
 0xf84   :  { %v13143_v61 = vpop.f32.mrb[184].mxu1  ;;  %v25224_v12 = vpop.f32.mrb[184].mxu0 }
 0xf85   :  { %18158 = vmatpush3.bf16.msra.mxu1 %v20726_v21  ;;  %v19497_v47 = vpop.f32.mrb[185].mxu1  ;;  %v19533_v44 = vpop.f32.mrb[185].mxu0  ;;  %v13149_v6 = vpack.c.bf16 %v13143_v61, %v13143_v61  ;;  %v13425_v24 = vpack.c.bf16 %v25224_v12, %v25224_v12 }
 0xf86   :  { %18159 = vmatprep.subr.bf16.mxu1 %v20729_v41  ;;  %v13146_v1 = vpop.f32.mrb[186].mxu1  ;;  %v13422_v13 = vpop.f32.mrb[186].mxu0  ;;  %v16905_v44 = vld [vmem:[%s25673_s17] ss:$0 sm:$0xff] }
 0xf87   :  { %v19498_v50 = vpop.f32.mrb[187].mxu1  ;;  %v19534_v63 = vpop.f32.mrb[187].mxu0 }
 0xf89   :  { %18160 = vmatpush3.bf16.msra.mxu1 %v20730_v59 }
 0xf8a   :  { %18161 = vmatprep.subr.bf16.mxu1 %v20733_v5 }
 0xf8c   :  { %v13189_v43 = vpop.f32.mrb[188].mxu1 }
 0xf8d   :  { %18162 = vmatpush3.bf16.msra.mxu1 %v20734_v20  ;;  %v13195_v33 = vpack.c.bf16 %v13189_v43, %v13189_v43  ;;  %v19503_v56 = vpop.f32.mrb[189].mxu1 }
 0xf8e   :  { %18163 = vmatprep.subr.bf16.mxu1 %v20737_v62  ;;  %v13192_v57 = vpop.f32.mrb[190].mxu1 }
 0xf8f   :  { %14081 = vmatprep.mubr.bf16.mxu0 %v13195_v33  ;;  %v19504_v53 = vpop.f32.mrb[191].mxu1 }
 0xf90   :  { %14082 = vmatmul.mubr.bf16.vlgmr.msra.gmra.mrb[188].mxu0 %v13149_v6 }
 0xf91   :  { %18164 = vmatpush3.bf16.msra.mxu1 %v20738_v0  ;;  %18178 = vmatpush3.bf16.msra.mxu0 %v20749_v15 }
 0xf92   :  { %18165 = vmatprep.subr.bf16.mxu1 %v20741_v23  ;;  %18179 = vmatprep.subr.bf16.mxu0 %v20751_v39 }
 0xf94   :  { %v13281_v2 = vpop.f32.mrb[192].mxu1 }
 0xf95   :  { %18166 = vmatpush3.bf16.msra.mxu1 %v20742_v14  ;;  %v13287_v35 = vpack.c.bf16 %v13281_v2, %v13281_v2  ;;  %18180 = vmatpush3.bf16.msra.mxu0 %v20752_v46  ;;  %v19515_v27 = vpop.f32.mrb[193].mxu1 }
 0xf96   :  { %18167 = vmatprep.subr.bf16.mxu1 %v20745_v9  ;;  %18181 = vmatprep.subr.bf16.mxu0 %v20754_v30  ;;  %v13284_v8 = vpop.f32.mrb[194].mxu1 }
 0xf97   :  { %14121 = vmatprep.mubr.bf16.mxu1 %v13287_v35  ;;  %v19516_v3 = vpop.f32.mrb[195].mxu1  ;;  %v16979_v8 = vld [vmem:[%s25674_s18 + $0x4] sm:$0xf] }
 0xf98   :  { %v16989_v3 = vld [vmem:[%s25674_s18 + $0x18] sm:$0xf] }
 0xf99   :  { %18168 = vmatpush3.bf16.msra.mxu1 %v20746_v58  ;;  %18182 = vmatpush3.bf16.msra.mxu0 %v20755_v34 }
 0xf9a   :  { %18169 = vmatprep.subr.bf16.mxu1 %v20748_v40  ;;  %18183 = vmatprep.subr.bf16.mxu0 %v20757_v60  ;;  %v14211_v40 = vld [vmem:[%s25674_s18] sm:$0xf]  ;;  %v16985_v60 = vld [vmem:[%s25674_s18 + $0x10] sm:$0xf] }
 0xf9c   :  { %v13373_v37 = vpop.f32.mrb[196].mxu1 }
 0xf9d   :  { %18170 = vmatpush3.bf16.msra.mxu1 %v20750_v32  ;;  %18184 = vmatpush3.bf16.msra.mxu0 %v20758_v11  ;;  %v13379_v19 = vpack.c.bf16 %v13373_v37, %v13373_v37  ;;  %v19527_v54 = vpop.f32.mrb[197].mxu1  ;;  %v16981_v32 = vld [vmem:[%s25674_s18 + $0x8] sm:$0xf]  ;;  %v16993_v11 = vld [vmem:[%s25674_s18 + $0x20] sm:$0xf] }
 0xf9e   :  { %19535 = vmatprep.subr.bf16.mxu1 %v20849_v25  ;;  %18185 = vmatprep.subr.bf16.mxu0 %v20760_v17  ;;  %v13376_v45 = vpop.f32.mrb[198].mxu1  ;;  %v16983_v17 = vld [vmem:[%s25674_s18 + $0xc] sm:$0xf]  ;;  %v20773_v37 = vld [vmem:[%s25672_s19 + $0x40] sm:$0xff]  }
 0xf9f   :  { %14161 = vmatprep.mubr.bf16.mxu0 %v13379_v19  ;;  %v19528_v16 = vpop.f32.mrb[199].mxu1  ;;  %v20775_v19 = vld [vmem:[%s25672_s19 + $0x48] sm:$0xff]   ;;  %v20778_v45 = vld [vmem:[%s25672_s19 + $0x10] sm:$0xff]  }
 0xfa0   :  { %14122 = vmatmul.mubr.bf16.vlgmr.msra.gmra.mrb[204].mxu1 %v13241_v10  ;;  %v16987_v10 = vld [vmem:[%s25674_s18 + $0x14] sm:$0xf]  ;;  %v20776_v54 = vld [vmem:[%s25672_s19 + $0x8] sm:$0xff]   ;;  %v20779_v16 = vld [vmem:[%s25672_s19 + $0x58] sm:$0xff]  }
 0xfa1   :  { %19536 = vmatpush3.bf16.msra.mxu1 %v20753_v36  ;;  %18186 = vmatpush3.bf16.msra.mxu0 %v20761_v42  ;;  %v16991_v36 = vld [vmem:[%s25674_s18 + $0x1c] sm:$0xf]  ;;  %v20774_v42 = vld [vmem:[%s25672_s19] sm:$0xff]  }
 0xfa2   :  { %19537 = vmatprep.subr.bf16.mxu1 %v20849_v25  ;;  %18187 = vmatprep.subr.bf16.mxu0 %v20763_v55  ;;  %v20777_v55 = vld [vmem:[%s25672_s19 + $0x50] sm:$0xff]  }
 0xfa3   :  { %19551 = vmatprep.mubr.msk.bf16.mxu1 %vm20850_vm1, %v20849_v25 }
 0xfa5   :  { %19538 = vmatpush3.bf16.msra.mxu1 %v20756_v31  ;;  %18188 = vmatpush3.bf16.msra.mxu0 %v20764_v26  ;;  %v20780_v31 = vld [vmem:[%s25672_s19 + $0x18] sm:$0xff]   ;;  %v20781_v26 = vld [vmem:[%s25672_s19 + $0x60] sm:$0xff]  }
 0xfa6   :  { %19539 = vmatprep.subr.bf16.mxu1 %v20849_v25  ;;  %18189 = vmatprep.subr.bf16.mxu0 %v20766_v49  ;;  %v20782_v49 = vld [vmem:[%s25672_s19 + $0x20] sm:$0xff]  }
 0xfa9   :  { %19540 = vmatpush3.bf16.msra.mxu1 %v20759_v28  ;;  %18190 = vmatpush3.bf16.msra.mxu0 %v20767_v22  ;;  %v20783_v28 = vld [vmem:[%s25672_s19 + $0x68] sm:$0xff]  }
 0xfaa   :  { %19541 = vmatprep.subr.bf16.mxu1 %v20849_v25  ;;  %18191 = vmatprep.subr.bf16.mxu0 %v20769_v4  ;;  %v20784_v22 = vld [vmem:[%s25672_s19 + $0x28] sm:$0xff]   ;;  %v20785_v4 = vld [vmem:[%s25672_s19 + $0x70] sm:$0xff]  }
 0xfad   :  { %19542 = vmatpush3.bf16.msra.mxu1 %v20762_v38  ;;  %18192 = vmatpush3.bf16.msra.mxu0 %v20770_v51  ;;  %v20787_v38 = vld [vmem:[%s25672_s19 + $0xc0] sm:$0xff]   ;;  %v20786_v51 = vld [vmem:[%s25672_s19 + $0x30] sm:$0xff]  }
 0xfae   :  { %19543 = vmatprep.subr.bf16.mxu1 %v20849_v25  ;;  %19555 = vmatprep.subr.bf16.mxu0 %v20849_v25 }
 0xfb0   :  { %14162 = vmatmul.mubr.bf16.vlgmr.msra.gmra.mrb[192].mxu0 %v13333_v7  ;;  %v20789_v7 = vld [vmem:[%s25672_s19 + $0x80] sm:$0xff]  }
 0xfb1   :  { %19544 = vmatpush3.bf16.msra.mxu1 %v20765_v52  ;;  %19557 = vmatprep.mubr.msk.bf16.mxu0 %vm20850_vm1, %v20849_v25  ;;  %v20788_v52 = vld [vmem:[%s25672_s19 + $0x78] sm:$0xff]  }
 0xfb2   :  { %19545 = vmatprep.subr.bf16.mxu1 %v20849_v25 }
 0xfb5   :  { %19546 = vmatpush3.bf16.msra.mxu1 %v20768_v48  ;;  %v20791_v48 = vld [vmem:[%s25672_s19 + $0xc8] sm:$0xff]  }
 0xfb6   :  { %19547 = vmatprep.subr.bf16.mxu1 %v20849_v25 }
 0xfb9   :  { %19548 = vmatpush3.bf16.msra.mxu1 %v20771_v18  ;;  %v20792_v18 = vld [vmem:[%s25672_s19 + $0x88] sm:$0xff]  }
 0xfba   :  { %19549 = vmatprep.subr.bf16.mxu1 %v20849_v25 }
 0xfbd   :  { %19550 = vmatpush3.bf16.msra.mxu1 %v20772_v29  ;;  %v20795_v29 = vld [vmem:[%s25672_s19 + $0xd0] sm:$0xff]  }
 0xfbe   :  { %19579 = vmatprep.subr.bf16.mxu1 %v20849_v25 }
 0xfc0   :  { %19552 = vmatmul.mubr.bf16.vlgmr.msra.gmra.mrb[208].mxu1 %v13425_v24  ;;  %v20790_v24 = vld [vmem:[%s25672_s19 + $0x38] sm:$0xff]  }
 0xfc1   :  { %19581 = vmatprep.mubr.msk.bf16.mxu1 %vm20850_vm1, %v20849_v25 }
0x1053   :  { %v18127_v21 = vpop.f32.mrb[200].mxu1 }
0x1054   :  { %v18128_v41 = vpop.f32.mrb[201].mxu1 }
0x1055   :  { %v18129_v61 = vadd.f32 %v18128_v41, %v18127_v21  ;;  %v18130_v59 = vpop.f32.mrb[202].mxu1  ;;  %v20796_v21 = vld [vmem:[%s25672_s19 + $0x90] sm:$0xff]   ;;  %v20793_v41 = vld [vmem:[%s25672_s19 + $0x140] sm:$0xff]  }
0x1056   :  { %v18131_v47 = vpop.f32.mrb[203].mxu1  ;;  %v20800_v59 = vld [vmem:[%s25672_s19 + $0x98] sm:$0xff]  }
0x1057   :  { %v14044_v13 = vadd.f32 %v18129_v61, %v16905_v44  ;;  %v20799_v61 = vld [vmem:[%s25672_s19 + $0xd8] sm:$0xff]   ;;  %v20803_v47 = vld [vmem:[%s25672_s19 + $0xe0] sm:$0xff]  }
0x1058   :  { %v20804_v44 = vld [vmem:[%s25672_s19 + $0xa0] sm:$0xff]  }
0x1063   :  { %v18149_v5 = vpop.f32.mrb[188].mxu0 }
0x1064   :  { %v18150_v1 = vpop.f32.mrb[189].mxu0 }
0x1065   :  { %v18151_v12 = vadd.f32 %v18150_v1, %v18149_v5  ;;  %v18152_v50 = vpop.f32.mrb[190].mxu0  ;;  %v20807_v5 = vld [vmem:[%s25672_s19 + $0xe8] sm:$0xff]  }
0x1066   :  { %v18153_v63 = vpop.f32.mrb[191].mxu0  ;;  %v20808_v1 = vld [vmem:[%s25672_s19 + $0xa8] sm:$0xff]   ;;  %v20815_v50 = vld [vmem:[%s25672_s19 + $0xf8] sm:$0xff]  }
0x1067   :  { %v14084_v20 = vadd.f32 %v18151_v12, %v14044_v13  ;;  %v20811_v13 = vld [vmem:[%s25672_s19 + $0xf0] sm:$0xff]   ;;  %v20816_v63 = vld [vmem:[%s25672_s19 + $0xb8] sm:$0xff]  }
0x1068   :  { %v20812_v12 = vld [vmem:[%s25672_s19 + $0xb0] sm:$0xff]  }
0x1073   :  { %v18171_v62 = vpop.f32.mrb[204].mxu1 }
0x1074   :  { %v18172_v6 = vpop.f32.mrb[205].mxu1 }
0x1075   :  { %v18173_v43 = vadd.f32 %v18172_v6, %v18171_v62  ;;  %v18174_v0 = vpop.f32.mrb[206].mxu1 }
0x1076   :  { %v18175_v33 = vpop.f32.mrb[207].mxu1 }
0x1077   :  { %v14124_v56 = vadd.f32 %v18173_v43, %v14084_v20  ;;  %v20819_v20 = vld [vmem:[%s25672_s19 + $0x1c0] sm:$0xff]  }
0x1083   :  { %v18193_v15 = vpop.f32.mrb[192].mxu0 }
0x1084   :  { %v18194_v23 = vpop.f32.mrb[193].mxu0 }
0x1085   :  { %v18195_v57 = vadd.f32 %v18194_v23, %v18193_v15  ;;  %v18196_v39 = vpop.f32.mrb[194].mxu0 }
0x1086   :  { %v18197_v53 = vpop.f32.mrb[195].mxu0 }
0x1087   :  { %v14164_v14 = vadd.f32 %v18195_v57, %v14124_v56 }
0x1093   :  { %v14203_v46 = vpop.f32.mrb[208].mxu1 }
0x1094   :  { %v14204_v9 = vadd.f32 %v14203_v46, %v14164_v14  ;;  %v19553_v30 = vpop.f32.mrb[209].mxu1  ;;  %v20794_v14 = vld [vmem:[%s25672_s19 + $0x100] sm:$0xff]  }
0x1095   :  { %v14206_v2 = vpop.f32.mrb[210].mxu1 }
0x1096   :  { %v14209_v58 = vmax.f32 %v14204_v9, 0.0  ;;  %v19554_v35 = vpop.f32.mrb[211].mxu1  ;;  %v20797_v2 = vld [vmem:[%s25672_s19 + $0x148] sm:$0xff]  }
0x1098   :  { %v14210_v34 = vpack.c.bf16 %v14209_v58, %v14209_v58 }
0x109a   :  { %v14216_v27 = vsel %vm13013_vm3, %v14210_v34, 0 }
0x109b   :  { %19556 = vmatpush3.bf16.msra.mxu0 %v14216_v27  ;;  %19580 = vmatpush3.bf16.msra.mxu1 %v14216_v27 }
0x109c   :  { %19561 = vmatprep.subr.bf16.mxu0 %v20849_v25  ;;  %19591 = vmatprep.subr.bf16.mxu1 %v20849_v25 }
0x109e   :  { %19558 = vmatmul.mubr.msk.bf16.vlgmr.msra.gmra.mrb[196].mxu0 %vm13009_vm4, %v14211_v40  ;;  %19582 = vmatmul.mubr.msk.bf16.vlgmr.msra.gmra.mrb[212].mxu1 %vm13009_vm4, %v16985_v60  ;;  %v20798_v40 = vld [vmem:[%s25672_s19 + $0x108] sm:$0xff]   ;;  %v20801_v60 = vld [vmem:[%s25672_s19 + $0x150] sm:$0xff]  }
0x109f   :  { %19562 = vmatpush3.bf16.msra.mxu0 %v14216_v27  ;;  %19592 = vmatpush3.bf16.msra.mxu1 %v14216_v27 }
0x10a0   :  { %19563 = vmatprep.mubr.msk.bf16.mxu0 %vm20850_vm1, %v20849_v25  ;;  %19567 = vmatprep.subr.bf16.mxu0 %v20849_v25 }
0x10a1   :  { %19593 = vmatprep.mubr.msk.bf16.mxu1 %vm20850_vm1, %v20849_v25  ;;  %19603 = vmatprep.subr.bf16.mxu1 %v20849_v25 }
0x10a6   :  { %19564 = vmatmul.mubr.msk.bf16.vlgmr.msra.gmra.mrb[200].mxu0 %vm13009_vm4, %v16979_v8  ;;  %19594 = vmatmul.mubr.msk.bf16.vlgmr.msra.gmra.mrb[216].mxu1 %vm13009_vm4, %v16989_v3 }
0x10a7   :  { %19568 = vmatpush3.bf16.msra.mxu0 %v14216_v27  ;;  %19604 = vmatpush3.bf16.msra.mxu1 %v14216_v27 }
0x10a8   :  { %19569 = vmatprep.mubr.msk.bf16.mxu0 %vm20850_vm1, %v20849_v25  ;;  %19573 = vmatprep.subr.bf16.mxu0 %v20849_v25 }
0x10a9   :  { %19605 = vmatprep.mubr.msk.bf16.mxu1 %vm20850_vm1, %v20849_v25  ;;  %18248 = vmatprep.subr.bf16.mxu1 %v20787_v38  ;;  %v20823_v38 = vld [vmem:[%s25672_s19 + $0x1c8] sm:$0xff]  }
0x10ae   :  { %19570 = vmatmul.mubr.msk.bf16.vlgmr.msra.gmra.mrb[204].mxu0 %vm13009_vm4, %v16981_v32  ;;  %19606 = vmatmul.mubr.msk.bf16.vlgmr.msra.gmra.mrb[220].mxu1 %vm13009_vm4, %v16993_v11  ;;  %v20802_v32 = vld [vmem:[%s25672_s19 + $0x110] sm:$0xff]  }
0x10af   :  { %19574 = vmatpush3.bf16.msra.mxu0 %v14216_v27  ;;  %19575 = vmatprep.mubr.msk.bf16.mxu0 %vm20850_vm1, %v20849_v25 }
0x10b0   :  { %19585 = vmatprep.subr.bf16.mxu0 %v20849_v25  ;;  %18249 = vmatpush3.bf16.msra.mxu1 %v20789_v7  ;;  %v20814_v7 = vld [vmem:[%s25672_s19 + $0x128] sm:$0xff]  }
0x10b1   :  { %18250 = vmatprep.subr.bf16.mxu1 %v20791_v48  ;;  %v20817_v48 = vld [vmem:[%s25672_s19 + $0x170] sm:$0xff]  }
0x10b4   :  { %18251 = vmatpush3.bf16.msra.mxu1 %v20792_v18  ;;  %v20826_v18 = vld [vmem:[%s25672_s19 + $0x1d0] sm:$0xff]  }
0x10b5   :  { %18252 = vmatprep.subr.bf16.mxu1 %v20795_v29 }
0x10b6   :  { %19576 = vmatmul.mubr.msk.bf16.vlgmr.msra.gmra.mrb[208].mxu0 %vm13009_vm4, %v16983_v17 }
0x10b7   :  { %19586 = vmatpush3.bf16.msra.mxu0 %v14216_v27  ;;  %19587 = vmatprep.mubr.msk.bf16.mxu0 %vm20850_vm1, %v20849_v25 }
0x10b8   :  { %19597 = vmatprep.subr.bf16.mxu0 %v20849_v25  ;;  %18253 = vmatpush3.bf16.msra.mxu1 %v20796_v21 }
0x10b9   :  { %18254 = vmatprep.subr.bf16.mxu1 %v20799_v61 }
0x10bc   :  { %18255 = vmatpush3.bf16.msra.mxu1 %v20800_v59  ;;  %v20820_v59 = vld [vmem:[%s25672_s19 + $0x178] sm:$0xff]  }
0x10bd   :  { %18256 = vmatprep.subr.bf16.mxu1 %v20803_v47  ;;  %v20829_v47 = vld [vmem:[%s25672_s19 + $0x1d8] sm:$0xff]  }
0x10be   :  { %19588 = vmatmul.mubr.msk.bf16.vlgmr.msra.gmra.mrb[212].mxu0 %vm13009_vm4, %v16987_v10  ;;  %v20805_v10 = vld [vmem:[%s25672_s19 + $0x158] sm:$0xff]  }
0x10bf   :  { %19598 = vmatpush3.bf16.msra.mxu0 %v14216_v27  ;;  %19599 = vmatprep.mubr.msk.bf16.mxu0 %vm20850_vm1, %v20849_v25 }
0x10c0   :  { %18226 = vmatprep.subr.bf16.mxu0 %v20773_v37  ;;  %18257 = vmatpush3.bf16.msra.mxu1 %v20804_v44 }
0x10c1   :  { %18258 = vmatprep.subr.bf16.mxu1 %v20807_v5 }
0x10c4   :  { %18259 = vmatpush3.bf16.msra.mxu1 %v20808_v1  ;;  %v20822_v1 = vld [vmem:[%s25672_s19 + $0x138] sm:$0xff]  }
0x10c5   :  { %18260 = vmatprep.subr.bf16.mxu1 %v20811_v13  ;;  %v20830_v13 = vld [vmem:[%s25672_s19 + $0x198] sm:$0xff]  }
0x10c6   :  { %19600 = vmatmul.mubr.msk.bf16.vlgmr.msra.gmra.mrb[216].mxu0 %vm13009_vm4, %v16991_v36 }
0x10c7   :  { %18227 = vmatpush3.bf16.msra.mxu0 %v20774_v42 }
0x10c8   :  { %18228 = vmatprep.subr.bf16.mxu0 %v20775_v19  ;;  %18261 = vmatpush3.bf16.msra.mxu1 %v20812_v12  ;;  %v20832_v12 = vld [vmem:[%s25672_s19 + $0x1e0] sm:$0xff]  }
0x10c9   :  { %18262 = vmatprep.subr.bf16.mxu1 %v20815_v50 }
0x10cb   :  { %18229 = vmatpush3.bf16.msra.mxu0 %v20776_v54  ;;  %v20806_v54 = vld [vmem:[%s25672_s19 + $0x118] sm:$0xff]  }
0x10cc   :  { %18230 = vmatprep.subr.bf16.mxu0 %v20777_v55  ;;  %18263 = vmatpush3.bf16.msra.mxu1 %v20816_v63  ;;  %v20809_v55 = vld [vmem:[%s25672_s19 + $0x160] sm:$0xff]  }
0x10cd   :  { %18292 = vmatprep.subr.bf16.mxu1 %v20819_v20  ;;  %v20825_v20 = vld [vmem:[%s25672_s19 + $0x200] sm:$0xff]  }
0x10cf   :  { %18231 = vmatpush3.bf16.msra.mxu0 %v20778_v45 }
0x10d0   :  { %18232 = vmatprep.subr.bf16.mxu0 %v20779_v16 }
0x10d3   :  { %18233 = vmatpush3.bf16.msra.mxu0 %v20780_v31  ;;  %v20810_v31 = vld [vmem:[%s25672_s19 + $0x120] sm:$0xff]  }
0x10d4   :  { %18234 = vmatprep.subr.bf16.mxu0 %v20781_v26 }
0x10d7   :  { %18235 = vmatpush3.bf16.msra.mxu0 %v20782_v49 }
0x10d8   :  { %18236 = vmatprep.subr.bf16.mxu0 %v20783_v28  ;;  %v20821_v28 = vld [vmem:[%s25672_s19 + $0x180] sm:$0xff]  }
0x10db   :  { %18237 = vmatpush3.bf16.msra.mxu0 %v20784_v22  ;;  %v20813_v22 = vld [vmem:[%s25672_s19 + $0x168] sm:$0xff]  }
0x10dc   :  { %18238 = vmatprep.subr.bf16.mxu0 %v20785_v4 }
0x10df   :  { %18239 = vmatpush3.bf16.msra.mxu0 %v20786_v51 }
0x10e0   :  { %18240 = vmatprep.subr.bf16.mxu0 %v20788_v52  ;;  %v20824_v52 = vld [vmem:[%s25672_s19 + $0x188] sm:$0xff]  }
0x10e3   :  { %18241 = vmatpush3.bf16.msra.mxu0 %v20790_v24  ;;  %v20818_v24 = vld [vmem:[%s25672_s19 + $0x130] sm:$0xff]  }
0x10e4   :  { %18270 = vmatprep.subr.bf16.mxu0 %v20793_v41  ;;  %v20827_v41 = vld [vmem:[%s25672_s19 + $0x190] sm:$0xff]  }
0x1171   :  { %v14252_v62 = vpop.f32.mrb[196].mxu0  ;;  %v25513_v6 = vpop.f32.mrb[212].mxu1 }
0x1172   :  { %v19559_v43 = vpop.f32.mrb[197].mxu0  ;;  %v19583_v0 = vpop.f32.mrb[213].mxu1  ;;  %v14258_v30 = vpack.c.bf16 %v14252_v62, %v14252_v62  ;;  %v14442_v50 = vpack.c.bf16 %v25513_v6, %v25513_v6  ;;  %v20833_v62 = vld [vmem:[%s25672_s19 + $0x1a0] sm:$0xff]   ;;  %v20835_v6 = vld [vmem:[%s25672_s19 + $0x1e8] sm:$0xff]  }
0x1173   :  { %v14255_v33 = vpop.f32.mrb[198].mxu0  ;;  %v14439_v56 = vpop.f32.mrb[214].mxu1 }
0x1174   :  { %v19560_v15 = vpop.f32.mrb[199].mxu0  ;;  %v19584_v23 = vpop.f32.mrb[215].mxu1 }
0x1175   :  { %v20828_v15 = vld [vmem:[%s25672_s19 + $0x208] sm:$0xff]  }
0x1176   :  { %v20836_v23 = vld [vmem:[%s25672_s19 + $0x1a8] sm:$0xff]  }
0x1179   :  { %v14298_v57 = vpop.f32.mrb[200].mxu0  ;;  %v25515_v39 = vpop.f32.mrb[216].mxu1 }
0x117a   :  { %v14304_v53 = vpack.c.bf16 %v14298_v57, %v14298_v57  ;;  %v19565_v46 = vpop.f32.mrb[201].mxu0  ;;  %v19595_v9 = vpop.f32.mrb[217].mxu1  ;;  %v20838_v57 = vld [vmem:[%s25672_s19 + $0x1f0] sm:$0xff]  }
0x117b   :  { %v14301_v58 = vpop.f32.mrb[202].mxu0  ;;  %v14531_v35 = vpop.f32.mrb[218].mxu1  ;;  %v20841_v46 = vld [vmem:[%s25672_s19 + $0x1f8] sm:$0xff]  }
0x117c   :  { %15242 = vmatprep.mubr.bf16.mxu0 %v14304_v53  ;;  %v19566_v34 = vpop.f32.mrb[203].mxu0  ;;  %v19596_v27 = vpop.f32.mrb[219].mxu1  ;;  %v20831_v53 = vld [vmem:[%s25672_s19 + $0x210] sm:$0xff]   ;;  %v20834_v9 = vld [vmem:[%s25672_s19 + $0x218] sm:$0xff]   ;;  %v20837_v58 = vld [vmem:[%s25672_s19 + $0x220] sm:$0xff]  }
0x117d   :  { %15243 = vmatmul.mubr.bf16.vlgmr.msra.gmra.mrb[220].mxu0 %v14258_v30  ;;  %v20842_v30 = vld [vmem:[%s25672_s19 + $0x1b8] sm:$0xff]   ;;  %v20840_v35 = vld [vmem:[%s25672_s19 + $0x228] sm:$0xff]  }
0x117e   :  { %18271 = vmatpush3.bf16.msra.mxu0 %v20794_v14  ;;  %v20839_v14 = vld [vmem:[%s25672_s19 + $0x1b0] sm:$0xff]   ;;  %v20844_v34 = vld [vmem:[%s25672_s19 + $0x238] sm:$0xff]  }
0x117f   :  { %18272 = vmatprep.subr.bf16.mxu0 %v20797_v2  ;;  %v14534_v2 = vpack.c.bf16 %v25515_v39, %v25515_v39  ;;  %v20843_v39 = vld [vmem:[%s25672_s19 + $0x230] sm:$0xff]  }
0x1181   :  { %v14344_v8 = vpop.f32.mrb[204].mxu0  ;;  %v25529_v3 = vpop.f32.mrb[220].mxu1 }
0x1182   :  { %18273 = vmatpush3.bf16.msra.mxu0 %v20798_v40  ;;  %v19571_v11 = vpop.f32.mrb[205].mxu0  ;;  %v19607_v17 = vpop.f32.mrb[221].mxu1  ;;  %v14350_v45 = vpack.c.bf16 %v14344_v8, %v14344_v8  ;;  %v14626_v27 = vpack.c.bf16 %v25529_v3, %v25529_v3 }
0x1183   :  { %18274 = vmatprep.subr.bf16.mxu0 %v20801_v60  ;;  %v14347_v37 = vpop.f32.mrb[206].mxu0  ;;  %v14623_v36 = vpop.f32.mrb[222].mxu1  ;;  %v16995_v17 = vld [vmem:[%s25675_s20] ss:$0 sm:$0xff] }
0x1184   :  { %v19572_v42 = vpop.f32.mrb[207].mxu0  ;;  %v19608_v19 = vpop.f32.mrb[223].mxu1 }
0x1186   :  { %18275 = vmatpush3.bf16.msra.mxu0 %v20802_v32 }
0x1187   :  { %18276 = vmatprep.subr.bf16.mxu0 %v20805_v10 }
0x1189   :  { %v14390_v16 = vpop.f32.mrb[208].mxu0 }
0x118a   :  { %18277 = vmatpush3.bf16.msra.mxu0 %v20806_v54  ;;  %v14396_v26 = vpack.c.bf16 %v14390_v16, %v14390_v16  ;;  %v19577_v49 = vpop.f32.mrb[209].mxu0 }
0x118b   :  { %18278 = vmatprep.subr.bf16.mxu0 %v20809_v55  ;;  %v14393_v4 = vpop.f32.mrb[210].mxu0 }
0x118c   :  { %15282 = vmatprep.mubr.bf16.mxu1 %v14396_v26  ;;  %v19578_v51 = vpop.f32.mrb[211].mxu0 }
0x118d   :  { %15283 = vmatmul.mubr.bf16.vlgmr.msra.gmra.mrb[224].mxu1 %v14350_v45 }
0x118e   :  { %18279 = vmatpush3.bf16.msra.mxu0 %v20810_v31  ;;  %18293 = vmatpush3.bf16.msra.mxu1 %v20821_v28 }
0x118f   :  { %18280 = vmatprep.subr.bf16.mxu0 %v20813_v22  ;;  %18294 = vmatprep.subr.bf16.mxu1 %v20823_v38 }
0x1191   :  { %v14482_v29 = vpop.f32.mrb[212].mxu0 }
0x1192   :  { %18281 = vmatpush3.bf16.msra.mxu0 %v20814_v7  ;;  %v14488_v21 = vpack.c.bf16 %v14482_v29, %v14482_v29  ;;  %18295 = vmatpush3.bf16.msra.mxu1 %v20824_v52  ;;  %v19589_v61 = vpop.f32.mrb[213].mxu0 }
0x1193   :  { %18282 = vmatprep.subr.bf16.mxu0 %v20817_v48  ;;  %18296 = vmatprep.subr.bf16.mxu1 %v20826_v18  ;;  %v14485_v44 = vpop.f32.mrb[214].mxu0 }
0x1194   :  { %15322 = vmatprep.mubr.bf16.mxu0 %v14488_v21  ;;  %v19590_v5 = vpop.f32.mrb[215].mxu0 }
0x1196   :  { %18283 = vmatpush3.bf16.msra.mxu0 %v20818_v24  ;;  %18297 = vmatpush3.bf16.msra.mxu1 %v20827_v41 }
0x1197   :  { %18284 = vmatprep.subr.bf16.mxu0 %v20820_v59  ;;  %18298 = vmatprep.subr.bf16.mxu1 %v20829_v47 }
0x1199   :  { %v14574_v63 = vpop.f32.mrb[216].mxu0 }
0x119a   :  { %18285 = vmatpush3.bf16.msra.mxu0 %v20822_v1  ;;  %18299 = vmatpush3.bf16.msra.mxu1 %v20830_v13  ;;  %v14580_v43 = vpack.c.bf16 %v14574_v63, %v14574_v63  ;;  %v19601_v0 = vpop.f32.mrb[217].mxu0 }
0x119b   :  { %19609 = vmatprep.subr.bf16.mxu0 %v20849_v25  ;;  %18300 = vmatprep.subr.bf16.mxu1 %v20832_v12  ;;  %v14577_v33 = vpop.f32.mrb[218].mxu0 }
0x119c   :  { %15362 = vmatprep.mubr.bf16.mxu1 %v14580_v43  ;;  %v19602_v56 = vpop.f32.mrb[219].mxu0 }
0x119d   :  { %15323 = vmatmul.mubr.bf16.vlgmr.msra.gmra.mrb[224].mxu0 %v14442_v50 }
0x119e   :  { %19610 = vmatpush3.bf16.msra.mxu0 %v20825_v20  ;;  %18301 = vmatpush3.bf16.msra.mxu1 %v20833_v62 }
0x119f   :  { %19611 = vmatprep.subr.bf16.mxu0 %v20849_v25  ;;  %18302 = vmatprep.subr.bf16.mxu1 %v20835_v6 }
0x11a0   :  { %19625 = vmatprep.mubr.msk.bf16.mxu0 %vm20850_vm1, %v20849_v25 }
0x11a2   :  { %19612 = vmatpush3.bf16.msra.mxu0 %v20828_v15  ;;  %18303 = vmatpush3.bf16.msra.mxu1 %v20836_v23 }
0x11a3   :  { %19613 = vmatprep.subr.bf16.mxu0 %v20849_v25  ;;  %18304 = vmatprep.subr.bf16.mxu1 %v20838_v57 }
0x11a6   :  { %19614 = vmatpush3.bf16.msra.mxu0 %v20831_v53  ;;  %18305 = vmatpush3.bf16.msra.mxu1 %v20839_v14 }
0x11a7   :  { %19615 = vmatprep.subr.bf16.mxu0 %v20849_v25  ;;  %18306 = vmatprep.subr.bf16.mxu1 %v20841_v46 }
0x11aa   :  { %19616 = vmatpush3.bf16.msra.mxu0 %v20834_v9  ;;  %18307 = vmatpush3.bf16.msra.mxu1 %v20842_v30 }
0x11ab   :  { %19617 = vmatprep.subr.bf16.mxu0 %v20849_v25 }
0x11ad   :  { %15363 = vmatmul.mubr.bf16.vlgmr.msra.gmra.mrb[228].mxu1 %v14534_v2 }
0x11ae   :  { %19618 = vmatpush3.bf16.msra.mxu0 %v20837_v58 }
0x11af   :  { %19619 = vmatprep.subr.bf16.mxu0 %v20849_v25 }
0x11b2   :  { %19620 = vmatpush3.bf16.msra.mxu0 %v20840_v35 }
0x11b3   :  { %19621 = vmatprep.subr.bf16.mxu0 %v20849_v25 }
0x11b6   :  { %19622 = vmatpush3.bf16.msra.mxu0 %v20843_v39 }
0x11b7   :  { %19623 = vmatprep.subr.bf16.mxu0 %v20849_v25 }
0x11ba   :  { %19624 = vmatpush3.bf16.msra.mxu0 %v20844_v34 }
0x11bd   :  { %19626 = vmatmul.mubr.bf16.vlgmr.msra.gmra.mrb[228].mxu0 %v14626_v27 }
0x1250   :  { %v18242_v40 = vpop.f32.mrb[220].mxu0 }
0x1251   :  { %v18243_v60 = vpop.f32.mrb[221].mxu0 }
0x1252   :  { %v18244_v8 = vadd.f32 %v18243_v60, %v18242_v40  ;;  %v18245_v32 = vpop.f32.mrb[222].mxu0 }
0x1253   :  { %v18246_v11 = vpop.f32.mrb[223].mxu0 }
0x1254   :  { %v15245_v36 = vadd.f32 %v18244_v8, %v16995_v17 }
0x1260   :  { %v18264_v10 = vpop.f32.mrb[224].mxu1 }
0x1261   :  { %v18265_v37 = vpop.f32.mrb[225].mxu1 }
0x1262   :  { %v18266_v42 = vadd.f32 %v18265_v37, %v18264_v10  ;;  %v18267_v19 = vpop.f32.mrb[226].mxu1 }
0x1263   :  { %v18268_v25 = vpop.f32.mrb[227].mxu1 }
0x1264   :  { %v15285_v54 = vadd.f32 %v18266_v42, %v15245_v36 }
0x1270   :  { %v18286_v55 = vpop.f32.mrb[224].mxu0 }
0x1271   :  { %v18287_v3 = vpop.f32.mrb[225].mxu0 }
0x1272   :  { %v18288_v45 = vadd.f32 %v18287_v3, %v18286_v55  ;;  %v18289_v16 = vpop.f32.mrb[226].mxu0 }
0x1273   :  { %v18290_v31 = vpop.f32.mrb[227].mxu0 }
0x1274   :  { %v15325_v26 = vadd.f32 %v18288_v45, %v15285_v54 }
0x1280   :  { %v18308_v49 = vpop.f32.mrb[228].mxu1 }
0x1281   :  { %v18309_v28 = vpop.f32.mrb[229].mxu1 }
0x1282   :  { %v18310_v22 = vadd.f32 %v18309_v28, %v18308_v49  ;;  %v18311_v4 = vpop.f32.mrb[230].mxu1 }
0x1283   :  { %v18312_v38 = vpop.f32.mrb[231].mxu1 }
0x1284   :  { %v15365_v51 = vadd.f32 %v18310_v22, %v15325_v26 }
0x1290   :  { %v15404_v7 = vpop.f32.mrb[228].mxu0 }
0x1291   :  { %v15405_v52 = vadd.f32 %v15404_v7, %v15365_v51  ;;  %v19627_v48 = vpop.f32.mrb[229].mxu0 }
0x1292   :  { %v15407_v18 = vpop.f32.mrb[230].mxu0 }
0x1293   :  { %v15410_v29 = vmax.f32 %v15405_v52, 0.0  ;;  %v19628_v24 = vpop.f32.mrb[231].mxu0 }
0x1295   :  { %15411 = vst [vmem:[%s25676_s21] sm:$0xff] %v15410_v29 }

</bundles_post_ra>
